<compile_context>
chip_gen: v7x
topology: tpu7x:2x2x1
jax: 0.10.0
libtpu: 0.0.40
codegen_flags: <defaults>
</compile_context>

<pallas_src>
import jax
import jax.numpy as jnp
from jax import lax
from jax.experimental import pallas as pl
from jax.experimental.pallas import tpu as pltpu

# ---- shapes fixed by the PyTorch module ----
H = 21                              # EEG electrodes (conv "height")
W = 170                             # raw time samples
WCROP = 169                         # x[:, :, :, range(169)]
K1, PAD1 = 100, 50                  # Conv2d(1, 8, (1,100), padding=(0,50))
W1OUT = WCROP + 2 * PAD1 - K1 + 1   # 170
C1, C2 = 8, 16
POOL1 = 4
W3IN = 41                           # x[:, :, :, range(41)]
K3, PAD3 = 16, 8                    # Conv2d(16,16,(1,16),padding=(0,8),groups=16)
W3PAD = W3IN + 2 * PAD3             # 57
W3OUT = W3PAD - K3 + 1              # 42
POOL2 = 8
WPOOL2 = W3OUT // POOL2             # 5
FEAT = C2 * WPOOL2                  # 80
NCLS = 5

SB = 8       # inner sample block of the spatial-conv matmul (S-independent)
S_MAX = 64   # samples per grid step (2S = 128 rows per group matmul); kept at 64
             # so the (2S,170) f32 group intermediate stays ~32 vregs (low spill).


def _elu(x):
    # ELU(alpha=1): x if x > 0 else exp(x) - 1
    return jnp.where(x > 0, x, jnp.exp(jnp.minimum(x, 0.0)) - 1.0)


# ----------------------------------------------------------------------------
# Pallas kernel: full EEGNet forward (conv1..fc) for S samples per grid step.
# Row layout inside the kernel is channel-major: row = channel * S + sample.
# ----------------------------------------------------------------------------
def make_eegnet_kernel(s):
    n_inner = s // SB

    def kernel(x_ref, w2bd_ref, t1_ref, m3_ref, g_ref, bfc_ref,
               shift2_ref, bn3b_ref, w4_ref, o_ref, zscr_ref, vscr_ref):
        # (1) grouped spatial conv (21,1), BN2 scale folded: S-independent
        #     8-sample block-diagonal bf16 matmul per inner block, scattered
        #     channel-major into a small f32 scratch (no S^2 kron constant).
        for blk in range(n_inner):
            xb = x_ref[blk * SB * H:(blk + 1) * SB * H, :]          # (168,169) bf16
            zb = jnp.dot(w2bd_ref[...], xb,
                         preferred_element_type=jnp.float32)        # (128,169) f32
            for o in range(C2):
                zscr_ref[o * s + blk * SB:o * s + (blk + 1) * SB, :] = \
                    zb[o * SB:(o + 1) * SB, :]

        # (2)-(3) per temporal group g: Toeplitz conv1 (BN1 scale folded) on the
        #     group's 2 channels (contiguous 2S rows), + folded BN shifts + ELU,
        #     then AvgPool(4)+crop(41)+depthwise conv3_1 as one per-channel matmul.
        for gi in range(C1):
            zg = zscr_ref[2 * gi * s:(2 * gi + 2) * s, :]            # (2s,169) f32
            yg = jnp.dot(zg.astype(jnp.bfloat16), t1_ref[gi],
                         preferred_element_type=jnp.float32)         # (2s,170) f32
            for c in range(2):
                och = 2 * gi + c
                y = _elu(yg[c * s:(c + 1) * s, :] + shift2_ref[och])  # (s,170)
                vscr_ref[och] = jnp.dot(y.astype(jnp.bfloat16), m3_ref[och],
                                        preferred_element_type=jnp.float32)

        # (4) pointwise conv3_2 (BN3 scale folded) as a VPU MAC over 16 channels
        #     with SMEM scalar weights, + BN3 shift + ELU, then the folded
        #     AvgPool(8)+Flatten+Linear matmul accumulated into the logits.
        acc = jnp.zeros((s, NCLS), jnp.float32) + bfc_ref[...]
        for o in range(C2):
            yo = vscr_ref[0] * w4_ref[o, 0]
            for c in range(1, C2):
                yo = yo + vscr_ref[c] * w4_ref[o, c]                  # (s,42) f32
            yo = _elu(yo + bn3b_ref[o])
            acc = acc + jnp.dot(yo.astype(jnp.bfloat16), g_ref[o],
                                preferred_element_type=jnp.float32)   # (s,5)
        o_ref[...] = acc

    return kernel


# ----------------------------------------------------------------------------
# pallas_call wrapper
# ----------------------------------------------------------------------------
def _choose_s(n):
    # Keep >=2 grid steps whenever n > SB (v7x dual-TC "parallel" split) and keep
    # batch-padding waste small for tiny batches; always a multiple of SB.
    s = ((n + 1) // 2 + SB - 1) // SB * SB
    return max(SB, min(S_MAX, s))


def eegnet_pallas(xrows, consts, s, nblk):
    kernel = make_eegnet_kernel(s)

    def cspec(a):  # whole-array constant block (constant index -> no re-DMA)
        return pl.BlockSpec(a.shape, lambda i: (0,) * a.ndim)

    smem = pl.BlockSpec(memory_space=pltpu.MemorySpace.SMEM)

    return pl.pallas_call(
        kernel,
        out_shape=jax.ShapeDtypeStruct((nblk * s, NCLS), jnp.float32),
        grid=(nblk,),
        in_specs=[
            pl.BlockSpec((s * H, WCROP), lambda i: (i, 0)),   # raw input rows
            cspec(consts['W2BD8']), cspec(consts['T1']), cspec(consts['M3']),
            cspec(consts['G']), cspec(consts['BFC']),
            smem, smem, smem,                                 # SHIFT2, BN3B, W4S
        ],
        out_specs=pl.BlockSpec((s, NCLS), lambda i: (i, 0)),
        scratch_shapes=[pltpu.VMEM((C2 * s, WCROP), jnp.float32),   # channel-major z
                        pltpu.VMEM((C2, s, W3OUT), jnp.float32)],   # conv3_1 outputs
        compiler_params=pltpu.CompilerParams(
            dimension_semantics=("parallel",)),               # megacore-able
    )(xrows, consts['W2BD8'], consts['T1'], consts['M3'], consts['G'],
      consts['BFC'], consts['SHIFT2'], consts['BN3B'], consts['W4S'])


def forward(x, consts):
    n = x.shape[0]
    s = _choose_s(n)
    npad = -(-n // s) * s
    nblk = npad // s
    # torch: reshape to (n,1,21,170) then crop to 169 columns; no host zero-pad,
    # input stored bf16 (the conv1 Toeplitz only keeps the 169 valid rows).
    xc = x.reshape(n, H, W)[:, :, :WCROP].astype(jnp.bfloat16)
    xp = jnp.pad(xc, ((0, npad - n), (0, 0), (0, 0)))
    xrows = xp.reshape(npad * H, WCROP)                       # rows = sample*21 + h
    out = eegnet_pallas(xrows, consts, s, nblk)               # (npad, 5) logits
    return out[:n]


# ----------------------------------------------------------------------------
# Parameters (deterministic, synthetic) and folded-constant construction
# ----------------------------------------------------------------------------
def init_params(key):
    ks = jax.random.split(key, 9)
    p = {}
    p['w1'] = 0.05 * jax.random.normal(ks[0], (C1, K1), jnp.float32)
    p['w2'] = 0.20 * jax.random.normal(ks[1], (C2, H), jnp.float32)
    p['w3'] = 0.25 * jax.random.normal(ks[2], (C2, K3), jnp.float32)
    p['w4'] = 0.25 * jax.random.normal(ks[3], (C2, C2), jnp.float32)
    p['wfc'] = 0.10 * jax.random.normal(ks[4], (NCLS, FEAT), jnp.float32)
    p['bfc'] = 0.10 * jax.random.normal(ks[5], (NCLS,), jnp.float32)

    def bn(k, c):
        k1, k2, k3, k4 = jax.random.split(k, 4)
        gamma = 1.0 + 0.1 * jax.random.normal(k1, (c,), jnp.float32)
        beta = 0.1 * jax.random.normal(k2, (c,), jnp.float32)
        mean = 0.1 * jax.random.normal(k3, (c,), jnp.float32)
        var = 1.0 + 0.2 * jax.random.uniform(k4, (c,), jnp.float32)
        scale = gamma / jnp.sqrt(var + 1e-5)              # eval-mode BN affine
        shift = beta - mean * scale
        return scale, shift

    p['bn1s'], p['bn1b'] = bn(ks[6], C1)
    p['bn2s'], p['bn2b'] = bn(ks[7], C2)
    p['bn3s'], p['bn3b'] = bn(ks[8], C2)
    return p


def build_kernel_consts(p):
    f32, bf16 = jnp.float32, jnp.bfloat16

    # conv1 Toeplitz per group, BN1 scale folded, only the 169 valid (non-pad)
    # input positions kept: T1[g, tau, t] = w1s[g, tau+50-t]  (0 <= tau+50-t < 100)
    w1s = p['w1'] * p['bn1s'][:, None]                                   # (8,100)
    tau = jnp.arange(WCROP)[:, None]
    tt = jnp.arange(W1OUT)[None, :]
    k = tau + PAD1 - tt                                                  # (169,170)
    T1 = jnp.where((k >= 0) & (k < K1),
                   w1s[:, jnp.clip(k, 0, K1 - 1)], 0.0)                  # (8,169,170)

    # grouped spatial conv (21,1), BN2 scale folded, block-diag over a fixed
    # SB=8 sample block with channel-major output rows (S-independent constant):
    # W2BD8[o*8+s, s*21+h] = w2[o,h]*bn2s[o]
    w2s = p['w2'] * p['bn2s'][:, None]                                   # (16,21)
    eye_sb = jnp.eye(SB, dtype=f32)
    W2BD8 = (w2s[:, None, None, :] * eye_sb[None, :, :, None]
             ).reshape(C2 * SB, SB * H)                                  # (128,168)

    # per-channel shift: BN1 bias pushed through conv2, then BN2 affine
    grp = jnp.arange(C2) // 2
    SHIFT2 = p['bn2b'] + p['bn2s'] * p['bn1b'][grp] * jnp.sum(p['w2'], axis=1)

    # AvgPool(1,4) + crop(41) + conv3_1 zero-pad(8) as a (170,57) matrix, folded
    # with the depthwise conv3_1 Toeplitz into one per-channel (170,42) matrix.
    P4P = jnp.zeros((W1OUT, W3PAD), f32)
    idx = jnp.arange(W3IN * POOL1)
    P4P = P4P.at[idx, PAD3 + idx // POOL1].set(1.0 / POOL1)              # (170,57)
    v = jnp.arange(W3PAD)[:, None]
    t3 = jnp.arange(W3OUT)[None, :]
    k3 = v - t3
    T3 = jnp.where((k3 >= 0) & (k3 < K3),
                   p['w3'][:, jnp.clip(k3, 0, K3 - 1)], 0.0)             # (16,57,42)
    M3 = jnp.einsum('uv,cvt->cut', P4P, T3)                              # (16,170,42)

    # pointwise conv3_2 with BN3 scale folded (SMEM scalars) + BN3 shift
    W4S = p['w4'] * p['bn3s'][:, None]                                   # (16,16)
    BN3B = p['bn3b']                                                     # (16,)

    # AvgPool(1,8) + Flatten + Linear(80,5) folded into per-channel (42,5) blocks
    P8 = jnp.zeros((W3OUT, WPOOL2), f32)
    idx8 = jnp.arange(WPOOL2 * POOL2)
    P8 = P8.at[idx8, idx8 // POOL2].set(1.0 / POOL2)                     # (42,5)
    wfc_c = p['wfc'].reshape(NCLS, C2, WPOOL2)                           # (5,16,5)
    G = jnp.einsum('tw,kcw->ctk', P8, wfc_c)                             # (16,42,5)
    BFC = p['bfc'].reshape(1, NCLS)

    return dict(W2BD8=W2BD8.astype(bf16), T1=T1.astype(bf16),
                M3=M3.astype(bf16), G=G.astype(bf16), BFC=BFC,
                SHIFT2=SHIFT2, BN3B=BN3B, W4S=W4S)


# ----------------------------------------------------------------------------
# Pure-JAX reference (for correctness check)
# ----------------------------------------------------------------------------
def ref_forward(x, p):
    hi = lax.Precision.HIGHEST
    dn = ('NCHW', 'OIHW', 'NCHW')
    n = x.shape[0]
    y = x.reshape(n, 1, H, W)[:, :, :, :WCROP]
    y = lax.conv_general_dilated(y, p['w1'].reshape(C1, 1, 1, K1), (1, 1),
                                 ((0, 0), (PAD1, PAD1)),
                                 dimension_numbers=dn, precision=hi)
    y = y * p['bn1s'].reshape(1, C1, 1, 1) + p['bn1b'].reshape(1, C1, 1, 1)
    y = lax.conv_general_dilated(y, p['w2'].reshape(C2, 1, H, 1), (1, 1),
                                 ((0, 0), (0, 0)), dimension_numbers=dn,
                                 feature_group_count=C1, precision=hi)
    y = y * p['bn2s'].reshape(1, C2, 1, 1) + p['bn2b'].reshape(1, C2, 1, 1)
    y = _elu(y)
    y = y[..., :(W1OUT // POOL1) * POOL1]
    y = y.reshape(n, C2, 1, W1OUT // POOL1, POOL1).mean(-1)
    y = y[..., :W3IN]
    y = lax.conv_general_dilated(y, p['w3'].reshape(C2, 1, 1, K3), (1, 1),
                                 ((0, 0), (PAD3, PAD3)), dimension_numbers=dn,
                                 feature_group_count=C2, precision=hi)
    y = lax.conv_general_dilated(y, p['w4'].reshape(C2, C2, 1, 1), (1, 1),
                                 ((0, 0), (0, 0)), dimension_numbers=dn,
                                 precision=hi)
    y = y * p['bn3s'].reshape(1, C2, 1, 1) + p['bn3b'].reshape(1, C2, 1, 1)
    y = _elu(y)
    y = y[..., :WPOOL2 * POOL2].reshape(n, C2, 1, WPOOL2, POOL2).mean(-1)
    return y.reshape(n, FEAT) @ p['wfc'].T + p['bfc']


# ----------------------------------------------------------------------------
if __name__ == "__main__":
    key = jax.random.PRNGKey(0)
    kx, kp = jax.random.split(key)
    N = 2
    x = jax.random.normal(kx, (N, H, W), jnp.float32)

    params = init_params(kp)
    consts = build_kernel_consts(params)

    fwd = jax.jit(forward)
    out = jax.block_until_ready(fwd(x, consts))
    assert out.shape == (N, NCLS)

    ref = jax.block_until_ready(ref_forward(x, params))
    err = float(jnp.max(jnp.abs(out - ref)))
    if not bool(jnp.allclose(out, ref, atol=3e-2, rtol=3e-2)):
        raise AssertionError(f"Pallas output mismatch vs reference, max|err|={err}")

    print("KERNEL_OK")
</pallas_src>

<mosaic_0001>
module attributes {stable_mosaic.version = 11 : i64} {
  func.func @kernel(%arg0: i32, %arg1: memref<168x169xbf16, #tpu.memory_space<vmem>>, %arg2: memref<128x168xbf16, #tpu.memory_space<vmem>>, %arg3: memref<8x169x170xbf16, #tpu.memory_space<vmem>>, %arg4: memref<16x170x42xbf16, #tpu.memory_space<vmem>>, %arg5: memref<16x42x5xbf16, #tpu.memory_space<vmem>>, %arg6: memref<1x5xf32, #tpu.memory_space<vmem>>, %arg7: memref<16xf32, #tpu.memory_space<smem>>, %arg8: memref<16xf32, #tpu.memory_space<smem>>, %arg9: memref<16x16xf32, #tpu.memory_space<smem>>, %arg10: memref<8x5xf32, #tpu.memory_space<vmem>>, %arg11: memref<128x169xf32, #tpu.memory_space<vmem>>, %arg12: memref<16x8x42xf32, #tpu.memory_space<vmem>>) attributes {dimension_semantics = [#tpu.dimension_semantics<parallel>], iteration_bounds = array<i64: 1>, scalar_prefetch = 0 : i64, scratch_operands = 2 : i64, tpu.core_type = #tpu.core_type<tc>, window_params = [{transform_indices = @transform_0, window_bounds = array<i64: 168, 169>}, {pipeline_mode = #tpu.pipeline_mode<synchronous>, transform_indices = @transform_1, window_bounds = array<i64: 128, 168>}, {pipeline_mode = #tpu.pipeline_mode<synchronous>, transform_indices = @transform_2, window_bounds = array<i64: 8, 169, 170>}, {pipeline_mode = #tpu.pipeline_mode<synchronous>, transform_indices = @transform_3, window_bounds = array<i64: 16, 170, 42>}, {pipeline_mode = #tpu.pipeline_mode<synchronous>, transform_indices = @transform_4, window_bounds = array<i64: 16, 42, 5>}, {pipeline_mode = #tpu.pipeline_mode<synchronous>, transform_indices = @transform_5, window_bounds = array<i64: 1, 5>}, {transform_indices = @transform_6, window_bounds = array<i64: 16>}, {transform_indices = @transform_7, window_bounds = array<i64: 16>}, {transform_indices = @transform_8, window_bounds = array<i64: 16, 16>}, {transform_indices = @transform_9, window_bounds = array<i64: 8, 5>}]} {
    %c0 = arith.constant 0 : index
    %c0_0 = arith.constant 0 : index
    %0 = vector.load %arg1[%c0, %c0_0] : memref<168x169xbf16, #tpu.memory_space<vmem>>, vector<168x169xbf16>
    %c0_1 = arith.constant 0 : index
    %c0_2 = arith.constant 0 : index
    %1 = vector.load %arg2[%c0_1, %c0_2] : memref<128x168xbf16, #tpu.memory_space<vmem>>, vector<128x168xbf16>
    %cst = arith.constant dense<0.000000e+00> : vector<128x169xf32>
    %2 = tpu.matmul %1, %0, %cst {dimension_numbers = #tpu.dot_dimension_numbers<[1], [0], [0], [1], [0, 0, 1, 1], [], []>} : vector<128x168xbf16>, vector<168x169xbf16>, vector<128x169xf32> -> vector<128x169xf32>
    %3 = vector.extract_strided_slice %2 {offsets = [0, 0], sizes = [8, 169], strides = [1, 1]} : vector<128x169xf32> to vector<8x169xf32>
    %c0_3 = arith.constant 0 : index
    %c0_4 = arith.constant 0 : index
    %4 = vector.load %arg11[%c0_3, %c0_4] : memref<128x169xf32, #tpu.memory_space<vmem>>, vector<8x169xf32>
    tpu.vector_store %arg11[%c0_3, %c0_4], %3 {strides = array<i32>} : memref<128x169xf32, #tpu.memory_space<vmem>>, vector<8x169xf32>,
    %5 = vector.extract_strided_slice %2 {offsets = [8, 0], sizes = [8, 169], strides = [1, 1]} : vector<128x169xf32> to vector<8x169xf32>
    %c8 = arith.constant 8 : index
    %c0_5 = arith.constant 0 : index
    %6 = vector.load %arg11[%c8, %c0_5] : memref<128x169xf32, #tpu.memory_space<vmem>>, vector<8x169xf32>
    tpu.vector_store %arg11[%c8, %c0_5], %5 {strides = array<i32>} : memref<128x169xf32, #tpu.memory_space<vmem>>, vector<8x169xf32>,
    %7 = vector.extract_strided_slice %2 {offsets = [16, 0], sizes = [8, 169], strides = [1, 1]} : vector<128x169xf32> to vector<8x169xf32>
    %c16 = arith.constant 16 : index
    %c0_6 = arith.constant 0 : index
    %8 = vector.load %arg11[%c16, %c0_6] : memref<128x169xf32, #tpu.memory_space<vmem>>, vector<8x169xf32>
    tpu.vector_store %arg11[%c16, %c0_6], %7 {strides = array<i32>} : memref<128x169xf32, #tpu.memory_space<vmem>>, vector<8x169xf32>,
    %9 = vector.extract_strided_slice %2 {offsets = [24, 0], sizes = [8, 169], strides = [1, 1]} : vector<128x169xf32> to vector<8x169xf32>
    %c24 = arith.constant 24 : index
    %c0_7 = arith.constant 0 : index
    %10 = vector.load %arg11[%c24, %c0_7] : memref<128x169xf32, #tpu.memory_space<vmem>>, vector<8x169xf32>
    tpu.vector_store %arg11[%c24, %c0_7], %9 {strides = array<i32>} : memref<128x169xf32, #tpu.memory_space<vmem>>, vector<8x169xf32>,
    %11 = vector.extract_strided_slice %2 {offsets = [32, 0], sizes = [8, 169], strides = [1, 1]} : vector<128x169xf32> to vector<8x169xf32>
    %c32 = arith.constant 32 : index
    %c0_8 = arith.constant 0 : index
    %12 = vector.load %arg11[%c32, %c0_8] : memref<128x169xf32, #tpu.memory_space<vmem>>, vector<8x169xf32>
    tpu.vector_store %arg11[%c32, %c0_8], %11 {strides = array<i32>} : memref<128x169xf32, #tpu.memory_space<vmem>>, vector<8x169xf32>,
    %13 = vector.extract_strided_slice %2 {offsets = [40, 0], sizes = [8, 169], strides = [1, 1]} : vector<128x169xf32> to vector<8x169xf32>
    %c40 = arith.constant 40 : index
    %c0_9 = arith.constant 0 : index
    %14 = vector.load %arg11[%c40, %c0_9] : memref<128x169xf32, #tpu.memory_space<vmem>>, vector<8x169xf32>
    tpu.vector_store %arg11[%c40, %c0_9], %13 {strides = array<i32>} : memref<128x169xf32, #tpu.memory_space<vmem>>, vector<8x169xf32>,
    %15 = vector.extract_strided_slice %2 {offsets = [48, 0], sizes = [8, 169], strides = [1, 1]} : vector<128x169xf32> to vector<8x169xf32>
    %c48 = arith.constant 48 : index
    %c0_10 = arith.constant 0 : index
    %16 = vector.load %arg11[%c48, %c0_10] : memref<128x169xf32, #tpu.memory_space<vmem>>, vector<8x169xf32>
    tpu.vector_store %arg11[%c48, %c0_10], %15 {strides = array<i32>} : memref<128x169xf32, #tpu.memory_space<vmem>>, vector<8x169xf32>,
    %17 = vector.extract_strided_slice %2 {offsets = [56, 0], sizes = [8, 169], strides = [1, 1]} : vector<128x169xf32> to vector<8x169xf32>
    %c56 = arith.constant 56 : index
    %c0_11 = arith.constant 0 : index
    %18 = vector.load %arg11[%c56, %c0_11] : memref<128x169xf32, #tpu.memory_space<vmem>>, vector<8x169xf32>
    tpu.vector_store %arg11[%c56, %c0_11], %17 {strides = array<i32>} : memref<128x169xf32, #tpu.memory_space<vmem>>, vector<8x169xf32>,
    %19 = vector.extract_strided_slice %2 {offsets = [64, 0], sizes = [8, 169], strides = [1, 1]} : vector<128x169xf32> to vector<8x169xf32>
    %c64 = arith.constant 64 : index
    %c0_12 = arith.constant 0 : index
    %20 = vector.load %arg11[%c64, %c0_12] : memref<128x169xf32, #tpu.memory_space<vmem>>, vector<8x169xf32>
    tpu.vector_store %arg11[%c64, %c0_12], %19 {strides = array<i32>} : memref<128x169xf32, #tpu.memory_space<vmem>>, vector<8x169xf32>,
    %21 = vector.extract_strided_slice %2 {offsets = [72, 0], sizes = [8, 169], strides = [1, 1]} : vector<128x169xf32> to vector<8x169xf32>
    %c72 = arith.constant 72 : index
    %c0_13 = arith.constant 0 : index
    %22 = vector.load %arg11[%c72, %c0_13] : memref<128x169xf32, #tpu.memory_space<vmem>>, vector<8x169xf32>
    tpu.vector_store %arg11[%c72, %c0_13], %21 {strides = array<i32>} : memref<128x169xf32, #tpu.memory_space<vmem>>, vector<8x169xf32>,
    %23 = vector.extract_strided_slice %2 {offsets = [80, 0], sizes = [8, 169], strides = [1, 1]} : vector<128x169xf32> to vector<8x169xf32>
    %c80 = arith.constant 80 : index
    %c0_14 = arith.constant 0 : index
    %24 = vector.load %arg11[%c80, %c0_14] : memref<128x169xf32, #tpu.memory_space<vmem>>, vector<8x169xf32>
    tpu.vector_store %arg11[%c80, %c0_14], %23 {strides = array<i32>} : memref<128x169xf32, #tpu.memory_space<vmem>>, vector<8x169xf32>,
    %25 = vector.extract_strided_slice %2 {offsets = [88, 0], sizes = [8, 169], strides = [1, 1]} : vector<128x169xf32> to vector<8x169xf32>
    %c88 = arith.constant 88 : index
    %c0_15 = arith.constant 0 : index
    %26 = vector.load %arg11[%c88, %c0_15] : memref<128x169xf32, #tpu.memory_space<vmem>>, vector<8x169xf32>
    tpu.vector_store %arg11[%c88, %c0_15], %25 {strides = array<i32>} : memref<128x169xf32, #tpu.memory_space<vmem>>, vector<8x169xf32>,
    %27 = vector.extract_strided_slice %2 {offsets = [96, 0], sizes = [8, 169], strides = [1, 1]} : vector<128x169xf32> to vector<8x169xf32>
    %c96 = arith.constant 96 : index
    %c0_16 = arith.constant 0 : index
    %28 = vector.load %arg11[%c96, %c0_16] : memref<128x169xf32, #tpu.memory_space<vmem>>, vector<8x169xf32>
    tpu.vector_store %arg11[%c96, %c0_16], %27 {strides = array<i32>} : memref<128x169xf32, #tpu.memory_space<vmem>>, vector<8x169xf32>,
    %29 = vector.extract_strided_slice %2 {offsets = [104, 0], sizes = [8, 169], strides = [1, 1]} : vector<128x169xf32> to vector<8x169xf32>
    %c104 = arith.constant 104 : index
    %c0_17 = arith.constant 0 : index
    %30 = vector.load %arg11[%c104, %c0_17] : memref<128x169xf32, #tpu.memory_space<vmem>>, vector<8x169xf32>
    tpu.vector_store %arg11[%c104, %c0_17], %29 {strides = array<i32>} : memref<128x169xf32, #tpu.memory_space<vmem>>, vector<8x169xf32>,
    %31 = vector.extract_strided_slice %2 {offsets = [112, 0], sizes = [8, 169], strides = [1, 1]} : vector<128x169xf32> to vector<8x169xf32>
    %c112 = arith.constant 112 : index
    %c0_18 = arith.constant 0 : index
    %32 = vector.load %arg11[%c112, %c0_18] : memref<128x169xf32, #tpu.memory_space<vmem>>, vector<8x169xf32>
    tpu.vector_store %arg11[%c112, %c0_18], %31 {strides = array<i32>} : memref<128x169xf32, #tpu.memory_space<vmem>>, vector<8x169xf32>,
    %33 = vector.extract_strided_slice %2 {offsets = [120, 0], sizes = [8, 169], strides = [1, 1]} : vector<128x169xf32> to vector<8x169xf32>
    %c120 = arith.constant 120 : index
    %c0_19 = arith.constant 0 : index
    %34 = vector.load %arg11[%c120, %c0_19] : memref<128x169xf32, #tpu.memory_space<vmem>>, vector<8x169xf32>
    tpu.vector_store %arg11[%c120, %c0_19], %33 {strides = array<i32>} : memref<128x169xf32, #tpu.memory_space<vmem>>, vector<8x169xf32>,
    %c0_20 = arith.constant 0 : index
    %c0_21 = arith.constant 0 : index
    %35 = vector.load %arg11[%c0_20, %c0_21] : memref<128x169xf32, #tpu.memory_space<vmem>>, vector<16x169xf32>
    %36 = arith.truncf %35 : vector<16x169xf32> to vector<16x169xbf16>
    %c0_22 = arith.constant 0 : index
    %c0_23 = arith.constant 0 : index
    %c0_24 = arith.constant 0 : index
    %37 = vector.load %arg3[%c0_22, %c0_23, %c0_24] : memref<8x169x170xbf16, #tpu.memory_space<vmem>>, vector<1x169x170xbf16>
    %38 = vector.shape_cast %37 : vector<1x169x170xbf16> to vector<169x170xbf16>
    %cst_25 = arith.constant dense<0.000000e+00> : vector<16x170xf32>
    %39 = tpu.matmul %36, %38, %cst_25 {dimension_numbers = #tpu.dot_dimension_numbers<[1], [0], [0], [1], [0, 0, 1, 1], [], []>} : vector<16x169xbf16>, vector<169x170xbf16>, vector<16x170xf32> -> vector<16x170xf32>
    %40 = vector.extract_strided_slice %39 {offsets = [0, 0], sizes = [8, 170], strides = [1, 1]} : vector<16x170xf32> to vector<8x170xf32>
    %c0_26 = arith.constant 0 : index
    %41 = memref.load %arg7[%c0_26] : memref<16xf32, #tpu.memory_space<smem>>
    %42 = vector.broadcast %41 : f32 to vector<8x170xf32>
    %43 = arith.addf %40, %42 : vector<8x170xf32>
    %cst_27 = arith.constant 0.000000e+00 : f32
    %44 = vector.broadcast %cst_27 : f32 to vector<8x170xf32>
    %45 = arith.cmpf ogt, %43, %44 : vector<8x170xf32>
    %cst_28 = arith.constant 0.000000e+00 : f32
    %46 = vector.broadcast %cst_28 : f32 to vector<8x170xf32>
    %47 = arith.minimumf %43, %46 : vector<8x170xf32>
    %48 = math.exp %47 : vector<8x170xf32>
    %cst_29 = arith.constant 1.000000e+00 : f32
    %49 = vector.broadcast %cst_29 : f32 to vector<8x170xf32>
    %50 = arith.subf %48, %49 : vector<8x170xf32>
    %51 = arith.select %45, %43, %50 : vector<8x170xi1>, vector<8x170xf32>
    %52 = arith.truncf %51 : vector<8x170xf32> to vector<8x170xbf16>
    %c0_30 = arith.constant 0 : index
    %c0_31 = arith.constant 0 : index
    %c0_32 = arith.constant 0 : index
    %53 = vector.load %arg4[%c0_30, %c0_31, %c0_32] : memref<16x170x42xbf16, #tpu.memory_space<vmem>>, vector<1x170x42xbf16>
    %54 = vector.shape_cast %53 : vector<1x170x42xbf16> to vector<170x42xbf16>
    %cst_33 = arith.constant dense<0.000000e+00> : vector<8x42xf32>
    %55 = tpu.matmul %52, %54, %cst_33 {dimension_numbers = #tpu.dot_dimension_numbers<[1], [0], [0], [1], [0, 0, 1, 1], [], []>} : vector<8x170xbf16>, vector<170x42xbf16>, vector<8x42xf32> -> vector<8x42xf32>
    %c0_34 = arith.constant 0 : index
    %c0_35 = arith.constant 0 : index
    %c0_36 = arith.constant 0 : index
    %56 = vector.load %arg12[%c0_34, %c0_35, %c0_36] : memref<16x8x42xf32, #tpu.memory_space<vmem>>, vector<1x8x42xf32>
    %57 = vector.shape_cast %56 : vector<1x8x42xf32> to vector<8x42xf32>
    %58 = vector.shape_cast %55 : vector<8x42xf32> to vector<1x8x42xf32>
    tpu.vector_store %arg12[%c0_34, %c0_35, %c0_36], %58 {strides = array<i32>} : memref<16x8x42xf32, #tpu.memory_space<vmem>>, vector<1x8x42xf32>,
    %59 = vector.extract_strided_slice %39 {offsets = [8, 0], sizes = [8, 170], strides = [1, 1]} : vector<16x170xf32> to vector<8x170xf32>
    %c1 = arith.constant 1 : index
    %60 = memref.load %arg7[%c1] : memref<16xf32, #tpu.memory_space<smem>>
    %61 = vector.broadcast %60 : f32 to vector<8x170xf32>
    %62 = arith.addf %59, %61 : vector<8x170xf32>
    %cst_37 = arith.constant 0.000000e+00 : f32
    %63 = vector.broadcast %cst_37 : f32 to vector<8x170xf32>
    %64 = arith.cmpf ogt, %62, %63 : vector<8x170xf32>
    %cst_38 = arith.constant 0.000000e+00 : f32
    %65 = vector.broadcast %cst_38 : f32 to vector<8x170xf32>
    %66 = arith.minimumf %62, %65 : vector<8x170xf32>
    %67 = math.exp %66 : vector<8x170xf32>
    %cst_39 = arith.constant 1.000000e+00 : f32
    %68 = vector.broadcast %cst_39 : f32 to vector<8x170xf32>
    %69 = arith.subf %67, %68 : vector<8x170xf32>
    %70 = arith.select %64, %62, %69 : vector<8x170xi1>, vector<8x170xf32>
    %71 = arith.truncf %70 : vector<8x170xf32> to vector<8x170xbf16>
    %c1_40 = arith.constant 1 : index
    %c0_41 = arith.constant 0 : index
    %c0_42 = arith.constant 0 : index
    %72 = vector.load %arg4[%c1_40, %c0_41, %c0_42] : memref<16x170x42xbf16, #tpu.memory_space<vmem>>, vector<1x170x42xbf16>
    %73 = vector.shape_cast %72 : vector<1x170x42xbf16> to vector<170x42xbf16>
    %cst_43 = arith.constant dense<0.000000e+00> : vector<8x42xf32>
    %74 = tpu.matmul %71, %73, %cst_43 {dimension_numbers = #tpu.dot_dimension_numbers<[1], [0], [0], [1], [0, 0, 1, 1], [], []>} : vector<8x170xbf16>, vector<170x42xbf16>, vector<8x42xf32> -> vector<8x42xf32>
    %c1_44 = arith.constant 1 : index
    %c0_45 = arith.constant 0 : index
    %c0_46 = arith.constant 0 : index
    %75 = vector.load %arg12[%c1_44, %c0_45, %c0_46] : memref<16x8x42xf32, #tpu.memory_space<vmem>>, vector<1x8x42xf32>
    %76 = vector.shape_cast %75 : vector<1x8x42xf32> to vector<8x42xf32>
    %77 = vector.shape_cast %74 : vector<8x42xf32> to vector<1x8x42xf32>
    tpu.vector_store %arg12[%c1_44, %c0_45, %c0_46], %77 {strides = array<i32>} : memref<16x8x42xf32, #tpu.memory_space<vmem>>, vector<1x8x42xf32>,
    %c16_47 = arith.constant 16 : index
    %c0_48 = arith.constant 0 : index
    %78 = vector.load %arg11[%c16_47, %c0_48] : memref<128x169xf32, #tpu.memory_space<vmem>>, vector<16x169xf32>
    %79 = arith.truncf %78 : vector<16x169xf32> to vector<16x169xbf16>
    %c1_49 = arith.constant 1 : index
    %c0_50 = arith.constant 0 : index
    %c0_51 = arith.constant 0 : index
    %80 = vector.load %arg3[%c1_49, %c0_50, %c0_51] : memref<8x169x170xbf16, #tpu.memory_space<vmem>>, vector<1x169x170xbf16>
    %81 = vector.shape_cast %80 : vector<1x169x170xbf16> to vector<169x170xbf16>
    %cst_52 = arith.constant dense<0.000000e+00> : vector<16x170xf32>
    %82 = tpu.matmul %79, %81, %cst_52 {dimension_numbers = #tpu.dot_dimension_numbers<[1], [0], [0], [1], [0, 0, 1, 1], [], []>} : vector<16x169xbf16>, vector<169x170xbf16>, vector<16x170xf32> -> vector<16x170xf32>
    %83 = vector.extract_strided_slice %82 {offsets = [0, 0], sizes = [8, 170], strides = [1, 1]} : vector<16x170xf32> to vector<8x170xf32>
    %c2 = arith.constant 2 : index
    %84 = memref.load %arg7[%c2] : memref<16xf32, #tpu.memory_space<smem>>
    %85 = vector.broadcast %84 : f32 to vector<8x170xf32>
    %86 = arith.addf %83, %85 : vector<8x170xf32>
    %cst_53 = arith.constant 0.000000e+00 : f32
    %87 = vector.broadcast %cst_53 : f32 to vector<8x170xf32>
    %88 = arith.cmpf ogt, %86, %87 : vector<8x170xf32>
    %cst_54 = arith.constant 0.000000e+00 : f32
    %89 = vector.broadcast %cst_54 : f32 to vector<8x170xf32>
    %90 = arith.minimumf %86, %89 : vector<8x170xf32>
    %91 = math.exp %90 : vector<8x170xf32>
    %cst_55 = arith.constant 1.000000e+00 : f32
    %92 = vector.broadcast %cst_55 : f32 to vector<8x170xf32>
    %93 = arith.subf %91, %92 : vector<8x170xf32>
    %94 = arith.select %88, %86, %93 : vector<8x170xi1>, vector<8x170xf32>
    %95 = arith.truncf %94 : vector<8x170xf32> to vector<8x170xbf16>
    %c2_56 = arith.constant 2 : index
    %c0_57 = arith.constant 0 : index
    %c0_58 = arith.constant 0 : index
    %96 = vector.load %arg4[%c2_56, %c0_57, %c0_58] : memref<16x170x42xbf16, #tpu.memory_space<vmem>>, vector<1x170x42xbf16>
    %97 = vector.shape_cast %96 : vector<1x170x42xbf16> to vector<170x42xbf16>
    %cst_59 = arith.constant dense<0.000000e+00> : vector<8x42xf32>
    %98 = tpu.matmul %95, %97, %cst_59 {dimension_numbers = #tpu.dot_dimension_numbers<[1], [0], [0], [1], [0, 0, 1, 1], [], []>} : vector<8x170xbf16>, vector<170x42xbf16>, vector<8x42xf32> -> vector<8x42xf32>
    %c2_60 = arith.constant 2 : index
    %c0_61 = arith.constant 0 : index
    %c0_62 = arith.constant 0 : index
    %99 = vector.load %arg12[%c2_60, %c0_61, %c0_62] : memref<16x8x42xf32, #tpu.memory_space<vmem>>, vector<1x8x42xf32>
    %100 = vector.shape_cast %99 : vector<1x8x42xf32> to vector<8x42xf32>
    %101 = vector.shape_cast %98 : vector<8x42xf32> to vector<1x8x42xf32>
    tpu.vector_store %arg12[%c2_60, %c0_61, %c0_62], %101 {strides = array<i32>} : memref<16x8x42xf32, #tpu.memory_space<vmem>>, vector<1x8x42xf32>,
    %102 = vector.extract_strided_slice %82 {offsets = [8, 0], sizes = [8, 170], strides = [1, 1]} : vector<16x170xf32> to vector<8x170xf32>
    %c3 = arith.constant 3 : index
    %103 = memref.load %arg7[%c3] : memref<16xf32, #tpu.memory_space<smem>>
    %104 = vector.broadcast %103 : f32 to vector<8x170xf32>
    %105 = arith.addf %102, %104 : vector<8x170xf32>
    %cst_63 = arith.constant 0.000000e+00 : f32
    %106 = vector.broadcast %cst_63 : f32 to vector<8x170xf32>
    %107 = arith.cmpf ogt, %105, %106 : vector<8x170xf32>
    %cst_64 = arith.constant 0.000000e+00 : f32
    %108 = vector.broadcast %cst_64 : f32 to vector<8x170xf32>
    %109 = arith.minimumf %105, %108 : vector<8x170xf32>
    %110 = math.exp %109 : vector<8x170xf32>
    %cst_65 = arith.constant 1.000000e+00 : f32
    %111 = vector.broadcast %cst_65 : f32 to vector<8x170xf32>
    %112 = arith.subf %110, %111 : vector<8x170xf32>
    %113 = arith.select %107, %105, %112 : vector<8x170xi1>, vector<8x170xf32>
    %114 = arith.truncf %113 : vector<8x170xf32> to vector<8x170xbf16>
    %c3_66 = arith.constant 3 : index
    %c0_67 = arith.constant 0 : index
    %c0_68 = arith.constant 0 : index
    %115 = vector.load %arg4[%c3_66, %c0_67, %c0_68] : memref<16x170x42xbf16, #tpu.memory_space<vmem>>, vector<1x170x42xbf16>
    %116 = vector.shape_cast %115 : vector<1x170x42xbf16> to vector<170x42xbf16>
    %cst_69 = arith.constant dense<0.000000e+00> : vector<8x42xf32>
    %117 = tpu.matmul %114, %116, %cst_69 {dimension_numbers = #tpu.dot_dimension_numbers<[1], [0], [0], [1], [0, 0, 1, 1], [], []>} : vector<8x170xbf16>, vector<170x42xbf16>, vector<8x42xf32> -> vector<8x42xf32>
    %c3_70 = arith.constant 3 : index
    %c0_71 = arith.constant 0 : index
    %c0_72 = arith.constant 0 : index
    %118 = vector.load %arg12[%c3_70, %c0_71, %c0_72] : memref<16x8x42xf32, #tpu.memory_space<vmem>>, vector<1x8x42xf32>
    %119 = vector.shape_cast %118 : vector<1x8x42xf32> to vector<8x42xf32>
    %120 = vector.shape_cast %117 : vector<8x42xf32> to vector<1x8x42xf32>
    tpu.vector_store %arg12[%c3_70, %c0_71, %c0_72], %120 {strides = array<i32>} : memref<16x8x42xf32, #tpu.memory_space<vmem>>, vector<1x8x42xf32>,
    %c32_73 = arith.constant 32 : index
    %c0_74 = arith.constant 0 : index
    %121 = vector.load %arg11[%c32_73, %c0_74] : memref<128x169xf32, #tpu.memory_space<vmem>>, vector<16x169xf32>
    %122 = arith.truncf %121 : vector<16x169xf32> to vector<16x169xbf16>
    %c2_75 = arith.constant 2 : index
    %c0_76 = arith.constant 0 : index
    %c0_77 = arith.constant 0 : index
    %123 = vector.load %arg3[%c2_75, %c0_76, %c0_77] : memref<8x169x170xbf16, #tpu.memory_space<vmem>>, vector<1x169x170xbf16>
    %124 = vector.shape_cast %123 : vector<1x169x170xbf16> to vector<169x170xbf16>
    %cst_78 = arith.constant dense<0.000000e+00> : vector<16x170xf32>
    %125 = tpu.matmul %122, %124, %cst_78 {dimension_numbers = #tpu.dot_dimension_numbers<[1], [0], [0], [1], [0, 0, 1, 1], [], []>} : vector<16x169xbf16>, vector<169x170xbf16>, vector<16x170xf32> -> vector<16x170xf32>
    %126 = vector.extract_strided_slice %125 {offsets = [0, 0], sizes = [8, 170], strides = [1, 1]} : vector<16x170xf32> to vector<8x170xf32>
    %c4 = arith.constant 4 : index
    %127 = memref.load %arg7[%c4] : memref<16xf32, #tpu.memory_space<smem>>
    %128 = vector.broadcast %127 : f32 to vector<8x170xf32>
    %129 = arith.addf %126, %128 : vector<8x170xf32>
    %cst_79 = arith.constant 0.000000e+00 : f32
    %130 = vector.broadcast %cst_79 : f32 to vector<8x170xf32>
    %131 = arith.cmpf ogt, %129, %130 : vector<8x170xf32>
    %cst_80 = arith.constant 0.000000e+00 : f32
    %132 = vector.broadcast %cst_80 : f32 to vector<8x170xf32>
    %133 = arith.minimumf %129, %132 : vector<8x170xf32>
    %134 = math.exp %133 : vector<8x170xf32>
    %cst_81 = arith.constant 1.000000e+00 : f32
    %135 = vector.broadcast %cst_81 : f32 to vector<8x170xf32>
    %136 = arith.subf %134, %135 : vector<8x170xf32>
    %137 = arith.select %131, %129, %136 : vector<8x170xi1>, vector<8x170xf32>
    %138 = arith.truncf %137 : vector<8x170xf32> to vector<8x170xbf16>
    %c4_82 = arith.constant 4 : index
    %c0_83 = arith.constant 0 : index
    %c0_84 = arith.constant 0 : index
    %139 = vector.load %arg4[%c4_82, %c0_83, %c0_84] : memref<16x170x42xbf16, #tpu.memory_space<vmem>>, vector<1x170x42xbf16>
    %140 = vector.shape_cast %139 : vector<1x170x42xbf16> to vector<170x42xbf16>
    %cst_85 = arith.constant dense<0.000000e+00> : vector<8x42xf32>
    %141 = tpu.matmul %138, %140, %cst_85 {dimension_numbers = #tpu.dot_dimension_numbers<[1], [0], [0], [1], [0, 0, 1, 1], [], []>} : vector<8x170xbf16>, vector<170x42xbf16>, vector<8x42xf32> -> vector<8x42xf32>
    %c4_86 = arith.constant 4 : index
    %c0_87 = arith.constant 0 : index
    %c0_88 = arith.constant 0 : index
    %142 = vector.load %arg12[%c4_86, %c0_87, %c0_88] : memref<16x8x42xf32, #tpu.memory_space<vmem>>, vector<1x8x42xf32>
    %143 = vector.shape_cast %142 : vector<1x8x42xf32> to vector<8x42xf32>
    %144 = vector.shape_cast %141 : vector<8x42xf32> to vector<1x8x42xf32>
    tpu.vector_store %arg12[%c4_86, %c0_87, %c0_88], %144 {strides = array<i32>} : memref<16x8x42xf32, #tpu.memory_space<vmem>>, vector<1x8x42xf32>,
    %145 = vector.extract_strided_slice %125 {offsets = [8, 0], sizes = [8, 170], strides = [1, 1]} : vector<16x170xf32> to vector<8x170xf32>
    %c5 = arith.constant 5 : index
    %146 = memref.load %arg7[%c5] : memref<16xf32, #tpu.memory_space<smem>>
    %147 = vector.broadcast %146 : f32 to vector<8x170xf32>
    %148 = arith.addf %145, %147 : vector<8x170xf32>
    %cst_89 = arith.constant 0.000000e+00 : f32
    %149 = vector.broadcast %cst_89 : f32 to vector<8x170xf32>
    %150 = arith.cmpf ogt, %148, %149 : vector<8x170xf32>
    %cst_90 = arith.constant 0.000000e+00 : f32
    %151 = vector.broadcast %cst_90 : f32 to vector<8x170xf32>
    %152 = arith.minimumf %148, %151 : vector<8x170xf32>
    %153 = math.exp %152 : vector<8x170xf32>
    %cst_91 = arith.constant 1.000000e+00 : f32
    %154 = vector.broadcast %cst_91 : f32 to vector<8x170xf32>
    %155 = arith.subf %153, %154 : vector<8x170xf32>
    %156 = arith.select %150, %148, %155 : vector<8x170xi1>, vector<8x170xf32>
    %157 = arith.truncf %156 : vector<8x170xf32> to vector<8x170xbf16>
    %c5_92 = arith.constant 5 : index
    %c0_93 = arith.constant 0 : index
    %c0_94 = arith.constant 0 : index
    %158 = vector.load %arg4[%c5_92, %c0_93, %c0_94] : memref<16x170x42xbf16, #tpu.memory_space<vmem>>, vector<1x170x42xbf16>
    %159 = vector.shape_cast %158 : vector<1x170x42xbf16> to vector<170x42xbf16>
    %cst_95 = arith.constant dense<0.000000e+00> : vector<8x42xf32>
    %160 = tpu.matmul %157, %159, %cst_95 {dimension_numbers = #tpu.dot_dimension_numbers<[1], [0], [0], [1], [0, 0, 1, 1], [], []>} : vector<8x170xbf16>, vector<170x42xbf16>, vector<8x42xf32> -> vector<8x42xf32>
    %c5_96 = arith.constant 5 : index
    %c0_97 = arith.constant 0 : index
    %c0_98 = arith.constant 0 : index
    %161 = vector.load %arg12[%c5_96, %c0_97, %c0_98] : memref<16x8x42xf32, #tpu.memory_space<vmem>>, vector<1x8x42xf32>
    %162 = vector.shape_cast %161 : vector<1x8x42xf32> to vector<8x42xf32>
    %163 = vector.shape_cast %160 : vector<8x42xf32> to vector<1x8x42xf32>
    tpu.vector_store %arg12[%c5_96, %c0_97, %c0_98], %163 {strides = array<i32>} : memref<16x8x42xf32, #tpu.memory_space<vmem>>, vector<1x8x42xf32>,
    %c48_99 = arith.constant 48 : index
    %c0_100 = arith.constant 0 : index
    %164 = vector.load %arg11[%c48_99, %c0_100] : memref<128x169xf32, #tpu.memory_space<vmem>>, vector<16x169xf32>
    %165 = arith.truncf %164 : vector<16x169xf32> to vector<16x169xbf16>
    %c3_101 = arith.constant 3 : index
    %c0_102 = arith.constant 0 : index
    %c0_103 = arith.constant 0 : index
    %166 = vector.load %arg3[%c3_101, %c0_102, %c0_103] : memref<8x169x170xbf16, #tpu.memory_space<vmem>>, vector<1x169x170xbf16>
    %167 = vector.shape_cast %166 : vector<1x169x170xbf16> to vector<169x170xbf16>
    %cst_104 = arith.constant dense<0.000000e+00> : vector<16x170xf32>
    %168 = tpu.matmul %165, %167, %cst_104 {dimension_numbers = #tpu.dot_dimension_numbers<[1], [0], [0], [1], [0, 0, 1, 1], [], []>} : vector<16x169xbf16>, vector<169x170xbf16>, vector<16x170xf32> -> vector<16x170xf32>
    %169 = vector.extract_strided_slice %168 {offsets = [0, 0], sizes = [8, 170], strides = [1, 1]} : vector<16x170xf32> to vector<8x170xf32>
    %c6 = arith.constant 6 : index
    %170 = memref.load %arg7[%c6] : memref<16xf32, #tpu.memory_space<smem>>
    %171 = vector.broadcast %170 : f32 to vector<8x170xf32>
    %172 = arith.addf %169, %171 : vector<8x170xf32>
    %cst_105 = arith.constant 0.000000e+00 : f32
    %173 = vector.broadcast %cst_105 : f32 to vector<8x170xf32>
    %174 = arith.cmpf ogt, %172, %173 : vector<8x170xf32>
    %cst_106 = arith.constant 0.000000e+00 : f32
    %175 = vector.broadcast %cst_106 : f32 to vector<8x170xf32>
    %176 = arith.minimumf %172, %175 : vector<8x170xf32>
    %177 = math.exp %176 : vector<8x170xf32>
    %cst_107 = arith.constant 1.000000e+00 : f32
    %178 = vector.broadcast %cst_107 : f32 to vector<8x170xf32>
    %179 = arith.subf %177, %178 : vector<8x170xf32>
    %180 = arith.select %174, %172, %179 : vector<8x170xi1>, vector<8x170xf32>
    %181 = arith.truncf %180 : vector<8x170xf32> to vector<8x170xbf16>
    %c6_108 = arith.constant 6 : index
    %c0_109 = arith.constant 0 : index
    %c0_110 = arith.constant 0 : index
    %182 = vector.load %arg4[%c6_108, %c0_109, %c0_110] : memref<16x170x42xbf16, #tpu.memory_space<vmem>>, vector<1x170x42xbf16>
    %183 = vector.shape_cast %182 : vector<1x170x42xbf16> to vector<170x42xbf16>
    %cst_111 = arith.constant dense<0.000000e+00> : vector<8x42xf32>
    %184 = tpu.matmul %181, %183, %cst_111 {dimension_numbers = #tpu.dot_dimension_numbers<[1], [0], [0], [1], [0, 0, 1, 1], [], []>} : vector<8x170xbf16>, vector<170x42xbf16>, vector<8x42xf32> -> vector<8x42xf32>
    %c6_112 = arith.constant 6 : index
    %c0_113 = arith.constant 0 : index
    %c0_114 = arith.constant 0 : index
    %185 = vector.load %arg12[%c6_112, %c0_113, %c0_114] : memref<16x8x42xf32, #tpu.memory_space<vmem>>, vector<1x8x42xf32>
    %186 = vector.shape_cast %185 : vector<1x8x42xf32> to vector<8x42xf32>
    %187 = vector.shape_cast %184 : vector<8x42xf32> to vector<1x8x42xf32>
    tpu.vector_store %arg12[%c6_112, %c0_113, %c0_114], %187 {strides = array<i32>} : memref<16x8x42xf32, #tpu.memory_space<vmem>>, vector<1x8x42xf32>,
    %188 = vector.extract_strided_slice %168 {offsets = [8, 0], sizes = [8, 170], strides = [1, 1]} : vector<16x170xf32> to vector<8x170xf32>
    %c7 = arith.constant 7 : index
    %189 = memref.load %arg7[%c7] : memref<16xf32, #tpu.memory_space<smem>>
    %190 = vector.broadcast %189 : f32 to vector<8x170xf32>
    %191 = arith.addf %188, %190 : vector<8x170xf32>
    %cst_115 = arith.constant 0.000000e+00 : f32
    %192 = vector.broadcast %cst_115 : f32 to vector<8x170xf32>
    %193 = arith.cmpf ogt, %191, %192 : vector<8x170xf32>
    %cst_116 = arith.constant 0.000000e+00 : f32
    %194 = vector.broadcast %cst_116 : f32 to vector<8x170xf32>
    %195 = arith.minimumf %191, %194 : vector<8x170xf32>
    %196 = math.exp %195 : vector<8x170xf32>
    %cst_117 = arith.constant 1.000000e+00 : f32
    %197 = vector.broadcast %cst_117 : f32 to vector<8x170xf32>
    %198 = arith.subf %196, %197 : vector<8x170xf32>
    %199 = arith.select %193, %191, %198 : vector<8x170xi1>, vector<8x170xf32>
    %200 = arith.truncf %199 : vector<8x170xf32> to vector<8x170xbf16>
    %c7_118 = arith.constant 7 : index
    %c0_119 = arith.constant 0 : index
    %c0_120 = arith.constant 0 : index
    %201 = vector.load %arg4[%c7_118, %c0_119, %c0_120] : memref<16x170x42xbf16, #tpu.memory_space<vmem>>, vector<1x170x42xbf16>
    %202 = vector.shape_cast %201 : vector<1x170x42xbf16> to vector<170x42xbf16>
    %cst_121 = arith.constant dense<0.000000e+00> : vector<8x42xf32>
    %203 = tpu.matmul %200, %202, %cst_121 {dimension_numbers = #tpu.dot_dimension_numbers<[1], [0], [0], [1], [0, 0, 1, 1], [], []>} : vector<8x170xbf16>, vector<170x42xbf16>, vector<8x42xf32> -> vector<8x42xf32>
    %c7_122 = arith.constant 7 : index
    %c0_123 = arith.constant 0 : index
    %c0_124 = arith.constant 0 : index
    %204 = vector.load %arg12[%c7_122, %c0_123, %c0_124] : memref<16x8x42xf32, #tpu.memory_space<vmem>>, vector<1x8x42xf32>
    %205 = vector.shape_cast %204 : vector<1x8x42xf32> to vector<8x42xf32>
    %206 = vector.shape_cast %203 : vector<8x42xf32> to vector<1x8x42xf32>
    tpu.vector_store %arg12[%c7_122, %c0_123, %c0_124], %206 {strides = array<i32>} : memref<16x8x42xf32, #tpu.memory_space<vmem>>, vector<1x8x42xf32>,
    %c64_125 = arith.constant 64 : index
    %c0_126 = arith.constant 0 : index
    %207 = vector.load %arg11[%c64_125, %c0_126] : memref<128x169xf32, #tpu.memory_space<vmem>>, vector<16x169xf32>
    %208 = arith.truncf %207 : vector<16x169xf32> to vector<16x169xbf16>
    %c4_127 = arith.constant 4 : index
    %c0_128 = arith.constant 0 : index
    %c0_129 = arith.constant 0 : index
    %209 = vector.load %arg3[%c4_127, %c0_128, %c0_129] : memref<8x169x170xbf16, #tpu.memory_space<vmem>>, vector<1x169x170xbf16>
    %210 = vector.shape_cast %209 : vector<1x169x170xbf16> to vector<169x170xbf16>
    %cst_130 = arith.constant dense<0.000000e+00> : vector<16x170xf32>
    %211 = tpu.matmul %208, %210, %cst_130 {dimension_numbers = #tpu.dot_dimension_numbers<[1], [0], [0], [1], [0, 0, 1, 1], [], []>} : vector<16x169xbf16>, vector<169x170xbf16>, vector<16x170xf32> -> vector<16x170xf32>
    %212 = vector.extract_strided_slice %211 {offsets = [0, 0], sizes = [8, 170], strides = [1, 1]} : vector<16x170xf32> to vector<8x170xf32>
    %c8_131 = arith.constant 8 : index
    %213 = memref.load %arg7[%c8_131] : memref<16xf32, #tpu.memory_space<smem>>
    %214 = vector.broadcast %213 : f32 to vector<8x170xf32>
    %215 = arith.addf %212, %214 : vector<8x170xf32>
    %cst_132 = arith.constant 0.000000e+00 : f32
    %216 = vector.broadcast %cst_132 : f32 to vector<8x170xf32>
    %217 = arith.cmpf ogt, %215, %216 : vector<8x170xf32>
    %cst_133 = arith.constant 0.000000e+00 : f32
    %218 = vector.broadcast %cst_133 : f32 to vector<8x170xf32>
    %219 = arith.minimumf %215, %218 : vector<8x170xf32>
    %220 = math.exp %219 : vector<8x170xf32>
    %cst_134 = arith.constant 1.000000e+00 : f32
    %221 = vector.broadcast %cst_134 : f32 to vector<8x170xf32>
    %222 = arith.subf %220, %221 : vector<8x170xf32>
    %223 = arith.select %217, %215, %222 : vector<8x170xi1>, vector<8x170xf32>
    %224 = arith.truncf %223 : vector<8x170xf32> to vector<8x170xbf16>
    %c8_135 = arith.constant 8 : index
    %c0_136 = arith.constant 0 : index
    %c0_137 = arith.constant 0 : index
    %225 = vector.load %arg4[%c8_135, %c0_136, %c0_137] : memref<16x170x42xbf16, #tpu.memory_space<vmem>>, vector<1x170x42xbf16>
    %226 = vector.shape_cast %225 : vector<1x170x42xbf16> to vector<170x42xbf16>
    %cst_138 = arith.constant dense<0.000000e+00> : vector<8x42xf32>
    %227 = tpu.matmul %224, %226, %cst_138 {dimension_numbers = #tpu.dot_dimension_numbers<[1], [0], [0], [1], [0, 0, 1, 1], [], []>} : vector<8x170xbf16>, vector<170x42xbf16>, vector<8x42xf32> -> vector<8x42xf32>
    %c8_139 = arith.constant 8 : index
    %c0_140 = arith.constant 0 : index
    %c0_141 = arith.constant 0 : index
    %228 = vector.load %arg12[%c8_139, %c0_140, %c0_141] : memref<16x8x42xf32, #tpu.memory_space<vmem>>, vector<1x8x42xf32>
    %229 = vector.shape_cast %228 : vector<1x8x42xf32> to vector<8x42xf32>
    %230 = vector.shape_cast %227 : vector<8x42xf32> to vector<1x8x42xf32>
    tpu.vector_store %arg12[%c8_139, %c0_140, %c0_141], %230 {strides = array<i32>} : memref<16x8x42xf32, #tpu.memory_space<vmem>>, vector<1x8x42xf32>,
    %231 = vector.extract_strided_slice %211 {offsets = [8, 0], sizes = [8, 170], strides = [1, 1]} : vector<16x170xf32> to vector<8x170xf32>
    %c9 = arith.constant 9 : index
    %232 = memref.load %arg7[%c9] : memref<16xf32, #tpu.memory_space<smem>>
    %233 = vector.broadcast %232 : f32 to vector<8x170xf32>
    %234 = arith.addf %231, %233 : vector<8x170xf32>
    %cst_142 = arith.constant 0.000000e+00 : f32
    %235 = vector.broadcast %cst_142 : f32 to vector<8x170xf32>
    %236 = arith.cmpf ogt, %234, %235 : vector<8x170xf32>
    %cst_143 = arith.constant 0.000000e+00 : f32
    %237 = vector.broadcast %cst_143 : f32 to vector<8x170xf32>
    %238 = arith.minimumf %234, %237 : vector<8x170xf32>
    %239 = math.exp %238 : vector<8x170xf32>
    %cst_144 = arith.constant 1.000000e+00 : f32
    %240 = vector.broadcast %cst_144 : f32 to vector<8x170xf32>
    %241 = arith.subf %239, %240 : vector<8x170xf32>
    %242 = arith.select %236, %234, %241 : vector<8x170xi1>, vector<8x170xf32>
    %243 = arith.truncf %242 : vector<8x170xf32> to vector<8x170xbf16>
    %c9_145 = arith.constant 9 : index
    %c0_146 = arith.constant 0 : index
    %c0_147 = arith.constant 0 : index
    %244 = vector.load %arg4[%c9_145, %c0_146, %c0_147] : memref<16x170x42xbf16, #tpu.memory_space<vmem>>, vector<1x170x42xbf16>
    %245 = vector.shape_cast %244 : vector<1x170x42xbf16> to vector<170x42xbf16>
    %cst_148 = arith.constant dense<0.000000e+00> : vector<8x42xf32>
    %246 = tpu.matmul %243, %245, %cst_148 {dimension_numbers = #tpu.dot_dimension_numbers<[1], [0], [0], [1], [0, 0, 1, 1], [], []>} : vector<8x170xbf16>, vector<170x42xbf16>, vector<8x42xf32> -> vector<8x42xf32>
    %c9_149 = arith.constant 9 : index
    %c0_150 = arith.constant 0 : index
    %c0_151 = arith.constant 0 : index
    %247 = vector.load %arg12[%c9_149, %c0_150, %c0_151] : memref<16x8x42xf32, #tpu.memory_space<vmem>>, vector<1x8x42xf32>
    %248 = vector.shape_cast %247 : vector<1x8x42xf32> to vector<8x42xf32>
    %249 = vector.shape_cast %246 : vector<8x42xf32> to vector<1x8x42xf32>
    tpu.vector_store %arg12[%c9_149, %c0_150, %c0_151], %249 {strides = array<i32>} : memref<16x8x42xf32, #tpu.memory_space<vmem>>, vector<1x8x42xf32>,
    %c80_152 = arith.constant 80 : index
    %c0_153 = arith.constant 0 : index
    %250 = vector.load %arg11[%c80_152, %c0_153] : memref<128x169xf32, #tpu.memory_space<vmem>>, vector<16x169xf32>
    %251 = arith.truncf %250 : vector<16x169xf32> to vector<16x169xbf16>
    %c5_154 = arith.constant 5 : index
    %c0_155 = arith.constant 0 : index
    %c0_156 = arith.constant 0 : index
    %252 = vector.load %arg3[%c5_154, %c0_155, %c0_156] : memref<8x169x170xbf16, #tpu.memory_space<vmem>>, vector<1x169x170xbf16>
    %253 = vector.shape_cast %252 : vector<1x169x170xbf16> to vector<169x170xbf16>
    %cst_157 = arith.constant dense<0.000000e+00> : vector<16x170xf32>
    %254 = tpu.matmul %251, %253, %cst_157 {dimension_numbers = #tpu.dot_dimension_numbers<[1], [0], [0], [1], [0, 0, 1, 1], [], []>} : vector<16x169xbf16>, vector<169x170xbf16>, vector<16x170xf32> -> vector<16x170xf32>
    %255 = vector.extract_strided_slice %254 {offsets = [0, 0], sizes = [8, 170], strides = [1, 1]} : vector<16x170xf32> to vector<8x170xf32>
    %c10 = arith.constant 10 : index
    %256 = memref.load %arg7[%c10] : memref<16xf32, #tpu.memory_space<smem>>
    %257 = vector.broadcast %256 : f32 to vector<8x170xf32>
    %258 = arith.addf %255, %257 : vector<8x170xf32>
    %cst_158 = arith.constant 0.000000e+00 : f32
    %259 = vector.broadcast %cst_158 : f32 to vector<8x170xf32>
    %260 = arith.cmpf ogt, %258, %259 : vector<8x170xf32>
    %cst_159 = arith.constant 0.000000e+00 : f32
    %261 = vector.broadcast %cst_159 : f32 to vector<8x170xf32>
    %262 = arith.minimumf %258, %261 : vector<8x170xf32>
    %263 = math.exp %262 : vector<8x170xf32>
    %cst_160 = arith.constant 1.000000e+00 : f32
    %264 = vector.broadcast %cst_160 : f32 to vector<8x170xf32>
    %265 = arith.subf %263, %264 : vector<8x170xf32>
    %266 = arith.select %260, %258, %265 : vector<8x170xi1>, vector<8x170xf32>
    %267 = arith.truncf %266 : vector<8x170xf32> to vector<8x170xbf16>
    %c10_161 = arith.constant 10 : index
    %c0_162 = arith.constant 0 : index
    %c0_163 = arith.constant 0 : index
    %268 = vector.load %arg4[%c10_161, %c0_162, %c0_163] : memref<16x170x42xbf16, #tpu.memory_space<vmem>>, vector<1x170x42xbf16>
    %269 = vector.shape_cast %268 : vector<1x170x42xbf16> to vector<170x42xbf16>
    %cst_164 = arith.constant dense<0.000000e+00> : vector<8x42xf32>
    %270 = tpu.matmul %267, %269, %cst_164 {dimension_numbers = #tpu.dot_dimension_numbers<[1], [0], [0], [1], [0, 0, 1, 1], [], []>} : vector<8x170xbf16>, vector<170x42xbf16>, vector<8x42xf32> -> vector<8x42xf32>
    %c10_165 = arith.constant 10 : index
    %c0_166 = arith.constant 0 : index
    %c0_167 = arith.constant 0 : index
    %271 = vector.load %arg12[%c10_165, %c0_166, %c0_167] : memref<16x8x42xf32, #tpu.memory_space<vmem>>, vector<1x8x42xf32>
    %272 = vector.shape_cast %271 : vector<1x8x42xf32> to vector<8x42xf32>
    %273 = vector.shape_cast %270 : vector<8x42xf32> to vector<1x8x42xf32>
    tpu.vector_store %arg12[%c10_165, %c0_166, %c0_167], %273 {strides = array<i32>} : memref<16x8x42xf32, #tpu.memory_space<vmem>>, vector<1x8x42xf32>,
    %274 = vector.extract_strided_slice %254 {offsets = [8, 0], sizes = [8, 170], strides = [1, 1]} : vector<16x170xf32> to vector<8x170xf32>
    %c11 = arith.constant 11 : index
    %275 = memref.load %arg7[%c11] : memref<16xf32, #tpu.memory_space<smem>>
    %276 = vector.broadcast %275 : f32 to vector<8x170xf32>
    %277 = arith.addf %274, %276 : vector<8x170xf32>
    %cst_168 = arith.constant 0.000000e+00 : f32
    %278 = vector.broadcast %cst_168 : f32 to vector<8x170xf32>
    %279 = arith.cmpf ogt, %277, %278 : vector<8x170xf32>
    %cst_169 = arith.constant 0.000000e+00 : f32
    %280 = vector.broadcast %cst_169 : f32 to vector<8x170xf32>
    %281 = arith.minimumf %277, %280 : vector<8x170xf32>
    %282 = math.exp %281 : vector<8x170xf32>
    %cst_170 = arith.constant 1.000000e+00 : f32
    %283 = vector.broadcast %cst_170 : f32 to vector<8x170xf32>
    %284 = arith.subf %282, %283 : vector<8x170xf32>
    %285 = arith.select %279, %277, %284 : vector<8x170xi1>, vector<8x170xf32>
    %286 = arith.truncf %285 : vector<8x170xf32> to vector<8x170xbf16>
    %c11_171 = arith.constant 11 : index
    %c0_172 = arith.constant 0 : index
    %c0_173 = arith.constant 0 : index
    %287 = vector.load %arg4[%c11_171, %c0_172, %c0_173] : memref<16x170x42xbf16, #tpu.memory_space<vmem>>, vector<1x170x42xbf16>
    %288 = vector.shape_cast %287 : vector<1x170x42xbf16> to vector<170x42xbf16>
    %cst_174 = arith.constant dense<0.000000e+00> : vector<8x42xf32>
    %289 = tpu.matmul %286, %288, %cst_174 {dimension_numbers = #tpu.dot_dimension_numbers<[1], [0], [0], [1], [0, 0, 1, 1], [], []>} : vector<8x170xbf16>, vector<170x42xbf16>, vector<8x42xf32> -> vector<8x42xf32>
    %c11_175 = arith.constant 11 : index
    %c0_176 = arith.constant 0 : index
    %c0_177 = arith.constant 0 : index
    %290 = vector.load %arg12[%c11_175, %c0_176, %c0_177] : memref<16x8x42xf32, #tpu.memory_space<vmem>>, vector<1x8x42xf32>
    %291 = vector.shape_cast %290 : vector<1x8x42xf32> to vector<8x42xf32>
    %292 = vector.shape_cast %289 : vector<8x42xf32> to vector<1x8x42xf32>
    tpu.vector_store %arg12[%c11_175, %c0_176, %c0_177], %292 {strides = array<i32>} : memref<16x8x42xf32, #tpu.memory_space<vmem>>, vector<1x8x42xf32>,
    %c96_178 = arith.constant 96 : index
    %c0_179 = arith.constant 0 : index
    %293 = vector.load %arg11[%c96_178, %c0_179] : memref<128x169xf32, #tpu.memory_space<vmem>>, vector<16x169xf32>
    %294 = arith.truncf %293 : vector<16x169xf32> to vector<16x169xbf16>
    %c6_180 = arith.constant 6 : index
    %c0_181 = arith.constant 0 : index
    %c0_182 = arith.constant 0 : index
    %295 = vector.load %arg3[%c6_180, %c0_181, %c0_182] : memref<8x169x170xbf16, #tpu.memory_space<vmem>>, vector<1x169x170xbf16>
    %296 = vector.shape_cast %295 : vector<1x169x170xbf16> to vector<169x170xbf16>
    %cst_183 = arith.constant dense<0.000000e+00> : vector<16x170xf32>
    %297 = tpu.matmul %294, %296, %cst_183 {dimension_numbers = #tpu.dot_dimension_numbers<[1], [0], [0], [1], [0, 0, 1, 1], [], []>} : vector<16x169xbf16>, vector<169x170xbf16>, vector<16x170xf32> -> vector<16x170xf32>
    %298 = vector.extract_strided_slice %297 {offsets = [0, 0], sizes = [8, 170], strides = [1, 1]} : vector<16x170xf32> to vector<8x170xf32>
    %c12 = arith.constant 12 : index
    %299 = memref.load %arg7[%c12] : memref<16xf32, #tpu.memory_space<smem>>
    %300 = vector.broadcast %299 : f32 to vector<8x170xf32>
    %301 = arith.addf %298, %300 : vector<8x170xf32>
    %cst_184 = arith.constant 0.000000e+00 : f32
    %302 = vector.broadcast %cst_184 : f32 to vector<8x170xf32>
    %303 = arith.cmpf ogt, %301, %302 : vector<8x170xf32>
    %cst_185 = arith.constant 0.000000e+00 : f32
    %304 = vector.broadcast %cst_185 : f32 to vector<8x170xf32>
    %305 = arith.minimumf %301, %304 : vector<8x170xf32>
    %306 = math.exp %305 : vector<8x170xf32>
    %cst_186 = arith.constant 1.000000e+00 : f32
    %307 = vector.broadcast %cst_186 : f32 to vector<8x170xf32>
    %308 = arith.subf %306, %307 : vector<8x170xf32>
    %309 = arith.select %303, %301, %308 : vector<8x170xi1>, vector<8x170xf32>
    %310 = arith.truncf %309 : vector<8x170xf32> to vector<8x170xbf16>
    %c12_187 = arith.constant 12 : index
    %c0_188 = arith.constant 0 : index
    %c0_189 = arith.constant 0 : index
    %311 = vector.load %arg4[%c12_187, %c0_188, %c0_189] : memref<16x170x42xbf16, #tpu.memory_space<vmem>>, vector<1x170x42xbf16>
    %312 = vector.shape_cast %311 : vector<1x170x42xbf16> to vector<170x42xbf16>
    %cst_190 = arith.constant dense<0.000000e+00> : vector<8x42xf32>
    %313 = tpu.matmul %310, %312, %cst_190 {dimension_numbers = #tpu.dot_dimension_numbers<[1], [0], [0], [1], [0, 0, 1, 1], [], []>} : vector<8x170xbf16>, vector<170x42xbf16>, vector<8x42xf32> -> vector<8x42xf32>
    %c12_191 = arith.constant 12 : index
    %c0_192 = arith.constant 0 : index
    %c0_193 = arith.constant 0 : index
    %314 = vector.load %arg12[%c12_191, %c0_192, %c0_193] : memref<16x8x42xf32, #tpu.memory_space<vmem>>, vector<1x8x42xf32>
    %315 = vector.shape_cast %314 : vector<1x8x42xf32> to vector<8x42xf32>
    %316 = vector.shape_cast %313 : vector<8x42xf32> to vector<1x8x42xf32>
    tpu.vector_store %arg12[%c12_191, %c0_192, %c0_193], %316 {strides = array<i32>} : memref<16x8x42xf32, #tpu.memory_space<vmem>>, vector<1x8x42xf32>,
    %317 = vector.extract_strided_slice %297 {offsets = [8, 0], sizes = [8, 170], strides = [1, 1]} : vector<16x170xf32> to vector<8x170xf32>
    %c13 = arith.constant 13 : index
    %318 = memref.load %arg7[%c13] : memref<16xf32, #tpu.memory_space<smem>>
    %319 = vector.broadcast %318 : f32 to vector<8x170xf32>
    %320 = arith.addf %317, %319 : vector<8x170xf32>
    %cst_194 = arith.constant 0.000000e+00 : f32
    %321 = vector.broadcast %cst_194 : f32 to vector<8x170xf32>
    %322 = arith.cmpf ogt, %320, %321 : vector<8x170xf32>
    %cst_195 = arith.constant 0.000000e+00 : f32
    %323 = vector.broadcast %cst_195 : f32 to vector<8x170xf32>
    %324 = arith.minimumf %320, %323 : vector<8x170xf32>
    %325 = math.exp %324 : vector<8x170xf32>
    %cst_196 = arith.constant 1.000000e+00 : f32
    %326 = vector.broadcast %cst_196 : f32 to vector<8x170xf32>
    %327 = arith.subf %325, %326 : vector<8x170xf32>
    %328 = arith.select %322, %320, %327 : vector<8x170xi1>, vector<8x170xf32>
    %329 = arith.truncf %328 : vector<8x170xf32> to vector<8x170xbf16>
    %c13_197 = arith.constant 13 : index
    %c0_198 = arith.constant 0 : index
    %c0_199 = arith.constant 0 : index
    %330 = vector.load %arg4[%c13_197, %c0_198, %c0_199] : memref<16x170x42xbf16, #tpu.memory_space<vmem>>, vector<1x170x42xbf16>
    %331 = vector.shape_cast %330 : vector<1x170x42xbf16> to vector<170x42xbf16>
    %cst_200 = arith.constant dense<0.000000e+00> : vector<8x42xf32>
    %332 = tpu.matmul %329, %331, %cst_200 {dimension_numbers = #tpu.dot_dimension_numbers<[1], [0], [0], [1], [0, 0, 1, 1], [], []>} : vector<8x170xbf16>, vector<170x42xbf16>, vector<8x42xf32> -> vector<8x42xf32>
    %c13_201 = arith.constant 13 : index
    %c0_202 = arith.constant 0 : index
    %c0_203 = arith.constant 0 : index
    %333 = vector.load %arg12[%c13_201, %c0_202, %c0_203] : memref<16x8x42xf32, #tpu.memory_space<vmem>>, vector<1x8x42xf32>
    %334 = vector.shape_cast %333 : vector<1x8x42xf32> to vector<8x42xf32>
    %335 = vector.shape_cast %332 : vector<8x42xf32> to vector<1x8x42xf32>
    tpu.vector_store %arg12[%c13_201, %c0_202, %c0_203], %335 {strides = array<i32>} : memref<16x8x42xf32, #tpu.memory_space<vmem>>, vector<1x8x42xf32>,
    %c112_204 = arith.constant 112 : index
    %c0_205 = arith.constant 0 : index
    %336 = vector.load %arg11[%c112_204, %c0_205] : memref<128x169xf32, #tpu.memory_space<vmem>>, vector<16x169xf32>
    %337 = arith.truncf %336 : vector<16x169xf32> to vector<16x169xbf16>
    %c7_206 = arith.constant 7 : index
    %c0_207 = arith.constant 0 : index
    %c0_208 = arith.constant 0 : index
    %338 = vector.load %arg3[%c7_206, %c0_207, %c0_208] : memref<8x169x170xbf16, #tpu.memory_space<vmem>>, vector<1x169x170xbf16>
    %339 = vector.shape_cast %338 : vector<1x169x170xbf16> to vector<169x170xbf16>
    %cst_209 = arith.constant dense<0.000000e+00> : vector<16x170xf32>
    %340 = tpu.matmul %337, %339, %cst_209 {dimension_numbers = #tpu.dot_dimension_numbers<[1], [0], [0], [1], [0, 0, 1, 1], [], []>} : vector<16x169xbf16>, vector<169x170xbf16>, vector<16x170xf32> -> vector<16x170xf32>
    %341 = vector.extract_strided_slice %340 {offsets = [0, 0], sizes = [8, 170], strides = [1, 1]} : vector<16x170xf32> to vector<8x170xf32>
    %c14 = arith.constant 14 : index
    %342 = memref.load %arg7[%c14] : memref<16xf32, #tpu.memory_space<smem>>
    %343 = vector.broadcast %342 : f32 to vector<8x170xf32>
    %344 = arith.addf %341, %343 : vector<8x170xf32>
    %cst_210 = arith.constant 0.000000e+00 : f32
    %345 = vector.broadcast %cst_210 : f32 to vector<8x170xf32>
    %346 = arith.cmpf ogt, %344, %345 : vector<8x170xf32>
    %cst_211 = arith.constant 0.000000e+00 : f32
    %347 = vector.broadcast %cst_211 : f32 to vector<8x170xf32>
    %348 = arith.minimumf %344, %347 : vector<8x170xf32>
    %349 = math.exp %348 : vector<8x170xf32>
    %cst_212 = arith.constant 1.000000e+00 : f32
    %350 = vector.broadcast %cst_212 : f32 to vector<8x170xf32>
    %351 = arith.subf %349, %350 : vector<8x170xf32>
    %352 = arith.select %346, %344, %351 : vector<8x170xi1>, vector<8x170xf32>
    %353 = arith.truncf %352 : vector<8x170xf32> to vector<8x170xbf16>
    %c14_213 = arith.constant 14 : index
    %c0_214 = arith.constant 0 : index
    %c0_215 = arith.constant 0 : index
    %354 = vector.load %arg4[%c14_213, %c0_214, %c0_215] : memref<16x170x42xbf16, #tpu.memory_space<vmem>>, vector<1x170x42xbf16>
    %355 = vector.shape_cast %354 : vector<1x170x42xbf16> to vector<170x42xbf16>
    %cst_216 = arith.constant dense<0.000000e+00> : vector<8x42xf32>
    %356 = tpu.matmul %353, %355, %cst_216 {dimension_numbers = #tpu.dot_dimension_numbers<[1], [0], [0], [1], [0, 0, 1, 1], [], []>} : vector<8x170xbf16>, vector<170x42xbf16>, vector<8x42xf32> -> vector<8x42xf32>
    %c14_217 = arith.constant 14 : index
    %c0_218 = arith.constant 0 : index
    %c0_219 = arith.constant 0 : index
    %357 = vector.load %arg12[%c14_217, %c0_218, %c0_219] : memref<16x8x42xf32, #tpu.memory_space<vmem>>, vector<1x8x42xf32>
    %358 = vector.shape_cast %357 : vector<1x8x42xf32> to vector<8x42xf32>
    %359 = vector.shape_cast %356 : vector<8x42xf32> to vector<1x8x42xf32>
    tpu.vector_store %arg12[%c14_217, %c0_218, %c0_219], %359 {strides = array<i32>} : memref<16x8x42xf32, #tpu.memory_space<vmem>>, vector<1x8x42xf32>,
    %360 = vector.extract_strided_slice %340 {offsets = [8, 0], sizes = [8, 170], strides = [1, 1]} : vector<16x170xf32> to vector<8x170xf32>
    %c15 = arith.constant 15 : index
    %361 = memref.load %arg7[%c15] : memref<16xf32, #tpu.memory_space<smem>>
    %362 = vector.broadcast %361 : f32 to vector<8x170xf32>
    %363 = arith.addf %360, %362 : vector<8x170xf32>
    %cst_220 = arith.constant 0.000000e+00 : f32
    %364 = vector.broadcast %cst_220 : f32 to vector<8x170xf32>
    %365 = arith.cmpf ogt, %363, %364 : vector<8x170xf32>
    %cst_221 = arith.constant 0.000000e+00 : f32
    %366 = vector.broadcast %cst_221 : f32 to vector<8x170xf32>
    %367 = arith.minimumf %363, %366 : vector<8x170xf32>
    %368 = math.exp %367 : vector<8x170xf32>
    %cst_222 = arith.constant 1.000000e+00 : f32
    %369 = vector.broadcast %cst_222 : f32 to vector<8x170xf32>
    %370 = arith.subf %368, %369 : vector<8x170xf32>
    %371 = arith.select %365, %363, %370 : vector<8x170xi1>, vector<8x170xf32>
    %372 = arith.truncf %371 : vector<8x170xf32> to vector<8x170xbf16>
    %c15_223 = arith.constant 15 : index
    %c0_224 = arith.constant 0 : index
    %c0_225 = arith.constant 0 : index
    %373 = vector.load %arg4[%c15_223, %c0_224, %c0_225] : memref<16x170x42xbf16, #tpu.memory_space<vmem>>, vector<1x170x42xbf16>
    %374 = vector.shape_cast %373 : vector<1x170x42xbf16> to vector<170x42xbf16>
    %cst_226 = arith.constant dense<0.000000e+00> : vector<8x42xf32>
    %375 = tpu.matmul %372, %374, %cst_226 {dimension_numbers = #tpu.dot_dimension_numbers<[1], [0], [0], [1], [0, 0, 1, 1], [], []>} : vector<8x170xbf16>, vector<170x42xbf16>, vector<8x42xf32> -> vector<8x42xf32>
    %c15_227 = arith.constant 15 : index
    %c0_228 = arith.constant 0 : index
    %c0_229 = arith.constant 0 : index
    %376 = vector.load %arg12[%c15_227, %c0_228, %c0_229] : memref<16x8x42xf32, #tpu.memory_space<vmem>>, vector<1x8x42xf32>
    %377 = vector.shape_cast %376 : vector<1x8x42xf32> to vector<8x42xf32>
    %378 = vector.shape_cast %375 : vector<8x42xf32> to vector<1x8x42xf32>
    tpu.vector_store %arg12[%c15_227, %c0_228, %c0_229], %378 {strides = array<i32>} : memref<16x8x42xf32, #tpu.memory_space<vmem>>, vector<1x8x42xf32>,
    %cst_230 = arith.constant 0.000000e+00 : f32
    %379 = vector.broadcast %cst_230 : f32 to vector<8x5xf32>
    %c0_231 = arith.constant 0 : index
    %c0_232 = arith.constant 0 : index
    %380 = vector.load %arg6[%c0_231, %c0_232] : memref<1x5xf32, #tpu.memory_space<vmem>>, vector<1x5xf32>
    %381 = vector.broadcast %380 : vector<1x5xf32> to vector<8x5xf32>
    %382 = arith.addf %379, %381 : vector<8x5xf32>
    %c0_233 = arith.constant 0 : index
    %c0_234 = arith.constant 0 : index
    %c0_235 = arith.constant 0 : index
    %383 = vector.load %arg12[%c0_233, %c0_234, %c0_235] : memref<16x8x42xf32, #tpu.memory_space<vmem>>, vector<1x8x42xf32>
    %384 = vector.shape_cast %383 : vector<1x8x42xf32> to vector<8x42xf32>
    %c0_236 = arith.constant 0 : index
    %c0_237 = arith.constant 0 : index
    %385 = memref.load %arg9[%c0_236, %c0_237] : memref<16x16xf32, #tpu.memory_space<smem>>
    %386 = vector.broadcast %385 : f32 to vector<8x42xf32>
    %387 = arith.mulf %384, %386 : vector<8x42xf32>
    %c1_238 = arith.constant 1 : index
    %c0_239 = arith.constant 0 : index
    %c0_240 = arith.constant 0 : index
    %388 = vector.load %arg12[%c1_238, %c0_239, %c0_240] : memref<16x8x42xf32, #tpu.memory_space<vmem>>, vector<1x8x42xf32>
    %389 = vector.shape_cast %388 : vector<1x8x42xf32> to vector<8x42xf32>
    %c0_241 = arith.constant 0 : index
    %c1_242 = arith.constant 1 : index
    %390 = memref.load %arg9[%c0_241, %c1_242] : memref<16x16xf32, #tpu.memory_space<smem>>
    %391 = vector.broadcast %390 : f32 to vector<8x42xf32>
    %392 = arith.mulf %389, %391 : vector<8x42xf32>
    %393 = arith.addf %387, %392 : vector<8x42xf32>
    %c2_243 = arith.constant 2 : index
    %c0_244 = arith.constant 0 : index
    %c0_245 = arith.constant 0 : index
    %394 = vector.load %arg12[%c2_243, %c0_244, %c0_245] : memref<16x8x42xf32, #tpu.memory_space<vmem>>, vector<1x8x42xf32>
    %395 = vector.shape_cast %394 : vector<1x8x42xf32> to vector<8x42xf32>
    %c0_246 = arith.constant 0 : index
    %c2_247 = arith.constant 2 : index
    %396 = memref.load %arg9[%c0_246, %c2_247] : memref<16x16xf32, #tpu.memory_space<smem>>
    %397 = vector.broadcast %396 : f32 to vector<8x42xf32>
    %398 = arith.mulf %395, %397 : vector<8x42xf32>
    %399 = arith.addf %393, %398 : vector<8x42xf32>
    %c3_248 = arith.constant 3 : index
    %c0_249 = arith.constant 0 : index
    %c0_250 = arith.constant 0 : index
    %400 = vector.load %arg12[%c3_248, %c0_249, %c0_250] : memref<16x8x42xf32, #tpu.memory_space<vmem>>, vector<1x8x42xf32>
    %401 = vector.shape_cast %400 : vector<1x8x42xf32> to vector<8x42xf32>
    %c0_251 = arith.constant 0 : index
    %c3_252 = arith.constant 3 : index
    %402 = memref.load %arg9[%c0_251, %c3_252] : memref<16x16xf32, #tpu.memory_space<smem>>
    %403 = vector.broadcast %402 : f32 to vector<8x42xf32>
    %404 = arith.mulf %401, %403 : vector<8x42xf32>
    %405 = arith.addf %399, %404 : vector<8x42xf32>
    %c4_253 = arith.constant 4 : index
    %c0_254 = arith.constant 0 : index
    %c0_255 = arith.constant 0 : index
    %406 = vector.load %arg12[%c4_253, %c0_254, %c0_255] : memref<16x8x42xf32, #tpu.memory_space<vmem>>, vector<1x8x42xf32>
    %407 = vector.shape_cast %406 : vector<1x8x42xf32> to vector<8x42xf32>
    %c0_256 = arith.constant 0 : index
    %c4_257 = arith.constant 4 : index
    %408 = memref.load %arg9[%c0_256, %c4_257] : memref<16x16xf32, #tpu.memory_space<smem>>
    %409 = vector.broadcast %408 : f32 to vector<8x42xf32>
    %410 = arith.mulf %407, %409 : vector<8x42xf32>
    %411 = arith.addf %405, %410 : vector<8x42xf32>
    %c5_258 = arith.constant 5 : index
    %c0_259 = arith.constant 0 : index
    %c0_260 = arith.constant 0 : index
    %412 = vector.load %arg12[%c5_258, %c0_259, %c0_260] : memref<16x8x42xf32, #tpu.memory_space<vmem>>, vector<1x8x42xf32>
    %413 = vector.shape_cast %412 : vector<1x8x42xf32> to vector<8x42xf32>
    %c0_261 = arith.constant 0 : index
    %c5_262 = arith.constant 5 : index
    %414 = memref.load %arg9[%c0_261, %c5_262] : memref<16x16xf32, #tpu.memory_space<smem>>
    %415 = vector.broadcast %414 : f32 to vector<8x42xf32>
    %416 = arith.mulf %413, %415 : vector<8x42xf32>
    %417 = arith.addf %411, %416 : vector<8x42xf32>
    %c6_263 = arith.constant 6 : index
    %c0_264 = arith.constant 0 : index
    %c0_265 = arith.constant 0 : index
    %418 = vector.load %arg12[%c6_263, %c0_264, %c0_265] : memref<16x8x42xf32, #tpu.memory_space<vmem>>, vector<1x8x42xf32>
    %419 = vector.shape_cast %418 : vector<1x8x42xf32> to vector<8x42xf32>
    %c0_266 = arith.constant 0 : index
    %c6_267 = arith.constant 6 : index
    %420 = memref.load %arg9[%c0_266, %c6_267] : memref<16x16xf32, #tpu.memory_space<smem>>
    %421 = vector.broadcast %420 : f32 to vector<8x42xf32>
    %422 = arith.mulf %419, %421 : vector<8x42xf32>
    %423 = arith.addf %417, %422 : vector<8x42xf32>
    %c7_268 = arith.constant 7 : index
    %c0_269 = arith.constant 0 : index
    %c0_270 = arith.constant 0 : index
    %424 = vector.load %arg12[%c7_268, %c0_269, %c0_270] : memref<16x8x42xf32, #tpu.memory_space<vmem>>, vector<1x8x42xf32>
    %425 = vector.shape_cast %424 : vector<1x8x42xf32> to vector<8x42xf32>
    %c0_271 = arith.constant 0 : index
    %c7_272 = arith.constant 7 : index
    %426 = memref.load %arg9[%c0_271, %c7_272] : memref<16x16xf32, #tpu.memory_space<smem>>
    %427 = vector.broadcast %426 : f32 to vector<8x42xf32>
    %428 = arith.mulf %425, %427 : vector<8x42xf32>
    %429 = arith.addf %423, %428 : vector<8x42xf32>
    %c8_273 = arith.constant 8 : index
    %c0_274 = arith.constant 0 : index
    %c0_275 = arith.constant 0 : index
    %430 = vector.load %arg12[%c8_273, %c0_274, %c0_275] : memref<16x8x42xf32, #tpu.memory_space<vmem>>, vector<1x8x42xf32>
    %431 = vector.shape_cast %430 : vector<1x8x42xf32> to vector<8x42xf32>
    %c0_276 = arith.constant 0 : index
    %c8_277 = arith.constant 8 : index
    %432 = memref.load %arg9[%c0_276, %c8_277] : memref<16x16xf32, #tpu.memory_space<smem>>
    %433 = vector.broadcast %432 : f32 to vector<8x42xf32>
    %434 = arith.mulf %431, %433 : vector<8x42xf32>
    %435 = arith.addf %429, %434 : vector<8x42xf32>
    %c9_278 = arith.constant 9 : index
    %c0_279 = arith.constant 0 : index
    %c0_280 = arith.constant 0 : index
    %436 = vector.load %arg12[%c9_278, %c0_279, %c0_280] : memref<16x8x42xf32, #tpu.memory_space<vmem>>, vector<1x8x42xf32>
    %437 = vector.shape_cast %436 : vector<1x8x42xf32> to vector<8x42xf32>
    %c0_281 = arith.constant 0 : index
    %c9_282 = arith.constant 9 : index
    %438 = memref.load %arg9[%c0_281, %c9_282] : memref<16x16xf32, #tpu.memory_space<smem>>
    %439 = vector.broadcast %438 : f32 to vector<8x42xf32>
    %440 = arith.mulf %437, %439 : vector<8x42xf32>
    %441 = arith.addf %435, %440 : vector<8x42xf32>
    %c10_283 = arith.constant 10 : index
    %c0_284 = arith.constant 0 : index
    %c0_285 = arith.constant 0 : index
    %442 = vector.load %arg12[%c10_283, %c0_284, %c0_285] : memref<16x8x42xf32, #tpu.memory_space<vmem>>, vector<1x8x42xf32>
    %443 = vector.shape_cast %442 : vector<1x8x42xf32> to vector<8x42xf32>
    %c0_286 = arith.constant 0 : index
    %c10_287 = arith.constant 10 : index
    %444 = memref.load %arg9[%c0_286, %c10_287] : memref<16x16xf32, #tpu.memory_space<smem>>
    %445 = vector.broadcast %444 : f32 to vector<8x42xf32>
    %446 = arith.mulf %443, %445 : vector<8x42xf32>
    %447 = arith.addf %441, %446 : vector<8x42xf32>
    %c11_288 = arith.constant 11 : index
    %c0_289 = arith.constant 0 : index
    %c0_290 = arith.constant 0 : index
    %448 = vector.load %arg12[%c11_288, %c0_289, %c0_290] : memref<16x8x42xf32, #tpu.memory_space<vmem>>, vector<1x8x42xf32>
    %449 = vector.shape_cast %448 : vector<1x8x42xf32> to vector<8x42xf32>
    %c0_291 = arith.constant 0 : index
    %c11_292 = arith.constant 11 : index
    %450 = memref.load %arg9[%c0_291, %c11_292] : memref<16x16xf32, #tpu.memory_space<smem>>
    %451 = vector.broadcast %450 : f32 to vector<8x42xf32>
    %452 = arith.mulf %449, %451 : vector<8x42xf32>
    %453 = arith.addf %447, %452 : vector<8x42xf32>
    %c12_293 = arith.constant 12 : index
    %c0_294 = arith.constant 0 : index
    %c0_295 = arith.constant 0 : index
    %454 = vector.load %arg12[%c12_293, %c0_294, %c0_295] : memref<16x8x42xf32, #tpu.memory_space<vmem>>, vector<1x8x42xf32>
    %455 = vector.shape_cast %454 : vector<1x8x42xf32> to vector<8x42xf32>
    %c0_296 = arith.constant 0 : index
    %c12_297 = arith.constant 12 : index
    %456 = memref.load %arg9[%c0_296, %c12_297] : memref<16x16xf32, #tpu.memory_space<smem>>
    %457 = vector.broadcast %456 : f32 to vector<8x42xf32>
    %458 = arith.mulf %455, %457 : vector<8x42xf32>
    %459 = arith.addf %453, %458 : vector<8x42xf32>
    %c13_298 = arith.constant 13 : index
    %c0_299 = arith.constant 0 : index
    %c0_300 = arith.constant 0 : index
    %460 = vector.load %arg12[%c13_298, %c0_299, %c0_300] : memref<16x8x42xf32, #tpu.memory_space<vmem>>, vector<1x8x42xf32>
    %461 = vector.shape_cast %460 : vector<1x8x42xf32> to vector<8x42xf32>
    %c0_301 = arith.constant 0 : index
    %c13_302 = arith.constant 13 : index
    %462 = memref.load %arg9[%c0_301, %c13_302] : memref<16x16xf32, #tpu.memory_space<smem>>
    %463 = vector.broadcast %462 : f32 to vector<8x42xf32>
    %464 = arith.mulf %461, %463 : vector<8x42xf32>
    %465 = arith.addf %459, %464 : vector<8x42xf32>
    %c14_303 = arith.constant 14 : index
    %c0_304 = arith.constant 0 : index
    %c0_305 = arith.constant 0 : index
    %466 = vector.load %arg12[%c14_303, %c0_304, %c0_305] : memref<16x8x42xf32, #tpu.memory_space<vmem>>, vector<1x8x42xf32>
    %467 = vector.shape_cast %466 : vector<1x8x42xf32> to vector<8x42xf32>
    %c0_306 = arith.constant 0 : index
    %c14_307 = arith.constant 14 : index
    %468 = memref.load %arg9[%c0_306, %c14_307] : memref<16x16xf32, #tpu.memory_space<smem>>
    %469 = vector.broadcast %468 : f32 to vector<8x42xf32>
    %470 = arith.mulf %467, %469 : vector<8x42xf32>
    %471 = arith.addf %465, %470 : vector<8x42xf32>
    %c15_308 = arith.constant 15 : index
    %c0_309 = arith.constant 0 : index
    %c0_310 = arith.constant 0 : index
    %472 = vector.load %arg12[%c15_308, %c0_309, %c0_310] : memref<16x8x42xf32, #tpu.memory_space<vmem>>, vector<1x8x42xf32>
    %473 = vector.shape_cast %472 : vector<1x8x42xf32> to vector<8x42xf32>
    %c0_311 = arith.constant 0 : index
    %c15_312 = arith.constant 15 : index
    %474 = memref.load %arg9[%c0_311, %c15_312] : memref<16x16xf32, #tpu.memory_space<smem>>
    %475 = vector.broadcast %474 : f32 to vector<8x42xf32>
    %476 = arith.mulf %473, %475 : vector<8x42xf32>
    %477 = arith.addf %471, %476 : vector<8x42xf32>
    %c0_313 = arith.constant 0 : index
    %478 = memref.load %arg8[%c0_313] : memref<16xf32, #tpu.memory_space<smem>>
    %479 = vector.broadcast %478 : f32 to vector<8x42xf32>
    %480 = arith.addf %477, %479 : vector<8x42xf32>
    %cst_314 = arith.constant 0.000000e+00 : f32
    %481 = vector.broadcast %cst_314 : f32 to vector<8x42xf32>
    %482 = arith.cmpf ogt, %480, %481 : vector<8x42xf32>
    %cst_315 = arith.constant 0.000000e+00 : f32
    %483 = vector.broadcast %cst_315 : f32 to vector<8x42xf32>
    %484 = arith.minimumf %480, %483 : vector<8x42xf32>
    %485 = math.exp %484 : vector<8x42xf32>
    %cst_316 = arith.constant 1.000000e+00 : f32
    %486 = vector.broadcast %cst_316 : f32 to vector<8x42xf32>
    %487 = arith.subf %485, %486 : vector<8x42xf32>
    %488 = arith.select %482, %480, %487 : vector<8x42xi1>, vector<8x42xf32>
    %489 = arith.truncf %488 : vector<8x42xf32> to vector<8x42xbf16>
    %c0_317 = arith.constant 0 : index
    %c0_318 = arith.constant 0 : index
    %c0_319 = arith.constant 0 : index
    %490 = vector.load %arg5[%c0_317, %c0_318, %c0_319] : memref<16x42x5xbf16, #tpu.memory_space<vmem>>, vector<1x42x5xbf16>
    %491 = vector.shape_cast %490 : vector<1x42x5xbf16> to vector<42x5xbf16>
    %cst_320 = arith.constant dense<0.000000e+00> : vector<8x5xf32>
    %492 = tpu.matmul %489, %491, %cst_320 {dimension_numbers = #tpu.dot_dimension_numbers<[1], [0], [0], [1], [0, 0, 1, 1], [], []>} : vector<8x42xbf16>, vector<42x5xbf16>, vector<8x5xf32> -> vector<8x5xf32>
    %493 = arith.addf %382, %492 : vector<8x5xf32>
    %c0_321 = arith.constant 0 : index
    %c0_322 = arith.constant 0 : index
    %c0_323 = arith.constant 0 : index
    %494 = vector.load %arg12[%c0_321, %c0_322, %c0_323] : memref<16x8x42xf32, #tpu.memory_space<vmem>>, vector<1x8x42xf32>
    %495 = vector.shape_cast %494 : vector<1x8x42xf32> to vector<8x42xf32>
    %c1_324 = arith.constant 1 : index
    %c0_325 = arith.constant 0 : index
    %496 = memref.load %arg9[%c1_324, %c0_325] : memref<16x16xf32, #tpu.memory_space<smem>>
    %497 = vector.broadcast %496 : f32 to vector<8x42xf32>
    %498 = arith.mulf %495, %497 : vector<8x42xf32>
    %c1_326 = arith.constant 1 : index
    %c0_327 = arith.constant 0 : index
    %c0_328 = arith.constant 0 : index
    %499 = vector.load %arg12[%c1_326, %c0_327, %c0_328] : memref<16x8x42xf32, #tpu.memory_space<vmem>>, vector<1x8x42xf32>
    %500 = vector.shape_cast %499 : vector<1x8x42xf32> to vector<8x42xf32>
    %c1_329 = arith.constant 1 : index
    %c1_330 = arith.constant 1 : index
    %501 = memref.load %arg9[%c1_329, %c1_330] : memref<16x16xf32, #tpu.memory_space<smem>>
    %502 = vector.broadcast %501 : f32 to vector<8x42xf32>
    %503 = arith.mulf %500, %502 : vector<8x42xf32>
    %504 = arith.addf %498, %503 : vector<8x42xf32>
    %c2_331 = arith.constant 2 : index
    %c0_332 = arith.constant 0 : index
    %c0_333 = arith.constant 0 : index
    %505 = vector.load %arg12[%c2_331, %c0_332, %c0_333] : memref<16x8x42xf32, #tpu.memory_space<vmem>>, vector<1x8x42xf32>
    %506 = vector.shape_cast %505 : vector<1x8x42xf32> to vector<8x42xf32>
    %c1_334 = arith.constant 1 : index
    %c2_335 = arith.constant 2 : index
    %507 = memref.load %arg9[%c1_334, %c2_335] : memref<16x16xf32, #tpu.memory_space<smem>>
    %508 = vector.broadcast %507 : f32 to vector<8x42xf32>
    %509 = arith.mulf %506, %508 : vector<8x42xf32>
    %510 = arith.addf %504, %509 : vector<8x42xf32>
    %c3_336 = arith.constant 3 : index
    %c0_337 = arith.constant 0 : index
    %c0_338 = arith.constant 0 : index
    %511 = vector.load %arg12[%c3_336, %c0_337, %c0_338] : memref<16x8x42xf32, #tpu.memory_space<vmem>>, vector<1x8x42xf32>
    %512 = vector.shape_cast %511 : vector<1x8x42xf32> to vector<8x42xf32>
    %c1_339 = arith.constant 1 : index
    %c3_340 = arith.constant 3 : index
    %513 = memref.load %arg9[%c1_339, %c3_340] : memref<16x16xf32, #tpu.memory_space<smem>>
    %514 = vector.broadcast %513 : f32 to vector<8x42xf32>
    %515 = arith.mulf %512, %514 : vector<8x42xf32>
    %516 = arith.addf %510, %515 : vector<8x42xf32>
    %c4_341 = arith.constant 4 : index
    %c0_342 = arith.constant 0 : index
    %c0_343 = arith.constant 0 : index
    %517 = vector.load %arg12[%c4_341, %c0_342, %c0_343] : memref<16x8x42xf32, #tpu.memory_space<vmem>>, vector<1x8x42xf32>
    %518 = vector.shape_cast %517 : vector<1x8x42xf32> to vector<8x42xf32>
    %c1_344 = arith.constant 1 : index
    %c4_345 = arith.constant 4 : index
    %519 = memref.load %arg9[%c1_344, %c4_345] : memref<16x16xf32, #tpu.memory_space<smem>>
    %520 = vector.broadcast %519 : f32 to vector<8x42xf32>
    %521 = arith.mulf %518, %520 : vector<8x42xf32>
    %522 = arith.addf %516, %521 : vector<8x42xf32>
    %c5_346 = arith.constant 5 : index
    %c0_347 = arith.constant 0 : index
    %c0_348 = arith.constant 0 : index
    %523 = vector.load %arg12[%c5_346, %c0_347, %c0_348] : memref<16x8x42xf32, #tpu.memory_space<vmem>>, vector<1x8x42xf32>
    %524 = vector.shape_cast %523 : vector<1x8x42xf32> to vector<8x42xf32>
    %c1_349 = arith.constant 1 : index
    %c5_350 = arith.constant 5 : index
    %525 = memref.load %arg9[%c1_349, %c5_350] : memref<16x16xf32, #tpu.memory_space<smem>>
    %526 = vector.broadcast %525 : f32 to vector<8x42xf32>
    %527 = arith.mulf %524, %526 : vector<8x42xf32>
    %528 = arith.addf %522, %527 : vector<8x42xf32>
    %c6_351 = arith.constant 6 : index
    %c0_352 = arith.constant 0 : index
    %c0_353 = arith.constant 0 : index
    %529 = vector.load %arg12[%c6_351, %c0_352, %c0_353] : memref<16x8x42xf32, #tpu.memory_space<vmem>>, vector<1x8x42xf32>
    %530 = vector.shape_cast %529 : vector<1x8x42xf32> to vector<8x42xf32>
    %c1_354 = arith.constant 1 : index
    %c6_355 = arith.constant 6 : index
    %531 = memref.load %arg9[%c1_354, %c6_355] : memref<16x16xf32, #tpu.memory_space<smem>>
    %532 = vector.broadcast %531 : f32 to vector<8x42xf32>
    %533 = arith.mulf %530, %532 : vector<8x42xf32>
    %534 = arith.addf %528, %533 : vector<8x42xf32>
    %c7_356 = arith.constant 7 : index
    %c0_357 = arith.constant 0 : index
    %c0_358 = arith.constant 0 : index
    %535 = vector.load %arg12[%c7_356, %c0_357, %c0_358] : memref<16x8x42xf32, #tpu.memory_space<vmem>>, vector<1x8x42xf32>
    %536 = vector.shape_cast %535 : vector<1x8x42xf32> to vector<8x42xf32>
    %c1_359 = arith.constant 1 : index
    %c7_360 = arith.constant 7 : index
    %537 = memref.load %arg9[%c1_359, %c7_360] : memref<16x16xf32, #tpu.memory_space<smem>>
    %538 = vector.broadcast %537 : f32 to vector<8x42xf32>
    %539 = arith.mulf %536, %538 : vector<8x42xf32>
    %540 = arith.addf %534, %539 : vector<8x42xf32>
    %c8_361 = arith.constant 8 : index
    %c0_362 = arith.constant 0 : index
    %c0_363 = arith.constant 0 : index
    %541 = vector.load %arg12[%c8_361, %c0_362, %c0_363] : memref<16x8x42xf32, #tpu.memory_space<vmem>>, vector<1x8x42xf32>
    %542 = vector.shape_cast %541 : vector<1x8x42xf32> to vector<8x42xf32>
    %c1_364 = arith.constant 1 : index
    %c8_365 = arith.constant 8 : index
    %543 = memref.load %arg9[%c1_364, %c8_365] : memref<16x16xf32, #tpu.memory_space<smem>>
    %544 = vector.broadcast %543 : f32 to vector<8x42xf32>
    %545 = arith.mulf %542, %544 : vector<8x42xf32>
    %546 = arith.addf %540, %545 : vector<8x42xf32>
    %c9_366 = arith.constant 9 : index
    %c0_367 = arith.constant 0 : index
    %c0_368 = arith.constant 0 : index
    %547 = vector.load %arg12[%c9_366, %c0_367, %c0_368] : memref<16x8x42xf32, #tpu.memory_space<vmem>>, vector<1x8x42xf32>
    %548 = vector.shape_cast %547 : vector<1x8x42xf32> to vector<8x42xf32>
    %c1_369 = arith.constant 1 : index
    %c9_370 = arith.constant 9 : index
    %549 = memref.load %arg9[%c1_369, %c9_370] : memref<16x16xf32, #tpu.memory_space<smem>>
    %550 = vector.broadcast %549 : f32 to vector<8x42xf32>
    %551 = arith.mulf %548, %550 : vector<8x42xf32>
    %552 = arith.addf %546, %551 : vector<8x42xf32>
    %c10_371 = arith.constant 10 : index
    %c0_372 = arith.constant 0 : index
    %c0_373 = arith.constant 0 : index
    %553 = vector.load %arg12[%c10_371, %c0_372, %c0_373] : memref<16x8x42xf32, #tpu.memory_space<vmem>>, vector<1x8x42xf32>
    %554 = vector.shape_cast %553 : vector<1x8x42xf32> to vector<8x42xf32>
    %c1_374 = arith.constant 1 : index
    %c10_375 = arith.constant 10 : index
    %555 = memref.load %arg9[%c1_374, %c10_375] : memref<16x16xf32, #tpu.memory_space<smem>>
    %556 = vector.broadcast %555 : f32 to vector<8x42xf32>
    %557 = arith.mulf %554, %556 : vector<8x42xf32>
    %558 = arith.addf %552, %557 : vector<8x42xf32>
    %c11_376 = arith.constant 11 : index
    %c0_377 = arith.constant 0 : index
    %c0_378 = arith.constant 0 : index
    %559 = vector.load %arg12[%c11_376, %c0_377, %c0_378] : memref<16x8x42xf32, #tpu.memory_space<vmem>>, vector<1x8x42xf32>
    %560 = vector.shape_cast %559 : vector<1x8x42xf32> to vector<8x42xf32>
    %c1_379 = arith.constant 1 : index
    %c11_380 = arith.constant 11 : index
    %561 = memref.load %arg9[%c1_379, %c11_380] : memref<16x16xf32, #tpu.memory_space<smem>>
    %562 = vector.broadcast %561 : f32 to vector<8x42xf32>
    %563 = arith.mulf %560, %562 : vector<8x42xf32>
    %564 = arith.addf %558, %563 : vector<8x42xf32>
    %c12_381 = arith.constant 12 : index
    %c0_382 = arith.constant 0 : index
    %c0_383 = arith.constant 0 : index
    %565 = vector.load %arg12[%c12_381, %c0_382, %c0_383] : memref<16x8x42xf32, #tpu.memory_space<vmem>>, vector<1x8x42xf32>
    %566 = vector.shape_cast %565 : vector<1x8x42xf32> to vector<8x42xf32>
    %c1_384 = arith.constant 1 : index
    %c12_385 = arith.constant 12 : index
    %567 = memref.load %arg9[%c1_384, %c12_385] : memref<16x16xf32, #tpu.memory_space<smem>>
    %568 = vector.broadcast %567 : f32 to vector<8x42xf32>
    %569 = arith.mulf %566, %568 : vector<8x42xf32>
    %570 = arith.addf %564, %569 : vector<8x42xf32>
    %c13_386 = arith.constant 13 : index
    %c0_387 = arith.constant 0 : index
    %c0_388 = arith.constant 0 : index
    %571 = vector.load %arg12[%c13_386, %c0_387, %c0_388] : memref<16x8x42xf32, #tpu.memory_space<vmem>>, vector<1x8x42xf32>
    %572 = vector.shape_cast %571 : vector<1x8x42xf32> to vector<8x42xf32>
    %c1_389 = arith.constant 1 : index
    %c13_390 = arith.constant 13 : index
    %573 = memref.load %arg9[%c1_389, %c13_390] : memref<16x16xf32, #tpu.memory_space<smem>>
    %574 = vector.broadcast %573 : f32 to vector<8x42xf32>
    %575 = arith.mulf %572, %574 : vector<8x42xf32>
    %576 = arith.addf %570, %575 : vector<8x42xf32>
    %c14_391 = arith.constant 14 : index
    %c0_392 = arith.constant 0 : index
    %c0_393 = arith.constant 0 : index
    %577 = vector.load %arg12[%c14_391, %c0_392, %c0_393] : memref<16x8x42xf32, #tpu.memory_space<vmem>>, vector<1x8x42xf32>
    %578 = vector.shape_cast %577 : vector<1x8x42xf32> to vector<8x42xf32>
    %c1_394 = arith.constant 1 : index
    %c14_395 = arith.constant 14 : index
    %579 = memref.load %arg9[%c1_394, %c14_395] : memref<16x16xf32, #tpu.memory_space<smem>>
    %580 = vector.broadcast %579 : f32 to vector<8x42xf32>
    %581 = arith.mulf %578, %580 : vector<8x42xf32>
    %582 = arith.addf %576, %581 : vector<8x42xf32>
    %c15_396 = arith.constant 15 : index
    %c0_397 = arith.constant 0 : index
    %c0_398 = arith.constant 0 : index
    %583 = vector.load %arg12[%c15_396, %c0_397, %c0_398] : memref<16x8x42xf32, #tpu.memory_space<vmem>>, vector<1x8x42xf32>
    %584 = vector.shape_cast %583 : vector<1x8x42xf32> to vector<8x42xf32>
    %c1_399 = arith.constant 1 : index
    %c15_400 = arith.constant 15 : index
    %585 = memref.load %arg9[%c1_399, %c15_400] : memref<16x16xf32, #tpu.memory_space<smem>>
    %586 = vector.broadcast %585 : f32 to vector<8x42xf32>
    %587 = arith.mulf %584, %586 : vector<8x42xf32>
    %588 = arith.addf %582, %587 : vector<8x42xf32>
    %c1_401 = arith.constant 1 : index
    %589 = memref.load %arg8[%c1_401] : memref<16xf32, #tpu.memory_space<smem>>
    %590 = vector.broadcast %589 : f32 to vector<8x42xf32>
    %591 = arith.addf %588, %590 : vector<8x42xf32>
    %cst_402 = arith.constant 0.000000e+00 : f32
    %592 = vector.broadcast %cst_402 : f32 to vector<8x42xf32>
    %593 = arith.cmpf ogt, %591, %592 : vector<8x42xf32>
    %cst_403 = arith.constant 0.000000e+00 : f32
    %594 = vector.broadcast %cst_403 : f32 to vector<8x42xf32>
    %595 = arith.minimumf %591, %594 : vector<8x42xf32>
    %596 = math.exp %595 : vector<8x42xf32>
    %cst_404 = arith.constant 1.000000e+00 : f32
    %597 = vector.broadcast %cst_404 : f32 to vector<8x42xf32>
    %598 = arith.subf %596, %597 : vector<8x42xf32>
    %599 = arith.select %593, %591, %598 : vector<8x42xi1>, vector<8x42xf32>
    %600 = arith.truncf %599 : vector<8x42xf32> to vector<8x42xbf16>
    %c1_405 = arith.constant 1 : index
    %c0_406 = arith.constant 0 : index
    %c0_407 = arith.constant 0 : index
    %601 = vector.load %arg5[%c1_405, %c0_406, %c0_407] : memref<16x42x5xbf16, #tpu.memory_space<vmem>>, vector<1x42x5xbf16>
    %602 = vector.shape_cast %601 : vector<1x42x5xbf16> to vector<42x5xbf16>
    %cst_408 = arith.constant dense<0.000000e+00> : vector<8x5xf32>
    %603 = tpu.matmul %600, %602, %cst_408 {dimension_numbers = #tpu.dot_dimension_numbers<[1], [0], [0], [1], [0, 0, 1, 1], [], []>} : vector<8x42xbf16>, vector<42x5xbf16>, vector<8x5xf32> -> vector<8x5xf32>
    %604 = arith.addf %493, %603 : vector<8x5xf32>
    %c0_409 = arith.constant 0 : index
    %c0_410 = arith.constant 0 : index
    %c0_411 = arith.constant 0 : index
    %605 = vector.load %arg12[%c0_409, %c0_410, %c0_411] : memref<16x8x42xf32, #tpu.memory_space<vmem>>, vector<1x8x42xf32>
    %606 = vector.shape_cast %605 : vector<1x8x42xf32> to vector<8x42xf32>
    %c2_412 = arith.constant 2 : index
    %c0_413 = arith.constant 0 : index
    %607 = memref.load %arg9[%c2_412, %c0_413] : memref<16x16xf32, #tpu.memory_space<smem>>
    %608 = vector.broadcast %607 : f32 to vector<8x42xf32>
    %609 = arith.mulf %606, %608 : vector<8x42xf32>
    %c1_414 = arith.constant 1 : index
    %c0_415 = arith.constant 0 : index
    %c0_416 = arith.constant 0 : index
    %610 = vector.load %arg12[%c1_414, %c0_415, %c0_416] : memref<16x8x42xf32, #tpu.memory_space<vmem>>, vector<1x8x42xf32>
    %611 = vector.shape_cast %610 : vector<1x8x42xf32> to vector<8x42xf32>
    %c2_417 = arith.constant 2 : index
    %c1_418 = arith.constant 1 : index
    %612 = memref.load %arg9[%c2_417, %c1_418] : memref<16x16xf32, #tpu.memory_space<smem>>
    %613 = vector.broadcast %612 : f32 to vector<8x42xf32>
    %614 = arith.mulf %611, %613 : vector<8x42xf32>
    %615 = arith.addf %609, %614 : vector<8x42xf32>
    %c2_419 = arith.constant 2 : index
    %c0_420 = arith.constant 0 : index
    %c0_421 = arith.constant 0 : index
    %616 = vector.load %arg12[%c2_419, %c0_420, %c0_421] : memref<16x8x42xf32, #tpu.memory_space<vmem>>, vector<1x8x42xf32>
    %617 = vector.shape_cast %616 : vector<1x8x42xf32> to vector<8x42xf32>
    %c2_422 = arith.constant 2 : index
    %c2_423 = arith.constant 2 : index
    %618 = memref.load %arg9[%c2_422, %c2_423] : memref<16x16xf32, #tpu.memory_space<smem>>
    %619 = vector.broadcast %618 : f32 to vector<8x42xf32>
    %620 = arith.mulf %617, %619 : vector<8x42xf32>
    %621 = arith.addf %615, %620 : vector<8x42xf32>
    %c3_424 = arith.constant 3 : index
    %c0_425 = arith.constant 0 : index
    %c0_426 = arith.constant 0 : index
    %622 = vector.load %arg12[%c3_424, %c0_425, %c0_426] : memref<16x8x42xf32, #tpu.memory_space<vmem>>, vector<1x8x42xf32>
    %623 = vector.shape_cast %622 : vector<1x8x42xf32> to vector<8x42xf32>
    %c2_427 = arith.constant 2 : index
    %c3_428 = arith.constant 3 : index
    %624 = memref.load %arg9[%c2_427, %c3_428] : memref<16x16xf32, #tpu.memory_space<smem>>
    %625 = vector.broadcast %624 : f32 to vector<8x42xf32>
    %626 = arith.mulf %623, %625 : vector<8x42xf32>
    %627 = arith.addf %621, %626 : vector<8x42xf32>
    %c4_429 = arith.constant 4 : index
    %c0_430 = arith.constant 0 : index
    %c0_431 = arith.constant 0 : index
    %628 = vector.load %arg12[%c4_429, %c0_430, %c0_431] : memref<16x8x42xf32, #tpu.memory_space<vmem>>, vector<1x8x42xf32>
    %629 = vector.shape_cast %628 : vector<1x8x42xf32> to vector<8x42xf32>
    %c2_432 = arith.constant 2 : index
    %c4_433 = arith.constant 4 : index
    %630 = memref.load %arg9[%c2_432, %c4_433] : memref<16x16xf32, #tpu.memory_space<smem>>
    %631 = vector.broadcast %630 : f32 to vector<8x42xf32>
    %632 = arith.mulf %629, %631 : vector<8x42xf32>
    %633 = arith.addf %627, %632 : vector<8x42xf32>
    %c5_434 = arith.constant 5 : index
    %c0_435 = arith.constant 0 : index
    %c0_436 = arith.constant 0 : index
    %634 = vector.load %arg12[%c5_434, %c0_435, %c0_436] : memref<16x8x42xf32, #tpu.memory_space<vmem>>, vector<1x8x42xf32>
    %635 = vector.shape_cast %634 : vector<1x8x42xf32> to vector<8x42xf32>
    %c2_437 = arith.constant 2 : index
    %c5_438 = arith.constant 5 : index
    %636 = memref.load %arg9[%c2_437, %c5_438] : memref<16x16xf32, #tpu.memory_space<smem>>
    %637 = vector.broadcast %636 : f32 to vector<8x42xf32>
    %638 = arith.mulf %635, %637 : vector<8x42xf32>
    %639 = arith.addf %633, %638 : vector<8x42xf32>
    %c6_439 = arith.constant 6 : index
    %c0_440 = arith.constant 0 : index
    %c0_441 = arith.constant 0 : index
    %640 = vector.load %arg12[%c6_439, %c0_440, %c0_441] : memref<16x8x42xf32, #tpu.memory_space<vmem>>, vector<1x8x42xf32>
    %641 = vector.shape_cast %640 : vector<1x8x42xf32> to vector<8x42xf32>
    %c2_442 = arith.constant 2 : index
    %c6_443 = arith.constant 6 : index
    %642 = memref.load %arg9[%c2_442, %c6_443] : memref<16x16xf32, #tpu.memory_space<smem>>
    %643 = vector.broadcast %642 : f32 to vector<8x42xf32>
    %644 = arith.mulf %641, %643 : vector<8x42xf32>
    %645 = arith.addf %639, %644 : vector<8x42xf32>
    %c7_444 = arith.constant 7 : index
    %c0_445 = arith.constant 0 : index
    %c0_446 = arith.constant 0 : index
    %646 = vector.load %arg12[%c7_444, %c0_445, %c0_446] : memref<16x8x42xf32, #tpu.memory_space<vmem>>, vector<1x8x42xf32>
    %647 = vector.shape_cast %646 : vector<1x8x42xf32> to vector<8x42xf32>
    %c2_447 = arith.constant 2 : index
    %c7_448 = arith.constant 7 : index
    %648 = memref.load %arg9[%c2_447, %c7_448] : memref<16x16xf32, #tpu.memory_space<smem>>
    %649 = vector.broadcast %648 : f32 to vector<8x42xf32>
    %650 = arith.mulf %647, %649 : vector<8x42xf32>
    %651 = arith.addf %645, %650 : vector<8x42xf32>
    %c8_449 = arith.constant 8 : index
    %c0_450 = arith.constant 0 : index
    %c0_451 = arith.constant 0 : index
    %652 = vector.load %arg12[%c8_449, %c0_450, %c0_451] : memref<16x8x42xf32, #tpu.memory_space<vmem>>, vector<1x8x42xf32>
    %653 = vector.shape_cast %652 : vector<1x8x42xf32> to vector<8x42xf32>
    %c2_452 = arith.constant 2 : index
    %c8_453 = arith.constant 8 : index
    %654 = memref.load %arg9[%c2_452, %c8_453] : memref<16x16xf32, #tpu.memory_space<smem>>
    %655 = vector.broadcast %654 : f32 to vector<8x42xf32>
    %656 = arith.mulf %653, %655 : vector<8x42xf32>
    %657 = arith.addf %651, %656 : vector<8x42xf32>
    %c9_454 = arith.constant 9 : index
    %c0_455 = arith.constant 0 : index
    %c0_456 = arith.constant 0 : index
    %658 = vector.load %arg12[%c9_454, %c0_455, %c0_456] : memref<16x8x42xf32, #tpu.memory_space<vmem>>, vector<1x8x42xf32>
    %659 = vector.shape_cast %658 : vector<1x8x42xf32> to vector<8x42xf32>
    %c2_457 = arith.constant 2 : index
    %c9_458 = arith.constant 9 : index
    %660 = memref.load %arg9[%c2_457, %c9_458] : memref<16x16xf32, #tpu.memory_space<smem>>
    %661 = vector.broadcast %660 : f32 to vector<8x42xf32>
    %662 = arith.mulf %659, %661 : vector<8x42xf32>
    %663 = arith.addf %657, %662 : vector<8x42xf32>
    %c10_459 = arith.constant 10 : index
    %c0_460 = arith.constant 0 : index
    %c0_461 = arith.constant 0 : index
    %664 = vector.load %arg12[%c10_459, %c0_460, %c0_461] : memref<16x8x42xf32, #tpu.memory_space<vmem>>, vector<1x8x42xf32>
    %665 = vector.shape_cast %664 : vector<1x8x42xf32> to vector<8x42xf32>
    %c2_462 = arith.constant 2 : index
    %c10_463 = arith.constant 10 : index
    %666 = memref.load %arg9[%c2_462, %c10_463] : memref<16x16xf32, #tpu.memory_space<smem>>
    %667 = vector.broadcast %666 : f32 to vector<8x42xf32>
    %668 = arith.mulf %665, %667 : vector<8x42xf32>
    %669 = arith.addf %663, %668 : vector<8x42xf32>
    %c11_464 = arith.constant 11 : index
    %c0_465 = arith.constant 0 : index
    %c0_466 = arith.constant 0 : index
    %670 = vector.load %arg12[%c11_464, %c0_465, %c0_466] : memref<16x8x42xf32, #tpu.memory_space<vmem>>, vector<1x8x42xf32>
    %671 = vector.shape_cast %670 : vector<1x8x42xf32> to vector<8x42xf32>
    %c2_467 = arith.constant 2 : index
    %c11_468 = arith.constant 11 : index
    %672 = memref.load %arg9[%c2_467, %c11_468] : memref<16x16xf32, #tpu.memory_space<smem>>
    %673 = vector.broadcast %672 : f32 to vector<8x42xf32>
    %674 = arith.mulf %671, %673 : vector<8x42xf32>
    %675 = arith.addf %669, %674 : vector<8x42xf32>
    %c12_469 = arith.constant 12 : index
    %c0_470 = arith.constant 0 : index
    %c0_471 = arith.constant 0 : index
    %676 = vector.load %arg12[%c12_469, %c0_470, %c0_471] : memref<16x8x42xf32, #tpu.memory_space<vmem>>, vector<1x8x42xf32>
    %677 = vector.shape_cast %676 : vector<1x8x42xf32> to vector<8x42xf32>
    %c2_472 = arith.constant 2 : index
    %c12_473 = arith.constant 12 : index
    %678 = memref.load %arg9[%c2_472, %c12_473] : memref<16x16xf32, #tpu.memory_space<smem>>
    %679 = vector.broadcast %678 : f32 to vector<8x42xf32>
    %680 = arith.mulf %677, %679 : vector<8x42xf32>
    %681 = arith.addf %675, %680 : vector<8x42xf32>
    %c13_474 = arith.constant 13 : index
    %c0_475 = arith.constant 0 : index
    %c0_476 = arith.constant 0 : index
    %682 = vector.load %arg12[%c13_474, %c0_475, %c0_476] : memref<16x8x42xf32, #tpu.memory_space<vmem>>, vector<1x8x42xf32>
    %683 = vector.shape_cast %682 : vector<1x8x42xf32> to vector<8x42xf32>
    %c2_477 = arith.constant 2 : index
    %c13_478 = arith.constant 13 : index
    %684 = memref.load %arg9[%c2_477, %c13_478] : memref<16x16xf32, #tpu.memory_space<smem>>
    %685 = vector.broadcast %684 : f32 to vector<8x42xf32>
    %686 = arith.mulf %683, %685 : vector<8x42xf32>
    %687 = arith.addf %681, %686 : vector<8x42xf32>
    %c14_479 = arith.constant 14 : index
    %c0_480 = arith.constant 0 : index
    %c0_481 = arith.constant 0 : index
    %688 = vector.load %arg12[%c14_479, %c0_480, %c0_481] : memref<16x8x42xf32, #tpu.memory_space<vmem>>, vector<1x8x42xf32>
    %689 = vector.shape_cast %688 : vector<1x8x42xf32> to vector<8x42xf32>
    %c2_482 = arith.constant 2 : index
    %c14_483 = arith.constant 14 : index
    %690 = memref.load %arg9[%c2_482, %c14_483] : memref<16x16xf32, #tpu.memory_space<smem>>
    %691 = vector.broadcast %690 : f32 to vector<8x42xf32>
    %692 = arith.mulf %689, %691 : vector<8x42xf32>
    %693 = arith.addf %687, %692 : vector<8x42xf32>
    %c15_484 = arith.constant 15 : index
    %c0_485 = arith.constant 0 : index
    %c0_486 = arith.constant 0 : index
    %694 = vector.load %arg12[%c15_484, %c0_485, %c0_486] : memref<16x8x42xf32, #tpu.memory_space<vmem>>, vector<1x8x42xf32>
    %695 = vector.shape_cast %694 : vector<1x8x42xf32> to vector<8x42xf32>
    %c2_487 = arith.constant 2 : index
    %c15_488 = arith.constant 15 : index
    %696 = memref.load %arg9[%c2_487, %c15_488] : memref<16x16xf32, #tpu.memory_space<smem>>
    %697 = vector.broadcast %696 : f32 to vector<8x42xf32>
    %698 = arith.mulf %695, %697 : vector<8x42xf32>
    %699 = arith.addf %693, %698 : vector<8x42xf32>
    %c2_489 = arith.constant 2 : index
    %700 = memref.load %arg8[%c2_489] : memref<16xf32, #tpu.memory_space<smem>>
    %701 = vector.broadcast %700 : f32 to vector<8x42xf32>
    %702 = arith.addf %699, %701 : vector<8x42xf32>
    %cst_490 = arith.constant 0.000000e+00 : f32
    %703 = vector.broadcast %cst_490 : f32 to vector<8x42xf32>
    %704 = arith.cmpf ogt, %702, %703 : vector<8x42xf32>
    %cst_491 = arith.constant 0.000000e+00 : f32
    %705 = vector.broadcast %cst_491 : f32 to vector<8x42xf32>
    %706 = arith.minimumf %702, %705 : vector<8x42xf32>
    %707 = math.exp %706 : vector<8x42xf32>
    %cst_492 = arith.constant 1.000000e+00 : f32
    %708 = vector.broadcast %cst_492 : f32 to vector<8x42xf32>
    %709 = arith.subf %707, %708 : vector<8x42xf32>
    %710 = arith.select %704, %702, %709 : vector<8x42xi1>, vector<8x42xf32>
    %711 = arith.truncf %710 : vector<8x42xf32> to vector<8x42xbf16>
    %c2_493 = arith.constant 2 : index
    %c0_494 = arith.constant 0 : index
    %c0_495 = arith.constant 0 : index
    %712 = vector.load %arg5[%c2_493, %c0_494, %c0_495] : memref<16x42x5xbf16, #tpu.memory_space<vmem>>, vector<1x42x5xbf16>
    %713 = vector.shape_cast %712 : vector<1x42x5xbf16> to vector<42x5xbf16>
    %cst_496 = arith.constant dense<0.000000e+00> : vector<8x5xf32>
    %714 = tpu.matmul %711, %713, %cst_496 {dimension_numbers = #tpu.dot_dimension_numbers<[1], [0], [0], [1], [0, 0, 1, 1], [], []>} : vector<8x42xbf16>, vector<42x5xbf16>, vector<8x5xf32> -> vector<8x5xf32>
    %715 = arith.addf %604, %714 : vector<8x5xf32>
    %c0_497 = arith.constant 0 : index
    %c0_498 = arith.constant 0 : index
    %c0_499 = arith.constant 0 : index
    %716 = vector.load %arg12[%c0_497, %c0_498, %c0_499] : memref<16x8x42xf32, #tpu.memory_space<vmem>>, vector<1x8x42xf32>
    %717 = vector.shape_cast %716 : vector<1x8x42xf32> to vector<8x42xf32>
    %c3_500 = arith.constant 3 : index
    %c0_501 = arith.constant 0 : index
    %718 = memref.load %arg9[%c3_500, %c0_501] : memref<16x16xf32, #tpu.memory_space<smem>>
    %719 = vector.broadcast %718 : f32 to vector<8x42xf32>
    %720 = arith.mulf %717, %719 : vector<8x42xf32>
    %c1_502 = arith.constant 1 : index
    %c0_503 = arith.constant 0 : index
    %c0_504 = arith.constant 0 : index
    %721 = vector.load %arg12[%c1_502, %c0_503, %c0_504] : memref<16x8x42xf32, #tpu.memory_space<vmem>>, vector<1x8x42xf32>
    %722 = vector.shape_cast %721 : vector<1x8x42xf32> to vector<8x42xf32>
    %c3_505 = arith.constant 3 : index
    %c1_506 = arith.constant 1 : index
    %723 = memref.load %arg9[%c3_505, %c1_506] : memref<16x16xf32, #tpu.memory_space<smem>>
    %724 = vector.broadcast %723 : f32 to vector<8x42xf32>
    %725 = arith.mulf %722, %724 : vector<8x42xf32>
    %726 = arith.addf %720, %725 : vector<8x42xf32>
    %c2_507 = arith.constant 2 : index
    %c0_508 = arith.constant 0 : index
    %c0_509 = arith.constant 0 : index
    %727 = vector.load %arg12[%c2_507, %c0_508, %c0_509] : memref<16x8x42xf32, #tpu.memory_space<vmem>>, vector<1x8x42xf32>
    %728 = vector.shape_cast %727 : vector<1x8x42xf32> to vector<8x42xf32>
    %c3_510 = arith.constant 3 : index
    %c2_511 = arith.constant 2 : index
    %729 = memref.load %arg9[%c3_510, %c2_511] : memref<16x16xf32, #tpu.memory_space<smem>>
    %730 = vector.broadcast %729 : f32 to vector<8x42xf32>
    %731 = arith.mulf %728, %730 : vector<8x42xf32>
    %732 = arith.addf %726, %731 : vector<8x42xf32>
    %c3_512 = arith.constant 3 : index
    %c0_513 = arith.constant 0 : index
    %c0_514 = arith.constant 0 : index
    %733 = vector.load %arg12[%c3_512, %c0_513, %c0_514] : memref<16x8x42xf32, #tpu.memory_space<vmem>>, vector<1x8x42xf32>
    %734 = vector.shape_cast %733 : vector<1x8x42xf32> to vector<8x42xf32>
    %c3_515 = arith.constant 3 : index
    %c3_516 = arith.constant 3 : index
    %735 = memref.load %arg9[%c3_515, %c3_516] : memref<16x16xf32, #tpu.memory_space<smem>>
    %736 = vector.broadcast %735 : f32 to vector<8x42xf32>
    %737 = arith.mulf %734, %736 : vector<8x42xf32>
    %738 = arith.addf %732, %737 : vector<8x42xf32>
    %c4_517 = arith.constant 4 : index
    %c0_518 = arith.constant 0 : index
    %c0_519 = arith.constant 0 : index
    %739 = vector.load %arg12[%c4_517, %c0_518, %c0_519] : memref<16x8x42xf32, #tpu.memory_space<vmem>>, vector<1x8x42xf32>
    %740 = vector.shape_cast %739 : vector<1x8x42xf32> to vector<8x42xf32>
    %c3_520 = arith.constant 3 : index
    %c4_521 = arith.constant 4 : index
    %741 = memref.load %arg9[%c3_520, %c4_521] : memref<16x16xf32, #tpu.memory_space<smem>>
    %742 = vector.broadcast %741 : f32 to vector<8x42xf32>
    %743 = arith.mulf %740, %742 : vector<8x42xf32>
    %744 = arith.addf %738, %743 : vector<8x42xf32>
    %c5_522 = arith.constant 5 : index
    %c0_523 = arith.constant 0 : index
    %c0_524 = arith.constant 0 : index
    %745 = vector.load %arg12[%c5_522, %c0_523, %c0_524] : memref<16x8x42xf32, #tpu.memory_space<vmem>>, vector<1x8x42xf32>
    %746 = vector.shape_cast %745 : vector<1x8x42xf32> to vector<8x42xf32>
    %c3_525 = arith.constant 3 : index
    %c5_526 = arith.constant 5 : index
    %747 = memref.load %arg9[%c3_525, %c5_526] : memref<16x16xf32, #tpu.memory_space<smem>>
    %748 = vector.broadcast %747 : f32 to vector<8x42xf32>
    %749 = arith.mulf %746, %748 : vector<8x42xf32>
    %750 = arith.addf %744, %749 : vector<8x42xf32>
    %c6_527 = arith.constant 6 : index
    %c0_528 = arith.constant 0 : index
    %c0_529 = arith.constant 0 : index
    %751 = vector.load %arg12[%c6_527, %c0_528, %c0_529] : memref<16x8x42xf32, #tpu.memory_space<vmem>>, vector<1x8x42xf32>
    %752 = vector.shape_cast %751 : vector<1x8x42xf32> to vector<8x42xf32>
    %c3_530 = arith.constant 3 : index
    %c6_531 = arith.constant 6 : index
    %753 = memref.load %arg9[%c3_530, %c6_531] : memref<16x16xf32, #tpu.memory_space<smem>>
    %754 = vector.broadcast %753 : f32 to vector<8x42xf32>
    %755 = arith.mulf %752, %754 : vector<8x42xf32>
    %756 = arith.addf %750, %755 : vector<8x42xf32>
    %c7_532 = arith.constant 7 : index
    %c0_533 = arith.constant 0 : index
    %c0_534 = arith.constant 0 : index
    %757 = vector.load %arg12[%c7_532, %c0_533, %c0_534] : memref<16x8x42xf32, #tpu.memory_space<vmem>>, vector<1x8x42xf32>
    %758 = vector.shape_cast %757 : vector<1x8x42xf32> to vector<8x42xf32>
    %c3_535 = arith.constant 3 : index
    %c7_536 = arith.constant 7 : index
    %759 = memref.load %arg9[%c3_535, %c7_536] : memref<16x16xf32, #tpu.memory_space<smem>>
    %760 = vector.broadcast %759 : f32 to vector<8x42xf32>
    %761 = arith.mulf %758, %760 : vector<8x42xf32>
    %762 = arith.addf %756, %761 : vector<8x42xf32>
    %c8_537 = arith.constant 8 : index
    %c0_538 = arith.constant 0 : index
    %c0_539 = arith.constant 0 : index
    %763 = vector.load %arg12[%c8_537, %c0_538, %c0_539] : memref<16x8x42xf32, #tpu.memory_space<vmem>>, vector<1x8x42xf32>
    %764 = vector.shape_cast %763 : vector<1x8x42xf32> to vector<8x42xf32>
    %c3_540 = arith.constant 3 : index
    %c8_541 = arith.constant 8 : index
    %765 = memref.load %arg9[%c3_540, %c8_541] : memref<16x16xf32, #tpu.memory_space<smem>>
    %766 = vector.broadcast %765 : f32 to vector<8x42xf32>
    %767 = arith.mulf %764, %766 : vector<8x42xf32>
    %768 = arith.addf %762, %767 : vector<8x42xf32>
    %c9_542 = arith.constant 9 : index
    %c0_543 = arith.constant 0 : index
    %c0_544 = arith.constant 0 : index
    %769 = vector.load %arg12[%c9_542, %c0_543, %c0_544] : memref<16x8x42xf32, #tpu.memory_space<vmem>>, vector<1x8x42xf32>
    %770 = vector.shape_cast %769 : vector<1x8x42xf32> to vector<8x42xf32>
    %c3_545 = arith.constant 3 : index
    %c9_546 = arith.constant 9 : index
    %771 = memref.load %arg9[%c3_545, %c9_546] : memref<16x16xf32, #tpu.memory_space<smem>>
    %772 = vector.broadcast %771 : f32 to vector<8x42xf32>
    %773 = arith.mulf %770, %772 : vector<8x42xf32>
    %774 = arith.addf %768, %773 : vector<8x42xf32>
    %c10_547 = arith.constant 10 : index
    %c0_548 = arith.constant 0 : index
    %c0_549 = arith.constant 0 : index
    %775 = vector.load %arg12[%c10_547, %c0_548, %c0_549] : memref<16x8x42xf32, #tpu.memory_space<vmem>>, vector<1x8x42xf32>
    %776 = vector.shape_cast %775 : vector<1x8x42xf32> to vector<8x42xf32>
    %c3_550 = arith.constant 3 : index
    %c10_551 = arith.constant 10 : index
    %777 = memref.load %arg9[%c3_550, %c10_551] : memref<16x16xf32, #tpu.memory_space<smem>>
    %778 = vector.broadcast %777 : f32 to vector<8x42xf32>
    %779 = arith.mulf %776, %778 : vector<8x42xf32>
    %780 = arith.addf %774, %779 : vector<8x42xf32>
    %c11_552 = arith.constant 11 : index
    %c0_553 = arith.constant 0 : index
    %c0_554 = arith.constant 0 : index
    %781 = vector.load %arg12[%c11_552, %c0_553, %c0_554] : memref<16x8x42xf32, #tpu.memory_space<vmem>>, vector<1x8x42xf32>
    %782 = vector.shape_cast %781 : vector<1x8x42xf32> to vector<8x42xf32>
    %c3_555 = arith.constant 3 : index
    %c11_556 = arith.constant 11 : index
    %783 = memref.load %arg9[%c3_555, %c11_556] : memref<16x16xf32, #tpu.memory_space<smem>>
    %784 = vector.broadcast %783 : f32 to vector<8x42xf32>
    %785 = arith.mulf %782, %784 : vector<8x42xf32>
    %786 = arith.addf %780, %785 : vector<8x42xf32>
    %c12_557 = arith.constant 12 : index
    %c0_558 = arith.constant 0 : index
    %c0_559 = arith.constant 0 : index
    %787 = vector.load %arg12[%c12_557, %c0_558, %c0_559] : memref<16x8x42xf32, #tpu.memory_space<vmem>>, vector<1x8x42xf32>
    %788 = vector.shape_cast %787 : vector<1x8x42xf32> to vector<8x42xf32>
    %c3_560 = arith.constant 3 : index
    %c12_561 = arith.constant 12 : index
    %789 = memref.load %arg9[%c3_560, %c12_561] : memref<16x16xf32, #tpu.memory_space<smem>>
    %790 = vector.broadcast %789 : f32 to vector<8x42xf32>
    %791 = arith.mulf %788, %790 : vector<8x42xf32>
    %792 = arith.addf %786, %791 : vector<8x42xf32>
    %c13_562 = arith.constant 13 : index
    %c0_563 = arith.constant 0 : index
    %c0_564 = arith.constant 0 : index
    %793 = vector.load %arg12[%c13_562, %c0_563, %c0_564] : memref<16x8x42xf32, #tpu.memory_space<vmem>>, vector<1x8x42xf32>
    %794 = vector.shape_cast %793 : vector<1x8x42xf32> to vector<8x42xf32>
    %c3_565 = arith.constant 3 : index
    %c13_566 = arith.constant 13 : index
    %795 = memref.load %arg9[%c3_565, %c13_566] : memref<16x16xf32, #tpu.memory_space<smem>>
    %796 = vector.broadcast %795 : f32 to vector<8x42xf32>
    %797 = arith.mulf %794, %796 : vector<8x42xf32>
    %798 = arith.addf %792, %797 : vector<8x42xf32>
    %c14_567 = arith.constant 14 : index
    %c0_568 = arith.constant 0 : index
    %c0_569 = arith.constant 0 : index
    %799 = vector.load %arg12[%c14_567, %c0_568, %c0_569] : memref<16x8x42xf32, #tpu.memory_space<vmem>>, vector<1x8x42xf32>
    %800 = vector.shape_cast %799 : vector<1x8x42xf32> to vector<8x42xf32>
    %c3_570 = arith.constant 3 : index
    %c14_571 = arith.constant 14 : index
    %801 = memref.load %arg9[%c3_570, %c14_571] : memref<16x16xf32, #tpu.memory_space<smem>>
    %802 = vector.broadcast %801 : f32 to vector<8x42xf32>
    %803 = arith.mulf %800, %802 : vector<8x42xf32>
    %804 = arith.addf %798, %803 : vector<8x42xf32>
    %c15_572 = arith.constant 15 : index
    %c0_573 = arith.constant 0 : index
    %c0_574 = arith.constant 0 : index
    %805 = vector.load %arg12[%c15_572, %c0_573, %c0_574] : memref<16x8x42xf32, #tpu.memory_space<vmem>>, vector<1x8x42xf32>
    %806 = vector.shape_cast %805 : vector<1x8x42xf32> to vector<8x42xf32>
    %c3_575 = arith.constant 3 : index
    %c15_576 = arith.constant 15 : index
    %807 = memref.load %arg9[%c3_575, %c15_576] : memref<16x16xf32, #tpu.memory_space<smem>>
    %808 = vector.broadcast %807 : f32 to vector<8x42xf32>
    %809 = arith.mulf %806, %808 : vector<8x42xf32>
    %810 = arith.addf %804, %809 : vector<8x42xf32>
    %c3_577 = arith.constant 3 : index
    %811 = memref.load %arg8[%c3_577] : memref<16xf32, #tpu.memory_space<smem>>
    %812 = vector.broadcast %811 : f32 to vector<8x42xf32>
    %813 = arith.addf %810, %812 : vector<8x42xf32>
    %cst_578 = arith.constant 0.000000e+00 : f32
    %814 = vector.broadcast %cst_578 : f32 to vector<8x42xf32>
    %815 = arith.cmpf ogt, %813, %814 : vector<8x42xf32>
    %cst_579 = arith.constant 0.000000e+00 : f32
    %816 = vector.broadcast %cst_579 : f32 to vector<8x42xf32>
    %817 = arith.minimumf %813, %816 : vector<8x42xf32>
    %818 = math.exp %817 : vector<8x42xf32>
    %cst_580 = arith.constant 1.000000e+00 : f32
    %819 = vector.broadcast %cst_580 : f32 to vector<8x42xf32>
    %820 = arith.subf %818, %819 : vector<8x42xf32>
    %821 = arith.select %815, %813, %820 : vector<8x42xi1>, vector<8x42xf32>
    %822 = arith.truncf %821 : vector<8x42xf32> to vector<8x42xbf16>
    %c3_581 = arith.constant 3 : index
    %c0_582 = arith.constant 0 : index
    %c0_583 = arith.constant 0 : index
    %823 = vector.load %arg5[%c3_581, %c0_582, %c0_583] : memref<16x42x5xbf16, #tpu.memory_space<vmem>>, vector<1x42x5xbf16>
    %824 = vector.shape_cast %823 : vector<1x42x5xbf16> to vector<42x5xbf16>
    %cst_584 = arith.constant dense<0.000000e+00> : vector<8x5xf32>
    %825 = tpu.matmul %822, %824, %cst_584 {dimension_numbers = #tpu.dot_dimension_numbers<[1], [0], [0], [1], [0, 0, 1, 1], [], []>} : vector<8x42xbf16>, vector<42x5xbf16>, vector<8x5xf32> -> vector<8x5xf32>
    %826 = arith.addf %715, %825 : vector<8x5xf32>
    %c0_585 = arith.constant 0 : index
    %c0_586 = arith.constant 0 : index
    %c0_587 = arith.constant 0 : index
    %827 = vector.load %arg12[%c0_585, %c0_586, %c0_587] : memref<16x8x42xf32, #tpu.memory_space<vmem>>, vector<1x8x42xf32>
    %828 = vector.shape_cast %827 : vector<1x8x42xf32> to vector<8x42xf32>
    %c4_588 = arith.constant 4 : index
    %c0_589 = arith.constant 0 : index
    %829 = memref.load %arg9[%c4_588, %c0_589] : memref<16x16xf32, #tpu.memory_space<smem>>
    %830 = vector.broadcast %829 : f32 to vector<8x42xf32>
    %831 = arith.mulf %828, %830 : vector<8x42xf32>
    %c1_590 = arith.constant 1 : index
    %c0_591 = arith.constant 0 : index
    %c0_592 = arith.constant 0 : index
    %832 = vector.load %arg12[%c1_590, %c0_591, %c0_592] : memref<16x8x42xf32, #tpu.memory_space<vmem>>, vector<1x8x42xf32>
    %833 = vector.shape_cast %832 : vector<1x8x42xf32> to vector<8x42xf32>
    %c4_593 = arith.constant 4 : index
    %c1_594 = arith.constant 1 : index
    %834 = memref.load %arg9[%c4_593, %c1_594] : memref<16x16xf32, #tpu.memory_space<smem>>
    %835 = vector.broadcast %834 : f32 to vector<8x42xf32>
    %836 = arith.mulf %833, %835 : vector<8x42xf32>
    %837 = arith.addf %831, %836 : vector<8x42xf32>
    %c2_595 = arith.constant 2 : index
    %c0_596 = arith.constant 0 : index
    %c0_597 = arith.constant 0 : index
    %838 = vector.load %arg12[%c2_595, %c0_596, %c0_597] : memref<16x8x42xf32, #tpu.memory_space<vmem>>, vector<1x8x42xf32>
    %839 = vector.shape_cast %838 : vector<1x8x42xf32> to vector<8x42xf32>
    %c4_598 = arith.constant 4 : index
    %c2_599 = arith.constant 2 : index
    %840 = memref.load %arg9[%c4_598, %c2_599] : memref<16x16xf32, #tpu.memory_space<smem>>
    %841 = vector.broadcast %840 : f32 to vector<8x42xf32>
    %842 = arith.mulf %839, %841 : vector<8x42xf32>
    %843 = arith.addf %837, %842 : vector<8x42xf32>
    %c3_600 = arith.constant 3 : index
    %c0_601 = arith.constant 0 : index
    %c0_602 = arith.constant 0 : index
    %844 = vector.load %arg12[%c3_600, %c0_601, %c0_602] : memref<16x8x42xf32, #tpu.memory_space<vmem>>, vector<1x8x42xf32>
    %845 = vector.shape_cast %844 : vector<1x8x42xf32> to vector<8x42xf32>
    %c4_603 = arith.constant 4 : index
    %c3_604 = arith.constant 3 : index
    %846 = memref.load %arg9[%c4_603, %c3_604] : memref<16x16xf32, #tpu.memory_space<smem>>
    %847 = vector.broadcast %846 : f32 to vector<8x42xf32>
    %848 = arith.mulf %845, %847 : vector<8x42xf32>
    %849 = arith.addf %843, %848 : vector<8x42xf32>
    %c4_605 = arith.constant 4 : index
    %c0_606 = arith.constant 0 : index
    %c0_607 = arith.constant 0 : index
    %850 = vector.load %arg12[%c4_605, %c0_606, %c0_607] : memref<16x8x42xf32, #tpu.memory_space<vmem>>, vector<1x8x42xf32>
    %851 = vector.shape_cast %850 : vector<1x8x42xf32> to vector<8x42xf32>
    %c4_608 = arith.constant 4 : index
    %c4_609 = arith.constant 4 : index
    %852 = memref.load %arg9[%c4_608, %c4_609] : memref<16x16xf32, #tpu.memory_space<smem>>
    %853 = vector.broadcast %852 : f32 to vector<8x42xf32>
    %854 = arith.mulf %851, %853 : vector<8x42xf32>
    %855 = arith.addf %849, %854 : vector<8x42xf32>
    %c5_610 = arith.constant 5 : index
    %c0_611 = arith.constant 0 : index
    %c0_612 = arith.constant 0 : index
    %856 = vector.load %arg12[%c5_610, %c0_611, %c0_612] : memref<16x8x42xf32, #tpu.memory_space<vmem>>, vector<1x8x42xf32>
    %857 = vector.shape_cast %856 : vector<1x8x42xf32> to vector<8x42xf32>
    %c4_613 = arith.constant 4 : index
    %c5_614 = arith.constant 5 : index
    %858 = memref.load %arg9[%c4_613, %c5_614] : memref<16x16xf32, #tpu.memory_space<smem>>
    %859 = vector.broadcast %858 : f32 to vector<8x42xf32>
    %860 = arith.mulf %857, %859 : vector<8x42xf32>
    %861 = arith.addf %855, %860 : vector<8x42xf32>
    %c6_615 = arith.constant 6 : index
    %c0_616 = arith.constant 0 : index
    %c0_617 = arith.constant 0 : index
    %862 = vector.load %arg12[%c6_615, %c0_616, %c0_617] : memref<16x8x42xf32, #tpu.memory_space<vmem>>, vector<1x8x42xf32>
    %863 = vector.shape_cast %862 : vector<1x8x42xf32> to vector<8x42xf32>
    %c4_618 = arith.constant 4 : index
    %c6_619 = arith.constant 6 : index
    %864 = memref.load %arg9[%c4_618, %c6_619] : memref<16x16xf32, #tpu.memory_space<smem>>
    %865 = vector.broadcast %864 : f32 to vector<8x42xf32>
    %866 = arith.mulf %863, %865 : vector<8x42xf32>
    %867 = arith.addf %861, %866 : vector<8x42xf32>
    %c7_620 = arith.constant 7 : index
    %c0_621 = arith.constant 0 : index
    %c0_622 = arith.constant 0 : index
    %868 = vector.load %arg12[%c7_620, %c0_621, %c0_622] : memref<16x8x42xf32, #tpu.memory_space<vmem>>, vector<1x8x42xf32>
    %869 = vector.shape_cast %868 : vector<1x8x42xf32> to vector<8x42xf32>
    %c4_623 = arith.constant 4 : index
    %c7_624 = arith.constant 7 : index
    %870 = memref.load %arg9[%c4_623, %c7_624] : memref<16x16xf32, #tpu.memory_space<smem>>
    %871 = vector.broadcast %870 : f32 to vector<8x42xf32>
    %872 = arith.mulf %869, %871 : vector<8x42xf32>
    %873 = arith.addf %867, %872 : vector<8x42xf32>
    %c8_625 = arith.constant 8 : index
    %c0_626 = arith.constant 0 : index
    %c0_627 = arith.constant 0 : index
    %874 = vector.load %arg12[%c8_625, %c0_626, %c0_627] : memref<16x8x42xf32, #tpu.memory_space<vmem>>, vector<1x8x42xf32>
    %875 = vector.shape_cast %874 : vector<1x8x42xf32> to vector<8x42xf32>
    %c4_628 = arith.constant 4 : index
    %c8_629 = arith.constant 8 : index
    %876 = memref.load %arg9[%c4_628, %c8_629] : memref<16x16xf32, #tpu.memory_space<smem>>
    %877 = vector.broadcast %876 : f32 to vector<8x42xf32>
    %878 = arith.mulf %875, %877 : vector<8x42xf32>
    %879 = arith.addf %873, %878 : vector<8x42xf32>
    %c9_630 = arith.constant 9 : index
    %c0_631 = arith.constant 0 : index
    %c0_632 = arith.constant 0 : index
    %880 = vector.load %arg12[%c9_630, %c0_631, %c0_632] : memref<16x8x42xf32, #tpu.memory_space<vmem>>, vector<1x8x42xf32>
    %881 = vector.shape_cast %880 : vector<1x8x42xf32> to vector<8x42xf32>
    %c4_633 = arith.constant 4 : index
    %c9_634 = arith.constant 9 : index
    %882 = memref.load %arg9[%c4_633, %c9_634] : memref<16x16xf32, #tpu.memory_space<smem>>
    %883 = vector.broadcast %882 : f32 to vector<8x42xf32>
    %884 = arith.mulf %881, %883 : vector<8x42xf32>
    %885 = arith.addf %879, %884 : vector<8x42xf32>
    %c10_635 = arith.constant 10 : index
    %c0_636 = arith.constant 0 : index
    %c0_637 = arith.constant 0 : index
    %886 = vector.load %arg12[%c10_635, %c0_636, %c0_637] : memref<16x8x42xf32, #tpu.memory_space<vmem>>, vector<1x8x42xf32>
    %887 = vector.shape_cast %886 : vector<1x8x42xf32> to vector<8x42xf32>
    %c4_638 = arith.constant 4 : index
    %c10_639 = arith.constant 10 : index
    %888 = memref.load %arg9[%c4_638, %c10_639] : memref<16x16xf32, #tpu.memory_space<smem>>
    %889 = vector.broadcast %888 : f32 to vector<8x42xf32>
    %890 = arith.mulf %887, %889 : vector<8x42xf32>
    %891 = arith.addf %885, %890 : vector<8x42xf32>
    %c11_640 = arith.constant 11 : index
    %c0_641 = arith.constant 0 : index
    %c0_642 = arith.constant 0 : index
    %892 = vector.load %arg12[%c11_640, %c0_641, %c0_642] : memref<16x8x42xf32, #tpu.memory_space<vmem>>, vector<1x8x42xf32>
    %893 = vector.shape_cast %892 : vector<1x8x42xf32> to vector<8x42xf32>
    %c4_643 = arith.constant 4 : index
    %c11_644 = arith.constant 11 : index
    %894 = memref.load %arg9[%c4_643, %c11_644] : memref<16x16xf32, #tpu.memory_space<smem>>
    %895 = vector.broadcast %894 : f32 to vector<8x42xf32>
    %896 = arith.mulf %893, %895 : vector<8x42xf32>
    %897 = arith.addf %891, %896 : vector<8x42xf32>
    %c12_645 = arith.constant 12 : index
    %c0_646 = arith.constant 0 : index
    %c0_647 = arith.constant 0 : index
    %898 = vector.load %arg12[%c12_645, %c0_646, %c0_647] : memref<16x8x42xf32, #tpu.memory_space<vmem>>, vector<1x8x42xf32>
    %899 = vector.shape_cast %898 : vector<1x8x42xf32> to vector<8x42xf32>
    %c4_648 = arith.constant 4 : index
    %c12_649 = arith.constant 12 : index
    %900 = memref.load %arg9[%c4_648, %c12_649] : memref<16x16xf32, #tpu.memory_space<smem>>
    %901 = vector.broadcast %900 : f32 to vector<8x42xf32>
    %902 = arith.mulf %899, %901 : vector<8x42xf32>
    %903 = arith.addf %897, %902 : vector<8x42xf32>
    %c13_650 = arith.constant 13 : index
    %c0_651 = arith.constant 0 : index
    %c0_652 = arith.constant 0 : index
    %904 = vector.load %arg12[%c13_650, %c0_651, %c0_652] : memref<16x8x42xf32, #tpu.memory_space<vmem>>, vector<1x8x42xf32>
    %905 = vector.shape_cast %904 : vector<1x8x42xf32> to vector<8x42xf32>
    %c4_653 = arith.constant 4 : index
    %c13_654 = arith.constant 13 : index
    %906 = memref.load %arg9[%c4_653, %c13_654] : memref<16x16xf32, #tpu.memory_space<smem>>
    %907 = vector.broadcast %906 : f32 to vector<8x42xf32>
    %908 = arith.mulf %905, %907 : vector<8x42xf32>
    %909 = arith.addf %903, %908 : vector<8x42xf32>
    %c14_655 = arith.constant 14 : index
    %c0_656 = arith.constant 0 : index
    %c0_657 = arith.constant 0 : index
    %910 = vector.load %arg12[%c14_655, %c0_656, %c0_657] : memref<16x8x42xf32, #tpu.memory_space<vmem>>, vector<1x8x42xf32>
    %911 = vector.shape_cast %910 : vector<1x8x42xf32> to vector<8x42xf32>
    %c4_658 = arith.constant 4 : index
    %c14_659 = arith.constant 14 : index
    %912 = memref.load %arg9[%c4_658, %c14_659] : memref<16x16xf32, #tpu.memory_space<smem>>
    %913 = vector.broadcast %912 : f32 to vector<8x42xf32>
    %914 = arith.mulf %911, %913 : vector<8x42xf32>
    %915 = arith.addf %909, %914 : vector<8x42xf32>
    %c15_660 = arith.constant 15 : index
    %c0_661 = arith.constant 0 : index
    %c0_662 = arith.constant 0 : index
    %916 = vector.load %arg12[%c15_660, %c0_661, %c0_662] : memref<16x8x42xf32, #tpu.memory_space<vmem>>, vector<1x8x42xf32>
    %917 = vector.shape_cast %916 : vector<1x8x42xf32> to vector<8x42xf32>
    %c4_663 = arith.constant 4 : index
    %c15_664 = arith.constant 15 : index
    %918 = memref.load %arg9[%c4_663, %c15_664] : memref<16x16xf32, #tpu.memory_space<smem>>
    %919 = vector.broadcast %918 : f32 to vector<8x42xf32>
    %920 = arith.mulf %917, %919 : vector<8x42xf32>
    %921 = arith.addf %915, %920 : vector<8x42xf32>
    %c4_665 = arith.constant 4 : index
    %922 = memref.load %arg8[%c4_665] : memref<16xf32, #tpu.memory_space<smem>>
    %923 = vector.broadcast %922 : f32 to vector<8x42xf32>
    %924 = arith.addf %921, %923 : vector<8x42xf32>
    %cst_666 = arith.constant 0.000000e+00 : f32
    %925 = vector.broadcast %cst_666 : f32 to vector<8x42xf32>
    %926 = arith.cmpf ogt, %924, %925 : vector<8x42xf32>
    %cst_667 = arith.constant 0.000000e+00 : f32
    %927 = vector.broadcast %cst_667 : f32 to vector<8x42xf32>
    %928 = arith.minimumf %924, %927 : vector<8x42xf32>
    %929 = math.exp %928 : vector<8x42xf32>
    %cst_668 = arith.constant 1.000000e+00 : f32
    %930 = vector.broadcast %cst_668 : f32 to vector<8x42xf32>
    %931 = arith.subf %929, %930 : vector<8x42xf32>
    %932 = arith.select %926, %924, %931 : vector<8x42xi1>, vector<8x42xf32>
    %933 = arith.truncf %932 : vector<8x42xf32> to vector<8x42xbf16>
    %c4_669 = arith.constant 4 : index
    %c0_670 = arith.constant 0 : index
    %c0_671 = arith.constant 0 : index
    %934 = vector.load %arg5[%c4_669, %c0_670, %c0_671] : memref<16x42x5xbf16, #tpu.memory_space<vmem>>, vector<1x42x5xbf16>
    %935 = vector.shape_cast %934 : vector<1x42x5xbf16> to vector<42x5xbf16>
    %cst_672 = arith.constant dense<0.000000e+00> : vector<8x5xf32>
    %936 = tpu.matmul %933, %935, %cst_672 {dimension_numbers = #tpu.dot_dimension_numbers<[1], [0], [0], [1], [0, 0, 1, 1], [], []>} : vector<8x42xbf16>, vector<42x5xbf16>, vector<8x5xf32> -> vector<8x5xf32>
    %937 = arith.addf %826, %936 : vector<8x5xf32>
    %c0_673 = arith.constant 0 : index
    %c0_674 = arith.constant 0 : index
    %c0_675 = arith.constant 0 : index
    %938 = vector.load %arg12[%c0_673, %c0_674, %c0_675] : memref<16x8x42xf32, #tpu.memory_space<vmem>>, vector<1x8x42xf32>
    %939 = vector.shape_cast %938 : vector<1x8x42xf32> to vector<8x42xf32>
    %c5_676 = arith.constant 5 : index
    %c0_677 = arith.constant 0 : index
    %940 = memref.load %arg9[%c5_676, %c0_677] : memref<16x16xf32, #tpu.memory_space<smem>>
    %941 = vector.broadcast %940 : f32 to vector<8x42xf32>
    %942 = arith.mulf %939, %941 : vector<8x42xf32>
    %c1_678 = arith.constant 1 : index
    %c0_679 = arith.constant 0 : index
    %c0_680 = arith.constant 0 : index
    %943 = vector.load %arg12[%c1_678, %c0_679, %c0_680] : memref<16x8x42xf32, #tpu.memory_space<vmem>>, vector<1x8x42xf32>
    %944 = vector.shape_cast %943 : vector<1x8x42xf32> to vector<8x42xf32>
    %c5_681 = arith.constant 5 : index
    %c1_682 = arith.constant 1 : index
    %945 = memref.load %arg9[%c5_681, %c1_682] : memref<16x16xf32, #tpu.memory_space<smem>>
    %946 = vector.broadcast %945 : f32 to vector<8x42xf32>
    %947 = arith.mulf %944, %946 : vector<8x42xf32>
    %948 = arith.addf %942, %947 : vector<8x42xf32>
    %c2_683 = arith.constant 2 : index
    %c0_684 = arith.constant 0 : index
    %c0_685 = arith.constant 0 : index
    %949 = vector.load %arg12[%c2_683, %c0_684, %c0_685] : memref<16x8x42xf32, #tpu.memory_space<vmem>>, vector<1x8x42xf32>
    %950 = vector.shape_cast %949 : vector<1x8x42xf32> to vector<8x42xf32>
    %c5_686 = arith.constant 5 : index
    %c2_687 = arith.constant 2 : index
    %951 = memref.load %arg9[%c5_686, %c2_687] : memref<16x16xf32, #tpu.memory_space<smem>>
    %952 = vector.broadcast %951 : f32 to vector<8x42xf32>
    %953 = arith.mulf %950, %952 : vector<8x42xf32>
    %954 = arith.addf %948, %953 : vector<8x42xf32>
    %c3_688 = arith.constant 3 : index
    %c0_689 = arith.constant 0 : index
    %c0_690 = arith.constant 0 : index
    %955 = vector.load %arg12[%c3_688, %c0_689, %c0_690] : memref<16x8x42xf32, #tpu.memory_space<vmem>>, vector<1x8x42xf32>
    %956 = vector.shape_cast %955 : vector<1x8x42xf32> to vector<8x42xf32>
    %c5_691 = arith.constant 5 : index
    %c3_692 = arith.constant 3 : index
    %957 = memref.load %arg9[%c5_691, %c3_692] : memref<16x16xf32, #tpu.memory_space<smem>>
    %958 = vector.broadcast %957 : f32 to vector<8x42xf32>
    %959 = arith.mulf %956, %958 : vector<8x42xf32>
    %960 = arith.addf %954, %959 : vector<8x42xf32>
    %c4_693 = arith.constant 4 : index
    %c0_694 = arith.constant 0 : index
    %c0_695 = arith.constant 0 : index
    %961 = vector.load %arg12[%c4_693, %c0_694, %c0_695] : memref<16x8x42xf32, #tpu.memory_space<vmem>>, vector<1x8x42xf32>
    %962 = vector.shape_cast %961 : vector<1x8x42xf32> to vector<8x42xf32>
    %c5_696 = arith.constant 5 : index
    %c4_697 = arith.constant 4 : index
    %963 = memref.load %arg9[%c5_696, %c4_697] : memref<16x16xf32, #tpu.memory_space<smem>>
    %964 = vector.broadcast %963 : f32 to vector<8x42xf32>
    %965 = arith.mulf %962, %964 : vector<8x42xf32>
    %966 = arith.addf %960, %965 : vector<8x42xf32>
    %c5_698 = arith.constant 5 : index
    %c0_699 = arith.constant 0 : index
    %c0_700 = arith.constant 0 : index
    %967 = vector.load %arg12[%c5_698, %c0_699, %c0_700] : memref<16x8x42xf32, #tpu.memory_space<vmem>>, vector<1x8x42xf32>
    %968 = vector.shape_cast %967 : vector<1x8x42xf32> to vector<8x42xf32>
    %c5_701 = arith.constant 5 : index
    %c5_702 = arith.constant 5 : index
    %969 = memref.load %arg9[%c5_701, %c5_702] : memref<16x16xf32, #tpu.memory_space<smem>>
    %970 = vector.broadcast %969 : f32 to vector<8x42xf32>
    %971 = arith.mulf %968, %970 : vector<8x42xf32>
    %972 = arith.addf %966, %971 : vector<8x42xf32>
    %c6_703 = arith.constant 6 : index
    %c0_704 = arith.constant 0 : index
    %c0_705 = arith.constant 0 : index
    %973 = vector.load %arg12[%c6_703, %c0_704, %c0_705] : memref<16x8x42xf32, #tpu.memory_space<vmem>>, vector<1x8x42xf32>
    %974 = vector.shape_cast %973 : vector<1x8x42xf32> to vector<8x42xf32>
    %c5_706 = arith.constant 5 : index
    %c6_707 = arith.constant 6 : index
    %975 = memref.load %arg9[%c5_706, %c6_707] : memref<16x16xf32, #tpu.memory_space<smem>>
    %976 = vector.broadcast %975 : f32 to vector<8x42xf32>
    %977 = arith.mulf %974, %976 : vector<8x42xf32>
    %978 = arith.addf %972, %977 : vector<8x42xf32>
    %c7_708 = arith.constant 7 : index
    %c0_709 = arith.constant 0 : index
    %c0_710 = arith.constant 0 : index
    %979 = vector.load %arg12[%c7_708, %c0_709, %c0_710] : memref<16x8x42xf32, #tpu.memory_space<vmem>>, vector<1x8x42xf32>
    %980 = vector.shape_cast %979 : vector<1x8x42xf32> to vector<8x42xf32>
    %c5_711 = arith.constant 5 : index
    %c7_712 = arith.constant 7 : index
    %981 = memref.load %arg9[%c5_711, %c7_712] : memref<16x16xf32, #tpu.memory_space<smem>>
    %982 = vector.broadcast %981 : f32 to vector<8x42xf32>
    %983 = arith.mulf %980, %982 : vector<8x42xf32>
    %984 = arith.addf %978, %983 : vector<8x42xf32>
    %c8_713 = arith.constant 8 : index
    %c0_714 = arith.constant 0 : index
    %c0_715 = arith.constant 0 : index
    %985 = vector.load %arg12[%c8_713, %c0_714, %c0_715] : memref<16x8x42xf32, #tpu.memory_space<vmem>>, vector<1x8x42xf32>
    %986 = vector.shape_cast %985 : vector<1x8x42xf32> to vector<8x42xf32>
    %c5_716 = arith.constant 5 : index
    %c8_717 = arith.constant 8 : index
    %987 = memref.load %arg9[%c5_716, %c8_717] : memref<16x16xf32, #tpu.memory_space<smem>>
    %988 = vector.broadcast %987 : f32 to vector<8x42xf32>
    %989 = arith.mulf %986, %988 : vector<8x42xf32>
    %990 = arith.addf %984, %989 : vector<8x42xf32>
    %c9_718 = arith.constant 9 : index
    %c0_719 = arith.constant 0 : index
    %c0_720 = arith.constant 0 : index
    %991 = vector.load %arg12[%c9_718, %c0_719, %c0_720] : memref<16x8x42xf32, #tpu.memory_space<vmem>>, vector<1x8x42xf32>
    %992 = vector.shape_cast %991 : vector<1x8x42xf32> to vector<8x42xf32>
    %c5_721 = arith.constant 5 : index
    %c9_722 = arith.constant 9 : index
    %993 = memref.load %arg9[%c5_721, %c9_722] : memref<16x16xf32, #tpu.memory_space<smem>>
    %994 = vector.broadcast %993 : f32 to vector<8x42xf32>
    %995 = arith.mulf %992, %994 : vector<8x42xf32>
    %996 = arith.addf %990, %995 : vector<8x42xf32>
    %c10_723 = arith.constant 10 : index
    %c0_724 = arith.constant 0 : index
    %c0_725 = arith.constant 0 : index
    %997 = vector.load %arg12[%c10_723, %c0_724, %c0_725] : memref<16x8x42xf32, #tpu.memory_space<vmem>>, vector<1x8x42xf32>
    %998 = vector.shape_cast %997 : vector<1x8x42xf32> to vector<8x42xf32>
    %c5_726 = arith.constant 5 : index
    %c10_727 = arith.constant 10 : index
    %999 = memref.load %arg9[%c5_726, %c10_727] : memref<16x16xf32, #tpu.memory_space<smem>>
    %1000 = vector.broadcast %999 : f32 to vector<8x42xf32>
    %1001 = arith.mulf %998, %1000 : vector<8x42xf32>
    %1002 = arith.addf %996, %1001 : vector<8x42xf32>
    %c11_728 = arith.constant 11 : index
    %c0_729 = arith.constant 0 : index
    %c0_730 = arith.constant 0 : index
    %1003 = vector.load %arg12[%c11_728, %c0_729, %c0_730] : memref<16x8x42xf32, #tpu.memory_space<vmem>>, vector<1x8x42xf32>
    %1004 = vector.shape_cast %1003 : vector<1x8x42xf32> to vector<8x42xf32>
    %c5_731 = arith.constant 5 : index
    %c11_732 = arith.constant 11 : index
    %1005 = memref.load %arg9[%c5_731, %c11_732] : memref<16x16xf32, #tpu.memory_space<smem>>
    %1006 = vector.broadcast %1005 : f32 to vector<8x42xf32>
    %1007 = arith.mulf %1004, %1006 : vector<8x42xf32>
    %1008 = arith.addf %1002, %1007 : vector<8x42xf32>
    %c12_733 = arith.constant 12 : index
    %c0_734 = arith.constant 0 : index
    %c0_735 = arith.constant 0 : index
    %1009 = vector.load %arg12[%c12_733, %c0_734, %c0_735] : memref<16x8x42xf32, #tpu.memory_space<vmem>>, vector<1x8x42xf32>
    %1010 = vector.shape_cast %1009 : vector<1x8x42xf32> to vector<8x42xf32>
    %c5_736 = arith.constant 5 : index
    %c12_737 = arith.constant 12 : index
    %1011 = memref.load %arg9[%c5_736, %c12_737] : memref<16x16xf32, #tpu.memory_space<smem>>
    %1012 = vector.broadcast %1011 : f32 to vector<8x42xf32>
    %1013 = arith.mulf %1010, %1012 : vector<8x42xf32>
    %1014 = arith.addf %1008, %1013 : vector<8x42xf32>
    %c13_738 = arith.constant 13 : index
    %c0_739 = arith.constant 0 : index
    %c0_740 = arith.constant 0 : index
    %1015 = vector.load %arg12[%c13_738, %c0_739, %c0_740] : memref<16x8x42xf32, #tpu.memory_space<vmem>>, vector<1x8x42xf32>
    %1016 = vector.shape_cast %1015 : vector<1x8x42xf32> to vector<8x42xf32>
    %c5_741 = arith.constant 5 : index
    %c13_742 = arith.constant 13 : index
    %1017 = memref.load %arg9[%c5_741, %c13_742] : memref<16x16xf32, #tpu.memory_space<smem>>
    %1018 = vector.broadcast %1017 : f32 to vector<8x42xf32>
    %1019 = arith.mulf %1016, %1018 : vector<8x42xf32>
    %1020 = arith.addf %1014, %1019 : vector<8x42xf32>
    %c14_743 = arith.constant 14 : index
    %c0_744 = arith.constant 0 : index
    %c0_745 = arith.constant 0 : index
    %1021 = vector.load %arg12[%c14_743, %c0_744, %c0_745] : memref<16x8x42xf32, #tpu.memory_space<vmem>>, vector<1x8x42xf32>
    %1022 = vector.shape_cast %1021 : vector<1x8x42xf32> to vector<8x42xf32>
    %c5_746 = arith.constant 5 : index
    %c14_747 = arith.constant 14 : index
    %1023 = memref.load %arg9[%c5_746, %c14_747] : memref<16x16xf32, #tpu.memory_space<smem>>
    %1024 = vector.broadcast %1023 : f32 to vector<8x42xf32>
    %1025 = arith.mulf %1022, %1024 : vector<8x42xf32>
    %1026 = arith.addf %1020, %1025 : vector<8x42xf32>
    %c15_748 = arith.constant 15 : index
    %c0_749 = arith.constant 0 : index
    %c0_750 = arith.constant 0 : index
    %1027 = vector.load %arg12[%c15_748, %c0_749, %c0_750] : memref<16x8x42xf32, #tpu.memory_space<vmem>>, vector<1x8x42xf32>
    %1028 = vector.shape_cast %1027 : vector<1x8x42xf32> to vector<8x42xf32>
    %c5_751 = arith.constant 5 : index
    %c15_752 = arith.constant 15 : index
    %1029 = memref.load %arg9[%c5_751, %c15_752] : memref<16x16xf32, #tpu.memory_space<smem>>
    %1030 = vector.broadcast %1029 : f32 to vector<8x42xf32>
    %1031 = arith.mulf %1028, %1030 : vector<8x42xf32>
    %1032 = arith.addf %1026, %1031 : vector<8x42xf32>
    %c5_753 = arith.constant 5 : index
    %1033 = memref.load %arg8[%c5_753] : memref<16xf32, #tpu.memory_space<smem>>
    %1034 = vector.broadcast %1033 : f32 to vector<8x42xf32>
    %1035 = arith.addf %1032, %1034 : vector<8x42xf32>
    %cst_754 = arith.constant 0.000000e+00 : f32
    %1036 = vector.broadcast %cst_754 : f32 to vector<8x42xf32>
    %1037 = arith.cmpf ogt, %1035, %1036 : vector<8x42xf32>
    %cst_755 = arith.constant 0.000000e+00 : f32
    %1038 = vector.broadcast %cst_755 : f32 to vector<8x42xf32>
    %1039 = arith.minimumf %1035, %1038 : vector<8x42xf32>
    %1040 = math.exp %1039 : vector<8x42xf32>
    %cst_756 = arith.constant 1.000000e+00 : f32
    %1041 = vector.broadcast %cst_756 : f32 to vector<8x42xf32>
    %1042 = arith.subf %1040, %1041 : vector<8x42xf32>
    %1043 = arith.select %1037, %1035, %1042 : vector<8x42xi1>, vector<8x42xf32>
    %1044 = arith.truncf %1043 : vector<8x42xf32> to vector<8x42xbf16>
    %c5_757 = arith.constant 5 : index
    %c0_758 = arith.constant 0 : index
    %c0_759 = arith.constant 0 : index
    %1045 = vector.load %arg5[%c5_757, %c0_758, %c0_759] : memref<16x42x5xbf16, #tpu.memory_space<vmem>>, vector<1x42x5xbf16>
    %1046 = vector.shape_cast %1045 : vector<1x42x5xbf16> to vector<42x5xbf16>
    %cst_760 = arith.constant dense<0.000000e+00> : vector<8x5xf32>
    %1047 = tpu.matmul %1044, %1046, %cst_760 {dimension_numbers = #tpu.dot_dimension_numbers<[1], [0], [0], [1], [0, 0, 1, 1], [], []>} : vector<8x42xbf16>, vector<42x5xbf16>, vector<8x5xf32> -> vector<8x5xf32>
    %1048 = arith.addf %937, %1047 : vector<8x5xf32>
    %c0_761 = arith.constant 0 : index
    %c0_762 = arith.constant 0 : index
    %c0_763 = arith.constant 0 : index
    %1049 = vector.load %arg12[%c0_761, %c0_762, %c0_763] : memref<16x8x42xf32, #tpu.memory_space<vmem>>, vector<1x8x42xf32>
    %1050 = vector.shape_cast %1049 : vector<1x8x42xf32> to vector<8x42xf32>
    %c6_764 = arith.constant 6 : index
    %c0_765 = arith.constant 0 : index
    %1051 = memref.load %arg9[%c6_764, %c0_765] : memref<16x16xf32, #tpu.memory_space<smem>>
    %1052 = vector.broadcast %1051 : f32 to vector<8x42xf32>
    %1053 = arith.mulf %1050, %1052 : vector<8x42xf32>
    %c1_766 = arith.constant 1 : index
    %c0_767 = arith.constant 0 : index
    %c0_768 = arith.constant 0 : index
    %1054 = vector.load %arg12[%c1_766, %c0_767, %c0_768] : memref<16x8x42xf32, #tpu.memory_space<vmem>>, vector<1x8x42xf32>
    %1055 = vector.shape_cast %1054 : vector<1x8x42xf32> to vector<8x42xf32>
    %c6_769 = arith.constant 6 : index
    %c1_770 = arith.constant 1 : index
    %1056 = memref.load %arg9[%c6_769, %c1_770] : memref<16x16xf32, #tpu.memory_space<smem>>
    %1057 = vector.broadcast %1056 : f32 to vector<8x42xf32>
    %1058 = arith.mulf %1055, %1057 : vector<8x42xf32>
    %1059 = arith.addf %1053, %1058 : vector<8x42xf32>
    %c2_771 = arith.constant 2 : index
    %c0_772 = arith.constant 0 : index
    %c0_773 = arith.constant 0 : index
    %1060 = vector.load %arg12[%c2_771, %c0_772, %c0_773] : memref<16x8x42xf32, #tpu.memory_space<vmem>>, vector<1x8x42xf32>
    %1061 = vector.shape_cast %1060 : vector<1x8x42xf32> to vector<8x42xf32>
    %c6_774 = arith.constant 6 : index
    %c2_775 = arith.constant 2 : index
    %1062 = memref.load %arg9[%c6_774, %c2_775] : memref<16x16xf32, #tpu.memory_space<smem>>
    %1063 = vector.broadcast %1062 : f32 to vector<8x42xf32>
    %1064 = arith.mulf %1061, %1063 : vector<8x42xf32>
    %1065 = arith.addf %1059, %1064 : vector<8x42xf32>
    %c3_776 = arith.constant 3 : index
    %c0_777 = arith.constant 0 : index
    %c0_778 = arith.constant 0 : index
    %1066 = vector.load %arg12[%c3_776, %c0_777, %c0_778] : memref<16x8x42xf32, #tpu.memory_space<vmem>>, vector<1x8x42xf32>
    %1067 = vector.shape_cast %1066 : vector<1x8x42xf32> to vector<8x42xf32>
    %c6_779 = arith.constant 6 : index
    %c3_780 = arith.constant 3 : index
    %1068 = memref.load %arg9[%c6_779, %c3_780] : memref<16x16xf32, #tpu.memory_space<smem>>
    %1069 = vector.broadcast %1068 : f32 to vector<8x42xf32>
    %1070 = arith.mulf %1067, %1069 : vector<8x42xf32>
    %1071 = arith.addf %1065, %1070 : vector<8x42xf32>
    %c4_781 = arith.constant 4 : index
    %c0_782 = arith.constant 0 : index
    %c0_783 = arith.constant 0 : index
    %1072 = vector.load %arg12[%c4_781, %c0_782, %c0_783] : memref<16x8x42xf32, #tpu.memory_space<vmem>>, vector<1x8x42xf32>
    %1073 = vector.shape_cast %1072 : vector<1x8x42xf32> to vector<8x42xf32>
    %c6_784 = arith.constant 6 : index
    %c4_785 = arith.constant 4 : index
    %1074 = memref.load %arg9[%c6_784, %c4_785] : memref<16x16xf32, #tpu.memory_space<smem>>
    %1075 = vector.broadcast %1074 : f32 to vector<8x42xf32>
    %1076 = arith.mulf %1073, %1075 : vector<8x42xf32>
    %1077 = arith.addf %1071, %1076 : vector<8x42xf32>
    %c5_786 = arith.constant 5 : index
    %c0_787 = arith.constant 0 : index
    %c0_788 = arith.constant 0 : index
    %1078 = vector.load %arg12[%c5_786, %c0_787, %c0_788] : memref<16x8x42xf32, #tpu.memory_space<vmem>>, vector<1x8x42xf32>
    %1079 = vector.shape_cast %1078 : vector<1x8x42xf32> to vector<8x42xf32>
    %c6_789 = arith.constant 6 : index
    %c5_790 = arith.constant 5 : index
    %1080 = memref.load %arg9[%c6_789, %c5_790] : memref<16x16xf32, #tpu.memory_space<smem>>
    %1081 = vector.broadcast %1080 : f32 to vector<8x42xf32>
    %1082 = arith.mulf %1079, %1081 : vector<8x42xf32>
    %1083 = arith.addf %1077, %1082 : vector<8x42xf32>
    %c6_791 = arith.constant 6 : index
    %c0_792 = arith.constant 0 : index
    %c0_793 = arith.constant 0 : index
    %1084 = vector.load %arg12[%c6_791, %c0_792, %c0_793] : memref<16x8x42xf32, #tpu.memory_space<vmem>>, vector<1x8x42xf32>
    %1085 = vector.shape_cast %1084 : vector<1x8x42xf32> to vector<8x42xf32>
    %c6_794 = arith.constant 6 : index
    %c6_795 = arith.constant 6 : index
    %1086 = memref.load %arg9[%c6_794, %c6_795] : memref<16x16xf32, #tpu.memory_space<smem>>
    %1087 = vector.broadcast %1086 : f32 to vector<8x42xf32>
    %1088 = arith.mulf %1085, %1087 : vector<8x42xf32>
    %1089 = arith.addf %1083, %1088 : vector<8x42xf32>
    %c7_796 = arith.constant 7 : index
    %c0_797 = arith.constant 0 : index
    %c0_798 = arith.constant 0 : index
    %1090 = vector.load %arg12[%c7_796, %c0_797, %c0_798] : memref<16x8x42xf32, #tpu.memory_space<vmem>>, vector<1x8x42xf32>
    %1091 = vector.shape_cast %1090 : vector<1x8x42xf32> to vector<8x42xf32>
    %c6_799 = arith.constant 6 : index
    %c7_800 = arith.constant 7 : index
    %1092 = memref.load %arg9[%c6_799, %c7_800] : memref<16x16xf32, #tpu.memory_space<smem>>
    %1093 = vector.broadcast %1092 : f32 to vector<8x42xf32>
    %1094 = arith.mulf %1091, %1093 : vector<8x42xf32>
    %1095 = arith.addf %1089, %1094 : vector<8x42xf32>
    %c8_801 = arith.constant 8 : index
    %c0_802 = arith.constant 0 : index
    %c0_803 = arith.constant 0 : index
    %1096 = vector.load %arg12[%c8_801, %c0_802, %c0_803] : memref<16x8x42xf32, #tpu.memory_space<vmem>>, vector<1x8x42xf32>
    %1097 = vector.shape_cast %1096 : vector<1x8x42xf32> to vector<8x42xf32>
    %c6_804 = arith.constant 6 : index
    %c8_805 = arith.constant 8 : index
    %1098 = memref.load %arg9[%c6_804, %c8_805] : memref<16x16xf32, #tpu.memory_space<smem>>
    %1099 = vector.broadcast %1098 : f32 to vector<8x42xf32>
    %1100 = arith.mulf %1097, %1099 : vector<8x42xf32>
    %1101 = arith.addf %1095, %1100 : vector<8x42xf32>
    %c9_806 = arith.constant 9 : index
    %c0_807 = arith.constant 0 : index
    %c0_808 = arith.constant 0 : index
    %1102 = vector.load %arg12[%c9_806, %c0_807, %c0_808] : memref<16x8x42xf32, #tpu.memory_space<vmem>>, vector<1x8x42xf32>
    %1103 = vector.shape_cast %1102 : vector<1x8x42xf32> to vector<8x42xf32>
    %c6_809 = arith.constant 6 : index
    %c9_810 = arith.constant 9 : index
    %1104 = memref.load %arg9[%c6_809, %c9_810] : memref<16x16xf32, #tpu.memory_space<smem>>
    %1105 = vector.broadcast %1104 : f32 to vector<8x42xf32>
    %1106 = arith.mulf %1103, %1105 : vector<8x42xf32>
    %1107 = arith.addf %1101, %1106 : vector<8x42xf32>
    %c10_811 = arith.constant 10 : index
    %c0_812 = arith.constant 0 : index
    %c0_813 = arith.constant 0 : index
    %1108 = vector.load %arg12[%c10_811, %c0_812, %c0_813] : memref<16x8x42xf32, #tpu.memory_space<vmem>>, vector<1x8x42xf32>
    %1109 = vector.shape_cast %1108 : vector<1x8x42xf32> to vector<8x42xf32>
    %c6_814 = arith.constant 6 : index
    %c10_815 = arith.constant 10 : index
    %1110 = memref.load %arg9[%c6_814, %c10_815] : memref<16x16xf32, #tpu.memory_space<smem>>
    %1111 = vector.broadcast %1110 : f32 to vector<8x42xf32>
    %1112 = arith.mulf %1109, %1111 : vector<8x42xf32>
    %1113 = arith.addf %1107, %1112 : vector<8x42xf32>
    %c11_816 = arith.constant 11 : index
    %c0_817 = arith.constant 0 : index
    %c0_818 = arith.constant 0 : index
    %1114 = vector.load %arg12[%c11_816, %c0_817, %c0_818] : memref<16x8x42xf32, #tpu.memory_space<vmem>>, vector<1x8x42xf32>
    %1115 = vector.shape_cast %1114 : vector<1x8x42xf32> to vector<8x42xf32>
    %c6_819 = arith.constant 6 : index
    %c11_820 = arith.constant 11 : index
    %1116 = memref.load %arg9[%c6_819, %c11_820] : memref<16x16xf32, #tpu.memory_space<smem>>
    %1117 = vector.broadcast %1116 : f32 to vector<8x42xf32>
    %1118 = arith.mulf %1115, %1117 : vector<8x42xf32>
    %1119 = arith.addf %1113, %1118 : vector<8x42xf32>
    %c12_821 = arith.constant 12 : index
    %c0_822 = arith.constant 0 : index
    %c0_823 = arith.constant 0 : index
    %1120 = vector.load %arg12[%c12_821, %c0_822, %c0_823] : memref<16x8x42xf32, #tpu.memory_space<vmem>>, vector<1x8x42xf32>
    %1121 = vector.shape_cast %1120 : vector<1x8x42xf32> to vector<8x42xf32>
    %c6_824 = arith.constant 6 : index
    %c12_825 = arith.constant 12 : index
    %1122 = memref.load %arg9[%c6_824, %c12_825] : memref<16x16xf32, #tpu.memory_space<smem>>
    %1123 = vector.broadcast %1122 : f32 to vector<8x42xf32>
    %1124 = arith.mulf %1121, %1123 : vector<8x42xf32>
    %1125 = arith.addf %1119, %1124 : vector<8x42xf32>
    %c13_826 = arith.constant 13 : index
    %c0_827 = arith.constant 0 : index
    %c0_828 = arith.constant 0 : index
    %1126 = vector.load %arg12[%c13_826, %c0_827, %c0_828] : memref<16x8x42xf32, #tpu.memory_space<vmem>>, vector<1x8x42xf32>
    %1127 = vector.shape_cast %1126 : vector<1x8x42xf32> to vector<8x42xf32>
    %c6_829 = arith.constant 6 : index
    %c13_830 = arith.constant 13 : index
    %1128 = memref.load %arg9[%c6_829, %c13_830] : memref<16x16xf32, #tpu.memory_space<smem>>
    %1129 = vector.broadcast %1128 : f32 to vector<8x42xf32>
    %1130 = arith.mulf %1127, %1129 : vector<8x42xf32>
    %1131 = arith.addf %1125, %1130 : vector<8x42xf32>
    %c14_831 = arith.constant 14 : index
    %c0_832 = arith.constant 0 : index
    %c0_833 = arith.constant 0 : index
    %1132 = vector.load %arg12[%c14_831, %c0_832, %c0_833] : memref<16x8x42xf32, #tpu.memory_space<vmem>>, vector<1x8x42xf32>
    %1133 = vector.shape_cast %1132 : vector<1x8x42xf32> to vector<8x42xf32>
    %c6_834 = arith.constant 6 : index
    %c14_835 = arith.constant 14 : index
    %1134 = memref.load %arg9[%c6_834, %c14_835] : memref<16x16xf32, #tpu.memory_space<smem>>
    %1135 = vector.broadcast %1134 : f32 to vector<8x42xf32>
    %1136 = arith.mulf %1133, %1135 : vector<8x42xf32>
    %1137 = arith.addf %1131, %1136 : vector<8x42xf32>
    %c15_836 = arith.constant 15 : index
    %c0_837 = arith.constant 0 : index
    %c0_838 = arith.constant 0 : index
    %1138 = vector.load %arg12[%c15_836, %c0_837, %c0_838] : memref<16x8x42xf32, #tpu.memory_space<vmem>>, vector<1x8x42xf32>
    %1139 = vector.shape_cast %1138 : vector<1x8x42xf32> to vector<8x42xf32>
    %c6_839 = arith.constant 6 : index
    %c15_840 = arith.constant 15 : index
    %1140 = memref.load %arg9[%c6_839, %c15_840] : memref<16x16xf32, #tpu.memory_space<smem>>
    %1141 = vector.broadcast %1140 : f32 to vector<8x42xf32>
    %1142 = arith.mulf %1139, %1141 : vector<8x42xf32>
    %1143 = arith.addf %1137, %1142 : vector<8x42xf32>
    %c6_841 = arith.constant 6 : index
    %1144 = memref.load %arg8[%c6_841] : memref<16xf32, #tpu.memory_space<smem>>
    %1145 = vector.broadcast %1144 : f32 to vector<8x42xf32>
    %1146 = arith.addf %1143, %1145 : vector<8x42xf32>
    %cst_842 = arith.constant 0.000000e+00 : f32
    %1147 = vector.broadcast %cst_842 : f32 to vector<8x42xf32>
    %1148 = arith.cmpf ogt, %1146, %1147 : vector<8x42xf32>
    %cst_843 = arith.constant 0.000000e+00 : f32
    %1149 = vector.broadcast %cst_843 : f32 to vector<8x42xf32>
    %1150 = arith.minimumf %1146, %1149 : vector<8x42xf32>
    %1151 = math.exp %1150 : vector<8x42xf32>
    %cst_844 = arith.constant 1.000000e+00 : f32
    %1152 = vector.broadcast %cst_844 : f32 to vector<8x42xf32>
    %1153 = arith.subf %1151, %1152 : vector<8x42xf32>
    %1154 = arith.select %1148, %1146, %1153 : vector<8x42xi1>, vector<8x42xf32>
    %1155 = arith.truncf %1154 : vector<8x42xf32> to vector<8x42xbf16>
    %c6_845 = arith.constant 6 : index
    %c0_846 = arith.constant 0 : index
    %c0_847 = arith.constant 0 : index
    %1156 = vector.load %arg5[%c6_845, %c0_846, %c0_847] : memref<16x42x5xbf16, #tpu.memory_space<vmem>>, vector<1x42x5xbf16>
    %1157 = vector.shape_cast %1156 : vector<1x42x5xbf16> to vector<42x5xbf16>
    %cst_848 = arith.constant dense<0.000000e+00> : vector<8x5xf32>
    %1158 = tpu.matmul %1155, %1157, %cst_848 {dimension_numbers = #tpu.dot_dimension_numbers<[1], [0], [0], [1], [0, 0, 1, 1], [], []>} : vector<8x42xbf16>, vector<42x5xbf16>, vector<8x5xf32> -> vector<8x5xf32>
    %1159 = arith.addf %1048, %1158 : vector<8x5xf32>
    %c0_849 = arith.constant 0 : index
    %c0_850 = arith.constant 0 : index
    %c0_851 = arith.constant 0 : index
    %1160 = vector.load %arg12[%c0_849, %c0_850, %c0_851] : memref<16x8x42xf32, #tpu.memory_space<vmem>>, vector<1x8x42xf32>
    %1161 = vector.shape_cast %1160 : vector<1x8x42xf32> to vector<8x42xf32>
    %c7_852 = arith.constant 7 : index
    %c0_853 = arith.constant 0 : index
    %1162 = memref.load %arg9[%c7_852, %c0_853] : memref<16x16xf32, #tpu.memory_space<smem>>
    %1163 = vector.broadcast %1162 : f32 to vector<8x42xf32>
    %1164 = arith.mulf %1161, %1163 : vector<8x42xf32>
    %c1_854 = arith.constant 1 : index
    %c0_855 = arith.constant 0 : index
    %c0_856 = arith.constant 0 : index
    %1165 = vector.load %arg12[%c1_854, %c0_855, %c0_856] : memref<16x8x42xf32, #tpu.memory_space<vmem>>, vector<1x8x42xf32>
    %1166 = vector.shape_cast %1165 : vector<1x8x42xf32> to vector<8x42xf32>
    %c7_857 = arith.constant 7 : index
    %c1_858 = arith.constant 1 : index
    %1167 = memref.load %arg9[%c7_857, %c1_858] : memref<16x16xf32, #tpu.memory_space<smem>>
    %1168 = vector.broadcast %1167 : f32 to vector<8x42xf32>
    %1169 = arith.mulf %1166, %1168 : vector<8x42xf32>
    %1170 = arith.addf %1164, %1169 : vector<8x42xf32>
    %c2_859 = arith.constant 2 : index
    %c0_860 = arith.constant 0 : index
    %c0_861 = arith.constant 0 : index
    %1171 = vector.load %arg12[%c2_859, %c0_860, %c0_861] : memref<16x8x42xf32, #tpu.memory_space<vmem>>, vector<1x8x42xf32>
    %1172 = vector.shape_cast %1171 : vector<1x8x42xf32> to vector<8x42xf32>
    %c7_862 = arith.constant 7 : index
    %c2_863 = arith.constant 2 : index
    %1173 = memref.load %arg9[%c7_862, %c2_863] : memref<16x16xf32, #tpu.memory_space<smem>>
    %1174 = vector.broadcast %1173 : f32 to vector<8x42xf32>
    %1175 = arith.mulf %1172, %1174 : vector<8x42xf32>
    %1176 = arith.addf %1170, %1175 : vector<8x42xf32>
    %c3_864 = arith.constant 3 : index
    %c0_865 = arith.constant 0 : index
    %c0_866 = arith.constant 0 : index
    %1177 = vector.load %arg12[%c3_864, %c0_865, %c0_866] : memref<16x8x42xf32, #tpu.memory_space<vmem>>, vector<1x8x42xf32>
    %1178 = vector.shape_cast %1177 : vector<1x8x42xf32> to vector<8x42xf32>
    %c7_867 = arith.constant 7 : index
    %c3_868 = arith.constant 3 : index
    %1179 = memref.load %arg9[%c7_867, %c3_868] : memref<16x16xf32, #tpu.memory_space<smem>>
    %1180 = vector.broadcast %1179 : f32 to vector<8x42xf32>
    %1181 = arith.mulf %1178, %1180 : vector<8x42xf32>
    %1182 = arith.addf %1176, %1181 : vector<8x42xf32>
    %c4_869 = arith.constant 4 : index
    %c0_870 = arith.constant 0 : index
    %c0_871 = arith.constant 0 : index
    %1183 = vector.load %arg12[%c4_869, %c0_870, %c0_871] : memref<16x8x42xf32, #tpu.memory_space<vmem>>, vector<1x8x42xf32>
    %1184 = vector.shape_cast %1183 : vector<1x8x42xf32> to vector<8x42xf32>
    %c7_872 = arith.constant 7 : index
    %c4_873 = arith.constant 4 : index
    %1185 = memref.load %arg9[%c7_872, %c4_873] : memref<16x16xf32, #tpu.memory_space<smem>>
    %1186 = vector.broadcast %1185 : f32 to vector<8x42xf32>
    %1187 = arith.mulf %1184, %1186 : vector<8x42xf32>
    %1188 = arith.addf %1182, %1187 : vector<8x42xf32>
    %c5_874 = arith.constant 5 : index
    %c0_875 = arith.constant 0 : index
    %c0_876 = arith.constant 0 : index
    %1189 = vector.load %arg12[%c5_874, %c0_875, %c0_876] : memref<16x8x42xf32, #tpu.memory_space<vmem>>, vector<1x8x42xf32>
    %1190 = vector.shape_cast %1189 : vector<1x8x42xf32> to vector<8x42xf32>
    %c7_877 = arith.constant 7 : index
    %c5_878 = arith.constant 5 : index
    %1191 = memref.load %arg9[%c7_877, %c5_878] : memref<16x16xf32, #tpu.memory_space<smem>>
    %1192 = vector.broadcast %1191 : f32 to vector<8x42xf32>
    %1193 = arith.mulf %1190, %1192 : vector<8x42xf32>
    %1194 = arith.addf %1188, %1193 : vector<8x42xf32>
    %c6_879 = arith.constant 6 : index
    %c0_880 = arith.constant 0 : index
    %c0_881 = arith.constant 0 : index
    %1195 = vector.load %arg12[%c6_879, %c0_880, %c0_881] : memref<16x8x42xf32, #tpu.memory_space<vmem>>, vector<1x8x42xf32>
    %1196 = vector.shape_cast %1195 : vector<1x8x42xf32> to vector<8x42xf32>
    %c7_882 = arith.constant 7 : index
    %c6_883 = arith.constant 6 : index
    %1197 = memref.load %arg9[%c7_882, %c6_883] : memref<16x16xf32, #tpu.memory_space<smem>>
    %1198 = vector.broadcast %1197 : f32 to vector<8x42xf32>
    %1199 = arith.mulf %1196, %1198 : vector<8x42xf32>
    %1200 = arith.addf %1194, %1199 : vector<8x42xf32>
    %c7_884 = arith.constant 7 : index
    %c0_885 = arith.constant 0 : index
    %c0_886 = arith.constant 0 : index
    %1201 = vector.load %arg12[%c7_884, %c0_885, %c0_886] : memref<16x8x42xf32, #tpu.memory_space<vmem>>, vector<1x8x42xf32>
    %1202 = vector.shape_cast %1201 : vector<1x8x42xf32> to vector<8x42xf32>
    %c7_887 = arith.constant 7 : index
    %c7_888 = arith.constant 7 : index
    %1203 = memref.load %arg9[%c7_887, %c7_888] : memref<16x16xf32, #tpu.memory_space<smem>>
    %1204 = vector.broadcast %1203 : f32 to vector<8x42xf32>
    %1205 = arith.mulf %1202, %1204 : vector<8x42xf32>
    %1206 = arith.addf %1200, %1205 : vector<8x42xf32>
    %c8_889 = arith.constant 8 : index
    %c0_890 = arith.constant 0 : index
    %c0_891 = arith.constant 0 : index
    %1207 = vector.load %arg12[%c8_889, %c0_890, %c0_891] : memref<16x8x42xf32, #tpu.memory_space<vmem>>, vector<1x8x42xf32>
    %1208 = vector.shape_cast %1207 : vector<1x8x42xf32> to vector<8x42xf32>
    %c7_892 = arith.constant 7 : index
    %c8_893 = arith.constant 8 : index
    %1209 = memref.load %arg9[%c7_892, %c8_893] : memref<16x16xf32, #tpu.memory_space<smem>>
    %1210 = vector.broadcast %1209 : f32 to vector<8x42xf32>
    %1211 = arith.mulf %1208, %1210 : vector<8x42xf32>
    %1212 = arith.addf %1206, %1211 : vector<8x42xf32>
    %c9_894 = arith.constant 9 : index
    %c0_895 = arith.constant 0 : index
    %c0_896 = arith.constant 0 : index
    %1213 = vector.load %arg12[%c9_894, %c0_895, %c0_896] : memref<16x8x42xf32, #tpu.memory_space<vmem>>, vector<1x8x42xf32>
    %1214 = vector.shape_cast %1213 : vector<1x8x42xf32> to vector<8x42xf32>
    %c7_897 = arith.constant 7 : index
    %c9_898 = arith.constant 9 : index
    %1215 = memref.load %arg9[%c7_897, %c9_898] : memref<16x16xf32, #tpu.memory_space<smem>>
    %1216 = vector.broadcast %1215 : f32 to vector<8x42xf32>
    %1217 = arith.mulf %1214, %1216 : vector<8x42xf32>
    %1218 = arith.addf %1212, %1217 : vector<8x42xf32>
    %c10_899 = arith.constant 10 : index
    %c0_900 = arith.constant 0 : index
    %c0_901 = arith.constant 0 : index
    %1219 = vector.load %arg12[%c10_899, %c0_900, %c0_901] : memref<16x8x42xf32, #tpu.memory_space<vmem>>, vector<1x8x42xf32>
    %1220 = vector.shape_cast %1219 : vector<1x8x42xf32> to vector<8x42xf32>
    %c7_902 = arith.constant 7 : index
    %c10_903 = arith.constant 10 : index
    %1221 = memref.load %arg9[%c7_902, %c10_903] : memref<16x16xf32, #tpu.memory_space<smem>>
    %1222 = vector.broadcast %1221 : f32 to vector<8x42xf32>
    %1223 = arith.mulf %1220, %1222 : vector<8x42xf32>
    %1224 = arith.addf %1218, %1223 : vector<8x42xf32>
    %c11_904 = arith.constant 11 : index
    %c0_905 = arith.constant 0 : index
    %c0_906 = arith.constant 0 : index
    %1225 = vector.load %arg12[%c11_904, %c0_905, %c0_906] : memref<16x8x42xf32, #tpu.memory_space<vmem>>, vector<1x8x42xf32>
    %1226 = vector.shape_cast %1225 : vector<1x8x42xf32> to vector<8x42xf32>
    %c7_907 = arith.constant 7 : index
    %c11_908 = arith.constant 11 : index
    %1227 = memref.load %arg9[%c7_907, %c11_908] : memref<16x16xf32, #tpu.memory_space<smem>>
    %1228 = vector.broadcast %1227 : f32 to vector<8x42xf32>
    %1229 = arith.mulf %1226, %1228 : vector<8x42xf32>
    %1230 = arith.addf %1224, %1229 : vector<8x42xf32>
    %c12_909 = arith.constant 12 : index
    %c0_910 = arith.constant 0 : index
    %c0_911 = arith.constant 0 : index
    %1231 = vector.load %arg12[%c12_909, %c0_910, %c0_911] : memref<16x8x42xf32, #tpu.memory_space<vmem>>, vector<1x8x42xf32>
    %1232 = vector.shape_cast %1231 : vector<1x8x42xf32> to vector<8x42xf32>
    %c7_912 = arith.constant 7 : index
    %c12_913 = arith.constant 12 : index
    %1233 = memref.load %arg9[%c7_912, %c12_913] : memref<16x16xf32, #tpu.memory_space<smem>>
    %1234 = vector.broadcast %1233 : f32 to vector<8x42xf32>
    %1235 = arith.mulf %1232, %1234 : vector<8x42xf32>
    %1236 = arith.addf %1230, %1235 : vector<8x42xf32>
    %c13_914 = arith.constant 13 : index
    %c0_915 = arith.constant 0 : index
    %c0_916 = arith.constant 0 : index
    %1237 = vector.load %arg12[%c13_914, %c0_915, %c0_916] : memref<16x8x42xf32, #tpu.memory_space<vmem>>, vector<1x8x42xf32>
    %1238 = vector.shape_cast %1237 : vector<1x8x42xf32> to vector<8x42xf32>
    %c7_917 = arith.constant 7 : index
    %c13_918 = arith.constant 13 : index
    %1239 = memref.load %arg9[%c7_917, %c13_918] : memref<16x16xf32, #tpu.memory_space<smem>>
    %1240 = vector.broadcast %1239 : f32 to vector<8x42xf32>
    %1241 = arith.mulf %1238, %1240 : vector<8x42xf32>
    %1242 = arith.addf %1236, %1241 : vector<8x42xf32>
    %c14_919 = arith.constant 14 : index
    %c0_920 = arith.constant 0 : index
    %c0_921 = arith.constant 0 : index
    %1243 = vector.load %arg12[%c14_919, %c0_920, %c0_921] : memref<16x8x42xf32, #tpu.memory_space<vmem>>, vector<1x8x42xf32>
    %1244 = vector.shape_cast %1243 : vector<1x8x42xf32> to vector<8x42xf32>
    %c7_922 = arith.constant 7 : index
    %c14_923 = arith.constant 14 : index
    %1245 = memref.load %arg9[%c7_922, %c14_923] : memref<16x16xf32, #tpu.memory_space<smem>>
    %1246 = vector.broadcast %1245 : f32 to vector<8x42xf32>
    %1247 = arith.mulf %1244, %1246 : vector<8x42xf32>
    %1248 = arith.addf %1242, %1247 : vector<8x42xf32>
    %c15_924 = arith.constant 15 : index
    %c0_925 = arith.constant 0 : index
    %c0_926 = arith.constant 0 : index
    %1249 = vector.load %arg12[%c15_924, %c0_925, %c0_926] : memref<16x8x42xf32, #tpu.memory_space<vmem>>, vector<1x8x42xf32>
    %1250 = vector.shape_cast %1249 : vector<1x8x42xf32> to vector<8x42xf32>
    %c7_927 = arith.constant 7 : index
    %c15_928 = arith.constant 15 : index
    %1251 = memref.load %arg9[%c7_927, %c15_928] : memref<16x16xf32, #tpu.memory_space<smem>>
    %1252 = vector.broadcast %1251 : f32 to vector<8x42xf32>
    %1253 = arith.mulf %1250, %1252 : vector<8x42xf32>
    %1254 = arith.addf %1248, %1253 : vector<8x42xf32>
    %c7_929 = arith.constant 7 : index
    %1255 = memref.load %arg8[%c7_929] : memref<16xf32, #tpu.memory_space<smem>>
    %1256 = vector.broadcast %1255 : f32 to vector<8x42xf32>
    %1257 = arith.addf %1254, %1256 : vector<8x42xf32>
    %cst_930 = arith.constant 0.000000e+00 : f32
    %1258 = vector.broadcast %cst_930 : f32 to vector<8x42xf32>
    %1259 = arith.cmpf ogt, %1257, %1258 : vector<8x42xf32>
    %cst_931 = arith.constant 0.000000e+00 : f32
    %1260 = vector.broadcast %cst_931 : f32 to vector<8x42xf32>
    %1261 = arith.minimumf %1257, %1260 : vector<8x42xf32>
    %1262 = math.exp %1261 : vector<8x42xf32>
    %cst_932 = arith.constant 1.000000e+00 : f32
    %1263 = vector.broadcast %cst_932 : f32 to vector<8x42xf32>
    %1264 = arith.subf %1262, %1263 : vector<8x42xf32>
    %1265 = arith.select %1259, %1257, %1264 : vector<8x42xi1>, vector<8x42xf32>
    %1266 = arith.truncf %1265 : vector<8x42xf32> to vector<8x42xbf16>
    %c7_933 = arith.constant 7 : index
    %c0_934 = arith.constant 0 : index
    %c0_935 = arith.constant 0 : index
    %1267 = vector.load %arg5[%c7_933, %c0_934, %c0_935] : memref<16x42x5xbf16, #tpu.memory_space<vmem>>, vector<1x42x5xbf16>
    %1268 = vector.shape_cast %1267 : vector<1x42x5xbf16> to vector<42x5xbf16>
    %cst_936 = arith.constant dense<0.000000e+00> : vector<8x5xf32>
    %1269 = tpu.matmul %1266, %1268, %cst_936 {dimension_numbers = #tpu.dot_dimension_numbers<[1], [0], [0], [1], [0, 0, 1, 1], [], []>} : vector<8x42xbf16>, vector<42x5xbf16>, vector<8x5xf32> -> vector<8x5xf32>
    %1270 = arith.addf %1159, %1269 : vector<8x5xf32>
    %c0_937 = arith.constant 0 : index
    %c0_938 = arith.constant 0 : index
    %c0_939 = arith.constant 0 : index
    %1271 = vector.load %arg12[%c0_937, %c0_938, %c0_939] : memref<16x8x42xf32, #tpu.memory_space<vmem>>, vector<1x8x42xf32>
    %1272 = vector.shape_cast %1271 : vector<1x8x42xf32> to vector<8x42xf32>
    %c8_940 = arith.constant 8 : index
    %c0_941 = arith.constant 0 : index
    %1273 = memref.load %arg9[%c8_940, %c0_941] : memref<16x16xf32, #tpu.memory_space<smem>>
    %1274 = vector.broadcast %1273 : f32 to vector<8x42xf32>
    %1275 = arith.mulf %1272, %1274 : vector<8x42xf32>
    %c1_942 = arith.constant 1 : index
    %c0_943 = arith.constant 0 : index
    %c0_944 = arith.constant 0 : index
    %1276 = vector.load %arg12[%c1_942, %c0_943, %c0_944] : memref<16x8x42xf32, #tpu.memory_space<vmem>>, vector<1x8x42xf32>
    %1277 = vector.shape_cast %1276 : vector<1x8x42xf32> to vector<8x42xf32>
    %c8_945 = arith.constant 8 : index
    %c1_946 = arith.constant 1 : index
    %1278 = memref.load %arg9[%c8_945, %c1_946] : memref<16x16xf32, #tpu.memory_space<smem>>
    %1279 = vector.broadcast %1278 : f32 to vector<8x42xf32>
    %1280 = arith.mulf %1277, %1279 : vector<8x42xf32>
    %1281 = arith.addf %1275, %1280 : vector<8x42xf32>
    %c2_947 = arith.constant 2 : index
    %c0_948 = arith.constant 0 : index
    %c0_949 = arith.constant 0 : index
    %1282 = vector.load %arg12[%c2_947, %c0_948, %c0_949] : memref<16x8x42xf32, #tpu.memory_space<vmem>>, vector<1x8x42xf32>
    %1283 = vector.shape_cast %1282 : vector<1x8x42xf32> to vector<8x42xf32>
    %c8_950 = arith.constant 8 : index
    %c2_951 = arith.constant 2 : index
    %1284 = memref.load %arg9[%c8_950, %c2_951] : memref<16x16xf32, #tpu.memory_space<smem>>
    %1285 = vector.broadcast %1284 : f32 to vector<8x42xf32>
    %1286 = arith.mulf %1283, %1285 : vector<8x42xf32>
    %1287 = arith.addf %1281, %1286 : vector<8x42xf32>
    %c3_952 = arith.constant 3 : index
    %c0_953 = arith.constant 0 : index
    %c0_954 = arith.constant 0 : index
    %1288 = vector.load %arg12[%c3_952, %c0_953, %c0_954] : memref<16x8x42xf32, #tpu.memory_space<vmem>>, vector<1x8x42xf32>
    %1289 = vector.shape_cast %1288 : vector<1x8x42xf32> to vector<8x42xf32>
    %c8_955 = arith.constant 8 : index
    %c3_956 = arith.constant 3 : index
    %1290 = memref.load %arg9[%c8_955, %c3_956] : memref<16x16xf32, #tpu.memory_space<smem>>
    %1291 = vector.broadcast %1290 : f32 to vector<8x42xf32>
    %1292 = arith.mulf %1289, %1291 : vector<8x42xf32>
    %1293 = arith.addf %1287, %1292 : vector<8x42xf32>
    %c4_957 = arith.constant 4 : index
    %c0_958 = arith.constant 0 : index
    %c0_959 = arith.constant 0 : index
    %1294 = vector.load %arg12[%c4_957, %c0_958, %c0_959] : memref<16x8x42xf32, #tpu.memory_space<vmem>>, vector<1x8x42xf32>
    %1295 = vector.shape_cast %1294 : vector<1x8x42xf32> to vector<8x42xf32>
    %c8_960 = arith.constant 8 : index
    %c4_961 = arith.constant 4 : index
    %1296 = memref.load %arg9[%c8_960, %c4_961] : memref<16x16xf32, #tpu.memory_space<smem>>
    %1297 = vector.broadcast %1296 : f32 to vector<8x42xf32>
    %1298 = arith.mulf %1295, %1297 : vector<8x42xf32>
    %1299 = arith.addf %1293, %1298 : vector<8x42xf32>
    %c5_962 = arith.constant 5 : index
    %c0_963 = arith.constant 0 : index
    %c0_964 = arith.constant 0 : index
    %1300 = vector.load %arg12[%c5_962, %c0_963, %c0_964] : memref<16x8x42xf32, #tpu.memory_space<vmem>>, vector<1x8x42xf32>
    %1301 = vector.shape_cast %1300 : vector<1x8x42xf32> to vector<8x42xf32>
    %c8_965 = arith.constant 8 : index
    %c5_966 = arith.constant 5 : index
    %1302 = memref.load %arg9[%c8_965, %c5_966] : memref<16x16xf32, #tpu.memory_space<smem>>
    %1303 = vector.broadcast %1302 : f32 to vector<8x42xf32>
    %1304 = arith.mulf %1301, %1303 : vector<8x42xf32>
    %1305 = arith.addf %1299, %1304 : vector<8x42xf32>
    %c6_967 = arith.constant 6 : index
    %c0_968 = arith.constant 0 : index
    %c0_969 = arith.constant 0 : index
    %1306 = vector.load %arg12[%c6_967, %c0_968, %c0_969] : memref<16x8x42xf32, #tpu.memory_space<vmem>>, vector<1x8x42xf32>
    %1307 = vector.shape_cast %1306 : vector<1x8x42xf32> to vector<8x42xf32>
    %c8_970 = arith.constant 8 : index
    %c6_971 = arith.constant 6 : index
    %1308 = memref.load %arg9[%c8_970, %c6_971] : memref<16x16xf32, #tpu.memory_space<smem>>
    %1309 = vector.broadcast %1308 : f32 to vector<8x42xf32>
    %1310 = arith.mulf %1307, %1309 : vector<8x42xf32>
    %1311 = arith.addf %1305, %1310 : vector<8x42xf32>
    %c7_972 = arith.constant 7 : index
    %c0_973 = arith.constant 0 : index
    %c0_974 = arith.constant 0 : index
    %1312 = vector.load %arg12[%c7_972, %c0_973, %c0_974] : memref<16x8x42xf32, #tpu.memory_space<vmem>>, vector<1x8x42xf32>
    %1313 = vector.shape_cast %1312 : vector<1x8x42xf32> to vector<8x42xf32>
    %c8_975 = arith.constant 8 : index
    %c7_976 = arith.constant 7 : index
    %1314 = memref.load %arg9[%c8_975, %c7_976] : memref<16x16xf32, #tpu.memory_space<smem>>
    %1315 = vector.broadcast %1314 : f32 to vector<8x42xf32>
    %1316 = arith.mulf %1313, %1315 : vector<8x42xf32>
    %1317 = arith.addf %1311, %1316 : vector<8x42xf32>
    %c8_977 = arith.constant 8 : index
    %c0_978 = arith.constant 0 : index
    %c0_979 = arith.constant 0 : index
    %1318 = vector.load %arg12[%c8_977, %c0_978, %c0_979] : memref<16x8x42xf32, #tpu.memory_space<vmem>>, vector<1x8x42xf32>
    %1319 = vector.shape_cast %1318 : vector<1x8x42xf32> to vector<8x42xf32>
    %c8_980 = arith.constant 8 : index
    %c8_981 = arith.constant 8 : index
    %1320 = memref.load %arg9[%c8_980, %c8_981] : memref<16x16xf32, #tpu.memory_space<smem>>
    %1321 = vector.broadcast %1320 : f32 to vector<8x42xf32>
    %1322 = arith.mulf %1319, %1321 : vector<8x42xf32>
    %1323 = arith.addf %1317, %1322 : vector<8x42xf32>
    %c9_982 = arith.constant 9 : index
    %c0_983 = arith.constant 0 : index
    %c0_984 = arith.constant 0 : index
    %1324 = vector.load %arg12[%c9_982, %c0_983, %c0_984] : memref<16x8x42xf32, #tpu.memory_space<vmem>>, vector<1x8x42xf32>
    %1325 = vector.shape_cast %1324 : vector<1x8x42xf32> to vector<8x42xf32>
    %c8_985 = arith.constant 8 : index
    %c9_986 = arith.constant 9 : index
    %1326 = memref.load %arg9[%c8_985, %c9_986] : memref<16x16xf32, #tpu.memory_space<smem>>
    %1327 = vector.broadcast %1326 : f32 to vector<8x42xf32>
    %1328 = arith.mulf %1325, %1327 : vector<8x42xf32>
    %1329 = arith.addf %1323, %1328 : vector<8x42xf32>
    %c10_987 = arith.constant 10 : index
    %c0_988 = arith.constant 0 : index
    %c0_989 = arith.constant 0 : index
    %1330 = vector.load %arg12[%c10_987, %c0_988, %c0_989] : memref<16x8x42xf32, #tpu.memory_space<vmem>>, vector<1x8x42xf32>
    %1331 = vector.shape_cast %1330 : vector<1x8x42xf32> to vector<8x42xf32>
    %c8_990 = arith.constant 8 : index
    %c10_991 = arith.constant 10 : index
    %1332 = memref.load %arg9[%c8_990, %c10_991] : memref<16x16xf32, #tpu.memory_space<smem>>
    %1333 = vector.broadcast %1332 : f32 to vector<8x42xf32>
    %1334 = arith.mulf %1331, %1333 : vector<8x42xf32>
    %1335 = arith.addf %1329, %1334 : vector<8x42xf32>
    %c11_992 = arith.constant 11 : index
    %c0_993 = arith.constant 0 : index
    %c0_994 = arith.constant 0 : index
    %1336 = vector.load %arg12[%c11_992, %c0_993, %c0_994] : memref<16x8x42xf32, #tpu.memory_space<vmem>>, vector<1x8x42xf32>
    %1337 = vector.shape_cast %1336 : vector<1x8x42xf32> to vector<8x42xf32>
    %c8_995 = arith.constant 8 : index
    %c11_996 = arith.constant 11 : index
    %1338 = memref.load %arg9[%c8_995, %c11_996] : memref<16x16xf32, #tpu.memory_space<smem>>
    %1339 = vector.broadcast %1338 : f32 to vector<8x42xf32>
    %1340 = arith.mulf %1337, %1339 : vector<8x42xf32>
    %1341 = arith.addf %1335, %1340 : vector<8x42xf32>
    %c12_997 = arith.constant 12 : index
    %c0_998 = arith.constant 0 : index
    %c0_999 = arith.constant 0 : index
    %1342 = vector.load %arg12[%c12_997, %c0_998, %c0_999] : memref<16x8x42xf32, #tpu.memory_space<vmem>>, vector<1x8x42xf32>
    %1343 = vector.shape_cast %1342 : vector<1x8x42xf32> to vector<8x42xf32>
    %c8_1000 = arith.constant 8 : index
    %c12_1001 = arith.constant 12 : index
    %1344 = memref.load %arg9[%c8_1000, %c12_1001] : memref<16x16xf32, #tpu.memory_space<smem>>
    %1345 = vector.broadcast %1344 : f32 to vector<8x42xf32>
    %1346 = arith.mulf %1343, %1345 : vector<8x42xf32>
    %1347 = arith.addf %1341, %1346 : vector<8x42xf32>
    %c13_1002 = arith.constant 13 : index
    %c0_1003 = arith.constant 0 : index
    %c0_1004 = arith.constant 0 : index
    %1348 = vector.load %arg12[%c13_1002, %c0_1003, %c0_1004] : memref<16x8x42xf32, #tpu.memory_space<vmem>>, vector<1x8x42xf32>
    %1349 = vector.shape_cast %1348 : vector<1x8x42xf32> to vector<8x42xf32>
    %c8_1005 = arith.constant 8 : index
    %c13_1006 = arith.constant 13 : index
    %1350 = memref.load %arg9[%c8_1005, %c13_1006] : memref<16x16xf32, #tpu.memory_space<smem>>
    %1351 = vector.broadcast %1350 : f32 to vector<8x42xf32>
    %1352 = arith.mulf %1349, %1351 : vector<8x42xf32>
    %1353 = arith.addf %1347, %1352 : vector<8x42xf32>
    %c14_1007 = arith.constant 14 : index
    %c0_1008 = arith.constant 0 : index
    %c0_1009 = arith.constant 0 : index
    %1354 = vector.load %arg12[%c14_1007, %c0_1008, %c0_1009] : memref<16x8x42xf32, #tpu.memory_space<vmem>>, vector<1x8x42xf32>
    %1355 = vector.shape_cast %1354 : vector<1x8x42xf32> to vector<8x42xf32>
    %c8_1010 = arith.constant 8 : index
    %c14_1011 = arith.constant 14 : index
    %1356 = memref.load %arg9[%c8_1010, %c14_1011] : memref<16x16xf32, #tpu.memory_space<smem>>
    %1357 = vector.broadcast %1356 : f32 to vector<8x42xf32>
    %1358 = arith.mulf %1355, %1357 : vector<8x42xf32>
    %1359 = arith.addf %1353, %1358 : vector<8x42xf32>
    %c15_1012 = arith.constant 15 : index
    %c0_1013 = arith.constant 0 : index
    %c0_1014 = arith.constant 0 : index
    %1360 = vector.load %arg12[%c15_1012, %c0_1013, %c0_1014] : memref<16x8x42xf32, #tpu.memory_space<vmem>>, vector<1x8x42xf32>
    %1361 = vector.shape_cast %1360 : vector<1x8x42xf32> to vector<8x42xf32>
    %c8_1015 = arith.constant 8 : index
    %c15_1016 = arith.constant 15 : index
    %1362 = memref.load %arg9[%c8_1015, %c15_1016] : memref<16x16xf32, #tpu.memory_space<smem>>
    %1363 = vector.broadcast %1362 : f32 to vector<8x42xf32>
    %1364 = arith.mulf %1361, %1363 : vector<8x42xf32>
    %1365 = arith.addf %1359, %1364 : vector<8x42xf32>
    %c8_1017 = arith.constant 8 : index
    %1366 = memref.load %arg8[%c8_1017] : memref<16xf32, #tpu.memory_space<smem>>
    %1367 = vector.broadcast %1366 : f32 to vector<8x42xf32>
    %1368 = arith.addf %1365, %1367 : vector<8x42xf32>
    %cst_1018 = arith.constant 0.000000e+00 : f32
    %1369 = vector.broadcast %cst_1018 : f32 to vector<8x42xf32>
    %1370 = arith.cmpf ogt, %1368, %1369 : vector<8x42xf32>
    %cst_1019 = arith.constant 0.000000e+00 : f32
    %1371 = vector.broadcast %cst_1019 : f32 to vector<8x42xf32>
    %1372 = arith.minimumf %1368, %1371 : vector<8x42xf32>
    %1373 = math.exp %1372 : vector<8x42xf32>
    %cst_1020 = arith.constant 1.000000e+00 : f32
    %1374 = vector.broadcast %cst_1020 : f32 to vector<8x42xf32>
    %1375 = arith.subf %1373, %1374 : vector<8x42xf32>
    %1376 = arith.select %1370, %1368, %1375 : vector<8x42xi1>, vector<8x42xf32>
    %1377 = arith.truncf %1376 : vector<8x42xf32> to vector<8x42xbf16>
    %c8_1021 = arith.constant 8 : index
    %c0_1022 = arith.constant 0 : index
    %c0_1023 = arith.constant 0 : index
    %1378 = vector.load %arg5[%c8_1021, %c0_1022, %c0_1023] : memref<16x42x5xbf16, #tpu.memory_space<vmem>>, vector<1x42x5xbf16>
    %1379 = vector.shape_cast %1378 : vector<1x42x5xbf16> to vector<42x5xbf16>
    %cst_1024 = arith.constant dense<0.000000e+00> : vector<8x5xf32>
    %1380 = tpu.matmul %1377, %1379, %cst_1024 {dimension_numbers = #tpu.dot_dimension_numbers<[1], [0], [0], [1], [0, 0, 1, 1], [], []>} : vector<8x42xbf16>, vector<42x5xbf16>, vector<8x5xf32> -> vector<8x5xf32>
    %1381 = arith.addf %1270, %1380 : vector<8x5xf32>
    %c0_1025 = arith.constant 0 : index
    %c0_1026 = arith.constant 0 : index
    %c0_1027 = arith.constant 0 : index
    %1382 = vector.load %arg12[%c0_1025, %c0_1026, %c0_1027] : memref<16x8x42xf32, #tpu.memory_space<vmem>>, vector<1x8x42xf32>
    %1383 = vector.shape_cast %1382 : vector<1x8x42xf32> to vector<8x42xf32>
    %c9_1028 = arith.constant 9 : index
    %c0_1029 = arith.constant 0 : index
    %1384 = memref.load %arg9[%c9_1028, %c0_1029] : memref<16x16xf32, #tpu.memory_space<smem>>
    %1385 = vector.broadcast %1384 : f32 to vector<8x42xf32>
    %1386 = arith.mulf %1383, %1385 : vector<8x42xf32>
    %c1_1030 = arith.constant 1 : index
    %c0_1031 = arith.constant 0 : index
    %c0_1032 = arith.constant 0 : index
    %1387 = vector.load %arg12[%c1_1030, %c0_1031, %c0_1032] : memref<16x8x42xf32, #tpu.memory_space<vmem>>, vector<1x8x42xf32>
    %1388 = vector.shape_cast %1387 : vector<1x8x42xf32> to vector<8x42xf32>
    %c9_1033 = arith.constant 9 : index
    %c1_1034 = arith.constant 1 : index
    %1389 = memref.load %arg9[%c9_1033, %c1_1034] : memref<16x16xf32, #tpu.memory_space<smem>>
    %1390 = vector.broadcast %1389 : f32 to vector<8x42xf32>
    %1391 = arith.mulf %1388, %1390 : vector<8x42xf32>
    %1392 = arith.addf %1386, %1391 : vector<8x42xf32>
    %c2_1035 = arith.constant 2 : index
    %c0_1036 = arith.constant 0 : index
    %c0_1037 = arith.constant 0 : index
    %1393 = vector.load %arg12[%c2_1035, %c0_1036, %c0_1037] : memref<16x8x42xf32, #tpu.memory_space<vmem>>, vector<1x8x42xf32>
    %1394 = vector.shape_cast %1393 : vector<1x8x42xf32> to vector<8x42xf32>
    %c9_1038 = arith.constant 9 : index
    %c2_1039 = arith.constant 2 : index
    %1395 = memref.load %arg9[%c9_1038, %c2_1039] : memref<16x16xf32, #tpu.memory_space<smem>>
    %1396 = vector.broadcast %1395 : f32 to vector<8x42xf32>
    %1397 = arith.mulf %1394, %1396 : vector<8x42xf32>
    %1398 = arith.addf %1392, %1397 : vector<8x42xf32>
    %c3_1040 = arith.constant 3 : index
    %c0_1041 = arith.constant 0 : index
    %c0_1042 = arith.constant 0 : index
    %1399 = vector.load %arg12[%c3_1040, %c0_1041, %c0_1042] : memref<16x8x42xf32, #tpu.memory_space<vmem>>, vector<1x8x42xf32>
    %1400 = vector.shape_cast %1399 : vector<1x8x42xf32> to vector<8x42xf32>
    %c9_1043 = arith.constant 9 : index
    %c3_1044 = arith.constant 3 : index
    %1401 = memref.load %arg9[%c9_1043, %c3_1044] : memref<16x16xf32, #tpu.memory_space<smem>>
    %1402 = vector.broadcast %1401 : f32 to vector<8x42xf32>
    %1403 = arith.mulf %1400, %1402 : vector<8x42xf32>
    %1404 = arith.addf %1398, %1403 : vector<8x42xf32>
    %c4_1045 = arith.constant 4 : index
    %c0_1046 = arith.constant 0 : index
    %c0_1047 = arith.constant 0 : index
    %1405 = vector.load %arg12[%c4_1045, %c0_1046, %c0_1047] : memref<16x8x42xf32, #tpu.memory_space<vmem>>, vector<1x8x42xf32>
    %1406 = vector.shape_cast %1405 : vector<1x8x42xf32> to vector<8x42xf32>
    %c9_1048 = arith.constant 9 : index
    %c4_1049 = arith.constant 4 : index
    %1407 = memref.load %arg9[%c9_1048, %c4_1049] : memref<16x16xf32, #tpu.memory_space<smem>>
    %1408 = vector.broadcast %1407 : f32 to vector<8x42xf32>
    %1409 = arith.mulf %1406, %1408 : vector<8x42xf32>
    %1410 = arith.addf %1404, %1409 : vector<8x42xf32>
    %c5_1050 = arith.constant 5 : index
    %c0_1051 = arith.constant 0 : index
    %c0_1052 = arith.constant 0 : index
    %1411 = vector.load %arg12[%c5_1050, %c0_1051, %c0_1052] : memref<16x8x42xf32, #tpu.memory_space<vmem>>, vector<1x8x42xf32>
    %1412 = vector.shape_cast %1411 : vector<1x8x42xf32> to vector<8x42xf32>
    %c9_1053 = arith.constant 9 : index
    %c5_1054 = arith.constant 5 : index
    %1413 = memref.load %arg9[%c9_1053, %c5_1054] : memref<16x16xf32, #tpu.memory_space<smem>>
    %1414 = vector.broadcast %1413 : f32 to vector<8x42xf32>
    %1415 = arith.mulf %1412, %1414 : vector<8x42xf32>
    %1416 = arith.addf %1410, %1415 : vector<8x42xf32>
    %c6_1055 = arith.constant 6 : index
    %c0_1056 = arith.constant 0 : index
    %c0_1057 = arith.constant 0 : index
    %1417 = vector.load %arg12[%c6_1055, %c0_1056, %c0_1057] : memref<16x8x42xf32, #tpu.memory_space<vmem>>, vector<1x8x42xf32>
    %1418 = vector.shape_cast %1417 : vector<1x8x42xf32> to vector<8x42xf32>
    %c9_1058 = arith.constant 9 : index
    %c6_1059 = arith.constant 6 : index
    %1419 = memref.load %arg9[%c9_1058, %c6_1059] : memref<16x16xf32, #tpu.memory_space<smem>>
    %1420 = vector.broadcast %1419 : f32 to vector<8x42xf32>
    %1421 = arith.mulf %1418, %1420 : vector<8x42xf32>
    %1422 = arith.addf %1416, %1421 : vector<8x42xf32>
    %c7_1060 = arith.constant 7 : index
    %c0_1061 = arith.constant 0 : index
    %c0_1062 = arith.constant 0 : index
    %1423 = vector.load %arg12[%c7_1060, %c0_1061, %c0_1062] : memref<16x8x42xf32, #tpu.memory_space<vmem>>, vector<1x8x42xf32>
    %1424 = vector.shape_cast %1423 : vector<1x8x42xf32> to vector<8x42xf32>
    %c9_1063 = arith.constant 9 : index
    %c7_1064 = arith.constant 7 : index
    %1425 = memref.load %arg9[%c9_1063, %c7_1064] : memref<16x16xf32, #tpu.memory_space<smem>>
    %1426 = vector.broadcast %1425 : f32 to vector<8x42xf32>
    %1427 = arith.mulf %1424, %1426 : vector<8x42xf32>
    %1428 = arith.addf %1422, %1427 : vector<8x42xf32>
    %c8_1065 = arith.constant 8 : index
    %c0_1066 = arith.constant 0 : index
    %c0_1067 = arith.constant 0 : index
    %1429 = vector.load %arg12[%c8_1065, %c0_1066, %c0_1067] : memref<16x8x42xf32, #tpu.memory_space<vmem>>, vector<1x8x42xf32>
    %1430 = vector.shape_cast %1429 : vector<1x8x42xf32> to vector<8x42xf32>
    %c9_1068 = arith.constant 9 : index
    %c8_1069 = arith.constant 8 : index
    %1431 = memref.load %arg9[%c9_1068, %c8_1069] : memref<16x16xf32, #tpu.memory_space<smem>>
    %1432 = vector.broadcast %1431 : f32 to vector<8x42xf32>
    %1433 = arith.mulf %1430, %1432 : vector<8x42xf32>
    %1434 = arith.addf %1428, %1433 : vector<8x42xf32>
    %c9_1070 = arith.constant 9 : index
    %c0_1071 = arith.constant 0 : index
    %c0_1072 = arith.constant 0 : index
    %1435 = vector.load %arg12[%c9_1070, %c0_1071, %c0_1072] : memref<16x8x42xf32, #tpu.memory_space<vmem>>, vector<1x8x42xf32>
    %1436 = vector.shape_cast %1435 : vector<1x8x42xf32> to vector<8x42xf32>
    %c9_1073 = arith.constant 9 : index
    %c9_1074 = arith.constant 9 : index
    %1437 = memref.load %arg9[%c9_1073, %c9_1074] : memref<16x16xf32, #tpu.memory_space<smem>>
    %1438 = vector.broadcast %1437 : f32 to vector<8x42xf32>
    %1439 = arith.mulf %1436, %1438 : vector<8x42xf32>
    %1440 = arith.addf %1434, %1439 : vector<8x42xf32>
    %c10_1075 = arith.constant 10 : index
    %c0_1076 = arith.constant 0 : index
    %c0_1077 = arith.constant 0 : index
    %1441 = vector.load %arg12[%c10_1075, %c0_1076, %c0_1077] : memref<16x8x42xf32, #tpu.memory_space<vmem>>, vector<1x8x42xf32>
    %1442 = vector.shape_cast %1441 : vector<1x8x42xf32> to vector<8x42xf32>
    %c9_1078 = arith.constant 9 : index
    %c10_1079 = arith.constant 10 : index
    %1443 = memref.load %arg9[%c9_1078, %c10_1079] : memref<16x16xf32, #tpu.memory_space<smem>>
    %1444 = vector.broadcast %1443 : f32 to vector<8x42xf32>
    %1445 = arith.mulf %1442, %1444 : vector<8x42xf32>
    %1446 = arith.addf %1440, %1445 : vector<8x42xf32>
    %c11_1080 = arith.constant 11 : index
    %c0_1081 = arith.constant 0 : index
    %c0_1082 = arith.constant 0 : index
    %1447 = vector.load %arg12[%c11_1080, %c0_1081, %c0_1082] : memref<16x8x42xf32, #tpu.memory_space<vmem>>, vector<1x8x42xf32>
    %1448 = vector.shape_cast %1447 : vector<1x8x42xf32> to vector<8x42xf32>
    %c9_1083 = arith.constant 9 : index
    %c11_1084 = arith.constant 11 : index
    %1449 = memref.load %arg9[%c9_1083, %c11_1084] : memref<16x16xf32, #tpu.memory_space<smem>>
    %1450 = vector.broadcast %1449 : f32 to vector<8x42xf32>
    %1451 = arith.mulf %1448, %1450 : vector<8x42xf32>
    %1452 = arith.addf %1446, %1451 : vector<8x42xf32>
    %c12_1085 = arith.constant 12 : index
    %c0_1086 = arith.constant 0 : index
    %c0_1087 = arith.constant 0 : index
    %1453 = vector.load %arg12[%c12_1085, %c0_1086, %c0_1087] : memref<16x8x42xf32, #tpu.memory_space<vmem>>, vector<1x8x42xf32>
    %1454 = vector.shape_cast %1453 : vector<1x8x42xf32> to vector<8x42xf32>
    %c9_1088 = arith.constant 9 : index
    %c12_1089 = arith.constant 12 : index
    %1455 = memref.load %arg9[%c9_1088, %c12_1089] : memref<16x16xf32, #tpu.memory_space<smem>>
    %1456 = vector.broadcast %1455 : f32 to vector<8x42xf32>
    %1457 = arith.mulf %1454, %1456 : vector<8x42xf32>
    %1458 = arith.addf %1452, %1457 : vector<8x42xf32>
    %c13_1090 = arith.constant 13 : index
    %c0_1091 = arith.constant 0 : index
    %c0_1092 = arith.constant 0 : index
    %1459 = vector.load %arg12[%c13_1090, %c0_1091, %c0_1092] : memref<16x8x42xf32, #tpu.memory_space<vmem>>, vector<1x8x42xf32>
    %1460 = vector.shape_cast %1459 : vector<1x8x42xf32> to vector<8x42xf32>
    %c9_1093 = arith.constant 9 : index
    %c13_1094 = arith.constant 13 : index
    %1461 = memref.load %arg9[%c9_1093, %c13_1094] : memref<16x16xf32, #tpu.memory_space<smem>>
    %1462 = vector.broadcast %1461 : f32 to vector<8x42xf32>
    %1463 = arith.mulf %1460, %1462 : vector<8x42xf32>
    %1464 = arith.addf %1458, %1463 : vector<8x42xf32>
    %c14_1095 = arith.constant 14 : index
    %c0_1096 = arith.constant 0 : index
    %c0_1097 = arith.constant 0 : index
    %1465 = vector.load %arg12[%c14_1095, %c0_1096, %c0_1097] : memref<16x8x42xf32, #tpu.memory_space<vmem>>, vector<1x8x42xf32>
    %1466 = vector.shape_cast %1465 : vector<1x8x42xf32> to vector<8x42xf32>
    %c9_1098 = arith.constant 9 : index
    %c14_1099 = arith.constant 14 : index
    %1467 = memref.load %arg9[%c9_1098, %c14_1099] : memref<16x16xf32, #tpu.memory_space<smem>>
    %1468 = vector.broadcast %1467 : f32 to vector<8x42xf32>
    %1469 = arith.mulf %1466, %1468 : vector<8x42xf32>
    %1470 = arith.addf %1464, %1469 : vector<8x42xf32>
    %c15_1100 = arith.constant 15 : index
    %c0_1101 = arith.constant 0 : index
    %c0_1102 = arith.constant 0 : index
    %1471 = vector.load %arg12[%c15_1100, %c0_1101, %c0_1102] : memref<16x8x42xf32, #tpu.memory_space<vmem>>, vector<1x8x42xf32>
    %1472 = vector.shape_cast %1471 : vector<1x8x42xf32> to vector<8x42xf32>
    %c9_1103 = arith.constant 9 : index
    %c15_1104 = arith.constant 15 : index
    %1473 = memref.load %arg9[%c9_1103, %c15_1104] : memref<16x16xf32, #tpu.memory_space<smem>>
    %1474 = vector.broadcast %1473 : f32 to vector<8x42xf32>
    %1475 = arith.mulf %1472, %1474 : vector<8x42xf32>
    %1476 = arith.addf %1470, %1475 : vector<8x42xf32>
    %c9_1105 = arith.constant 9 : index
    %1477 = memref.load %arg8[%c9_1105] : memref<16xf32, #tpu.memory_space<smem>>
    %1478 = vector.broadcast %1477 : f32 to vector<8x42xf32>
    %1479 = arith.addf %1476, %1478 : vector<8x42xf32>
    %cst_1106 = arith.constant 0.000000e+00 : f32
    %1480 = vector.broadcast %cst_1106 : f32 to vector<8x42xf32>
    %1481 = arith.cmpf ogt, %1479, %1480 : vector<8x42xf32>
    %cst_1107 = arith.constant 0.000000e+00 : f32
    %1482 = vector.broadcast %cst_1107 : f32 to vector<8x42xf32>
    %1483 = arith.minimumf %1479, %1482 : vector<8x42xf32>
    %1484 = math.exp %1483 : vector<8x42xf32>
    %cst_1108 = arith.constant 1.000000e+00 : f32
    %1485 = vector.broadcast %cst_1108 : f32 to vector<8x42xf32>
    %1486 = arith.subf %1484, %1485 : vector<8x42xf32>
    %1487 = arith.select %1481, %1479, %1486 : vector<8x42xi1>, vector<8x42xf32>
    %1488 = arith.truncf %1487 : vector<8x42xf32> to vector<8x42xbf16>
    %c9_1109 = arith.constant 9 : index
    %c0_1110 = arith.constant 0 : index
    %c0_1111 = arith.constant 0 : index
    %1489 = vector.load %arg5[%c9_1109, %c0_1110, %c0_1111] : memref<16x42x5xbf16, #tpu.memory_space<vmem>>, vector<1x42x5xbf16>
    %1490 = vector.shape_cast %1489 : vector<1x42x5xbf16> to vector<42x5xbf16>
    %cst_1112 = arith.constant dense<0.000000e+00> : vector<8x5xf32>
    %1491 = tpu.matmul %1488, %1490, %cst_1112 {dimension_numbers = #tpu.dot_dimension_numbers<[1], [0], [0], [1], [0, 0, 1, 1], [], []>} : vector<8x42xbf16>, vector<42x5xbf16>, vector<8x5xf32> -> vector<8x5xf32>
    %1492 = arith.addf %1381, %1491 : vector<8x5xf32>
    %c0_1113 = arith.constant 0 : index
    %c0_1114 = arith.constant 0 : index
    %c0_1115 = arith.constant 0 : index
    %1493 = vector.load %arg12[%c0_1113, %c0_1114, %c0_1115] : memref<16x8x42xf32, #tpu.memory_space<vmem>>, vector<1x8x42xf32>
    %1494 = vector.shape_cast %1493 : vector<1x8x42xf32> to vector<8x42xf32>
    %c10_1116 = arith.constant 10 : index
    %c0_1117 = arith.constant 0 : index
    %1495 = memref.load %arg9[%c10_1116, %c0_1117] : memref<16x16xf32, #tpu.memory_space<smem>>
    %1496 = vector.broadcast %1495 : f32 to vector<8x42xf32>
    %1497 = arith.mulf %1494, %1496 : vector<8x42xf32>
    %c1_1118 = arith.constant 1 : index
    %c0_1119 = arith.constant 0 : index
    %c0_1120 = arith.constant 0 : index
    %1498 = vector.load %arg12[%c1_1118, %c0_1119, %c0_1120] : memref<16x8x42xf32, #tpu.memory_space<vmem>>, vector<1x8x42xf32>
    %1499 = vector.shape_cast %1498 : vector<1x8x42xf32> to vector<8x42xf32>
    %c10_1121 = arith.constant 10 : index
    %c1_1122 = arith.constant 1 : index
    %1500 = memref.load %arg9[%c10_1121, %c1_1122] : memref<16x16xf32, #tpu.memory_space<smem>>
    %1501 = vector.broadcast %1500 : f32 to vector<8x42xf32>
    %1502 = arith.mulf %1499, %1501 : vector<8x42xf32>
    %1503 = arith.addf %1497, %1502 : vector<8x42xf32>
    %c2_1123 = arith.constant 2 : index
    %c0_1124 = arith.constant 0 : index
    %c0_1125 = arith.constant 0 : index
    %1504 = vector.load %arg12[%c2_1123, %c0_1124, %c0_1125] : memref<16x8x42xf32, #tpu.memory_space<vmem>>, vector<1x8x42xf32>
    %1505 = vector.shape_cast %1504 : vector<1x8x42xf32> to vector<8x42xf32>
    %c10_1126 = arith.constant 10 : index
    %c2_1127 = arith.constant 2 : index
    %1506 = memref.load %arg9[%c10_1126, %c2_1127] : memref<16x16xf32, #tpu.memory_space<smem>>
    %1507 = vector.broadcast %1506 : f32 to vector<8x42xf32>
    %1508 = arith.mulf %1505, %1507 : vector<8x42xf32>
    %1509 = arith.addf %1503, %1508 : vector<8x42xf32>
    %c3_1128 = arith.constant 3 : index
    %c0_1129 = arith.constant 0 : index
    %c0_1130 = arith.constant 0 : index
    %1510 = vector.load %arg12[%c3_1128, %c0_1129, %c0_1130] : memref<16x8x42xf32, #tpu.memory_space<vmem>>, vector<1x8x42xf32>
    %1511 = vector.shape_cast %1510 : vector<1x8x42xf32> to vector<8x42xf32>
    %c10_1131 = arith.constant 10 : index
    %c3_1132 = arith.constant 3 : index
    %1512 = memref.load %arg9[%c10_1131, %c3_1132] : memref<16x16xf32, #tpu.memory_space<smem>>
    %1513 = vector.broadcast %1512 : f32 to vector<8x42xf32>
    %1514 = arith.mulf %1511, %1513 : vector<8x42xf32>
    %1515 = arith.addf %1509, %1514 : vector<8x42xf32>
    %c4_1133 = arith.constant 4 : index
    %c0_1134 = arith.constant 0 : index
    %c0_1135 = arith.constant 0 : index
    %1516 = vector.load %arg12[%c4_1133, %c0_1134, %c0_1135] : memref<16x8x42xf32, #tpu.memory_space<vmem>>, vector<1x8x42xf32>
    %1517 = vector.shape_cast %1516 : vector<1x8x42xf32> to vector<8x42xf32>
    %c10_1136 = arith.constant 10 : index
    %c4_1137 = arith.constant 4 : index
    %1518 = memref.load %arg9[%c10_1136, %c4_1137] : memref<16x16xf32, #tpu.memory_space<smem>>
    %1519 = vector.broadcast %1518 : f32 to vector<8x42xf32>
    %1520 = arith.mulf %1517, %1519 : vector<8x42xf32>
    %1521 = arith.addf %1515, %1520 : vector<8x42xf32>
    %c5_1138 = arith.constant 5 : index
    %c0_1139 = arith.constant 0 : index
    %c0_1140 = arith.constant 0 : index
    %1522 = vector.load %arg12[%c5_1138, %c0_1139, %c0_1140] : memref<16x8x42xf32, #tpu.memory_space<vmem>>, vector<1x8x42xf32>
    %1523 = vector.shape_cast %1522 : vector<1x8x42xf32> to vector<8x42xf32>
    %c10_1141 = arith.constant 10 : index
    %c5_1142 = arith.constant 5 : index
    %1524 = memref.load %arg9[%c10_1141, %c5_1142] : memref<16x16xf32, #tpu.memory_space<smem>>
    %1525 = vector.broadcast %1524 : f32 to vector<8x42xf32>
    %1526 = arith.mulf %1523, %1525 : vector<8x42xf32>
    %1527 = arith.addf %1521, %1526 : vector<8x42xf32>
    %c6_1143 = arith.constant 6 : index
    %c0_1144 = arith.constant 0 : index
    %c0_1145 = arith.constant 0 : index
    %1528 = vector.load %arg12[%c6_1143, %c0_1144, %c0_1145] : memref<16x8x42xf32, #tpu.memory_space<vmem>>, vector<1x8x42xf32>
    %1529 = vector.shape_cast %1528 : vector<1x8x42xf32> to vector<8x42xf32>
    %c10_1146 = arith.constant 10 : index
    %c6_1147 = arith.constant 6 : index
    %1530 = memref.load %arg9[%c10_1146, %c6_1147] : memref<16x16xf32, #tpu.memory_space<smem>>
    %1531 = vector.broadcast %1530 : f32 to vector<8x42xf32>
    %1532 = arith.mulf %1529, %1531 : vector<8x42xf32>
    %1533 = arith.addf %1527, %1532 : vector<8x42xf32>
    %c7_1148 = arith.constant 7 : index
    %c0_1149 = arith.constant 0 : index
    %c0_1150 = arith.constant 0 : index
    %1534 = vector.load %arg12[%c7_1148, %c0_1149, %c0_1150] : memref<16x8x42xf32, #tpu.memory_space<vmem>>, vector<1x8x42xf32>
    %1535 = vector.shape_cast %1534 : vector<1x8x42xf32> to vector<8x42xf32>
    %c10_1151 = arith.constant 10 : index
    %c7_1152 = arith.constant 7 : index
    %1536 = memref.load %arg9[%c10_1151, %c7_1152] : memref<16x16xf32, #tpu.memory_space<smem>>
    %1537 = vector.broadcast %1536 : f32 to vector<8x42xf32>
    %1538 = arith.mulf %1535, %1537 : vector<8x42xf32>
    %1539 = arith.addf %1533, %1538 : vector<8x42xf32>
    %c8_1153 = arith.constant 8 : index
    %c0_1154 = arith.constant 0 : index
    %c0_1155 = arith.constant 0 : index
    %1540 = vector.load %arg12[%c8_1153, %c0_1154, %c0_1155] : memref<16x8x42xf32, #tpu.memory_space<vmem>>, vector<1x8x42xf32>
    %1541 = vector.shape_cast %1540 : vector<1x8x42xf32> to vector<8x42xf32>
    %c10_1156 = arith.constant 10 : index
    %c8_1157 = arith.constant 8 : index
    %1542 = memref.load %arg9[%c10_1156, %c8_1157] : memref<16x16xf32, #tpu.memory_space<smem>>
    %1543 = vector.broadcast %1542 : f32 to vector<8x42xf32>
    %1544 = arith.mulf %1541, %1543 : vector<8x42xf32>
    %1545 = arith.addf %1539, %1544 : vector<8x42xf32>
    %c9_1158 = arith.constant 9 : index
    %c0_1159 = arith.constant 0 : index
    %c0_1160 = arith.constant 0 : index
    %1546 = vector.load %arg12[%c9_1158, %c0_1159, %c0_1160] : memref<16x8x42xf32, #tpu.memory_space<vmem>>, vector<1x8x42xf32>
    %1547 = vector.shape_cast %1546 : vector<1x8x42xf32> to vector<8x42xf32>
    %c10_1161 = arith.constant 10 : index
    %c9_1162 = arith.constant 9 : index
    %1548 = memref.load %arg9[%c10_1161, %c9_1162] : memref<16x16xf32, #tpu.memory_space<smem>>
    %1549 = vector.broadcast %1548 : f32 to vector<8x42xf32>
    %1550 = arith.mulf %1547, %1549 : vector<8x42xf32>
    %1551 = arith.addf %1545, %1550 : vector<8x42xf32>
    %c10_1163 = arith.constant 10 : index
    %c0_1164 = arith.constant 0 : index
    %c0_1165 = arith.constant 0 : index
    %1552 = vector.load %arg12[%c10_1163, %c0_1164, %c0_1165] : memref<16x8x42xf32, #tpu.memory_space<vmem>>, vector<1x8x42xf32>
    %1553 = vector.shape_cast %1552 : vector<1x8x42xf32> to vector<8x42xf32>
    %c10_1166 = arith.constant 10 : index
    %c10_1167 = arith.constant 10 : index
    %1554 = memref.load %arg9[%c10_1166, %c10_1167] : memref<16x16xf32, #tpu.memory_space<smem>>
    %1555 = vector.broadcast %1554 : f32 to vector<8x42xf32>
    %1556 = arith.mulf %1553, %1555 : vector<8x42xf32>
    %1557 = arith.addf %1551, %1556 : vector<8x42xf32>
    %c11_1168 = arith.constant 11 : index
    %c0_1169 = arith.constant 0 : index
    %c0_1170 = arith.constant 0 : index
    %1558 = vector.load %arg12[%c11_1168, %c0_1169, %c0_1170] : memref<16x8x42xf32, #tpu.memory_space<vmem>>, vector<1x8x42xf32>
    %1559 = vector.shape_cast %1558 : vector<1x8x42xf32> to vector<8x42xf32>
    %c10_1171 = arith.constant 10 : index
    %c11_1172 = arith.constant 11 : index
    %1560 = memref.load %arg9[%c10_1171, %c11_1172] : memref<16x16xf32, #tpu.memory_space<smem>>
    %1561 = vector.broadcast %1560 : f32 to vector<8x42xf32>
    %1562 = arith.mulf %1559, %1561 : vector<8x42xf32>
    %1563 = arith.addf %1557, %1562 : vector<8x42xf32>
    %c12_1173 = arith.constant 12 : index
    %c0_1174 = arith.constant 0 : index
    %c0_1175 = arith.constant 0 : index
    %1564 = vector.load %arg12[%c12_1173, %c0_1174, %c0_1175] : memref<16x8x42xf32, #tpu.memory_space<vmem>>, vector<1x8x42xf32>
    %1565 = vector.shape_cast %1564 : vector<1x8x42xf32> to vector<8x42xf32>
    %c10_1176 = arith.constant 10 : index
    %c12_1177 = arith.constant 12 : index
    %1566 = memref.load %arg9[%c10_1176, %c12_1177] : memref<16x16xf32, #tpu.memory_space<smem>>
    %1567 = vector.broadcast %1566 : f32 to vector<8x42xf32>
    %1568 = arith.mulf %1565, %1567 : vector<8x42xf32>
    %1569 = arith.addf %1563, %1568 : vector<8x42xf32>
    %c13_1178 = arith.constant 13 : index
    %c0_1179 = arith.constant 0 : index
    %c0_1180 = arith.constant 0 : index
    %1570 = vector.load %arg12[%c13_1178, %c0_1179, %c0_1180] : memref<16x8x42xf32, #tpu.memory_space<vmem>>, vector<1x8x42xf32>
    %1571 = vector.shape_cast %1570 : vector<1x8x42xf32> to vector<8x42xf32>
    %c10_1181 = arith.constant 10 : index
    %c13_1182 = arith.constant 13 : index
    %1572 = memref.load %arg9[%c10_1181, %c13_1182] : memref<16x16xf32, #tpu.memory_space<smem>>
    %1573 = vector.broadcast %1572 : f32 to vector<8x42xf32>
    %1574 = arith.mulf %1571, %1573 : vector<8x42xf32>
    %1575 = arith.addf %1569, %1574 : vector<8x42xf32>
    %c14_1183 = arith.constant 14 : index
    %c0_1184 = arith.constant 0 : index
    %c0_1185 = arith.constant 0 : index
    %1576 = vector.load %arg12[%c14_1183, %c0_1184, %c0_1185] : memref<16x8x42xf32, #tpu.memory_space<vmem>>, vector<1x8x42xf32>
    %1577 = vector.shape_cast %1576 : vector<1x8x42xf32> to vector<8x42xf32>
    %c10_1186 = arith.constant 10 : index
    %c14_1187 = arith.constant 14 : index
    %1578 = memref.load %arg9[%c10_1186, %c14_1187] : memref<16x16xf32, #tpu.memory_space<smem>>
    %1579 = vector.broadcast %1578 : f32 to vector<8x42xf32>
    %1580 = arith.mulf %1577, %1579 : vector<8x42xf32>
    %1581 = arith.addf %1575, %1580 : vector<8x42xf32>
    %c15_1188 = arith.constant 15 : index
    %c0_1189 = arith.constant 0 : index
    %c0_1190 = arith.constant 0 : index
    %1582 = vector.load %arg12[%c15_1188, %c0_1189, %c0_1190] : memref<16x8x42xf32, #tpu.memory_space<vmem>>, vector<1x8x42xf32>
    %1583 = vector.shape_cast %1582 : vector<1x8x42xf32> to vector<8x42xf32>
    %c10_1191 = arith.constant 10 : index
    %c15_1192 = arith.constant 15 : index
    %1584 = memref.load %arg9[%c10_1191, %c15_1192] : memref<16x16xf32, #tpu.memory_space<smem>>
    %1585 = vector.broadcast %1584 : f32 to vector<8x42xf32>
    %1586 = arith.mulf %1583, %1585 : vector<8x42xf32>
    %1587 = arith.addf %1581, %1586 : vector<8x42xf32>
    %c10_1193 = arith.constant 10 : index
    %1588 = memref.load %arg8[%c10_1193] : memref<16xf32, #tpu.memory_space<smem>>
    %1589 = vector.broadcast %1588 : f32 to vector<8x42xf32>
    %1590 = arith.addf %1587, %1589 : vector<8x42xf32>
    %cst_1194 = arith.constant 0.000000e+00 : f32
    %1591 = vector.broadcast %cst_1194 : f32 to vector<8x42xf32>
    %1592 = arith.cmpf ogt, %1590, %1591 : vector<8x42xf32>
    %cst_1195 = arith.constant 0.000000e+00 : f32
    %1593 = vector.broadcast %cst_1195 : f32 to vector<8x42xf32>
    %1594 = arith.minimumf %1590, %1593 : vector<8x42xf32>
    %1595 = math.exp %1594 : vector<8x42xf32>
    %cst_1196 = arith.constant 1.000000e+00 : f32
    %1596 = vector.broadcast %cst_1196 : f32 to vector<8x42xf32>
    %1597 = arith.subf %1595, %1596 : vector<8x42xf32>
    %1598 = arith.select %1592, %1590, %1597 : vector<8x42xi1>, vector<8x42xf32>
    %1599 = arith.truncf %1598 : vector<8x42xf32> to vector<8x42xbf16>
    %c10_1197 = arith.constant 10 : index
    %c0_1198 = arith.constant 0 : index
    %c0_1199 = arith.constant 0 : index
    %1600 = vector.load %arg5[%c10_1197, %c0_1198, %c0_1199] : memref<16x42x5xbf16, #tpu.memory_space<vmem>>, vector<1x42x5xbf16>
    %1601 = vector.shape_cast %1600 : vector<1x42x5xbf16> to vector<42x5xbf16>
    %cst_1200 = arith.constant dense<0.000000e+00> : vector<8x5xf32>
    %1602 = tpu.matmul %1599, %1601, %cst_1200 {dimension_numbers = #tpu.dot_dimension_numbers<[1], [0], [0], [1], [0, 0, 1, 1], [], []>} : vector<8x42xbf16>, vector<42x5xbf16>, vector<8x5xf32> -> vector<8x5xf32>
    %1603 = arith.addf %1492, %1602 : vector<8x5xf32>
    %c0_1201 = arith.constant 0 : index
    %c0_1202 = arith.constant 0 : index
    %c0_1203 = arith.constant 0 : index
    %1604 = vector.load %arg12[%c0_1201, %c0_1202, %c0_1203] : memref<16x8x42xf32, #tpu.memory_space<vmem>>, vector<1x8x42xf32>
    %1605 = vector.shape_cast %1604 : vector<1x8x42xf32> to vector<8x42xf32>
    %c11_1204 = arith.constant 11 : index
    %c0_1205 = arith.constant 0 : index
    %1606 = memref.load %arg9[%c11_1204, %c0_1205] : memref<16x16xf32, #tpu.memory_space<smem>>
    %1607 = vector.broadcast %1606 : f32 to vector<8x42xf32>
    %1608 = arith.mulf %1605, %1607 : vector<8x42xf32>
    %c1_1206 = arith.constant 1 : index
    %c0_1207 = arith.constant 0 : index
    %c0_1208 = arith.constant 0 : index
    %1609 = vector.load %arg12[%c1_1206, %c0_1207, %c0_1208] : memref<16x8x42xf32, #tpu.memory_space<vmem>>, vector<1x8x42xf32>
    %1610 = vector.shape_cast %1609 : vector<1x8x42xf32> to vector<8x42xf32>
    %c11_1209 = arith.constant 11 : index
    %c1_1210 = arith.constant 1 : index
    %1611 = memref.load %arg9[%c11_1209, %c1_1210] : memref<16x16xf32, #tpu.memory_space<smem>>
    %1612 = vector.broadcast %1611 : f32 to vector<8x42xf32>
    %1613 = arith.mulf %1610, %1612 : vector<8x42xf32>
    %1614 = arith.addf %1608, %1613 : vector<8x42xf32>
    %c2_1211 = arith.constant 2 : index
    %c0_1212 = arith.constant 0 : index
    %c0_1213 = arith.constant 0 : index
    %1615 = vector.load %arg12[%c2_1211, %c0_1212, %c0_1213] : memref<16x8x42xf32, #tpu.memory_space<vmem>>, vector<1x8x42xf32>
    %1616 = vector.shape_cast %1615 : vector<1x8x42xf32> to vector<8x42xf32>
    %c11_1214 = arith.constant 11 : index
    %c2_1215 = arith.constant 2 : index
    %1617 = memref.load %arg9[%c11_1214, %c2_1215] : memref<16x16xf32, #tpu.memory_space<smem>>
    %1618 = vector.broadcast %1617 : f32 to vector<8x42xf32>
    %1619 = arith.mulf %1616, %1618 : vector<8x42xf32>
    %1620 = arith.addf %1614, %1619 : vector<8x42xf32>
    %c3_1216 = arith.constant 3 : index
    %c0_1217 = arith.constant 0 : index
    %c0_1218 = arith.constant 0 : index
    %1621 = vector.load %arg12[%c3_1216, %c0_1217, %c0_1218] : memref<16x8x42xf32, #tpu.memory_space<vmem>>, vector<1x8x42xf32>
    %1622 = vector.shape_cast %1621 : vector<1x8x42xf32> to vector<8x42xf32>
    %c11_1219 = arith.constant 11 : index
    %c3_1220 = arith.constant 3 : index
    %1623 = memref.load %arg9[%c11_1219, %c3_1220] : memref<16x16xf32, #tpu.memory_space<smem>>
    %1624 = vector.broadcast %1623 : f32 to vector<8x42xf32>
    %1625 = arith.mulf %1622, %1624 : vector<8x42xf32>
    %1626 = arith.addf %1620, %1625 : vector<8x42xf32>
    %c4_1221 = arith.constant 4 : index
    %c0_1222 = arith.constant 0 : index
    %c0_1223 = arith.constant 0 : index
    %1627 = vector.load %arg12[%c4_1221, %c0_1222, %c0_1223] : memref<16x8x42xf32, #tpu.memory_space<vmem>>, vector<1x8x42xf32>
    %1628 = vector.shape_cast %1627 : vector<1x8x42xf32> to vector<8x42xf32>
    %c11_1224 = arith.constant 11 : index
    %c4_1225 = arith.constant 4 : index
    %1629 = memref.load %arg9[%c11_1224, %c4_1225] : memref<16x16xf32, #tpu.memory_space<smem>>
    %1630 = vector.broadcast %1629 : f32 to vector<8x42xf32>
    %1631 = arith.mulf %1628, %1630 : vector<8x42xf32>
    %1632 = arith.addf %1626, %1631 : vector<8x42xf32>
    %c5_1226 = arith.constant 5 : index
    %c0_1227 = arith.constant 0 : index
    %c0_1228 = arith.constant 0 : index
    %1633 = vector.load %arg12[%c5_1226, %c0_1227, %c0_1228] : memref<16x8x42xf32, #tpu.memory_space<vmem>>, vector<1x8x42xf32>
    %1634 = vector.shape_cast %1633 : vector<1x8x42xf32> to vector<8x42xf32>
    %c11_1229 = arith.constant 11 : index
    %c5_1230 = arith.constant 5 : index
    %1635 = memref.load %arg9[%c11_1229, %c5_1230] : memref<16x16xf32, #tpu.memory_space<smem>>
    %1636 = vector.broadcast %1635 : f32 to vector<8x42xf32>
    %1637 = arith.mulf %1634, %1636 : vector<8x42xf32>
    %1638 = arith.addf %1632, %1637 : vector<8x42xf32>
    %c6_1231 = arith.constant 6 : index
    %c0_1232 = arith.constant 0 : index
    %c0_1233 = arith.constant 0 : index
    %1639 = vector.load %arg12[%c6_1231, %c0_1232, %c0_1233] : memref<16x8x42xf32, #tpu.memory_space<vmem>>, vector<1x8x42xf32>
    %1640 = vector.shape_cast %1639 : vector<1x8x42xf32> to vector<8x42xf32>
    %c11_1234 = arith.constant 11 : index
    %c6_1235 = arith.constant 6 : index
    %1641 = memref.load %arg9[%c11_1234, %c6_1235] : memref<16x16xf32, #tpu.memory_space<smem>>
    %1642 = vector.broadcast %1641 : f32 to vector<8x42xf32>
    %1643 = arith.mulf %1640, %1642 : vector<8x42xf32>
    %1644 = arith.addf %1638, %1643 : vector<8x42xf32>
    %c7_1236 = arith.constant 7 : index
    %c0_1237 = arith.constant 0 : index
    %c0_1238 = arith.constant 0 : index
    %1645 = vector.load %arg12[%c7_1236, %c0_1237, %c0_1238] : memref<16x8x42xf32, #tpu.memory_space<vmem>>, vector<1x8x42xf32>
    %1646 = vector.shape_cast %1645 : vector<1x8x42xf32> to vector<8x42xf32>
    %c11_1239 = arith.constant 11 : index
    %c7_1240 = arith.constant 7 : index
    %1647 = memref.load %arg9[%c11_1239, %c7_1240] : memref<16x16xf32, #tpu.memory_space<smem>>
    %1648 = vector.broadcast %1647 : f32 to vector<8x42xf32>
    %1649 = arith.mulf %1646, %1648 : vector<8x42xf32>
    %1650 = arith.addf %1644, %1649 : vector<8x42xf32>
    %c8_1241 = arith.constant 8 : index
    %c0_1242 = arith.constant 0 : index
    %c0_1243 = arith.constant 0 : index
    %1651 = vector.load %arg12[%c8_1241, %c0_1242, %c0_1243] : memref<16x8x42xf32, #tpu.memory_space<vmem>>, vector<1x8x42xf32>
    %1652 = vector.shape_cast %1651 : vector<1x8x42xf32> to vector<8x42xf32>
    %c11_1244 = arith.constant 11 : index
    %c8_1245 = arith.constant 8 : index
    %1653 = memref.load %arg9[%c11_1244, %c8_1245] : memref<16x16xf32, #tpu.memory_space<smem>>
    %1654 = vector.broadcast %1653 : f32 to vector<8x42xf32>
    %1655 = arith.mulf %1652, %1654 : vector<8x42xf32>
    %1656 = arith.addf %1650, %1655 : vector<8x42xf32>
    %c9_1246 = arith.constant 9 : index
    %c0_1247 = arith.constant 0 : index
    %c0_1248 = arith.constant 0 : index
    %1657 = vector.load %arg12[%c9_1246, %c0_1247, %c0_1248] : memref<16x8x42xf32, #tpu.memory_space<vmem>>, vector<1x8x42xf32>
    %1658 = vector.shape_cast %1657 : vector<1x8x42xf32> to vector<8x42xf32>
    %c11_1249 = arith.constant 11 : index
    %c9_1250 = arith.constant 9 : index
    %1659 = memref.load %arg9[%c11_1249, %c9_1250] : memref<16x16xf32, #tpu.memory_space<smem>>
    %1660 = vector.broadcast %1659 : f32 to vector<8x42xf32>
    %1661 = arith.mulf %1658, %1660 : vector<8x42xf32>
    %1662 = arith.addf %1656, %1661 : vector<8x42xf32>
    %c10_1251 = arith.constant 10 : index
    %c0_1252 = arith.constant 0 : index
    %c0_1253 = arith.constant 0 : index
    %1663 = vector.load %arg12[%c10_1251, %c0_1252, %c0_1253] : memref<16x8x42xf32, #tpu.memory_space<vmem>>, vector<1x8x42xf32>
    %1664 = vector.shape_cast %1663 : vector<1x8x42xf32> to vector<8x42xf32>
    %c11_1254 = arith.constant 11 : index
    %c10_1255 = arith.constant 10 : index
    %1665 = memref.load %arg9[%c11_1254, %c10_1255] : memref<16x16xf32, #tpu.memory_space<smem>>
    %1666 = vector.broadcast %1665 : f32 to vector<8x42xf32>
    %1667 = arith.mulf %1664, %1666 : vector<8x42xf32>
    %1668 = arith.addf %1662, %1667 : vector<8x42xf32>
    %c11_1256 = arith.constant 11 : index
    %c0_1257 = arith.constant 0 : index
    %c0_1258 = arith.constant 0 : index
    %1669 = vector.load %arg12[%c11_1256, %c0_1257, %c0_1258] : memref<16x8x42xf32, #tpu.memory_space<vmem>>, vector<1x8x42xf32>
    %1670 = vector.shape_cast %1669 : vector<1x8x42xf32> to vector<8x42xf32>
    %c11_1259 = arith.constant 11 : index
    %c11_1260 = arith.constant 11 : index
    %1671 = memref.load %arg9[%c11_1259, %c11_1260] : memref<16x16xf32, #tpu.memory_space<smem>>
    %1672 = vector.broadcast %1671 : f32 to vector<8x42xf32>
    %1673 = arith.mulf %1670, %1672 : vector<8x42xf32>
    %1674 = arith.addf %1668, %1673 : vector<8x42xf32>
    %c12_1261 = arith.constant 12 : index
    %c0_1262 = arith.constant 0 : index
    %c0_1263 = arith.constant 0 : index
    %1675 = vector.load %arg12[%c12_1261, %c0_1262, %c0_1263] : memref<16x8x42xf32, #tpu.memory_space<vmem>>, vector<1x8x42xf32>
    %1676 = vector.shape_cast %1675 : vector<1x8x42xf32> to vector<8x42xf32>
    %c11_1264 = arith.constant 11 : index
    %c12_1265 = arith.constant 12 : index
    %1677 = memref.load %arg9[%c11_1264, %c12_1265] : memref<16x16xf32, #tpu.memory_space<smem>>
    %1678 = vector.broadcast %1677 : f32 to vector<8x42xf32>
    %1679 = arith.mulf %1676, %1678 : vector<8x42xf32>
    %1680 = arith.addf %1674, %1679 : vector<8x42xf32>
    %c13_1266 = arith.constant 13 : index
    %c0_1267 = arith.constant 0 : index
    %c0_1268 = arith.constant 0 : index
    %1681 = vector.load %arg12[%c13_1266, %c0_1267, %c0_1268] : memref<16x8x42xf32, #tpu.memory_space<vmem>>, vector<1x8x42xf32>
    %1682 = vector.shape_cast %1681 : vector<1x8x42xf32> to vector<8x42xf32>
    %c11_1269 = arith.constant 11 : index
    %c13_1270 = arith.constant 13 : index
    %1683 = memref.load %arg9[%c11_1269, %c13_1270] : memref<16x16xf32, #tpu.memory_space<smem>>
    %1684 = vector.broadcast %1683 : f32 to vector<8x42xf32>
    %1685 = arith.mulf %1682, %1684 : vector<8x42xf32>
    %1686 = arith.addf %1680, %1685 : vector<8x42xf32>
    %c14_1271 = arith.constant 14 : index
    %c0_1272 = arith.constant 0 : index
    %c0_1273 = arith.constant 0 : index
    %1687 = vector.load %arg12[%c14_1271, %c0_1272, %c0_1273] : memref<16x8x42xf32, #tpu.memory_space<vmem>>, vector<1x8x42xf32>
    %1688 = vector.shape_cast %1687 : vector<1x8x42xf32> to vector<8x42xf32>
    %c11_1274 = arith.constant 11 : index
    %c14_1275 = arith.constant 14 : index
    %1689 = memref.load %arg9[%c11_1274, %c14_1275] : memref<16x16xf32, #tpu.memory_space<smem>>
    %1690 = vector.broadcast %1689 : f32 to vector<8x42xf32>
    %1691 = arith.mulf %1688, %1690 : vector<8x42xf32>
    %1692 = arith.addf %1686, %1691 : vector<8x42xf32>
    %c15_1276 = arith.constant 15 : index
    %c0_1277 = arith.constant 0 : index
    %c0_1278 = arith.constant 0 : index
    %1693 = vector.load %arg12[%c15_1276, %c0_1277, %c0_1278] : memref<16x8x42xf32, #tpu.memory_space<vmem>>, vector<1x8x42xf32>
    %1694 = vector.shape_cast %1693 : vector<1x8x42xf32> to vector<8x42xf32>
    %c11_1279 = arith.constant 11 : index
    %c15_1280 = arith.constant 15 : index
    %1695 = memref.load %arg9[%c11_1279, %c15_1280] : memref<16x16xf32, #tpu.memory_space<smem>>
    %1696 = vector.broadcast %1695 : f32 to vector<8x42xf32>
    %1697 = arith.mulf %1694, %1696 : vector<8x42xf32>
    %1698 = arith.addf %1692, %1697 : vector<8x42xf32>
    %c11_1281 = arith.constant 11 : index
    %1699 = memref.load %arg8[%c11_1281] : memref<16xf32, #tpu.memory_space<smem>>
    %1700 = vector.broadcast %1699 : f32 to vector<8x42xf32>
    %1701 = arith.addf %1698, %1700 : vector<8x42xf32>
    %cst_1282 = arith.constant 0.000000e+00 : f32
    %1702 = vector.broadcast %cst_1282 : f32 to vector<8x42xf32>
    %1703 = arith.cmpf ogt, %1701, %1702 : vector<8x42xf32>
    %cst_1283 = arith.constant 0.000000e+00 : f32
    %1704 = vector.broadcast %cst_1283 : f32 to vector<8x42xf32>
    %1705 = arith.minimumf %1701, %1704 : vector<8x42xf32>
    %1706 = math.exp %1705 : vector<8x42xf32>
    %cst_1284 = arith.constant 1.000000e+00 : f32
    %1707 = vector.broadcast %cst_1284 : f32 to vector<8x42xf32>
    %1708 = arith.subf %1706, %1707 : vector<8x42xf32>
    %1709 = arith.select %1703, %1701, %1708 : vector<8x42xi1>, vector<8x42xf32>
    %1710 = arith.truncf %1709 : vector<8x42xf32> to vector<8x42xbf16>
    %c11_1285 = arith.constant 11 : index
    %c0_1286 = arith.constant 0 : index
    %c0_1287 = arith.constant 0 : index
    %1711 = vector.load %arg5[%c11_1285, %c0_1286, %c0_1287] : memref<16x42x5xbf16, #tpu.memory_space<vmem>>, vector<1x42x5xbf16>
    %1712 = vector.shape_cast %1711 : vector<1x42x5xbf16> to vector<42x5xbf16>
    %cst_1288 = arith.constant dense<0.000000e+00> : vector<8x5xf32>
    %1713 = tpu.matmul %1710, %1712, %cst_1288 {dimension_numbers = #tpu.dot_dimension_numbers<[1], [0], [0], [1], [0, 0, 1, 1], [], []>} : vector<8x42xbf16>, vector<42x5xbf16>, vector<8x5xf32> -> vector<8x5xf32>
    %1714 = arith.addf %1603, %1713 : vector<8x5xf32>
    %c0_1289 = arith.constant 0 : index
    %c0_1290 = arith.constant 0 : index
    %c0_1291 = arith.constant 0 : index
    %1715 = vector.load %arg12[%c0_1289, %c0_1290, %c0_1291] : memref<16x8x42xf32, #tpu.memory_space<vmem>>, vector<1x8x42xf32>
    %1716 = vector.shape_cast %1715 : vector<1x8x42xf32> to vector<8x42xf32>
    %c12_1292 = arith.constant 12 : index
    %c0_1293 = arith.constant 0 : index
    %1717 = memref.load %arg9[%c12_1292, %c0_1293] : memref<16x16xf32, #tpu.memory_space<smem>>
    %1718 = vector.broadcast %1717 : f32 to vector<8x42xf32>
    %1719 = arith.mulf %1716, %1718 : vector<8x42xf32>
    %c1_1294 = arith.constant 1 : index
    %c0_1295 = arith.constant 0 : index
    %c0_1296 = arith.constant 0 : index
    %1720 = vector.load %arg12[%c1_1294, %c0_1295, %c0_1296] : memref<16x8x42xf32, #tpu.memory_space<vmem>>, vector<1x8x42xf32>
    %1721 = vector.shape_cast %1720 : vector<1x8x42xf32> to vector<8x42xf32>
    %c12_1297 = arith.constant 12 : index
    %c1_1298 = arith.constant 1 : index
    %1722 = memref.load %arg9[%c12_1297, %c1_1298] : memref<16x16xf32, #tpu.memory_space<smem>>
    %1723 = vector.broadcast %1722 : f32 to vector<8x42xf32>
    %1724 = arith.mulf %1721, %1723 : vector<8x42xf32>
    %1725 = arith.addf %1719, %1724 : vector<8x42xf32>
    %c2_1299 = arith.constant 2 : index
    %c0_1300 = arith.constant 0 : index
    %c0_1301 = arith.constant 0 : index
    %1726 = vector.load %arg12[%c2_1299, %c0_1300, %c0_1301] : memref<16x8x42xf32, #tpu.memory_space<vmem>>, vector<1x8x42xf32>
    %1727 = vector.shape_cast %1726 : vector<1x8x42xf32> to vector<8x42xf32>
    %c12_1302 = arith.constant 12 : index
    %c2_1303 = arith.constant 2 : index
    %1728 = memref.load %arg9[%c12_1302, %c2_1303] : memref<16x16xf32, #tpu.memory_space<smem>>
    %1729 = vector.broadcast %1728 : f32 to vector<8x42xf32>
    %1730 = arith.mulf %1727, %1729 : vector<8x42xf32>
    %1731 = arith.addf %1725, %1730 : vector<8x42xf32>
    %c3_1304 = arith.constant 3 : index
    %c0_1305 = arith.constant 0 : index
    %c0_1306 = arith.constant 0 : index
    %1732 = vector.load %arg12[%c3_1304, %c0_1305, %c0_1306] : memref<16x8x42xf32, #tpu.memory_space<vmem>>, vector<1x8x42xf32>
    %1733 = vector.shape_cast %1732 : vector<1x8x42xf32> to vector<8x42xf32>
    %c12_1307 = arith.constant 12 : index
    %c3_1308 = arith.constant 3 : index
    %1734 = memref.load %arg9[%c12_1307, %c3_1308] : memref<16x16xf32, #tpu.memory_space<smem>>
    %1735 = vector.broadcast %1734 : f32 to vector<8x42xf32>
    %1736 = arith.mulf %1733, %1735 : vector<8x42xf32>
    %1737 = arith.addf %1731, %1736 : vector<8x42xf32>
    %c4_1309 = arith.constant 4 : index
    %c0_1310 = arith.constant 0 : index
    %c0_1311 = arith.constant 0 : index
    %1738 = vector.load %arg12[%c4_1309, %c0_1310, %c0_1311] : memref<16x8x42xf32, #tpu.memory_space<vmem>>, vector<1x8x42xf32>
    %1739 = vector.shape_cast %1738 : vector<1x8x42xf32> to vector<8x42xf32>
    %c12_1312 = arith.constant 12 : index
    %c4_1313 = arith.constant 4 : index
    %1740 = memref.load %arg9[%c12_1312, %c4_1313] : memref<16x16xf32, #tpu.memory_space<smem>>
    %1741 = vector.broadcast %1740 : f32 to vector<8x42xf32>
    %1742 = arith.mulf %1739, %1741 : vector<8x42xf32>
    %1743 = arith.addf %1737, %1742 : vector<8x42xf32>
    %c5_1314 = arith.constant 5 : index
    %c0_1315 = arith.constant 0 : index
    %c0_1316 = arith.constant 0 : index
    %1744 = vector.load %arg12[%c5_1314, %c0_1315, %c0_1316] : memref<16x8x42xf32, #tpu.memory_space<vmem>>, vector<1x8x42xf32>
    %1745 = vector.shape_cast %1744 : vector<1x8x42xf32> to vector<8x42xf32>
    %c12_1317 = arith.constant 12 : index
    %c5_1318 = arith.constant 5 : index
    %1746 = memref.load %arg9[%c12_1317, %c5_1318] : memref<16x16xf32, #tpu.memory_space<smem>>
    %1747 = vector.broadcast %1746 : f32 to vector<8x42xf32>
    %1748 = arith.mulf %1745, %1747 : vector<8x42xf32>
    %1749 = arith.addf %1743, %1748 : vector<8x42xf32>
    %c6_1319 = arith.constant 6 : index
    %c0_1320 = arith.constant 0 : index
    %c0_1321 = arith.constant 0 : index
    %1750 = vector.load %arg12[%c6_1319, %c0_1320, %c0_1321] : memref<16x8x42xf32, #tpu.memory_space<vmem>>, vector<1x8x42xf32>
    %1751 = vector.shape_cast %1750 : vector<1x8x42xf32> to vector<8x42xf32>
    %c12_1322 = arith.constant 12 : index
    %c6_1323 = arith.constant 6 : index
    %1752 = memref.load %arg9[%c12_1322, %c6_1323] : memref<16x16xf32, #tpu.memory_space<smem>>
    %1753 = vector.broadcast %1752 : f32 to vector<8x42xf32>
    %1754 = arith.mulf %1751, %1753 : vector<8x42xf32>
    %1755 = arith.addf %1749, %1754 : vector<8x42xf32>
    %c7_1324 = arith.constant 7 : index
    %c0_1325 = arith.constant 0 : index
    %c0_1326 = arith.constant 0 : index
    %1756 = vector.load %arg12[%c7_1324, %c0_1325, %c0_1326] : memref<16x8x42xf32, #tpu.memory_space<vmem>>, vector<1x8x42xf32>
    %1757 = vector.shape_cast %1756 : vector<1x8x42xf32> to vector<8x42xf32>
    %c12_1327 = arith.constant 12 : index
    %c7_1328 = arith.constant 7 : index
    %1758 = memref.load %arg9[%c12_1327, %c7_1328] : memref<16x16xf32, #tpu.memory_space<smem>>
    %1759 = vector.broadcast %1758 : f32 to vector<8x42xf32>
    %1760 = arith.mulf %1757, %1759 : vector<8x42xf32>
    %1761 = arith.addf %1755, %1760 : vector<8x42xf32>
    %c8_1329 = arith.constant 8 : index
    %c0_1330 = arith.constant 0 : index
    %c0_1331 = arith.constant 0 : index
    %1762 = vector.load %arg12[%c8_1329, %c0_1330, %c0_1331] : memref<16x8x42xf32, #tpu.memory_space<vmem>>, vector<1x8x42xf32>
    %1763 = vector.shape_cast %1762 : vector<1x8x42xf32> to vector<8x42xf32>
    %c12_1332 = arith.constant 12 : index
    %c8_1333 = arith.constant 8 : index
    %1764 = memref.load %arg9[%c12_1332, %c8_1333] : memref<16x16xf32, #tpu.memory_space<smem>>
    %1765 = vector.broadcast %1764 : f32 to vector<8x42xf32>
    %1766 = arith.mulf %1763, %1765 : vector<8x42xf32>
    %1767 = arith.addf %1761, %1766 : vector<8x42xf32>
    %c9_1334 = arith.constant 9 : index
    %c0_1335 = arith.constant 0 : index
    %c0_1336 = arith.constant 0 : index
    %1768 = vector.load %arg12[%c9_1334, %c0_1335, %c0_1336] : memref<16x8x42xf32, #tpu.memory_space<vmem>>, vector<1x8x42xf32>
    %1769 = vector.shape_cast %1768 : vector<1x8x42xf32> to vector<8x42xf32>
    %c12_1337 = arith.constant 12 : index
    %c9_1338 = arith.constant 9 : index
    %1770 = memref.load %arg9[%c12_1337, %c9_1338] : memref<16x16xf32, #tpu.memory_space<smem>>
    %1771 = vector.broadcast %1770 : f32 to vector<8x42xf32>
    %1772 = arith.mulf %1769, %1771 : vector<8x42xf32>
    %1773 = arith.addf %1767, %1772 : vector<8x42xf32>
    %c10_1339 = arith.constant 10 : index
    %c0_1340 = arith.constant 0 : index
    %c0_1341 = arith.constant 0 : index
    %1774 = vector.load %arg12[%c10_1339, %c0_1340, %c0_1341] : memref<16x8x42xf32, #tpu.memory_space<vmem>>, vector<1x8x42xf32>
    %1775 = vector.shape_cast %1774 : vector<1x8x42xf32> to vector<8x42xf32>
    %c12_1342 = arith.constant 12 : index
    %c10_1343 = arith.constant 10 : index
    %1776 = memref.load %arg9[%c12_1342, %c10_1343] : memref<16x16xf32, #tpu.memory_space<smem>>
    %1777 = vector.broadcast %1776 : f32 to vector<8x42xf32>
    %1778 = arith.mulf %1775, %1777 : vector<8x42xf32>
    %1779 = arith.addf %1773, %1778 : vector<8x42xf32>
    %c11_1344 = arith.constant 11 : index
    %c0_1345 = arith.constant 0 : index
    %c0_1346 = arith.constant 0 : index
    %1780 = vector.load %arg12[%c11_1344, %c0_1345, %c0_1346] : memref<16x8x42xf32, #tpu.memory_space<vmem>>, vector<1x8x42xf32>
    %1781 = vector.shape_cast %1780 : vector<1x8x42xf32> to vector<8x42xf32>
    %c12_1347 = arith.constant 12 : index
    %c11_1348 = arith.constant 11 : index
    %1782 = memref.load %arg9[%c12_1347, %c11_1348] : memref<16x16xf32, #tpu.memory_space<smem>>
    %1783 = vector.broadcast %1782 : f32 to vector<8x42xf32>
    %1784 = arith.mulf %1781, %1783 : vector<8x42xf32>
    %1785 = arith.addf %1779, %1784 : vector<8x42xf32>
    %c12_1349 = arith.constant 12 : index
    %c0_1350 = arith.constant 0 : index
    %c0_1351 = arith.constant 0 : index
    %1786 = vector.load %arg12[%c12_1349, %c0_1350, %c0_1351] : memref<16x8x42xf32, #tpu.memory_space<vmem>>, vector<1x8x42xf32>
    %1787 = vector.shape_cast %1786 : vector<1x8x42xf32> to vector<8x42xf32>
    %c12_1352 = arith.constant 12 : index
    %c12_1353 = arith.constant 12 : index
    %1788 = memref.load %arg9[%c12_1352, %c12_1353] : memref<16x16xf32, #tpu.memory_space<smem>>
    %1789 = vector.broadcast %1788 : f32 to vector<8x42xf32>
    %1790 = arith.mulf %1787, %1789 : vector<8x42xf32>
    %1791 = arith.addf %1785, %1790 : vector<8x42xf32>
    %c13_1354 = arith.constant 13 : index
    %c0_1355 = arith.constant 0 : index
    %c0_1356 = arith.constant 0 : index
    %1792 = vector.load %arg12[%c13_1354, %c0_1355, %c0_1356] : memref<16x8x42xf32, #tpu.memory_space<vmem>>, vector<1x8x42xf32>
    %1793 = vector.shape_cast %1792 : vector<1x8x42xf32> to vector<8x42xf32>
    %c12_1357 = arith.constant 12 : index
    %c13_1358 = arith.constant 13 : index
    %1794 = memref.load %arg9[%c12_1357, %c13_1358] : memref<16x16xf32, #tpu.memory_space<smem>>
    %1795 = vector.broadcast %1794 : f32 to vector<8x42xf32>
    %1796 = arith.mulf %1793, %1795 : vector<8x42xf32>
    %1797 = arith.addf %1791, %1796 : vector<8x42xf32>
    %c14_1359 = arith.constant 14 : index
    %c0_1360 = arith.constant 0 : index
    %c0_1361 = arith.constant 0 : index
    %1798 = vector.load %arg12[%c14_1359, %c0_1360, %c0_1361] : memref<16x8x42xf32, #tpu.memory_space<vmem>>, vector<1x8x42xf32>
    %1799 = vector.shape_cast %1798 : vector<1x8x42xf32> to vector<8x42xf32>
    %c12_1362 = arith.constant 12 : index
    %c14_1363 = arith.constant 14 : index
    %1800 = memref.load %arg9[%c12_1362, %c14_1363] : memref<16x16xf32, #tpu.memory_space<smem>>
    %1801 = vector.broadcast %1800 : f32 to vector<8x42xf32>
    %1802 = arith.mulf %1799, %1801 : vector<8x42xf32>
    %1803 = arith.addf %1797, %1802 : vector<8x42xf32>
    %c15_1364 = arith.constant 15 : index
    %c0_1365 = arith.constant 0 : index
    %c0_1366 = arith.constant 0 : index
    %1804 = vector.load %arg12[%c15_1364, %c0_1365, %c0_1366] : memref<16x8x42xf32, #tpu.memory_space<vmem>>, vector<1x8x42xf32>
    %1805 = vector.shape_cast %1804 : vector<1x8x42xf32> to vector<8x42xf32>
    %c12_1367 = arith.constant 12 : index
    %c15_1368 = arith.constant 15 : index
    %1806 = memref.load %arg9[%c12_1367, %c15_1368] : memref<16x16xf32, #tpu.memory_space<smem>>
    %1807 = vector.broadcast %1806 : f32 to vector<8x42xf32>
    %1808 = arith.mulf %1805, %1807 : vector<8x42xf32>
    %1809 = arith.addf %1803, %1808 : vector<8x42xf32>
    %c12_1369 = arith.constant 12 : index
    %1810 = memref.load %arg8[%c12_1369] : memref<16xf32, #tpu.memory_space<smem>>
    %1811 = vector.broadcast %1810 : f32 to vector<8x42xf32>
    %1812 = arith.addf %1809, %1811 : vector<8x42xf32>
    %cst_1370 = arith.constant 0.000000e+00 : f32
    %1813 = vector.broadcast %cst_1370 : f32 to vector<8x42xf32>
    %1814 = arith.cmpf ogt, %1812, %1813 : vector<8x42xf32>
    %cst_1371 = arith.constant 0.000000e+00 : f32
    %1815 = vector.broadcast %cst_1371 : f32 to vector<8x42xf32>
    %1816 = arith.minimumf %1812, %1815 : vector<8x42xf32>
    %1817 = math.exp %1816 : vector<8x42xf32>
    %cst_1372 = arith.constant 1.000000e+00 : f32
    %1818 = vector.broadcast %cst_1372 : f32 to vector<8x42xf32>
    %1819 = arith.subf %1817, %1818 : vector<8x42xf32>
    %1820 = arith.select %1814, %1812, %1819 : vector<8x42xi1>, vector<8x42xf32>
    %1821 = arith.truncf %1820 : vector<8x42xf32> to vector<8x42xbf16>
    %c12_1373 = arith.constant 12 : index
    %c0_1374 = arith.constant 0 : index
    %c0_1375 = arith.constant 0 : index
    %1822 = vector.load %arg5[%c12_1373, %c0_1374, %c0_1375] : memref<16x42x5xbf16, #tpu.memory_space<vmem>>, vector<1x42x5xbf16>
    %1823 = vector.shape_cast %1822 : vector<1x42x5xbf16> to vector<42x5xbf16>
    %cst_1376 = arith.constant dense<0.000000e+00> : vector<8x5xf32>
    %1824 = tpu.matmul %1821, %1823, %cst_1376 {dimension_numbers = #tpu.dot_dimension_numbers<[1], [0], [0], [1], [0, 0, 1, 1], [], []>} : vector<8x42xbf16>, vector<42x5xbf16>, vector<8x5xf32> -> vector<8x5xf32>
    %1825 = arith.addf %1714, %1824 : vector<8x5xf32>
    %c0_1377 = arith.constant 0 : index
    %c0_1378 = arith.constant 0 : index
    %c0_1379 = arith.constant 0 : index
    %1826 = vector.load %arg12[%c0_1377, %c0_1378, %c0_1379] : memref<16x8x42xf32, #tpu.memory_space<vmem>>, vector<1x8x42xf32>
    %1827 = vector.shape_cast %1826 : vector<1x8x42xf32> to vector<8x42xf32>
    %c13_1380 = arith.constant 13 : index
    %c0_1381 = arith.constant 0 : index
    %1828 = memref.load %arg9[%c13_1380, %c0_1381] : memref<16x16xf32, #tpu.memory_space<smem>>
    %1829 = vector.broadcast %1828 : f32 to vector<8x42xf32>
    %1830 = arith.mulf %1827, %1829 : vector<8x42xf32>
    %c1_1382 = arith.constant 1 : index
    %c0_1383 = arith.constant 0 : index
    %c0_1384 = arith.constant 0 : index
    %1831 = vector.load %arg12[%c1_1382, %c0_1383, %c0_1384] : memref<16x8x42xf32, #tpu.memory_space<vmem>>, vector<1x8x42xf32>
    %1832 = vector.shape_cast %1831 : vector<1x8x42xf32> to vector<8x42xf32>
    %c13_1385 = arith.constant 13 : index
    %c1_1386 = arith.constant 1 : index
    %1833 = memref.load %arg9[%c13_1385, %c1_1386] : memref<16x16xf32, #tpu.memory_space<smem>>
    %1834 = vector.broadcast %1833 : f32 to vector<8x42xf32>
    %1835 = arith.mulf %1832, %1834 : vector<8x42xf32>
    %1836 = arith.addf %1830, %1835 : vector<8x42xf32>
    %c2_1387 = arith.constant 2 : index
    %c0_1388 = arith.constant 0 : index
    %c0_1389 = arith.constant 0 : index
    %1837 = vector.load %arg12[%c2_1387, %c0_1388, %c0_1389] : memref<16x8x42xf32, #tpu.memory_space<vmem>>, vector<1x8x42xf32>
    %1838 = vector.shape_cast %1837 : vector<1x8x42xf32> to vector<8x42xf32>
    %c13_1390 = arith.constant 13 : index
    %c2_1391 = arith.constant 2 : index
    %1839 = memref.load %arg9[%c13_1390, %c2_1391] : memref<16x16xf32, #tpu.memory_space<smem>>
    %1840 = vector.broadcast %1839 : f32 to vector<8x42xf32>
    %1841 = arith.mulf %1838, %1840 : vector<8x42xf32>
    %1842 = arith.addf %1836, %1841 : vector<8x42xf32>
    %c3_1392 = arith.constant 3 : index
    %c0_1393 = arith.constant 0 : index
    %c0_1394 = arith.constant 0 : index
    %1843 = vector.load %arg12[%c3_1392, %c0_1393, %c0_1394] : memref<16x8x42xf32, #tpu.memory_space<vmem>>, vector<1x8x42xf32>
    %1844 = vector.shape_cast %1843 : vector<1x8x42xf32> to vector<8x42xf32>
    %c13_1395 = arith.constant 13 : index
    %c3_1396 = arith.constant 3 : index
    %1845 = memref.load %arg9[%c13_1395, %c3_1396] : memref<16x16xf32, #tpu.memory_space<smem>>
    %1846 = vector.broadcast %1845 : f32 to vector<8x42xf32>
    %1847 = arith.mulf %1844, %1846 : vector<8x42xf32>
    %1848 = arith.addf %1842, %1847 : vector<8x42xf32>
    %c4_1397 = arith.constant 4 : index
    %c0_1398 = arith.constant 0 : index
    %c0_1399 = arith.constant 0 : index
    %1849 = vector.load %arg12[%c4_1397, %c0_1398, %c0_1399] : memref<16x8x42xf32, #tpu.memory_space<vmem>>, vector<1x8x42xf32>
    %1850 = vector.shape_cast %1849 : vector<1x8x42xf32> to vector<8x42xf32>
    %c13_1400 = arith.constant 13 : index
    %c4_1401 = arith.constant 4 : index
    %1851 = memref.load %arg9[%c13_1400, %c4_1401] : memref<16x16xf32, #tpu.memory_space<smem>>
    %1852 = vector.broadcast %1851 : f32 to vector<8x42xf32>
    %1853 = arith.mulf %1850, %1852 : vector<8x42xf32>
    %1854 = arith.addf %1848, %1853 : vector<8x42xf32>
    %c5_1402 = arith.constant 5 : index
    %c0_1403 = arith.constant 0 : index
    %c0_1404 = arith.constant 0 : index
    %1855 = vector.load %arg12[%c5_1402, %c0_1403, %c0_1404] : memref<16x8x42xf32, #tpu.memory_space<vmem>>, vector<1x8x42xf32>
    %1856 = vector.shape_cast %1855 : vector<1x8x42xf32> to vector<8x42xf32>
    %c13_1405 = arith.constant 13 : index
    %c5_1406 = arith.constant 5 : index
    %1857 = memref.load %arg9[%c13_1405, %c5_1406] : memref<16x16xf32, #tpu.memory_space<smem>>
    %1858 = vector.broadcast %1857 : f32 to vector<8x42xf32>
    %1859 = arith.mulf %1856, %1858 : vector<8x42xf32>
    %1860 = arith.addf %1854, %1859 : vector<8x42xf32>
    %c6_1407 = arith.constant 6 : index
    %c0_1408 = arith.constant 0 : index
    %c0_1409 = arith.constant 0 : index
    %1861 = vector.load %arg12[%c6_1407, %c0_1408, %c0_1409] : memref<16x8x42xf32, #tpu.memory_space<vmem>>, vector<1x8x42xf32>
    %1862 = vector.shape_cast %1861 : vector<1x8x42xf32> to vector<8x42xf32>
    %c13_1410 = arith.constant 13 : index
    %c6_1411 = arith.constant 6 : index
    %1863 = memref.load %arg9[%c13_1410, %c6_1411] : memref<16x16xf32, #tpu.memory_space<smem>>
    %1864 = vector.broadcast %1863 : f32 to vector<8x42xf32>
    %1865 = arith.mulf %1862, %1864 : vector<8x42xf32>
    %1866 = arith.addf %1860, %1865 : vector<8x42xf32>
    %c7_1412 = arith.constant 7 : index
    %c0_1413 = arith.constant 0 : index
    %c0_1414 = arith.constant 0 : index
    %1867 = vector.load %arg12[%c7_1412, %c0_1413, %c0_1414] : memref<16x8x42xf32, #tpu.memory_space<vmem>>, vector<1x8x42xf32>
    %1868 = vector.shape_cast %1867 : vector<1x8x42xf32> to vector<8x42xf32>
    %c13_1415 = arith.constant 13 : index
    %c7_1416 = arith.constant 7 : index
    %1869 = memref.load %arg9[%c13_1415, %c7_1416] : memref<16x16xf32, #tpu.memory_space<smem>>
    %1870 = vector.broadcast %1869 : f32 to vector<8x42xf32>
    %1871 = arith.mulf %1868, %1870 : vector<8x42xf32>
    %1872 = arith.addf %1866, %1871 : vector<8x42xf32>
    %c8_1417 = arith.constant 8 : index
    %c0_1418 = arith.constant 0 : index
    %c0_1419 = arith.constant 0 : index
    %1873 = vector.load %arg12[%c8_1417, %c0_1418, %c0_1419] : memref<16x8x42xf32, #tpu.memory_space<vmem>>, vector<1x8x42xf32>
    %1874 = vector.shape_cast %1873 : vector<1x8x42xf32> to vector<8x42xf32>
    %c13_1420 = arith.constant 13 : index
    %c8_1421 = arith.constant 8 : index
    %1875 = memref.load %arg9[%c13_1420, %c8_1421] : memref<16x16xf32, #tpu.memory_space<smem>>
    %1876 = vector.broadcast %1875 : f32 to vector<8x42xf32>
    %1877 = arith.mulf %1874, %1876 : vector<8x42xf32>
    %1878 = arith.addf %1872, %1877 : vector<8x42xf32>
    %c9_1422 = arith.constant 9 : index
    %c0_1423 = arith.constant 0 : index
    %c0_1424 = arith.constant 0 : index
    %1879 = vector.load %arg12[%c9_1422, %c0_1423, %c0_1424] : memref<16x8x42xf32, #tpu.memory_space<vmem>>, vector<1x8x42xf32>
    %1880 = vector.shape_cast %1879 : vector<1x8x42xf32> to vector<8x42xf32>
    %c13_1425 = arith.constant 13 : index
    %c9_1426 = arith.constant 9 : index
    %1881 = memref.load %arg9[%c13_1425, %c9_1426] : memref<16x16xf32, #tpu.memory_space<smem>>
    %1882 = vector.broadcast %1881 : f32 to vector<8x42xf32>
    %1883 = arith.mulf %1880, %1882 : vector<8x42xf32>
    %1884 = arith.addf %1878, %1883 : vector<8x42xf32>
    %c10_1427 = arith.constant 10 : index
    %c0_1428 = arith.constant 0 : index
    %c0_1429 = arith.constant 0 : index
    %1885 = vector.load %arg12[%c10_1427, %c0_1428, %c0_1429] : memref<16x8x42xf32, #tpu.memory_space<vmem>>, vector<1x8x42xf32>
    %1886 = vector.shape_cast %1885 : vector<1x8x42xf32> to vector<8x42xf32>
    %c13_1430 = arith.constant 13 : index
    %c10_1431 = arith.constant 10 : index
    %1887 = memref.load %arg9[%c13_1430, %c10_1431] : memref<16x16xf32, #tpu.memory_space<smem>>
    %1888 = vector.broadcast %1887 : f32 to vector<8x42xf32>
    %1889 = arith.mulf %1886, %1888 : vector<8x42xf32>
    %1890 = arith.addf %1884, %1889 : vector<8x42xf32>
    %c11_1432 = arith.constant 11 : index
    %c0_1433 = arith.constant 0 : index
    %c0_1434 = arith.constant 0 : index
    %1891 = vector.load %arg12[%c11_1432, %c0_1433, %c0_1434] : memref<16x8x42xf32, #tpu.memory_space<vmem>>, vector<1x8x42xf32>
    %1892 = vector.shape_cast %1891 : vector<1x8x42xf32> to vector<8x42xf32>
    %c13_1435 = arith.constant 13 : index
    %c11_1436 = arith.constant 11 : index
    %1893 = memref.load %arg9[%c13_1435, %c11_1436] : memref<16x16xf32, #tpu.memory_space<smem>>
    %1894 = vector.broadcast %1893 : f32 to vector<8x42xf32>
    %1895 = arith.mulf %1892, %1894 : vector<8x42xf32>
    %1896 = arith.addf %1890, %1895 : vector<8x42xf32>
    %c12_1437 = arith.constant 12 : index
    %c0_1438 = arith.constant 0 : index
    %c0_1439 = arith.constant 0 : index
    %1897 = vector.load %arg12[%c12_1437, %c0_1438, %c0_1439] : memref<16x8x42xf32, #tpu.memory_space<vmem>>, vector<1x8x42xf32>
    %1898 = vector.shape_cast %1897 : vector<1x8x42xf32> to vector<8x42xf32>
    %c13_1440 = arith.constant 13 : index
    %c12_1441 = arith.constant 12 : index
    %1899 = memref.load %arg9[%c13_1440, %c12_1441] : memref<16x16xf32, #tpu.memory_space<smem>>
    %1900 = vector.broadcast %1899 : f32 to vector<8x42xf32>
    %1901 = arith.mulf %1898, %1900 : vector<8x42xf32>
    %1902 = arith.addf %1896, %1901 : vector<8x42xf32>
    %c13_1442 = arith.constant 13 : index
    %c0_1443 = arith.constant 0 : index
    %c0_1444 = arith.constant 0 : index
    %1903 = vector.load %arg12[%c13_1442, %c0_1443, %c0_1444] : memref<16x8x42xf32, #tpu.memory_space<vmem>>, vector<1x8x42xf32>
    %1904 = vector.shape_cast %1903 : vector<1x8x42xf32> to vector<8x42xf32>
    %c13_1445 = arith.constant 13 : index
    %c13_1446 = arith.constant 13 : index
    %1905 = memref.load %arg9[%c13_1445, %c13_1446] : memref<16x16xf32, #tpu.memory_space<smem>>
    %1906 = vector.broadcast %1905 : f32 to vector<8x42xf32>
    %1907 = arith.mulf %1904, %1906 : vector<8x42xf32>
    %1908 = arith.addf %1902, %1907 : vector<8x42xf32>
    %c14_1447 = arith.constant 14 : index
    %c0_1448 = arith.constant 0 : index
    %c0_1449 = arith.constant 0 : index
    %1909 = vector.load %arg12[%c14_1447, %c0_1448, %c0_1449] : memref<16x8x42xf32, #tpu.memory_space<vmem>>, vector<1x8x42xf32>
    %1910 = vector.shape_cast %1909 : vector<1x8x42xf32> to vector<8x42xf32>
    %c13_1450 = arith.constant 13 : index
    %c14_1451 = arith.constant 14 : index
    %1911 = memref.load %arg9[%c13_1450, %c14_1451] : memref<16x16xf32, #tpu.memory_space<smem>>
    %1912 = vector.broadcast %1911 : f32 to vector<8x42xf32>
    %1913 = arith.mulf %1910, %1912 : vector<8x42xf32>
    %1914 = arith.addf %1908, %1913 : vector<8x42xf32>
    %c15_1452 = arith.constant 15 : index
    %c0_1453 = arith.constant 0 : index
    %c0_1454 = arith.constant 0 : index
    %1915 = vector.load %arg12[%c15_1452, %c0_1453, %c0_1454] : memref<16x8x42xf32, #tpu.memory_space<vmem>>, vector<1x8x42xf32>
    %1916 = vector.shape_cast %1915 : vector<1x8x42xf32> to vector<8x42xf32>
    %c13_1455 = arith.constant 13 : index
    %c15_1456 = arith.constant 15 : index
    %1917 = memref.load %arg9[%c13_1455, %c15_1456] : memref<16x16xf32, #tpu.memory_space<smem>>
    %1918 = vector.broadcast %1917 : f32 to vector<8x42xf32>
    %1919 = arith.mulf %1916, %1918 : vector<8x42xf32>
    %1920 = arith.addf %1914, %1919 : vector<8x42xf32>
    %c13_1457 = arith.constant 13 : index
    %1921 = memref.load %arg8[%c13_1457] : memref<16xf32, #tpu.memory_space<smem>>
    %1922 = vector.broadcast %1921 : f32 to vector<8x42xf32>
    %1923 = arith.addf %1920, %1922 : vector<8x42xf32>
    %cst_1458 = arith.constant 0.000000e+00 : f32
    %1924 = vector.broadcast %cst_1458 : f32 to vector<8x42xf32>
    %1925 = arith.cmpf ogt, %1923, %1924 : vector<8x42xf32>
    %cst_1459 = arith.constant 0.000000e+00 : f32
    %1926 = vector.broadcast %cst_1459 : f32 to vector<8x42xf32>
    %1927 = arith.minimumf %1923, %1926 : vector<8x42xf32>
    %1928 = math.exp %1927 : vector<8x42xf32>
    %cst_1460 = arith.constant 1.000000e+00 : f32
    %1929 = vector.broadcast %cst_1460 : f32 to vector<8x42xf32>
    %1930 = arith.subf %1928, %1929 : vector<8x42xf32>
    %1931 = arith.select %1925, %1923, %1930 : vector<8x42xi1>, vector<8x42xf32>
    %1932 = arith.truncf %1931 : vector<8x42xf32> to vector<8x42xbf16>
    %c13_1461 = arith.constant 13 : index
    %c0_1462 = arith.constant 0 : index
    %c0_1463 = arith.constant 0 : index
    %1933 = vector.load %arg5[%c13_1461, %c0_1462, %c0_1463] : memref<16x42x5xbf16, #tpu.memory_space<vmem>>, vector<1x42x5xbf16>
    %1934 = vector.shape_cast %1933 : vector<1x42x5xbf16> to vector<42x5xbf16>
    %cst_1464 = arith.constant dense<0.000000e+00> : vector<8x5xf32>
    %1935 = tpu.matmul %1932, %1934, %cst_1464 {dimension_numbers = #tpu.dot_dimension_numbers<[1], [0], [0], [1], [0, 0, 1, 1], [], []>} : vector<8x42xbf16>, vector<42x5xbf16>, vector<8x5xf32> -> vector<8x5xf32>
    %1936 = arith.addf %1825, %1935 : vector<8x5xf32>
    %c0_1465 = arith.constant 0 : index
    %c0_1466 = arith.constant 0 : index
    %c0_1467 = arith.constant 0 : index
    %1937 = vector.load %arg12[%c0_1465, %c0_1466, %c0_1467] : memref<16x8x42xf32, #tpu.memory_space<vmem>>, vector<1x8x42xf32>
    %1938 = vector.shape_cast %1937 : vector<1x8x42xf32> to vector<8x42xf32>
    %c14_1468 = arith.constant 14 : index
    %c0_1469 = arith.constant 0 : index
    %1939 = memref.load %arg9[%c14_1468, %c0_1469] : memref<16x16xf32, #tpu.memory_space<smem>>
    %1940 = vector.broadcast %1939 : f32 to vector<8x42xf32>
    %1941 = arith.mulf %1938, %1940 : vector<8x42xf32>
    %c1_1470 = arith.constant 1 : index
    %c0_1471 = arith.constant 0 : index
    %c0_1472 = arith.constant 0 : index
    %1942 = vector.load %arg12[%c1_1470, %c0_1471, %c0_1472] : memref<16x8x42xf32, #tpu.memory_space<vmem>>, vector<1x8x42xf32>
    %1943 = vector.shape_cast %1942 : vector<1x8x42xf32> to vector<8x42xf32>
    %c14_1473 = arith.constant 14 : index
    %c1_1474 = arith.constant 1 : index
    %1944 = memref.load %arg9[%c14_1473, %c1_1474] : memref<16x16xf32, #tpu.memory_space<smem>>
    %1945 = vector.broadcast %1944 : f32 to vector<8x42xf32>
    %1946 = arith.mulf %1943, %1945 : vector<8x42xf32>
    %1947 = arith.addf %1941, %1946 : vector<8x42xf32>
    %c2_1475 = arith.constant 2 : index
    %c0_1476 = arith.constant 0 : index
    %c0_1477 = arith.constant 0 : index
    %1948 = vector.load %arg12[%c2_1475, %c0_1476, %c0_1477] : memref<16x8x42xf32, #tpu.memory_space<vmem>>, vector<1x8x42xf32>
    %1949 = vector.shape_cast %1948 : vector<1x8x42xf32> to vector<8x42xf32>
    %c14_1478 = arith.constant 14 : index
    %c2_1479 = arith.constant 2 : index
    %1950 = memref.load %arg9[%c14_1478, %c2_1479] : memref<16x16xf32, #tpu.memory_space<smem>>
    %1951 = vector.broadcast %1950 : f32 to vector<8x42xf32>
    %1952 = arith.mulf %1949, %1951 : vector<8x42xf32>
    %1953 = arith.addf %1947, %1952 : vector<8x42xf32>
    %c3_1480 = arith.constant 3 : index
    %c0_1481 = arith.constant 0 : index
    %c0_1482 = arith.constant 0 : index
    %1954 = vector.load %arg12[%c3_1480, %c0_1481, %c0_1482] : memref<16x8x42xf32, #tpu.memory_space<vmem>>, vector<1x8x42xf32>
    %1955 = vector.shape_cast %1954 : vector<1x8x42xf32> to vector<8x42xf32>
    %c14_1483 = arith.constant 14 : index
    %c3_1484 = arith.constant 3 : index
    %1956 = memref.load %arg9[%c14_1483, %c3_1484] : memref<16x16xf32, #tpu.memory_space<smem>>
    %1957 = vector.broadcast %1956 : f32 to vector<8x42xf32>
    %1958 = arith.mulf %1955, %1957 : vector<8x42xf32>
    %1959 = arith.addf %1953, %1958 : vector<8x42xf32>
    %c4_1485 = arith.constant 4 : index
    %c0_1486 = arith.constant 0 : index
    %c0_1487 = arith.constant 0 : index
    %1960 = vector.load %arg12[%c4_1485, %c0_1486, %c0_1487] : memref<16x8x42xf32, #tpu.memory_space<vmem>>, vector<1x8x42xf32>
    %1961 = vector.shape_cast %1960 : vector<1x8x42xf32> to vector<8x42xf32>
    %c14_1488 = arith.constant 14 : index
    %c4_1489 = arith.constant 4 : index
    %1962 = memref.load %arg9[%c14_1488, %c4_1489] : memref<16x16xf32, #tpu.memory_space<smem>>
    %1963 = vector.broadcast %1962 : f32 to vector<8x42xf32>
    %1964 = arith.mulf %1961, %1963 : vector<8x42xf32>
    %1965 = arith.addf %1959, %1964 : vector<8x42xf32>
    %c5_1490 = arith.constant 5 : index
    %c0_1491 = arith.constant 0 : index
    %c0_1492 = arith.constant 0 : index
    %1966 = vector.load %arg12[%c5_1490, %c0_1491, %c0_1492] : memref<16x8x42xf32, #tpu.memory_space<vmem>>, vector<1x8x42xf32>
    %1967 = vector.shape_cast %1966 : vector<1x8x42xf32> to vector<8x42xf32>
    %c14_1493 = arith.constant 14 : index
    %c5_1494 = arith.constant 5 : index
    %1968 = memref.load %arg9[%c14_1493, %c5_1494] : memref<16x16xf32, #tpu.memory_space<smem>>
    %1969 = vector.broadcast %1968 : f32 to vector<8x42xf32>
    %1970 = arith.mulf %1967, %1969 : vector<8x42xf32>
    %1971 = arith.addf %1965, %1970 : vector<8x42xf32>
    %c6_1495 = arith.constant 6 : index
    %c0_1496 = arith.constant 0 : index
    %c0_1497 = arith.constant 0 : index
    %1972 = vector.load %arg12[%c6_1495, %c0_1496, %c0_1497] : memref<16x8x42xf32, #tpu.memory_space<vmem>>, vector<1x8x42xf32>
    %1973 = vector.shape_cast %1972 : vector<1x8x42xf32> to vector<8x42xf32>
    %c14_1498 = arith.constant 14 : index
    %c6_1499 = arith.constant 6 : index
    %1974 = memref.load %arg9[%c14_1498, %c6_1499] : memref<16x16xf32, #tpu.memory_space<smem>>
    %1975 = vector.broadcast %1974 : f32 to vector<8x42xf32>
    %1976 = arith.mulf %1973, %1975 : vector<8x42xf32>
    %1977 = arith.addf %1971, %1976 : vector<8x42xf32>
    %c7_1500 = arith.constant 7 : index
    %c0_1501 = arith.constant 0 : index
    %c0_1502 = arith.constant 0 : index
    %1978 = vector.load %arg12[%c7_1500, %c0_1501, %c0_1502] : memref<16x8x42xf32, #tpu.memory_space<vmem>>, vector<1x8x42xf32>
    %1979 = vector.shape_cast %1978 : vector<1x8x42xf32> to vector<8x42xf32>
    %c14_1503 = arith.constant 14 : index
    %c7_1504 = arith.constant 7 : index
    %1980 = memref.load %arg9[%c14_1503, %c7_1504] : memref<16x16xf32, #tpu.memory_space<smem>>
    %1981 = vector.broadcast %1980 : f32 to vector<8x42xf32>
    %1982 = arith.mulf %1979, %1981 : vector<8x42xf32>
    %1983 = arith.addf %1977, %1982 : vector<8x42xf32>
    %c8_1505 = arith.constant 8 : index
    %c0_1506 = arith.constant 0 : index
    %c0_1507 = arith.constant 0 : index
    %1984 = vector.load %arg12[%c8_1505, %c0_1506, %c0_1507] : memref<16x8x42xf32, #tpu.memory_space<vmem>>, vector<1x8x42xf32>
    %1985 = vector.shape_cast %1984 : vector<1x8x42xf32> to vector<8x42xf32>
    %c14_1508 = arith.constant 14 : index
    %c8_1509 = arith.constant 8 : index
    %1986 = memref.load %arg9[%c14_1508, %c8_1509] : memref<16x16xf32, #tpu.memory_space<smem>>
    %1987 = vector.broadcast %1986 : f32 to vector<8x42xf32>
    %1988 = arith.mulf %1985, %1987 : vector<8x42xf32>
    %1989 = arith.addf %1983, %1988 : vector<8x42xf32>
    %c9_1510 = arith.constant 9 : index
    %c0_1511 = arith.constant 0 : index
    %c0_1512 = arith.constant 0 : index
    %1990 = vector.load %arg12[%c9_1510, %c0_1511, %c0_1512] : memref<16x8x42xf32, #tpu.memory_space<vmem>>, vector<1x8x42xf32>
    %1991 = vector.shape_cast %1990 : vector<1x8x42xf32> to vector<8x42xf32>
    %c14_1513 = arith.constant 14 : index
    %c9_1514 = arith.constant 9 : index
    %1992 = memref.load %arg9[%c14_1513, %c9_1514] : memref<16x16xf32, #tpu.memory_space<smem>>
    %1993 = vector.broadcast %1992 : f32 to vector<8x42xf32>
    %1994 = arith.mulf %1991, %1993 : vector<8x42xf32>
    %1995 = arith.addf %1989, %1994 : vector<8x42xf32>
    %c10_1515 = arith.constant 10 : index
    %c0_1516 = arith.constant 0 : index
    %c0_1517 = arith.constant 0 : index
    %1996 = vector.load %arg12[%c10_1515, %c0_1516, %c0_1517] : memref<16x8x42xf32, #tpu.memory_space<vmem>>, vector<1x8x42xf32>
    %1997 = vector.shape_cast %1996 : vector<1x8x42xf32> to vector<8x42xf32>
    %c14_1518 = arith.constant 14 : index
    %c10_1519 = arith.constant 10 : index
    %1998 = memref.load %arg9[%c14_1518, %c10_1519] : memref<16x16xf32, #tpu.memory_space<smem>>
    %1999 = vector.broadcast %1998 : f32 to vector<8x42xf32>
    %2000 = arith.mulf %1997, %1999 : vector<8x42xf32>
    %2001 = arith.addf %1995, %2000 : vector<8x42xf32>
    %c11_1520 = arith.constant 11 : index
    %c0_1521 = arith.constant 0 : index
    %c0_1522 = arith.constant 0 : index
    %2002 = vector.load %arg12[%c11_1520, %c0_1521, %c0_1522] : memref<16x8x42xf32, #tpu.memory_space<vmem>>, vector<1x8x42xf32>
    %2003 = vector.shape_cast %2002 : vector<1x8x42xf32> to vector<8x42xf32>
    %c14_1523 = arith.constant 14 : index
    %c11_1524 = arith.constant 11 : index
    %2004 = memref.load %arg9[%c14_1523, %c11_1524] : memref<16x16xf32, #tpu.memory_space<smem>>
    %2005 = vector.broadcast %2004 : f32 to vector<8x42xf32>
    %2006 = arith.mulf %2003, %2005 : vector<8x42xf32>
    %2007 = arith.addf %2001, %2006 : vector<8x42xf32>
    %c12_1525 = arith.constant 12 : index
    %c0_1526 = arith.constant 0 : index
    %c0_1527 = arith.constant 0 : index
    %2008 = vector.load %arg12[%c12_1525, %c0_1526, %c0_1527] : memref<16x8x42xf32, #tpu.memory_space<vmem>>, vector<1x8x42xf32>
    %2009 = vector.shape_cast %2008 : vector<1x8x42xf32> to vector<8x42xf32>
    %c14_1528 = arith.constant 14 : index
    %c12_1529 = arith.constant 12 : index
    %2010 = memref.load %arg9[%c14_1528, %c12_1529] : memref<16x16xf32, #tpu.memory_space<smem>>
    %2011 = vector.broadcast %2010 : f32 to vector<8x42xf32>
    %2012 = arith.mulf %2009, %2011 : vector<8x42xf32>
    %2013 = arith.addf %2007, %2012 : vector<8x42xf32>
    %c13_1530 = arith.constant 13 : index
    %c0_1531 = arith.constant 0 : index
    %c0_1532 = arith.constant 0 : index
    %2014 = vector.load %arg12[%c13_1530, %c0_1531, %c0_1532] : memref<16x8x42xf32, #tpu.memory_space<vmem>>, vector<1x8x42xf32>
    %2015 = vector.shape_cast %2014 : vector<1x8x42xf32> to vector<8x42xf32>
    %c14_1533 = arith.constant 14 : index
    %c13_1534 = arith.constant 13 : index
    %2016 = memref.load %arg9[%c14_1533, %c13_1534] : memref<16x16xf32, #tpu.memory_space<smem>>
    %2017 = vector.broadcast %2016 : f32 to vector<8x42xf32>
    %2018 = arith.mulf %2015, %2017 : vector<8x42xf32>
    %2019 = arith.addf %2013, %2018 : vector<8x42xf32>
    %c14_1535 = arith.constant 14 : index
    %c0_1536 = arith.constant 0 : index
    %c0_1537 = arith.constant 0 : index
    %2020 = vector.load %arg12[%c14_1535, %c0_1536, %c0_1537] : memref<16x8x42xf32, #tpu.memory_space<vmem>>, vector<1x8x42xf32>
    %2021 = vector.shape_cast %2020 : vector<1x8x42xf32> to vector<8x42xf32>
    %c14_1538 = arith.constant 14 : index
    %c14_1539 = arith.constant 14 : index
    %2022 = memref.load %arg9[%c14_1538, %c14_1539] : memref<16x16xf32, #tpu.memory_space<smem>>
    %2023 = vector.broadcast %2022 : f32 to vector<8x42xf32>
    %2024 = arith.mulf %2021, %2023 : vector<8x42xf32>
    %2025 = arith.addf %2019, %2024 : vector<8x42xf32>
    %c15_1540 = arith.constant 15 : index
    %c0_1541 = arith.constant 0 : index
    %c0_1542 = arith.constant 0 : index
    %2026 = vector.load %arg12[%c15_1540, %c0_1541, %c0_1542] : memref<16x8x42xf32, #tpu.memory_space<vmem>>, vector<1x8x42xf32>
    %2027 = vector.shape_cast %2026 : vector<1x8x42xf32> to vector<8x42xf32>
    %c14_1543 = arith.constant 14 : index
    %c15_1544 = arith.constant 15 : index
    %2028 = memref.load %arg9[%c14_1543, %c15_1544] : memref<16x16xf32, #tpu.memory_space<smem>>
    %2029 = vector.broadcast %2028 : f32 to vector<8x42xf32>
    %2030 = arith.mulf %2027, %2029 : vector<8x42xf32>
    %2031 = arith.addf %2025, %2030 : vector<8x42xf32>
    %c14_1545 = arith.constant 14 : index
    %2032 = memref.load %arg8[%c14_1545] : memref<16xf32, #tpu.memory_space<smem>>
    %2033 = vector.broadcast %2032 : f32 to vector<8x42xf32>
    %2034 = arith.addf %2031, %2033 : vector<8x42xf32>
    %cst_1546 = arith.constant 0.000000e+00 : f32
    %2035 = vector.broadcast %cst_1546 : f32 to vector<8x42xf32>
    %2036 = arith.cmpf ogt, %2034, %2035 : vector<8x42xf32>
    %cst_1547 = arith.constant 0.000000e+00 : f32
    %2037 = vector.broadcast %cst_1547 : f32 to vector<8x42xf32>
    %2038 = arith.minimumf %2034, %2037 : vector<8x42xf32>
    %2039 = math.exp %2038 : vector<8x42xf32>
    %cst_1548 = arith.constant 1.000000e+00 : f32
    %2040 = vector.broadcast %cst_1548 : f32 to vector<8x42xf32>
    %2041 = arith.subf %2039, %2040 : vector<8x42xf32>
    %2042 = arith.select %2036, %2034, %2041 : vector<8x42xi1>, vector<8x42xf32>
    %2043 = arith.truncf %2042 : vector<8x42xf32> to vector<8x42xbf16>
    %c14_1549 = arith.constant 14 : index
    %c0_1550 = arith.constant 0 : index
    %c0_1551 = arith.constant 0 : index
    %2044 = vector.load %arg5[%c14_1549, %c0_1550, %c0_1551] : memref<16x42x5xbf16, #tpu.memory_space<vmem>>, vector<1x42x5xbf16>
    %2045 = vector.shape_cast %2044 : vector<1x42x5xbf16> to vector<42x5xbf16>
    %cst_1552 = arith.constant dense<0.000000e+00> : vector<8x5xf32>
    %2046 = tpu.matmul %2043, %2045, %cst_1552 {dimension_numbers = #tpu.dot_dimension_numbers<[1], [0], [0], [1], [0, 0, 1, 1], [], []>} : vector<8x42xbf16>, vector<42x5xbf16>, vector<8x5xf32> -> vector<8x5xf32>
    %2047 = arith.addf %1936, %2046 : vector<8x5xf32>
    %c0_1553 = arith.constant 0 : index
    %c0_1554 = arith.constant 0 : index
    %c0_1555 = arith.constant 0 : index
    %2048 = vector.load %arg12[%c0_1553, %c0_1554, %c0_1555] : memref<16x8x42xf32, #tpu.memory_space<vmem>>, vector<1x8x42xf32>
    %2049 = vector.shape_cast %2048 : vector<1x8x42xf32> to vector<8x42xf32>
    %c15_1556 = arith.constant 15 : index
    %c0_1557 = arith.constant 0 : index
    %2050 = memref.load %arg9[%c15_1556, %c0_1557] : memref<16x16xf32, #tpu.memory_space<smem>>
    %2051 = vector.broadcast %2050 : f32 to vector<8x42xf32>
    %2052 = arith.mulf %2049, %2051 : vector<8x42xf32>
    %c1_1558 = arith.constant 1 : index
    %c0_1559 = arith.constant 0 : index
    %c0_1560 = arith.constant 0 : index
    %2053 = vector.load %arg12[%c1_1558, %c0_1559, %c0_1560] : memref<16x8x42xf32, #tpu.memory_space<vmem>>, vector<1x8x42xf32>
    %2054 = vector.shape_cast %2053 : vector<1x8x42xf32> to vector<8x42xf32>
    %c15_1561 = arith.constant 15 : index
    %c1_1562 = arith.constant 1 : index
    %2055 = memref.load %arg9[%c15_1561, %c1_1562] : memref<16x16xf32, #tpu.memory_space<smem>>
    %2056 = vector.broadcast %2055 : f32 to vector<8x42xf32>
    %2057 = arith.mulf %2054, %2056 : vector<8x42xf32>
    %2058 = arith.addf %2052, %2057 : vector<8x42xf32>
    %c2_1563 = arith.constant 2 : index
    %c0_1564 = arith.constant 0 : index
    %c0_1565 = arith.constant 0 : index
    %2059 = vector.load %arg12[%c2_1563, %c0_1564, %c0_1565] : memref<16x8x42xf32, #tpu.memory_space<vmem>>, vector<1x8x42xf32>
    %2060 = vector.shape_cast %2059 : vector<1x8x42xf32> to vector<8x42xf32>
    %c15_1566 = arith.constant 15 : index
    %c2_1567 = arith.constant 2 : index
    %2061 = memref.load %arg9[%c15_1566, %c2_1567] : memref<16x16xf32, #tpu.memory_space<smem>>
    %2062 = vector.broadcast %2061 : f32 to vector<8x42xf32>
    %2063 = arith.mulf %2060, %2062 : vector<8x42xf32>
    %2064 = arith.addf %2058, %2063 : vector<8x42xf32>
    %c3_1568 = arith.constant 3 : index
    %c0_1569 = arith.constant 0 : index
    %c0_1570 = arith.constant 0 : index
    %2065 = vector.load %arg12[%c3_1568, %c0_1569, %c0_1570] : memref<16x8x42xf32, #tpu.memory_space<vmem>>, vector<1x8x42xf32>
    %2066 = vector.shape_cast %2065 : vector<1x8x42xf32> to vector<8x42xf32>
    %c15_1571 = arith.constant 15 : index
    %c3_1572 = arith.constant 3 : index
    %2067 = memref.load %arg9[%c15_1571, %c3_1572] : memref<16x16xf32, #tpu.memory_space<smem>>
    %2068 = vector.broadcast %2067 : f32 to vector<8x42xf32>
    %2069 = arith.mulf %2066, %2068 : vector<8x42xf32>
    %2070 = arith.addf %2064, %2069 : vector<8x42xf32>
    %c4_1573 = arith.constant 4 : index
    %c0_1574 = arith.constant 0 : index
    %c0_1575 = arith.constant 0 : index
    %2071 = vector.load %arg12[%c4_1573, %c0_1574, %c0_1575] : memref<16x8x42xf32, #tpu.memory_space<vmem>>, vector<1x8x42xf32>
    %2072 = vector.shape_cast %2071 : vector<1x8x42xf32> to vector<8x42xf32>
    %c15_1576 = arith.constant 15 : index
    %c4_1577 = arith.constant 4 : index
    %2073 = memref.load %arg9[%c15_1576, %c4_1577] : memref<16x16xf32, #tpu.memory_space<smem>>
    %2074 = vector.broadcast %2073 : f32 to vector<8x42xf32>
    %2075 = arith.mulf %2072, %2074 : vector<8x42xf32>
    %2076 = arith.addf %2070, %2075 : vector<8x42xf32>
    %c5_1578 = arith.constant 5 : index
    %c0_1579 = arith.constant 0 : index
    %c0_1580 = arith.constant 0 : index
    %2077 = vector.load %arg12[%c5_1578, %c0_1579, %c0_1580] : memref<16x8x42xf32, #tpu.memory_space<vmem>>, vector<1x8x42xf32>
    %2078 = vector.shape_cast %2077 : vector<1x8x42xf32> to vector<8x42xf32>
    %c15_1581 = arith.constant 15 : index
    %c5_1582 = arith.constant 5 : index
    %2079 = memref.load %arg9[%c15_1581, %c5_1582] : memref<16x16xf32, #tpu.memory_space<smem>>
    %2080 = vector.broadcast %2079 : f32 to vector<8x42xf32>
    %2081 = arith.mulf %2078, %2080 : vector<8x42xf32>
    %2082 = arith.addf %2076, %2081 : vector<8x42xf32>
    %c6_1583 = arith.constant 6 : index
    %c0_1584 = arith.constant 0 : index
    %c0_1585 = arith.constant 0 : index
    %2083 = vector.load %arg12[%c6_1583, %c0_1584, %c0_1585] : memref<16x8x42xf32, #tpu.memory_space<vmem>>, vector<1x8x42xf32>
    %2084 = vector.shape_cast %2083 : vector<1x8x42xf32> to vector<8x42xf32>
    %c15_1586 = arith.constant 15 : index
    %c6_1587 = arith.constant 6 : index
    %2085 = memref.load %arg9[%c15_1586, %c6_1587] : memref<16x16xf32, #tpu.memory_space<smem>>
    %2086 = vector.broadcast %2085 : f32 to vector<8x42xf32>
    %2087 = arith.mulf %2084, %2086 : vector<8x42xf32>
    %2088 = arith.addf %2082, %2087 : vector<8x42xf32>
    %c7_1588 = arith.constant 7 : index
    %c0_1589 = arith.constant 0 : index
    %c0_1590 = arith.constant 0 : index
    %2089 = vector.load %arg12[%c7_1588, %c0_1589, %c0_1590] : memref<16x8x42xf32, #tpu.memory_space<vmem>>, vector<1x8x42xf32>
    %2090 = vector.shape_cast %2089 : vector<1x8x42xf32> to vector<8x42xf32>
    %c15_1591 = arith.constant 15 : index
    %c7_1592 = arith.constant 7 : index
    %2091 = memref.load %arg9[%c15_1591, %c7_1592] : memref<16x16xf32, #tpu.memory_space<smem>>
    %2092 = vector.broadcast %2091 : f32 to vector<8x42xf32>
    %2093 = arith.mulf %2090, %2092 : vector<8x42xf32>
    %2094 = arith.addf %2088, %2093 : vector<8x42xf32>
    %c8_1593 = arith.constant 8 : index
    %c0_1594 = arith.constant 0 : index
    %c0_1595 = arith.constant 0 : index
    %2095 = vector.load %arg12[%c8_1593, %c0_1594, %c0_1595] : memref<16x8x42xf32, #tpu.memory_space<vmem>>, vector<1x8x42xf32>
    %2096 = vector.shape_cast %2095 : vector<1x8x42xf32> to vector<8x42xf32>
    %c15_1596 = arith.constant 15 : index
    %c8_1597 = arith.constant 8 : index
    %2097 = memref.load %arg9[%c15_1596, %c8_1597] : memref<16x16xf32, #tpu.memory_space<smem>>
    %2098 = vector.broadcast %2097 : f32 to vector<8x42xf32>
    %2099 = arith.mulf %2096, %2098 : vector<8x42xf32>
    %2100 = arith.addf %2094, %2099 : vector<8x42xf32>
    %c9_1598 = arith.constant 9 : index
    %c0_1599 = arith.constant 0 : index
    %c0_1600 = arith.constant 0 : index
    %2101 = vector.load %arg12[%c9_1598, %c0_1599, %c0_1600] : memref<16x8x42xf32, #tpu.memory_space<vmem>>, vector<1x8x42xf32>
    %2102 = vector.shape_cast %2101 : vector<1x8x42xf32> to vector<8x42xf32>
    %c15_1601 = arith.constant 15 : index
    %c9_1602 = arith.constant 9 : index
    %2103 = memref.load %arg9[%c15_1601, %c9_1602] : memref<16x16xf32, #tpu.memory_space<smem>>
    %2104 = vector.broadcast %2103 : f32 to vector<8x42xf32>
    %2105 = arith.mulf %2102, %2104 : vector<8x42xf32>
    %2106 = arith.addf %2100, %2105 : vector<8x42xf32>
    %c10_1603 = arith.constant 10 : index
    %c0_1604 = arith.constant 0 : index
    %c0_1605 = arith.constant 0 : index
    %2107 = vector.load %arg12[%c10_1603, %c0_1604, %c0_1605] : memref<16x8x42xf32, #tpu.memory_space<vmem>>, vector<1x8x42xf32>
    %2108 = vector.shape_cast %2107 : vector<1x8x42xf32> to vector<8x42xf32>
    %c15_1606 = arith.constant 15 : index
    %c10_1607 = arith.constant 10 : index
    %2109 = memref.load %arg9[%c15_1606, %c10_1607] : memref<16x16xf32, #tpu.memory_space<smem>>
    %2110 = vector.broadcast %2109 : f32 to vector<8x42xf32>
    %2111 = arith.mulf %2108, %2110 : vector<8x42xf32>
    %2112 = arith.addf %2106, %2111 : vector<8x42xf32>
    %c11_1608 = arith.constant 11 : index
    %c0_1609 = arith.constant 0 : index
    %c0_1610 = arith.constant 0 : index
    %2113 = vector.load %arg12[%c11_1608, %c0_1609, %c0_1610] : memref<16x8x42xf32, #tpu.memory_space<vmem>>, vector<1x8x42xf32>
    %2114 = vector.shape_cast %2113 : vector<1x8x42xf32> to vector<8x42xf32>
    %c15_1611 = arith.constant 15 : index
    %c11_1612 = arith.constant 11 : index
    %2115 = memref.load %arg9[%c15_1611, %c11_1612] : memref<16x16xf32, #tpu.memory_space<smem>>
    %2116 = vector.broadcast %2115 : f32 to vector<8x42xf32>
    %2117 = arith.mulf %2114, %2116 : vector<8x42xf32>
    %2118 = arith.addf %2112, %2117 : vector<8x42xf32>
    %c12_1613 = arith.constant 12 : index
    %c0_1614 = arith.constant 0 : index
    %c0_1615 = arith.constant 0 : index
    %2119 = vector.load %arg12[%c12_1613, %c0_1614, %c0_1615] : memref<16x8x42xf32, #tpu.memory_space<vmem>>, vector<1x8x42xf32>
    %2120 = vector.shape_cast %2119 : vector<1x8x42xf32> to vector<8x42xf32>
    %c15_1616 = arith.constant 15 : index
    %c12_1617 = arith.constant 12 : index
    %2121 = memref.load %arg9[%c15_1616, %c12_1617] : memref<16x16xf32, #tpu.memory_space<smem>>
    %2122 = vector.broadcast %2121 : f32 to vector<8x42xf32>
    %2123 = arith.mulf %2120, %2122 : vector<8x42xf32>
    %2124 = arith.addf %2118, %2123 : vector<8x42xf32>
    %c13_1618 = arith.constant 13 : index
    %c0_1619 = arith.constant 0 : index
    %c0_1620 = arith.constant 0 : index
    %2125 = vector.load %arg12[%c13_1618, %c0_1619, %c0_1620] : memref<16x8x42xf32, #tpu.memory_space<vmem>>, vector<1x8x42xf32>
    %2126 = vector.shape_cast %2125 : vector<1x8x42xf32> to vector<8x42xf32>
    %c15_1621 = arith.constant 15 : index
    %c13_1622 = arith.constant 13 : index
    %2127 = memref.load %arg9[%c15_1621, %c13_1622] : memref<16x16xf32, #tpu.memory_space<smem>>
    %2128 = vector.broadcast %2127 : f32 to vector<8x42xf32>
    %2129 = arith.mulf %2126, %2128 : vector<8x42xf32>
    %2130 = arith.addf %2124, %2129 : vector<8x42xf32>
    %c14_1623 = arith.constant 14 : index
    %c0_1624 = arith.constant 0 : index
    %c0_1625 = arith.constant 0 : index
    %2131 = vector.load %arg12[%c14_1623, %c0_1624, %c0_1625] : memref<16x8x42xf32, #tpu.memory_space<vmem>>, vector<1x8x42xf32>
    %2132 = vector.shape_cast %2131 : vector<1x8x42xf32> to vector<8x42xf32>
    %c15_1626 = arith.constant 15 : index
    %c14_1627 = arith.constant 14 : index
    %2133 = memref.load %arg9[%c15_1626, %c14_1627] : memref<16x16xf32, #tpu.memory_space<smem>>
    %2134 = vector.broadcast %2133 : f32 to vector<8x42xf32>
    %2135 = arith.mulf %2132, %2134 : vector<8x42xf32>
    %2136 = arith.addf %2130, %2135 : vector<8x42xf32>
    %c15_1628 = arith.constant 15 : index
    %c0_1629 = arith.constant 0 : index
    %c0_1630 = arith.constant 0 : index
    %2137 = vector.load %arg12[%c15_1628, %c0_1629, %c0_1630] : memref<16x8x42xf32, #tpu.memory_space<vmem>>, vector<1x8x42xf32>
    %2138 = vector.shape_cast %2137 : vector<1x8x42xf32> to vector<8x42xf32>
    %c15_1631 = arith.constant 15 : index
    %c15_1632 = arith.constant 15 : index
    %2139 = memref.load %arg9[%c15_1631, %c15_1632] : memref<16x16xf32, #tpu.memory_space<smem>>
    %2140 = vector.broadcast %2139 : f32 to vector<8x42xf32>
    %2141 = arith.mulf %2138, %2140 : vector<8x42xf32>
    %2142 = arith.addf %2136, %2141 : vector<8x42xf32>
    %c15_1633 = arith.constant 15 : index
    %2143 = memref.load %arg8[%c15_1633] : memref<16xf32, #tpu.memory_space<smem>>
    %2144 = vector.broadcast %2143 : f32 to vector<8x42xf32>
    %2145 = arith.addf %2142, %2144 : vector<8x42xf32>
    %cst_1634 = arith.constant 0.000000e+00 : f32
    %2146 = vector.broadcast %cst_1634 : f32 to vector<8x42xf32>
    %2147 = arith.cmpf ogt, %2145, %2146 : vector<8x42xf32>
    %cst_1635 = arith.constant 0.000000e+00 : f32
    %2148 = vector.broadcast %cst_1635 : f32 to vector<8x42xf32>
    %2149 = arith.minimumf %2145, %2148 : vector<8x42xf32>
    %2150 = math.exp %2149 : vector<8x42xf32>
    %cst_1636 = arith.constant 1.000000e+00 : f32
    %2151 = vector.broadcast %cst_1636 : f32 to vector<8x42xf32>
    %2152 = arith.subf %2150, %2151 : vector<8x42xf32>
    %2153 = arith.select %2147, %2145, %2152 : vector<8x42xi1>, vector<8x42xf32>
    %2154 = arith.truncf %2153 : vector<8x42xf32> to vector<8x42xbf16>
    %c15_1637 = arith.constant 15 : index
    %c0_1638 = arith.constant 0 : index
    %c0_1639 = arith.constant 0 : index
    %2155 = vector.load %arg5[%c15_1637, %c0_1638, %c0_1639] : memref<16x42x5xbf16, #tpu.memory_space<vmem>>, vector<1x42x5xbf16>
    %2156 = vector.shape_cast %2155 : vector<1x42x5xbf16> to vector<42x5xbf16>
    %cst_1640 = arith.constant dense<0.000000e+00> : vector<8x5xf32>
    %2157 = tpu.matmul %2154, %2156, %cst_1640 {dimension_numbers = #tpu.dot_dimension_numbers<[1], [0], [0], [1], [0, 0, 1, 1], [], []>} : vector<8x42xbf16>, vector<42x5xbf16>, vector<8x5xf32> -> vector<8x5xf32>
    %2158 = arith.addf %2047, %2157 : vector<8x5xf32>
    %c0_1641 = arith.constant 0 : index
    %c0_1642 = arith.constant 0 : index
    %2159 = vector.load %arg10[%c0_1641, %c0_1642] : memref<8x5xf32, #tpu.memory_space<vmem>>, vector<8x5xf32>
    tpu.vector_store %arg10[%c0_1641, %c0_1642], %2158 {strides = array<i32>} : memref<8x5xf32, #tpu.memory_space<vmem>>, vector<8x5xf32>,
    return
  }
  func.func @transform_0(%arg0: i32) -> (i32, i32) {
    %c0_i32 = arith.constant 0 : i32
    %c0_i32_0 = arith.constant 0 : i32
    return %arg0, %c0_i32 : i32, i32
  }
  func.func @transform_1(%arg0: i32) -> (i32, i32) {
    %c0_i32 = arith.constant 0 : i32
    %c0_i32_0 = arith.constant 0 : i32
    %c0_i32_1 = arith.constant 0 : i32
    return %c0_i32, %c0_i32_0 : i32, i32
  }
  func.func @transform_2(%arg0: i32) -> (i32, i32, i32) {
    %c0_i32 = arith.constant 0 : i32
    %c0_i32_0 = arith.constant 0 : i32
    %c0_i32_1 = arith.constant 0 : i32
    %c0_i32_2 = arith.constant 0 : i32
    return %c0_i32, %c0_i32_0, %c0_i32_1 : i32, i32, i32
  }
  func.func @transform_3(%arg0: i32) -> (i32, i32, i32) {
    %c0_i32 = arith.constant 0 : i32
    %c0_i32_0 = arith.constant 0 : i32
    %c0_i32_1 = arith.constant 0 : i32
    %c0_i32_2 = arith.constant 0 : i32
    return %c0_i32, %c0_i32_0, %c0_i32_1 : i32, i32, i32
  }
  func.func @transform_4(%arg0: i32) -> (i32, i32, i32) {
    %c0_i32 = arith.constant 0 : i32
    %c0_i32_0 = arith.constant 0 : i32
    %c0_i32_1 = arith.constant 0 : i32
    %c0_i32_2 = arith.constant 0 : i32
    return %c0_i32, %c0_i32_0, %c0_i32_1 : i32, i32, i32
  }
  func.func @transform_5(%arg0: i32) -> (i32, i32) {
    %c0_i32 = arith.constant 0 : i32
    %c0_i32_0 = arith.constant 0 : i32
    %c0_i32_1 = arith.constant 0 : i32
    return %c0_i32, %c0_i32_0 : i32, i32
  }
  func.func @transform_6(%arg0: i32) -> i32 {
    %c0_i32 = arith.constant 0 : i32
    %c0_i32_0 = arith.constant 0 : i32
    return %c0_i32 : i32
  }
  func.func @transform_7(%arg0: i32) -> i32 {
    %c0_i32 = arith.constant 0 : i32
    %c0_i32_0 = arith.constant 0 : i32
    return %c0_i32 : i32
  }
  func.func @transform_8(%arg0: i32) -> (i32, i32) {
    %c0_i32 = arith.constant 0 : i32
    %c0_i32_0 = arith.constant 0 : i32
    %c0_i32_1 = arith.constant 0 : i32
    return %c0_i32, %c0_i32_0 : i32, i32
  }
  func.func @transform_9(%arg0: i32) -> (i32, i32) {
    %c0_i32 = arith.constant 0 : i32
    %c0_i32_0 = arith.constant 0 : i32
    return %arg0, %c0_i32 : i32, i32
  }
}

</mosaic_0001>

<bundles_post_ra>
// kernel: forward.1
= control target key start
LH: loop header
LB: loop body
LE: loop exit
PB: predicated region body
PF: predicated region fallthrough
CT: control target
= control target key end

     0   :  { %14 = vsyncpa [#allocation5], 0  ;;  %s12079_s0 = inlined_call_operand.vmem [shape: bf16[168,169], index: 0, kind: input, shape index: {}]   ;;  %s12080_s1 = inlined_call_operand.vmem [shape: bf16[128,168], index: 1, kind: input, shape index: {}]   ;;  %s12081_s2 = inlined_call_operand.vmem [shape: bf16[8,169,170], index: 2, kind: input, shape index: {}]   ;;  %s12082_s3 = inlined_call_operand.vmem [shape: bf16[16,170,42], index: 3, kind: input, shape index: {}]   ;;  %s12083_s4 = inlined_call_operand.vmem [shape: bf16[16,42,5], index: 4, kind: input, shape index: {}]   ;;  %s12084_s5 = inlined_call_operand.vmem [shape: f32[1,5], index: 5, kind: input, shape index: {}]   ;;  %s12085_s6 = inlined_call_operand.vmem [shape: f32[16], index: 6, kind: input, shape index: {}]   ;;  %s12086_s7 = inlined_call_operand.vmem [shape: f32[16], index: 7, kind: input, shape index: {}]   ;;  %s12087_s8 = inlined_call_operand.vmem [shape: f32[16,16], index: 8, kind: input, shape index: {}]   ;;  %s12088_s9 = inlined_call_operand.vmem [shape: f32[8,5], index: 9, kind: output, shape index: {}]  }
   0x1   :  { %15 = vsyncpa [#allocation7], 0  ;;  %s44_s11 = sshll.u32 %s12086_s7, 4  ;;  %s34_s14 = sshll.u32 %s12085_s6, 4  ;;  %s45_s11 = int_to_ptr.vmem [resolvable:$true] %s44_s11  ;;  %s35_s14 = int_to_ptr.vmem [resolvable:$true] %s34_s14 }
   0x2   :  { %s9115_s15 = scalar_lea.vmem %s45_s11, 16  ;;  %p9120_p1 = scmp.lt.s32.totalorder %s45_s11, %s45_s11 }
   0x3   :  { %p9116_p0 = scmp.ne.s32.totalorder %s45_s11, %s9115_s15  ;;  %p9121_p2 = scmp.lt.s32.totalorder %s9115_s15, %s9115_s15 }
   0x5   :  { %p9122_p3 = por %p9121_p2, %p9120_p1 }
   0x7   :  { %p9123_p4 = pnand %p9122_p3, %p9116_p0 }
   0x9   :  { %9126 = shalt.err (!%p9123_p4)
}
   0xa   :  { %s9155_s16 = smov [#allocation6]   ;;  %s9127_s17 = scalar_lea.vmem %s35_s14, 16 }
   0xb   :  { %47 = dma.vmem_to_smem %s45_s11, 16, %s9155_s16, [#allocation7]  }
   0xc   :  { %p9128_p5 = scmp.ne.s32.totalorder %s35_s14, %s9127_s17  ;;  %p9132_p6 = scmp.lt.s32.totalorder %s35_s14, %s35_s14 }
   0xd   :  { %p9133_p7 = scmp.lt.s32.totalorder %s9127_s17, %s9127_s17 }
   0xf   :  { %p9134_p8 = por %p9133_p7, %p9132_p6 }
  0x11   :  { %p9135_p9 = pnand %p9134_p8, %p9128_p5 }
  0x13   :  { %9138 = shalt.err (!%p9135_p9)
}
  0x14   :  { %s9156_s7 = smov [#allocation4]   ;;  %s53_s19 = sshll.u32 %s12087_s8, 4  ;;  %s54_s19 = int_to_ptr.vmem [resolvable:$true] %s53_s19 }
  0x15   :  { %37 = dma.vmem_to_smem %s35_s14, 16, %s9156_s7, [#allocation5]  }
  0x16   :  { %s9139_s20 = scalar_lea.vmem %s54_s19, 256  ;;  %p9144_p11 = scmp.lt.s32.totalorder %s54_s19, %s54_s19 }
  0x17   :  { %p9140_p10 = scmp.ne.s32.totalorder %s54_s19, %s9139_s20  ;;  %p9145_p12 = scmp.lt.s32.totalorder %s9139_s20, %s9139_s20 }
  0x19   :  { %p9146_p13 = por %p9145_p12, %p9144_p11 }
  0x1b   :  { %p9147_p0 = pnand %p9146_p13, %p9140_p10 }
  0x1d   :  { %9150 = shalt.err (!%p9147_p0)
}
  0x1e   :  { %s9157_s21 = smov [#allocation8]   ;;  %s9158_s22 = smov 128  }
  0x1f   :  { %s9159_s23 = smov 8  }
  0x20   :  { %59 = dma.vmem_to_smem %s54_s19, 256, %s9157_s21, [#allocation7], %s9158_s22, %s9158_s22, %s9159_s23  }
  0x21   :  { %9151 = dma.done.wait [#allocation5], 16  }
  0x22   :  { %9152 = vsyncadd [#allocation5], 4294967280 }
  0x23   :  { %9153 = dma.done.wait [#allocation7], 272  }
  0x24   :  { %9154 = vsyncadd [#allocation7], 4294967024 }
  0x25   :  { %69 = sfence }
  0x26   :  { %v8461_v0 = vld [vmem:[%s12079_s0 + $0x4] ss:$8 sps:$4 sm:$0xff]   ;;  %v8463_v1 = vld [vmem:[%s12079_s0] ss:$8 sps:$4 sm:$0xff]   ;;  %v8464_v2 = vld [vmem:[%s12079_s0 + $0x14] ss:$8 sps:$4 sm:$0xff]  }
  0x27   :  { %317 = vmatprep.subr.bf16.mxu1 %v8461_v0  ;;  %v8466_v3 = vld [vmem:[%s12079_s0 + $0x10] ss:$8 sps:$4 sm:$0xff]   ;;  %v8467_v4 = vld [vmem:[%s12079_s0 + $0x24] ss:$8 sps:$4 sm:$0xff]   ;;  %v8469_v5 = vld [vmem:[%s12079_s0 + $0x20] ss:$8 sps:$4 sm:$0xff]  }
  0x28   :  { %318 = vmatpush1.bf16.msra.mxu1 %v8463_v1  ;;  %v8470_v6 = vld [vmem:[%s12079_s0 + $0x34] ss:$8 sps:$4 sm:$0xff]   ;;  %v8472_v7 = vld [vmem:[%s12079_s0 + $0x30] ss:$8 sps:$4 sm:$0xff]   ;;  %v8473_v8 = vld [vmem:[%s12079_s0 + $0x44] ss:$8 sps:$4 sm:$0xff]  }
  0x29   :  { %319 = vmatprep.subr.bf16.mxu1 %v8464_v2  ;;  %vm285_vm0 = vcmask 326656   ;;  %v8495_v9 = vld [vmem:[%s12080_s1 + $0x4] ss:$8 sps:$4 sm:$0xff]   ;;  %v8475_v10 = vld [vmem:[%s12079_s0 + $0x40] ss:$8 sps:$4 sm:$0xff]   ;;  %vm310_vm1 = vcmask 1043456  }
  0x2a   :  { %v8476_v11 = vld [vmem:[%s12079_s0 + $0x54] ss:$8 sps:$4 sm:$0xff]   ;;  %6814 = vmatprep.mubr.msk.bf16.mxu1 %vm285_vm0, %v8495_v9  ;;  %v8478_v12 = vld [vmem:[%s12079_s0 + $0x50] ss:$8 sps:$4 sm:$0xff]   ;;  %v8479_v13 = vld [vmem:[%s12079_s0 + $0x64] ss:$8 sps:$4 sm:$0xff]  }
  0x2b   :  { %v8481_v14 = vld [vmem:[%s12079_s0 + $0x60] ss:$8 sps:$4 sm:$0xff]   ;;  %v8482_v15 = vld [vmem:[%s12079_s0 + $0x74] ss:$8 sps:$4 sm:$0xff]   ;;  %v8484_v16 = vld [vmem:[%s12079_s0 + $0x70] ss:$8 sps:$4 sm:$0xff]  }
  0x2c   :  { %320 = vmatpush1.bf16.msra.mxu1 %v8466_v3  ;;  %v8485_v17 = vld [vmem:[%s12079_s0 + $0x84] ss:$8 sps:$4 sm:$0xff]   ;;  %v8487_v19 = vld [vmem:[%s12079_s0 + $0x80] ss:$8 sps:$4 sm:$0xff]   ;;  %v8488_v20 = vld [vmem:[%s12079_s0 + $0x94] ss:$8 sps:$4 sm:$0xff]  }
  0x2d   :  { %321 = vmatprep.subr.bf16.mxu1 %v8467_v4  ;;  %v91_v18 = vld [vmem:[%s12079_s0 + $0xa0] sm:$0xff]  ;;  %v8490_v22 = vld [vmem:[%s12079_s0 + $0x90] ss:$8 sps:$4 sm:$0xff]   ;;  %v8499_v28 = vld [vmem:[%s12080_s1 + $0x14] ss:$8 sps:$4 sm:$0xff]   ;;  %vm602_vm2 = vcmask 1044480  }
  0x2e   :  { %v6811_v21 = vcombine.low %v91_v18, %v91_v18  ;;  %v6812_v23 = vcombine.high %v91_v18, %v91_v18  ;;  %v8498_v25 = vld [vmem:[%s12081_s2 + $0x4] ss:$8 sps:$4 sm:$0xff]   ;;  %v8493_v26 = vld [vmem:[%s12080_s1] ss:$8 sps:$4 sm:$0xff]   ;;  %v8504_v29 = vld [vmem:[%s12081_s2 + $0x14] ss:$8 sps:$4 sm:$0xff]  }
  0x2f   :  { %v8496_v27 = vld [vmem:[%s12081_s2] ss:$8 sps:$4 sm:$0xff]   ;;  %v8502_v30 = vld [vmem:[%s12081_s2 + $0x10] ss:$8 sps:$4 sm:$0xff]   ;;  %v8507_v31 = vld [vmem:[%s12081_s2 + $0x24] ss:$8 sps:$4 sm:$0xff]  }
  0x30   :  { %322 = vmatpush1.bf16.msra.mxu1 %v8469_v5  ;;  %v312_v24 = vsel %vm310_vm1, %v6811_v21, 0  ;;  %v8501_v32 = vld [vmem:[%s12080_s1 + $0x10] ss:$8 sps:$4 sm:$0xff]   ;;  %v8505_v33 = vld [vmem:[%s12081_s2 + $0x20] ss:$8 sps:$4 sm:$0xff]   ;;  %v9160_v56 = vmov 65535  }
  0x31   :  { %323 = vmatprep.subr.bf16.mxu1 %v8470_v6  ;;  %v8508_v34 = vld [vmem:[%s12080_s1 + $0x24] ss:$8 sps:$4 sm:$0xff]   ;;  %v8513_v35 = vld [vmem:[%s12081_s2 + $0x34] ss:$8 sps:$4 sm:$0xff]   ;;  %v8511_v36 = vld [vmem:[%s12081_s2 + $0x30] ss:$8 sps:$4 sm:$0xff]  }
  0x32   :  { %v8519_v37 = vld [vmem:[%s12081_s2 + $0x44] ss:$8 sps:$4 sm:$0xff]   ;;  %v8510_v38 = vld [vmem:[%s12080_s1 + $0x20] ss:$8 sps:$4 sm:$0xff]   ;;  %v8514_v39 = vld [vmem:[%s12080_s1 + $0x34] ss:$8 sps:$4 sm:$0xff]  }
  0x33   :  { %v8517_v40 = vld [vmem:[%s12081_s2 + $0x40] ss:$8 sps:$4 sm:$0xff]   ;;  %v8525_v41 = vld [vmem:[%s12081_s2 + $0x54] ss:$8 sps:$4 sm:$0xff]   ;;  %v8523_v42 = vld [vmem:[%s12081_s2 + $0x50] ss:$8 sps:$4 sm:$0xff]  }
  0x34   :  { %324 = vmatpush1.bf16.msra.mxu1 %v8472_v7  ;;  %v8528_v43 = vld [vmem:[%s12081_s2 + $0x64] ss:$8 sps:$4 sm:$0xff]   ;;  %v8516_v44 = vld [vmem:[%s12080_s1 + $0x30] ss:$8 sps:$4 sm:$0xff]   ;;  %v8526_v46 = vld [vmem:[%s12081_s2 + $0x60] ss:$8 sps:$4 sm:$0xff]  }
  0x35   :  { %325 = vmatprep.subr.bf16.mxu1 %v8473_v8  ;;  %v8520_v45 = vld [vmem:[%s12080_s1 + $0x44] ss:$8 sps:$4 sm:$0xff]   ;;  %v8534_v47 = vld [vmem:[%s12081_s2 + $0x74] ss:$8 sps:$4 sm:$0xff]   ;;  %v8532_v48 = vld [vmem:[%s12081_s2 + $0x70] ss:$8 sps:$4 sm:$0xff]  }
  0x36   :  { %v8540_v49 = vld [vmem:[%s12081_s2 + $0x84] ss:$8 sps:$4 sm:$0xff]   ;;  %v8522_v50 = vld [vmem:[%s12080_s1 + $0x40] ss:$8 sps:$4 sm:$0xff]   ;;  %v8529_v51 = vld [vmem:[%s12080_s1 + $0x54] ss:$8 sps:$4 sm:$0xff]  }
  0x37   :  { %v8538_v52 = vld [vmem:[%s12081_s2 + $0x80] ss:$8 sps:$4 sm:$0xff]   ;;  %v8531_v53 = vld [vmem:[%s12080_s1 + $0x50] ss:$8 sps:$4 sm:$0xff]   ;;  %v8535_v54 = vld [vmem:[%s12080_s1 + $0x64] ss:$8 sps:$4 sm:$0xff]  }
  0x38   :  { %326 = vmatpush1.bf16.msra.mxu1 %v8475_v10  ;;  %v8537_v55 = vld [vmem:[%s12080_s1 + $0x60] ss:$8 sps:$4 sm:$0xff]   ;;  %v603_v57 = vsel %vm310_vm1, 4294967295, %v9160_v56  ;;  %v8541_v59 = vld [vmem:[%s12080_s1 + $0x74] ss:$8 sps:$4 sm:$0xff]   ;;  %v9161_v3 = vmov 0  }
  0x39   :  { %327 = vmatprep.subr.bf16.mxu1 %v8476_v11  ;;  %v9393_v58 = vsel %vm602_vm2, %v603_v57, 0  ;;  %v8546_v60 = vld [vmem:[%s12080_s1 + $0x70] ss:$8 sps:$4 sm:$0xff]   ;;  %v8545_v62 = vld [vmem:[%s12081_s2 + $0x94] ss:$8 sps:$4 sm:$0xff]   ;;  %919 = vmatprep.subr.bf16.mxu0 %v9161_v3  ;;  %v8553_v5 = vld [vmem:[%s12082_s3 + $0x60] sm:$0xff]  }
  0x3a   :  { %v8543_v61 = vld [vmem:[%s12081_s2 + $0x90] ss:$8 sps:$4 sm:$0xff]   ;;  %v8547_v63 = vld [vmem:[%s12081_s2 + $0xa0] ss:$8 sps:$4 sm:$0x1f]   ;;  %vm431_vm3 = vcmask 334848  }
  0x3b   :  { %v8549_v0 = vld [vmem:[%s12081_s2 + $0xa4] ss:$8 sps:$4 sm:$0x1f]   ;;  %v606_v2 = vand.u32 %v8547_v63, %v9393_v58  ;;  %v8551_v4 = vld [vmem:[%s12082_s3 + $0x58] sm:$0xff]   ;;  %v8557_v7 = vld [vmem:[%s12082_s3 + $0x70] sm:$0xff]   ;;  %s654_s15 = sld [smem:[#allocation4]] }
  0x3c   :  { %328 = vmatpush1.bf16.msra.mxu1 %v8478_v12  ;;  %v609_v1 = vand.u32 %v8549_v0, %v9393_v58  ;;  %920 = vmatpush1.bf16.msra.mxu0 %v8551_v4  ;;  %v8555_v6 = vld [vmem:[%s12082_s3 + $0x68] sm:$0xff]   ;;  %v8565_v56 = vld [vmem:[%s12082_s3 + $0x90] sm:$0xff]   ;;  %v8566_v57 = vld [vmem:[%s12082_s3 + $0x40] sm:$0xff]   ;;  %s6859_s16 = sld [smem:[#allocation4 + $0x1]]  ;;  %vm759_vm7 = vcmask 343040   ;;  %s9697_s24 = sld [smem:[#allocation8 + $0x400]] }
  0x3d   :  { %329 = vmatprep.subr.bf16.mxu1 %v8479_v13  ;;  %921 = vmatprep.subr.bf16.mxu0 %v9161_v3  ;;  %v8571_v0 = vld [vmem:[%s12082_s3 + $0xa8] sm:$0x1f]   ;;  %s9699_s25 = sld [smem:[#allocation8 + $0x401]]  ;;  %s9701_s0 = sld [smem:[#allocation8 + $0x480]] }
  0x3e   :  { %s9703_s8 = sld [smem:[#allocation8 + $0x481]]  ;;  %s9706_s26 = sld [smem:[#allocation8 + $0x500]] }
  0x3f   :  { %s9708_s27 = sld [smem:[#allocation8 + $0x501]]  ;;  %s9710_s28 = sld [smem:[#allocation8 + $0x580]] }
  0x40   :  { %330 = vmatpush1.bf16.msra.mxu1 %v8481_v14  ;;  %922 = vmatpush1.bf16.msra.mxu0 %v8553_v5  ;;  %s9712_s29 = sld [smem:[#allocation8 + $0x581]]  ;;  %s9715_s30 = sld [smem:[#allocation8 + $0x600]] }
  0x41   :  { %331 = vmatprep.subr.bf16.mxu1 %v8482_v15  ;;  %923 = vmatprep.subr.bf16.mxu0 %v9161_v3  ;;  %v655_v4 = vstv %s654_s15  ;;  %s9717_s10 = sld [smem:[#allocation8 + $0x601]]  ;;  %s9719_s11 = sld [smem:[#allocation8 + $0x680]] }
  0x42   :  { %s9721_s12 = sld [smem:[#allocation8 + $0x681]]  ;;  %s9723_s13 = sld [smem:[#allocation8 + $0x700]] }
  0x43   :  { %s9725_s14 = sld [smem:[#allocation8 + $0x780]]  ;;  %s9727_s15 = sld [smem:[#allocation8 + $0x701]] }
  0x44   :  { %332 = vmatpush1.bf16.msra.mxu1 %v8484_v16  ;;  %924 = vmatpush1.bf16.msra.mxu0 %v8555_v6  ;;  %v808_v6 = vstv %s6859_s16  ;;  %s9729_s16 = sld [smem:[#allocation8 + $0x781]]  ;;  %s6941_s17 = sld [smem:[#allocation4 + $0x2]] }
  0x45   :  { %333 = vmatprep.subr.bf16.mxu1 %v8485_v17  ;;  %925 = vmatprep.subr.bf16.mxu0 %v9161_v3  ;;  %s6978_s7 = sld [smem:[#allocation4 + $0x3]]  ;;  %s7060_s6 = sld [smem:[#allocation4 + $0x4]] }
  0x46   :  { %s7097_s18 = sld [smem:[#allocation4 + $0x5]]  ;;  %s7179_s1 = sld [smem:[#allocation4 + $0x6]] }
  0x47   :  { %s7216_s19 = sld [smem:[#allocation4 + $0x7]]  ;;  %s7298_s20 = sld [smem:[#allocation4 + $0x8]] }
  0x48   :  { %334 = vmatpush1.bf16.msra.mxu1 %v8487_v19  ;;  %926 = vmatpush1.bf16.msra.mxu0 %v8557_v7  ;;  %s7335_s21 = sld [smem:[#allocation4 + $0x9]]  ;;  %s7417_s22 = sld [smem:[#allocation4 + $0xa]] }
  0x49   :  { %335 = vmatprep.subr.bf16.mxu1 %v8488_v20  ;;  %927 = vmatprep.subr.bf16.mxu0 %v9161_v3  ;;  %v8550_v20 = vld [vmem:[%s12082_s3] sm:$0xff]   ;;  %s7454_s23 = sld [smem:[#allocation4 + $0xb]] }
  0x4c   :  { %336 = vmatpush1.bf16.msra.mxu1 %v8490_v22  ;;  %v8552_v22 = vld [vmem:[%s12082_s3 + $0x8] sm:$0xff]  }
  0x4d   :  { %6813 = vmatprep.subr.msk.bf16.mxu1 %vm310_vm1, %v6812_v23 }
  0x50   :  { %338 = vmatpush1.bf16.msra.mxu1 %v312_v24 }
  0x51   :  { %611 = vmatprep.subr.bf16.mxu1 %v8498_v25 }
  0x53   :  { %350 = vmatmul.mubr.bf16.vlgmr.msra.gmra.mrb[0].mxu1 %v8493_v26  ;;  %v8554_v26 = vld [vmem:[%s12082_s3 + $0x10] sm:$0xff]  }
  0x54   :  { %612 = vmatpush1.bf16.msra.mxu1 %v8496_v27  ;;  %6815 = vmatprep.mubr.msk.bf16.mxu1 %vm285_vm0, %v8499_v28  ;;  %v8556_v28 = vld [vmem:[%s12082_s3 + $0x18] sm:$0xff]  }
  0x55   :  { %613 = vmatprep.subr.bf16.mxu1 %v8504_v29 }
  0x58   :  { %614 = vmatpush1.bf16.msra.mxu1 %v8502_v30 }
  0x59   :  { %615 = vmatprep.subr.bf16.mxu1 %v8507_v31 }
  0x5b   :  { %360 = vmatmul.mubr.bf16.gmra.mrb[4].mxu1 %v8501_v32  ;;  %v8558_v32 = vld [vmem:[%s12082_s3 + $0x20] sm:$0xff]  }
  0x5c   :  { %6816 = vmatprep.mubr.msk.bf16.mxu1 %vm285_vm0, %v8508_v34  ;;  %616 = vmatpush1.bf16.msra.mxu1 %v8505_v33 }
  0x5d   :  { %617 = vmatprep.subr.bf16.mxu1 %v8513_v35 }
  0x60   :  { %618 = vmatpush1.bf16.msra.mxu1 %v8511_v36 }
  0x61   :  { %619 = vmatprep.subr.bf16.mxu1 %v8519_v37 }
  0x63   :  { %370 = vmatmul.mubr.bf16.gmra.mrb[8].mxu1 %v8510_v38 }
  0x64   :  { %6817 = vmatprep.mubr.msk.bf16.mxu1 %vm285_vm0, %v8514_v39  ;;  %620 = vmatpush1.bf16.msra.mxu1 %v8517_v40 }
  0x65   :  { %621 = vmatprep.subr.bf16.mxu1 %v8525_v41 }
  0x68   :  { %622 = vmatpush1.bf16.msra.mxu1 %v8523_v42 }
  0x69   :  { %623 = vmatprep.subr.bf16.mxu1 %v8528_v43 }
  0x6b   :  { %380 = vmatmul.mubr.bf16.gmra.mrb[12].mxu1 %v8516_v44 }
  0x6c   :  { %6818 = vmatprep.mubr.msk.bf16.mxu1 %vm285_vm0, %v8520_v45  ;;  %624 = vmatpush1.bf16.msra.mxu1 %v8526_v46 }
  0x6d   :  { %625 = vmatprep.subr.bf16.mxu1 %v8534_v47 }
  0x70   :  { %626 = vmatpush1.bf16.msra.mxu1 %v8532_v48 }
  0x71   :  { %627 = vmatprep.subr.bf16.mxu1 %v8540_v49 }
  0x73   :  { %390 = vmatmul.mubr.bf16.gmra.mrb[16].mxu1 %v8522_v50  ;;  %v8559_v50 = vld [vmem:[%s12082_s3 + $0x78] sm:$0xff]  }
  0x74   :  { %6819 = vmatprep.mubr.msk.bf16.mxu1 %vm285_vm0, %v8529_v51  ;;  %628 = vmatpush1.bf16.msra.mxu1 %v8538_v52  ;;  %v8560_v51 = vld [vmem:[%s12082_s3 + $0x28] sm:$0xff]   ;;  %v8561_v52 = vld [vmem:[%s12082_s3 + $0x80] sm:$0xff]  }
  0x75   :  { %629 = vmatprep.subr.bf16.mxu1 %v8545_v62  ;;  %928 = vmatpush1.bf16.msra.mxu0 %v8559_v50  ;;  %v8570_v62 = vld [vmem:[%s12082_s3 + $0x50] sm:$0x1f]   ;;  %v8581_v50 = vld [vmem:[%s12081_s2 + $0xe0] ss:$8 sps:$4 sm:$0xff]  }
  0x76   :  { %929 = vmatprep.subr.bf16.mxu0 %v9161_v3  ;;  %v764_v63 = vsel %vm602_vm2, %v8570_v62, 0  ;;  %v8601_v62 = vld [vmem:[%s12081_s2 + $0x144] ss:$8 sps:$4 sm:$0xff]  }
  0x78   :  { %630 = vmatpush1.bf16.msra.mxu1 %v8543_v61  ;;  %v8569_v61 = vld [vmem:[%s12082_s3 + $0xa0] sm:$0xff]  }
  0x79   :  { %631 = vmatprep.subr.bf16.mxu1 %v609_v1  ;;  %930 = vmatpush1.bf16.msra.mxu0 %v8561_v52  ;;  %v8574_v1 = vld [vmem:[%s12081_s2 + $0xb4] ss:$8 sps:$4 sm:$0xff]   ;;  %v8584_v52 = vld [vmem:[%s12081_s2 + $0xf0] ss:$8 sps:$4 sm:$0xff]  }
  0x7a   :  { %931 = vmatprep.subr.bf16.mxu0 %v9161_v3 }
  0x7b   :  { %400 = vmatmul.mubr.bf16.gmra.mrb[20].mxu1 %v8531_v53  ;;  %v8562_v53 = vld [vmem:[%s12082_s3 + $0x30] sm:$0xff]  }
  0x7c   :  { %6820 = vmatprep.mubr.msk.bf16.mxu1 %vm285_vm0, %v8535_v54  ;;  %632 = vmatpush1.bf16.msra.mxu1 %v606_v2  ;;  %v8563_v54 = vld [vmem:[%s12082_s3 + $0x88] sm:$0xff]   ;;  %v917_v2 = vsel %vm602_vm2, %v8571_v0, 0 }
  0x7d   :  { %766 = vmatprep.subr.bf16.mxu1 %v9161_v3  ;;  %932 = vmatpush1.bf16.msra.mxu0 %v8563_v54  ;;  %v8587_v54 = vld [vmem:[%s12081_s2 + $0x100] ss:$8 sps:$4 sm:$0xff]  }
  0x7e   :  { %933 = vmatprep.subr.bf16.mxu0 %v9161_v3  ;;  %v8599_v0 = vld [vmem:[%s12081_s2 + $0x140] ss:$8 sps:$4 sm:$0xff]  }
  0x81   :  { %934 = vmatpush1.bf16.msra.mxu0 %v8565_v56  ;;  %v8590_v56 = vld [vmem:[%s12081_s2 + $0x110] ss:$8 sps:$4 sm:$0xff]  }
  0x82   :  { %935 = vmatprep.subr.bf16.mxu0 %v9161_v3 }
  0x83   :  { %410 = vmatmul.mubr.bf16.gmra.mrb[24].mxu1 %v8537_v55  ;;  %v8564_v55 = vld [vmem:[%s12082_s3 + $0x38] sm:$0xff]  }
  0x84   :  { %6821 = vmatprep.mubr.msk.bf16.mxu1 %vm285_vm0, %v8541_v59  ;;  %v8567_v59 = vld [vmem:[%s12082_s3 + $0x98] sm:$0xff]  }
  0x85   :  { %936 = vmatpush1.bf16.msra.mxu0 %v8567_v59  ;;  %v8593_v59 = vld [vmem:[%s12081_s2 + $0x120] ss:$8 sps:$4 sm:$0xff]  }
  0x86   :  { %937 = vmatprep.subr.bf16.mxu0 %v9161_v3 }
  0x89   :  { %938 = vmatpush1.bf16.msra.mxu0 %v8569_v61  ;;  %v8596_v61 = vld [vmem:[%s12081_s2 + $0x130] ss:$8 sps:$4 sm:$0xff]  }
  0x8a   :  { %939 = vmatprep.subr.bf16.mxu0 %v9161_v3 }
  0x8b   :  { %420 = vmatmul.mubr.bf16.gmra.mrb[28].mxu1 %v8546_v60  ;;  %v8568_v60 = vld [vmem:[%s12082_s3 + $0x48] sm:$0xff]  }
  0x8d   :  { %940 = vmatpush1.bf16.msra.mxu0 %v917_v2 }
  0x8e   :  { %1262 = vmatprep.subr.bf16.mxu0 %v9161_v3 }
 0x126   :  { %v351_v8 = vpop.f32.mrb[0].mxu1 }
 0x127   :  { %v353_v9 = vpop.f32.mrb[1].mxu1 }
 0x128   :  { %432 = vst.msk [vmem:[#allocation2 + $0x8] sm:$0xff] %vm431_vm3, %v353_v9  ;;  %v355_v10 = vpop.f32.mrb[2].mxu1 }
 0x129   :  { %v357_v11 = vpop.f32.mrb[3].mxu1  ;;  %v467_v12 = vpack.c.bf16 %v355_v10, %v351_v8 }
 0x12a   :  { %434 = vst.msk [vmem:[#allocation2 + $0x18] sm:$0xff] %vm431_vm3, %v357_v11 }
 0x12e   :  { %v9436_v13 = vpop.f32.mrb[4].mxu1 }
 0x12f   :  { %v363_v14 = vpop.f32.mrb[5].mxu1  ;;  %v464_v16 = vld [vmem:[#allocation2 + $0x8] sm:$0xff] }
 0x130   :  { %436 = vst.msk [vmem:[#allocation2 + $0x28] sm:$0xff] %vm431_vm3, %v363_v14  ;;  %v9439_v15 = vpop.f32.mrb[6].mxu1 }
 0x131   :  { %v466_v17 = vld [vmem:[#allocation2 + $0x18] sm:$0xff]  ;;  %v367_v18 = vpop.f32.mrb[7].mxu1  ;;  %v965_v41 = vpack.c.bf16 %v9439_v15, %v9436_v13  ;;  %v8609_v13 = vld [vmem:[%s12082_s3 + $0xc0] sm:$0xff]  }
 0x132   :  { %v468_v19 = vpack.c.bf16 %v466_v17, %v464_v16  ;;  %438 = vst.msk [vmem:[#allocation2 + $0x38] sm:$0xff] %vm431_vm3, %v367_v18  ;;  %v8610_v15 = vld [vmem:[%s12082_s3 + $0x118] sm:$0xff]  }
 0x134   :  { %6844 = vmatprep.mubr.msk.bf16.mxu1 %vm431_vm3, %v468_v19 }
 0x135   :  { %644 = vmatmul.mubr.bf16.vlgmr.msra.gmra.mrb[32].mxu1 %v467_v12 }
 0x136   :  { %v371_v21 = vpop.f32.mrb[8].mxu1  ;;  %767 = vmatpush1.bf16.msra.mxu1 %v8550_v20 }
 0x137   :  { %439 = vst [vmem:[#allocation2 + $0x40] sm:$0xff] %v371_v21  ;;  %v373_v23 = vpop.f32.mrb[9].mxu1  ;;  %768 = vmatprep.subr.bf16.mxu1 %v9161_v3 }
 0x138   :  { %440 = vst.msk [vmem:[#allocation2 + $0x48] sm:$0xff] %vm431_vm3, %v373_v23  ;;  %v375_v24 = vpop.f32.mrb[10].mxu1 }
 0x139   :  { %441 = vst [vmem:[#allocation2 + $0x50] sm:$0xff] %v375_v24  ;;  %v377_v25 = vpop.f32.mrb[11].mxu1 }
 0x13a   :  { %442 = vst.msk [vmem:[#allocation2 + $0x58] sm:$0xff] %vm431_vm3, %v377_v25  ;;  %769 = vmatpush1.bf16.msra.mxu1 %v8552_v22 }
 0x13b   :  { %770 = vmatprep.subr.bf16.mxu1 %v9161_v3 }
 0x13e   :  { %v381_v27 = vpop.f32.mrb[12].mxu1  ;;  %771 = vmatpush1.bf16.msra.mxu1 %v8554_v26 }
 0x13f   :  { %443 = vst [vmem:[#allocation2 + $0x60] sm:$0xff] %v381_v27  ;;  %v383_v29 = vpop.f32.mrb[13].mxu1  ;;  %772 = vmatprep.subr.bf16.mxu1 %v9161_v3 }
 0x140   :  { %444 = vst.msk [vmem:[#allocation2 + $0x68] sm:$0xff] %vm431_vm3, %v383_v29  ;;  %v385_v30 = vpop.f32.mrb[14].mxu1 }
 0x141   :  { %445 = vst [vmem:[#allocation2 + $0x70] sm:$0xff] %v385_v30  ;;  %v387_v31 = vpop.f32.mrb[15].mxu1 }
 0x142   :  { %446 = vst.msk [vmem:[#allocation2 + $0x78] sm:$0xff] %vm431_vm3, %v387_v31  ;;  %773 = vmatpush1.bf16.msra.mxu1 %v8556_v28 }
 0x143   :  { %774 = vmatprep.subr.bf16.mxu1 %v9161_v3 }
 0x146   :  { %v391_v33 = vpop.f32.mrb[16].mxu1  ;;  %775 = vmatpush1.bf16.msra.mxu1 %v8558_v32 }
 0x147   :  { %447 = vst [vmem:[#allocation2 + $0x80] sm:$0xff] %v391_v33  ;;  %v393_v34 = vpop.f32.mrb[17].mxu1  ;;  %776 = vmatprep.subr.bf16.mxu1 %v9161_v3 }
 0x148   :  { %448 = vst.msk [vmem:[#allocation2 + $0x88] sm:$0xff] %vm431_vm3, %v393_v34  ;;  %v395_v35 = vpop.f32.mrb[18].mxu1 }
 0x149   :  { %449 = vst [vmem:[#allocation2 + $0x90] sm:$0xff] %v395_v35  ;;  %v397_v36 = vpop.f32.mrb[19].mxu1  ;;  %v8572_v35 = vld [vmem:[%s12081_s2 + $0xb0] ss:$8 sps:$4 sm:$0xff]  }
 0x14a   :  { %450 = vst.msk [vmem:[#allocation2 + $0x98] sm:$0xff] %vm431_vm3, %v397_v36  ;;  %777 = vmatpush1.bf16.msra.mxu1 %v8560_v51  ;;  %v962_v36 = vld [vmem:[#allocation2 + $0x28] sm:$0xff]  ;;  %v8586_v51 = vld [vmem:[%s12081_s2 + $0xf4] ss:$8 sps:$4 sm:$0xff]  }
 0x14b   :  { %778 = vmatprep.subr.bf16.mxu1 %v9161_v3 }
 0x14e   :  { %v401_v37 = vpop.f32.mrb[20].mxu1  ;;  %779 = vmatpush1.bf16.msra.mxu1 %v8562_v53  ;;  %v8589_v53 = vld [vmem:[%s12081_s2 + $0x104] ss:$8 sps:$4 sm:$0xff]  }
 0x14f   :  { %451 = vst [vmem:[#allocation2 + $0xa0] sm:$0xff] %v401_v37  ;;  %v403_v38 = vpop.f32.mrb[21].mxu1  ;;  %780 = vmatprep.subr.bf16.mxu1 %v9161_v3  ;;  %v964_v37 = vld [vmem:[#allocation2 + $0x38] sm:$0xff] }
 0x150   :  { %452 = vst.msk [vmem:[#allocation2 + $0xa8] sm:$0xff] %vm431_vm3, %v403_v38  ;;  %v405_v39 = vpop.f32.mrb[22].mxu1 }
 0x151   :  { %453 = vst [vmem:[#allocation2 + $0xb0] sm:$0xff] %v405_v39  ;;  %v407_v40 = vpop.f32.mrb[23].mxu1 }
 0x152   :  { %454 = vst.msk [vmem:[#allocation2 + $0xb8] sm:$0xff] %vm431_vm3, %v407_v40  ;;  %781 = vmatpush1.bf16.msra.mxu1 %v8564_v55  ;;  %v8592_v55 = vld [vmem:[%s12081_s2 + $0x114] ss:$8 sps:$4 sm:$0xff]  }
 0x153   :  { %782 = vmatprep.subr.bf16.mxu1 %v9161_v3 }
 0x156   :  { %v411_v42 = vpop.f32.mrb[24].mxu1  ;;  %783 = vmatpush1.bf16.msra.mxu1 %v8566_v57  ;;  %v8595_v57 = vld [vmem:[%s12081_s2 + $0x124] ss:$8 sps:$4 sm:$0xff]  }
 0x157   :  { %455 = vst [vmem:[#allocation2 + $0xc0] sm:$0xff] %v411_v42  ;;  %v413_v43 = vpop.f32.mrb[25].mxu1  ;;  %784 = vmatprep.subr.bf16.mxu1 %v9161_v3 }
 0x158   :  { %456 = vst.msk [vmem:[#allocation2 + $0xc8] sm:$0xff] %vm431_vm3, %v413_v43  ;;  %v415_v44 = vpop.f32.mrb[26].mxu1  ;;  %v8577_v43 = vld [vmem:[%s12081_s2 + $0xc4] ss:$8 sps:$4 sm:$0xff]  }
 0x159   :  { %457 = vst [vmem:[#allocation2 + $0xd0] sm:$0xff] %v415_v44  ;;  %v417_v45 = vpop.f32.mrb[27].mxu1  ;;  %v966_v44 = vpack.c.bf16 %v964_v37, %v962_v36  ;;  %v5616_v37 = vstv %s9697_s24  ;;  %s7536_s24 = sld [smem:[#allocation4 + $0xc]] }
 0x15a   :  { %458 = vst.msk [vmem:[#allocation2 + $0xd8] sm:$0xff] %vm431_vm3, %v417_v45  ;;  %785 = vmatpush1.bf16.msra.mxu1 %v8568_v60  ;;  %v8598_v60 = vld [vmem:[%s12081_s2 + $0x134] ss:$8 sps:$4 sm:$0xff]  }
 0x15b   :  { %786 = vmatprep.subr.bf16.mxu1 %v9161_v3 }
 0x15e   :  { %v421_v46 = vpop.f32.mrb[28].mxu1  ;;  %787 = vmatpush1.bf16.msra.mxu1 %v764_v63  ;;  %v8604_v63 = vld [vmem:[%s12081_s2 + $0x154] ss:$8 sps:$4 sm:$0x1f]  }
 0x15f   :  { %459 = vst [vmem:[#allocation2 + $0xe0] sm:$0xff] %v421_v46  ;;  %v423_v47 = vpop.f32.mrb[29].mxu1  ;;  %1107 = vmatprep.subr.bf16.mxu1 %v8574_v1  ;;  %v8575_v46 = vld [vmem:[%s12081_s2 + $0xc0] ss:$8 sps:$4 sm:$0xff]   ;;  %v1105_v2 = vand.u32 %v8604_v63, %v9393_v58 }
 0x160   :  { %460 = vst.msk [vmem:[#allocation2 + $0xe8] sm:$0xff] %vm431_vm3, %v423_v47  ;;  %v425_v48 = vpop.f32.mrb[30].mxu1  ;;  %v8580_v47 = vld [vmem:[%s12081_s2 + $0xd4] ss:$8 sps:$4 sm:$0xff]  }
 0x161   :  { %461 = vst [vmem:[#allocation2 + $0xf0] sm:$0xff] %v425_v48  ;;  %v427_v49 = vpop.f32.mrb[31].mxu1  ;;  %v8578_v48 = vld [vmem:[%s12081_s2 + $0xd0] ss:$8 sps:$4 sm:$0xff]  }
 0x162   :  { %462 = vst.msk [vmem:[#allocation2 + $0xf8] sm:$0xff] %vm431_vm3, %v427_v49  ;;  %v8583_v49 = vld [vmem:[%s12081_s2 + $0xe4] ss:$8 sps:$4 sm:$0xff]   ;;  %v8602_v1 = vld [vmem:[%s12081_s2 + $0x150] ss:$8 sps:$4 sm:$0x1f]  }
 0x208   :  { %v645_v5 = vpop.f32.mrb[32].mxu1 }
 0x209   :  { %v656_v7 = vadd.f32 %v655_v4, %v645_v5  ;;  %v647_v8 = vpop.f32.mrb[33].mxu1  ;;  %v8605_v5 = vld [vmem:[%s12082_s3 + $0xb0] sm:$0xff]  }
 0x20a   :  { %v657_v9 = vadd.f32 %v655_v4, %v647_v8  ;;  %v649_v10 = vpop.f32.mrb[34].mxu1  ;;  %v1102_v4 = vand.u32 %v8602_v1, %v9393_v58  ;;  %v8608_v8 = vld [vmem:[%s12082_s3 + $0x110] sm:$0xff]  }
 0x20b   :  { %v660_v11 = vmin.f32 %v656_v7, 0.0  ;;  %v809_v12 = vadd.f32 %v808_v6, %v649_v10  ;;  %v651_v14 = vpop.f32.mrb[35].mxu1  ;;  %vm658_vm4 = vcmp.gt.f32.partialorder %v656_v7, 0.0  ;;  %v8613_v10 = vld [vmem:[%s12082_s3 + $0xd0] sm:$0xff]  }
 0x20c   :  { %v661_v16 = vmin.f32 %v657_v9, 0.0  ;;  %v810_v17 = vadd.f32 %v808_v6, %v651_v14  ;;  %vm659_vm5 = vcmp.gt.f32.partialorder %v657_v9, 0.0  ;;  %v8606_v6 = vld [vmem:[%s12082_s3 + $0x108] sm:$0xff]   ;;  %v8616_v14 = vld [vmem:[%s12082_s3 + $0x130] sm:$0xff]  }
 0x20d   :  { %v662_v18 = vmul.f32 1.442695, %v660_v11  ;;  %v813_v19 = vmin.f32 %v809_v12, 0.0  ;;  %vm811_vm6 = vcmp.gt.f32.partialorder %v809_v12, 0.0  ;;  %v8614_v11 = vld [vmem:[%s12082_s3 + $0x128] sm:$0xff]  }
 0x20e   :  { %v664_v20 = vmul.f32 1.442695, %v661_v16  ;;  %v814_v21 = vmin.f32 %v810_v17, 0.0  ;;  %vm812_vm8 = vcmp.gt.f32.partialorder %v810_v17, 0.0  ;;  %v8617_v16 = vld [vmem:[%s12082_s3 + $0xe0] sm:$0xff]  }
 0x20f   :  { %9005 = vpow2.f32 %v662_v18  ;;  %v815_v22 = vmul.f32 1.442695, %v813_v19  ;;  %v8619_v18 = vld [vmem:[%s12082_s3 + $0xe8] sm:$0xff]   ;;  %v8620_v19 = vld [vmem:[%s12082_s3 + $0x140] sm:$0xff]  }
 0x210   :  { %9007 = vpow2.f32 %v664_v20  ;;  %v817_v23 = vmul.f32 1.442695, %v814_v21  ;;  %v8621_v20 = vld [vmem:[%s12082_s3 + $0xf0] sm:$0xff]   ;;  %v8622_v21 = vld [vmem:[%s12082_s3 + $0x148] sm:$0xff]  }
 0x211   :  { %9009 = vpow2.f32 %v815_v22  ;;  %v8623_v22 = vld [vmem:[%s12082_s3 + $0xf8] sm:$0xff]  }
 0x212   :  { %9011 = vpow2.f32 %v817_v23  ;;  %v8624_v23 = vld [vmem:[%s12082_s3 + $0x150] sm:$0xff]  }
 0x219   :  { %v9006_v24 = vpop.eup %9005 }
 0x21a   :  { %v9008_v25 = vpop.eup %9007  ;;  %v6845_v26 = vadd.f32 -1.0, %v9006_v24  ;;  %v8625_v24 = vld [vmem:[%s12082_s3 + $0x100] sm:$0x1f]  }
 0x21b   :  { %v9010_v27 = vpop.eup %9009  ;;  %v6846_v28 = vadd.f32 -1.0, %v9008_v25  ;;  %v1260_v25 = vsel %vm602_vm2, %v8625_v24, 0 }
 0x21c   :  { %v9012_v29 = vpop.eup %9011  ;;  %v668_v30 = vsel %vm658_vm4, %v656_v7, %v6845_v26  ;;  %v6860_v31 = vadd.f32 -1.0, %v9010_v27  ;;  %v8607_v7 = vld [vmem:[%s12082_s3 + $0xb8] sm:$0xff]   ;;  %v8629_v27 = vld [vmem:[%s12081_s2 + $0x164] ss:$8 sps:$4 sm:$0xff]  }
 0x21d   :  { %v669_v32 = vsel %vm659_vm5, %v657_v9, %v6846_v28  ;;  %v6861_v33 = vadd.f32 -1.0, %v9012_v29  ;;  %v670_v39 = vpack.c.bf16 %v668_v30, %v668_v30  ;;  %v8612_v9 = vld [vmem:[%s12082_s3 + $0x120] sm:$0xff]   ;;  %v8626_v26 = vld [vmem:[%s12082_s3 + $0x158] sm:$0x1f]  }
 0x21e   :  { %v671_v34 = vpack.c.bf16 %v669_v32, %v669_v32  ;;  %v821_v38 = vsel %vm811_vm6, %v809_v12, %v6860_v31  ;;  %v8615_v12 = vld [vmem:[%s12082_s3 + $0xd8] sm:$0xff]   ;;  %v1414_v28 = vsel %vm602_vm2, %v8626_v26, 0 }
 0x21f   :  { %v822_v40 = vsel %vm812_vm8, %v810_v17, %v6861_v33  ;;  %v823_v45 = vpack.c.bf16 %v821_v38, %v821_v38  ;;  %v8618_v17 = vld [vmem:[%s12082_s3 + $0x138] sm:$0xff]   ;;  %v5619_v38 = vstv %s9699_s25  ;;  %s7573_s25 = sld [smem:[#allocation4 + $0xd]] }
 0x220   :  { %6858 = vmatprep.mubr.msk.bf16.mxu1 %vm759_vm7, %v671_v34  ;;  %v824_v42 = vpack.c.bf16 %v822_v40, %v822_v40  ;;  %v5763_v40 = vstv %s9703_s8  ;;  %s9927_s8 = sld [smem:[#allocation8 + $0x403]] }
 0x221   :  { %799 = vmatmul.mubr.bf16.vlgmr.msra.gmra.mrb[36].mxu1 %v670_v39  ;;  %v5760_v39 = vstv %s9701_s0  ;;  %s9925_s0 = sld [smem:[#allocation8 + $0x402]] }
 0x222   :  { %1108 = vmatpush1.bf16.msra.mxu1 %v8572_v35  ;;  %6895 = vmatprep.mubr.msk.bf16.mxu0 %vm759_vm7, %v824_v42 }
 0x223   :  { %6940 = vmatprep.mubr.msk.bf16.mxu1 %vm431_vm3, %v966_v44  ;;  %952 = vmatmul.mubr.bf16.vlgmr.msra.gmra.mrb[0].mxu0 %v823_v45  ;;  %v5904_v44 = vstv %s9706_s26  ;;  %v5907_v45 = vstv %s9708_s27  ;;  %s9930_s26 = sld [smem:[#allocation8 + $0x482]]  ;;  %s9932_s27 = sld [smem:[#allocation8 + $0x483]] }
 0x224   :  { %1109 = vmatprep.subr.bf16.mxu1 %v8577_v43  ;;  %1263 = vmatpush1.bf16.msra.mxu0 %v8605_v5 }
 0x225   :  { %1264 = vmatprep.subr.bf16.mxu0 %v9161_v3 }
 0x226   :  { %1110 = vmatpush1.bf16.msra.mxu1 %v8575_v46  ;;  %v6048_v46 = vstv %s9710_s28  ;;  %s9934_s28 = sld [smem:[#allocation8 + $0x502]] }
 0x227   :  { %1111 = vmatprep.subr.bf16.mxu1 %v8580_v47  ;;  %v6051_v47 = vstv %s9712_s29  ;;  %s9936_s29 = sld [smem:[#allocation8 + $0x503]] }
 0x228   :  { %1265 = vmatpush1.bf16.msra.mxu0 %v8607_v7 }
 0x229   :  { %1266 = vmatprep.subr.bf16.mxu0 %v9161_v3 }
 0x22a   :  { %1112 = vmatpush1.bf16.msra.mxu1 %v8578_v48  ;;  %v6192_v48 = vstv %s9715_s30  ;;  %s9938_s30 = sld [smem:[#allocation8 + $0x582]] }
 0x22b   :  { %1113 = vmatprep.subr.bf16.mxu1 %v8583_v49  ;;  %v6195_v49 = vstv %s9717_s10  ;;  %s9940_s10 = sld [smem:[#allocation8 + $0x583]] }
 0x22c   :  { %1267 = vmatpush1.bf16.msra.mxu0 %v8609_v13 }
 0x22d   :  { %1268 = vmatprep.subr.bf16.mxu0 %v9161_v3 }
 0x22e   :  { %1114 = vmatpush1.bf16.msra.mxu1 %v8581_v50  ;;  %v6336_v50 = vstv %s9719_s11  ;;  %s9942_s11 = sld [smem:[#allocation8 + $0x602]] }
 0x22f   :  { %1115 = vmatprep.subr.bf16.mxu1 %v8586_v51  ;;  %v6339_v51 = vstv %s9721_s12  ;;  %s9944_s12 = sld [smem:[#allocation8 + $0x603]] }
 0x232   :  { %1116 = vmatpush1.bf16.msra.mxu1 %v8584_v52  ;;  %v6480_v52 = vstv %s9723_s13  ;;  %s9946_s13 = sld [smem:[#allocation8 + $0x682]] }
 0x233   :  { %1117 = vmatprep.subr.bf16.mxu1 %v8589_v53  ;;  %v6483_v53 = vstv %s9727_s15  ;;  %s9950_s15 = sld [smem:[#allocation8 + $0x702]] }
 0x236   :  { %1118 = vmatpush1.bf16.msra.mxu1 %v8587_v54  ;;  %v6624_v54 = vstv %s9725_s14  ;;  %s9948_s14 = sld [smem:[#allocation8 + $0x683]] }
 0x237   :  { %1119 = vmatprep.subr.bf16.mxu1 %v8592_v55  ;;  %v6627_v55 = vstv %s9729_s16  ;;  %s9952_s16 = sld [smem:[#allocation8 + $0x782]] }
 0x23a   :  { %1120 = vmatpush1.bf16.msra.mxu1 %v8590_v56 }
 0x23b   :  { %1121 = vmatprep.subr.bf16.mxu1 %v8595_v57 }
 0x23e   :  { %1122 = vmatpush1.bf16.msra.mxu1 %v8593_v59 }
 0x23f   :  { %1123 = vmatprep.subr.bf16.mxu1 %v8598_v60 }
 0x242   :  { %1124 = vmatpush1.bf16.msra.mxu1 %v8596_v61 }
 0x243   :  { %1125 = vmatprep.subr.bf16.mxu1 %v8601_v62 }
 0x246   :  { %1126 = vmatpush1.bf16.msra.mxu1 %v8599_v0 }
 0x247   :  { %1127 = vmatprep.subr.bf16.mxu1 %v1105_v2 }
 0x24a   :  { %1128 = vmatpush1.bf16.msra.mxu1 %v1102_v4 }
 0x24b   :  { %1416 = vmatprep.subr.bf16.mxu1 %v9161_v3 }
 0x24d   :  { %1140 = vmatmul.mubr.bf16.vlgmr.msra.gmra.mrb[40].mxu1 %v965_v41  ;;  %v8611_v41 = vld [vmem:[%s12082_s3 + $0xc8] sm:$0xff]  }
 0x24e   :  { %1417 = vmatpush1.bf16.msra.mxu1 %v8606_v6  ;;  %1269 = vmatpush1.bf16.msra.mxu0 %v8611_v41 }
 0x24f   :  { %1418 = vmatprep.subr.bf16.mxu1 %v9161_v3  ;;  %1270 = vmatprep.subr.bf16.mxu0 %v9161_v3 }
 0x252   :  { %1419 = vmatpush1.bf16.msra.mxu1 %v8608_v8  ;;  %1271 = vmatpush1.bf16.msra.mxu0 %v8613_v10 }
 0x253   :  { %1420 = vmatprep.subr.bf16.mxu1 %v9161_v3  ;;  %1272 = vmatprep.subr.bf16.mxu0 %v9161_v3 }
 0x256   :  { %1421 = vmatpush1.bf16.msra.mxu1 %v8610_v15  ;;  %1273 = vmatpush1.bf16.msra.mxu0 %v8615_v12 }
 0x257   :  { %1422 = vmatprep.subr.bf16.mxu1 %v9161_v3  ;;  %1274 = vmatprep.subr.bf16.mxu0 %v9161_v3 }
 0x25a   :  { %1423 = vmatpush1.bf16.msra.mxu1 %v8612_v9  ;;  %1275 = vmatpush1.bf16.msra.mxu0 %v8617_v16 }
 0x25b   :  { %1424 = vmatprep.subr.bf16.mxu1 %v9161_v3  ;;  %1276 = vmatprep.subr.bf16.mxu0 %v9161_v3 }
 0x25e   :  { %1425 = vmatpush1.bf16.msra.mxu1 %v8614_v11  ;;  %1277 = vmatpush1.bf16.msra.mxu0 %v8619_v18 }
 0x25f   :  { %1426 = vmatprep.subr.bf16.mxu1 %v9161_v3  ;;  %1278 = vmatprep.subr.bf16.mxu0 %v9161_v3 }
 0x262   :  { %1427 = vmatpush1.bf16.msra.mxu1 %v8616_v14  ;;  %1279 = vmatpush1.bf16.msra.mxu0 %v8621_v20 }
 0x263   :  { %1428 = vmatprep.subr.bf16.mxu1 %v9161_v3  ;;  %1280 = vmatprep.subr.bf16.mxu0 %v9161_v3 }
 0x266   :  { %1429 = vmatpush1.bf16.msra.mxu1 %v8618_v17  ;;  %1281 = vmatpush1.bf16.msra.mxu0 %v8623_v22  ;;  %v1151_v17 = vstv %s6941_s17  ;;  %s9954_s17 = sld [smem:[#allocation8 + $0x703]] }
 0x267   :  { %1430 = vmatprep.subr.bf16.mxu1 %v9161_v3  ;;  %1282 = vmatprep.subr.bf16.mxu0 %v9161_v3 }
 0x26a   :  { %1431 = vmatpush1.bf16.msra.mxu1 %v8620_v19  ;;  %1283 = vmatpush1.bf16.msra.mxu0 %v1260_v25  ;;  %v1305_v19 = vstv %s6978_s7  ;;  %s9956_s7 = sld [smem:[#allocation8 + $0x783]] }
 0x26b   :  { %1432 = vmatprep.subr.bf16.mxu1 %v9161_v3  ;;  %1604 = vmatprep.subr.bf16.mxu0 %v8629_v27 }
 0x26e   :  { %1433 = vmatpush1.bf16.msra.mxu1 %v8622_v21 }
 0x26f   :  { %1434 = vmatprep.subr.bf16.mxu1 %v9161_v3 }
 0x272   :  { %1435 = vmatpush1.bf16.msra.mxu1 %v8624_v23 }
 0x273   :  { %1436 = vmatprep.subr.bf16.mxu1 %v9161_v3 }
 0x276   :  { %1437 = vmatpush1.bf16.msra.mxu1 %v1414_v28 }
 0x277   :  { %1759 = vmatprep.subr.bf16.mxu1 %v9161_v3 }
 0x2f4   :  { %v800_v29 = vpop.f32.mrb[36].mxu1 }
 0x2f5   :  { %806 = vst.msk [vmem:[#allocation3] sm:$0xff] %vm759_vm7, %v800_v29  ;;  %v802_v30 = vpop.f32.mrb[37].mxu1 }
 0x2f6   :  { %v803_v31 = vpop.f32.mrb[38].mxu1  ;;  %v953_v32 = vpop.f32.mrb[0].mxu0 }
 0x2f7   :  { %960 = vst.msk [vmem:[#allocation3 + $0x8] sm:$0xff] %vm759_vm7, %v953_v32  ;;  %v804_v33 = vpop.f32.mrb[39].mxu1  ;;  %v955_v34 = vpop.f32.mrb[1].mxu0 }
 0x2f8   :  { %v956_v35 = vpop.f32.mrb[2].mxu0 }
 0x2f9   :  { %v957_v36 = vpop.f32.mrb[3].mxu0 }
 0x2fc   :  { %v4448_v42 = vld [vmem:[#allocation3] sm:$0xff] }
 0x2fd   :  { %v5617_v56 = vmul.f32 %v5616_v37, %v4448_v42  ;;  %v5761_v59 = vmul.f32 %v5760_v39, %v4448_v42  ;;  %v5905_v61 = vmul.f32 %v5904_v44, %v4448_v42  ;;  %v6049_v63 = vmul.f32 %v6048_v46, %v4448_v42 }
 0x2fe   :  { %v4452_v43 = vld [vmem:[#allocation3 + $0x8] sm:$0xff]  ;;  %v6193_v4 = vmul.f32 %v6192_v48, %v4448_v42  ;;  %v6337_v8 = vmul.f32 %v6336_v50, %v4448_v42  ;;  %v6481_v41 = vmul.f32 %v6480_v52, %v4448_v42  ;;  %v6625_v11 = vmul.f32 %v6624_v54, %v4448_v42  ;;  %v1461_v50 = vld [vmem:[#allocation2 + $0x58] sm:$0xff] }
 0x2ff   :  { %v5620_v57 = vmul.f32 %v5619_v38, %v4452_v43  ;;  %v5764_v60 = vmul.f32 %v5763_v40, %v4452_v43  ;;  %v5908_v62 = vmul.f32 %v5907_v45, %v4452_v43  ;;  %v6052_v0 = vmul.f32 %v6051_v47, %v4452_v43  ;;  %v8627_v48 = vld [vmem:[%s12081_s2 + $0x160] ss:$8 sps:$4 sm:$0xff]   ;;  %v8632_v54 = vld [vmem:[%s12081_s2 + $0x174] ss:$8 sps:$4 sm:$0xff]  }
 0x300   :  { %v6196_v5 = vmul.f32 %v6195_v49, %v4452_v43  ;;  %v6340_v13 = vmul.f32 %v6339_v51, %v4452_v43  ;;  %v6484_v9 = vmul.f32 %v6483_v53, %v4452_v43  ;;  %v6628_v12 = vmul.f32 %v6627_v55, %v4452_v43  ;;  %v1459_v49 = vld [vmem:[#allocation2 + $0x48] sm:$0xff] }
 0x301   :  { %v9747_v1 = vadd.f32 %v5620_v57, %v5617_v56  ;;  %v9749_v2 = vadd.f32 %v5764_v60, %v5761_v59  ;;  %v9751_v6 = vadd.f32 %v5908_v62, %v5905_v61  ;;  %v9753_v7 = vadd.f32 %v6052_v0, %v6049_v63  ;;  %v8630_v57 = vld [vmem:[%s12081_s2 + $0x170] ss:$8 sps:$4 sm:$0xff]   ;;  %v8635_v59 = vld [vmem:[%s12081_s2 + $0x184] ss:$8 sps:$4 sm:$0xff]   ;;  %v8633_v60 = vld [vmem:[%s12081_s2 + $0x180] ss:$8 sps:$4 sm:$0xff]  }
 0x302   :  { %v9755_v15 = vadd.f32 %v6196_v5, %v6193_v4  ;;  %v9757_v10 = vadd.f32 %v6340_v13, %v6337_v8  ;;  %v9759_v14 = vadd.f32 %v6484_v9, %v6481_v41  ;;  %v9761_v16 = vadd.f32 %v6628_v12, %v6625_v11  ;;  %v8638_v61 = vld [vmem:[%s12081_s2 + $0x194] ss:$8 sps:$4 sm:$0xff]   ;;  %v8636_v62 = vld [vmem:[%s12081_s2 + $0x190] ss:$8 sps:$4 sm:$0xff]   ;;  %v8641_v63 = vld [vmem:[%s12081_s2 + $0x1a4] ss:$8 sps:$4 sm:$0xff]  }
 0x303   :  { %v1463_v56 = vpack.c.bf16 %v1461_v50, %v1459_v49  ;;  %v8639_v0 = vld [vmem:[%s12081_s2 + $0x1a0] ss:$8 sps:$4 sm:$0xff]   ;;  %v8644_v4 = vld [vmem:[%s12081_s2 + $0x1b4] ss:$8 sps:$4 sm:$0xff]   ;;  %v8642_v5 = vld [vmem:[%s12081_s2 + $0x1b0] ss:$8 sps:$4 sm:$0xff]  }
 0x304   :  { %v8647_v8 = vld [vmem:[%s12081_s2 + $0x1c4] ss:$8 sps:$4 sm:$0xff]   ;;  %v8645_v13 = vld [vmem:[%s12081_s2 + $0x1c0] ss:$8 sps:$4 sm:$0xff]   ;;  %v8650_v41 = vld [vmem:[%s12081_s2 + $0x1d4] ss:$8 sps:$4 sm:$0xff]  }
 0x305   :  { %v8648_v9 = vld [vmem:[%s12081_s2 + $0x1d0] ss:$8 sps:$4 sm:$0xff]   ;;  %v8653_v11 = vld [vmem:[%s12081_s2 + $0x1e4] ss:$8 sps:$4 sm:$0xff]   ;;  %v8651_v12 = vld [vmem:[%s12081_s2 + $0x1e0] ss:$8 sps:$4 sm:$0xff]  }
 0x306   :  { %v8681_v49 = vld [vmem:[%s12082_s3 + $0x208] sm:$0x1f]   ;;  %v8684_v50 = vld [vmem:[%s12081_s2 + $0x214] ss:$8 sps:$4 sm:$0xff]  }
 0x320   :  { %v1141_v18 = vpop.f32.mrb[40].mxu1 }
 0x321   :  { %v1152_v20 = vadd.f32 %v1151_v17, %v1141_v18  ;;  %v1143_v21 = vpop.f32.mrb[41].mxu1  ;;  %v8659_v18 = vld [vmem:[%s12081_s2 + $0x204] ss:$8 sps:$4 sm:$0x1f]  }
 0x322   :  { %v1153_v22 = vadd.f32 %v1151_v17, %v1143_v21  ;;  %v1145_v23 = vpop.f32.mrb[42].mxu1  ;;  %v8656_v17 = vld [vmem:[%s12081_s2 + $0x1f4] ss:$8 sps:$4 sm:$0xff]   ;;  %v1602_v21 = vand.u32 %v8659_v18, %v9393_v58  ;;  %v6347_v18 = vstv %s9948_s14  ;;  %s10179_s14 = sld [smem:[#allocation8 + $0x605]] }
 0x323   :  { %v1156_v24 = vmin.f32 %v1152_v20, 0.0  ;;  %v1306_v25 = vadd.f32 %v1305_v19, %v1145_v23  ;;  %v1147_v26 = vpop.f32.mrb[43].mxu1  ;;  %vm1154_vm9 = vcmp.gt.f32.partialorder %v1152_v20, 0.0  ;;  %v1458_v23 = vld [vmem:[#allocation2 + $0x40] sm:$0xff] }
 0x324   :  { %v1157_v27 = vmin.f32 %v1153_v22, 0.0  ;;  %v1307_v28 = vadd.f32 %v1305_v19, %v1147_v26  ;;  %vm1155_vm10 = vcmp.gt.f32.partialorder %v1153_v22, 0.0  ;;  %v8654_v19 = vld [vmem:[%s12081_s2 + $0x1f0] ss:$8 sps:$4 sm:$0xff]   ;;  %v8660_v26 = vld [vmem:[%s12082_s3 + $0x160] sm:$0xff]  }
 0x325   :  { %v1158_v29 = vmul.f32 1.442695, %v1156_v24  ;;  %v1310_v30 = vmin.f32 %v1306_v25, 0.0  ;;  %vm1308_vm11 = vcmp.gt.f32.partialorder %v1306_v25, 0.0  ;;  %v1460_v24 = vld [vmem:[#allocation2 + $0x50] sm:$0xff] }
 0x326   :  { %v1160_v31 = vmul.f32 1.442695, %v1157_v27  ;;  %v1311_v32 = vmin.f32 %v1307_v28, 0.0  ;;  %vm1309_vm12 = vcmp.gt.f32.partialorder %v1307_v28, 0.0  ;;  %v8661_v27 = vld [vmem:[%s12082_s3 + $0x1b8] sm:$0xff]  }
 0x327   :  { %9013 = vpow2.f32 %v1158_v29  ;;  %v1312_v33 = vmul.f32 1.442695, %v1310_v30  ;;  %v8663_v29 = vld [vmem:[%s12082_s3 + $0x1c0] sm:$0xff]   ;;  %v8664_v30 = vld [vmem:[%s12082_s3 + $0x170] sm:$0xff]  }
 0x328   :  { %9015 = vpow2.f32 %v1160_v31  ;;  %v1314_v34 = vmul.f32 1.442695, %v1311_v32  ;;  %v8665_v31 = vld [vmem:[%s12082_s3 + $0x1c8] sm:$0xff]   ;;  %v8666_v32 = vld [vmem:[%s12082_s3 + $0x178] sm:$0xff]  }
 0x329   :  { %9017 = vpow2.f32 %v1312_v33  ;;  %v8667_v33 = vld [vmem:[%s12082_s3 + $0x1d0] sm:$0xff]  }
 0x32a   :  { %9019 = vpow2.f32 %v1314_v34  ;;  %v8668_v34 = vld [vmem:[%s12082_s3 + $0x180] sm:$0xff]  }
 0x331   :  { %v9014_v35 = vpop.eup %9013 }
 0x332   :  { %v9016_v36 = vpop.eup %9015  ;;  %v6942_v37 = vadd.f32 -1.0, %v9014_v35  ;;  %v8669_v35 = vld [vmem:[%s12082_s3 + $0x1d8] sm:$0xff]  }
 0x333   :  { %v9018_v38 = vpop.eup %9017  ;;  %v6943_v39 = vadd.f32 -1.0, %v9016_v36  ;;  %v8670_v36 = vld [vmem:[%s12082_s3 + $0x188] sm:$0xff]  }
 0x334   :  { %v9020_v40 = vpop.eup %9019  ;;  %v1164_v42 = vsel %vm1154_vm9, %v1152_v20, %v6942_v37  ;;  %v6979_v43 = vadd.f32 -1.0, %v9018_v38  ;;  %v8657_v20 = vld [vmem:[%s12081_s2 + $0x200] ss:$8 sps:$4 sm:$0x1f]   ;;  %v8672_v38 = vld [vmem:[%s12082_s3 + $0x190] sm:$0xff]  }
 0x335   :  { %v1165_v44 = vsel %vm1155_vm10, %v1153_v22, %v6943_v39  ;;  %v6980_v45 = vadd.f32 -1.0, %v9020_v40  ;;  %v1166_v51 = vpack.c.bf16 %v1164_v42, %v1164_v42  ;;  %v1599_v22 = vand.u32 %v8657_v20, %v9393_v58  ;;  %v8671_v37 = vld [vmem:[%s12082_s3 + $0x1e0] sm:$0xff]   ;;  %v8673_v39 = vld [vmem:[%s12082_s3 + $0x1e8] sm:$0xff]   ;;  %v8674_v40 = vld [vmem:[%s12082_s3 + $0x198] sm:$0xff]  }
 0x336   :  { %v1167_v46 = vpack.c.bf16 %v1165_v44, %v1165_v44  ;;  %v1318_v47 = vsel %vm1308_vm11, %v1306_v25, %v6979_v43  ;;  %v1462_v25 = vpack.c.bf16 %v1460_v24, %v1458_v23  ;;  %v8675_v42 = vld [vmem:[%s12082_s3 + $0x1f0] sm:$0xff]   ;;  %v8676_v43 = vld [vmem:[%s12082_s3 + $0x1a0] sm:$0xff]   ;;  %v8677_v44 = vld [vmem:[%s12082_s3 + $0x1f8] sm:$0xff]  }
 0x337   :  { %v1319_v52 = vsel %vm1309_vm12, %v1307_v28, %v6980_v45  ;;  %v1320_v55 = vpack.c.bf16 %v1318_v47, %v1318_v47  ;;  %v8662_v28 = vld [vmem:[%s12082_s3 + $0x168] sm:$0xff]   ;;  %v8680_v47 = vld [vmem:[%s12082_s3 + $0x1b0] sm:$0x1f]  }
 0x338   :  { %v1321_v53 = vpack.c.bf16 %v1319_v52, %v1319_v52  ;;  %6977 = vmatprep.mubr.msk.bf16.mxu0 %vm759_vm7, %v1167_v46  ;;  %v8678_v45 = vld [vmem:[%s12082_s3 + $0x1a8] sm:$0xff]   ;;  %v8679_v46 = vld [vmem:[%s12082_s3 + $0x200] sm:$0xff]  }
 0x339   :  { %1295 = vmatmul.mubr.bf16.vlgmr.msra.gmra.mrb[4].mxu0 %v1166_v51  ;;  %v1911_v51 = vsel %vm602_vm2, %v8681_v49, 0 }
 0x33a   :  { %1605 = vmatpush1.bf16.msra.mxu0 %v8627_v48  ;;  %7014 = vmatprep.mubr.msk.bf16.mxu1 %vm759_vm7, %v1321_v53  ;;  %v1757_v48 = vsel %vm602_vm2, %v8680_v47, 0 }
 0x33b   :  { %7059 = vmatprep.mubr.msk.bf16.mxu0 %vm431_vm3, %v1463_v56  ;;  %1449 = vmatmul.mubr.bf16.vlgmr.msra.gmra.mrb[44].mxu1 %v1320_v55 }
 0x33c   :  { %1606 = vmatprep.subr.bf16.mxu0 %v8632_v54  ;;  %1760 = vmatpush1.bf16.msra.mxu1 %v8660_v26  ;;  %v6491_v26 = vstv %s9954_s17  ;;  %s10185_s17 = sld [smem:[#allocation8 + $0x704]] }
 0x33d   :  { %1761 = vmatprep.subr.bf16.mxu1 %v9161_v3 }
 0x33e   :  { %1607 = vmatpush1.bf16.msra.mxu0 %v8630_v57 }
 0x33f   :  { %1608 = vmatprep.subr.bf16.mxu0 %v8635_v59 }
 0x340   :  { %1762 = vmatpush1.bf16.msra.mxu1 %v8662_v28 }
 0x341   :  { %1763 = vmatprep.subr.bf16.mxu1 %v9161_v3 }
 0x342   :  { %1609 = vmatpush1.bf16.msra.mxu0 %v8633_v60 }
 0x343   :  { %1610 = vmatprep.subr.bf16.mxu0 %v8638_v61 }
 0x344   :  { %1764 = vmatpush1.bf16.msra.mxu1 %v8664_v30  ;;  %v6635_v30 = vstv %s9956_s7  ;;  %s10187_s7 = sld [smem:[#allocation8 + $0x784]] }
 0x345   :  { %1765 = vmatprep.subr.bf16.mxu1 %v9161_v3 }
 0x346   :  { %1611 = vmatpush1.bf16.msra.mxu0 %v8636_v62 }
 0x347   :  { %1612 = vmatprep.subr.bf16.mxu0 %v8641_v63  ;;  %v5623_v63 = vstv %s9925_s0  ;;  %s11262_s0 = sld [smem:[#allocation8 + $0x202]] }
 0x348   :  { %1766 = vmatpush1.bf16.msra.mxu1 %v8666_v32 }
 0x349   :  { %1767 = vmatprep.subr.bf16.mxu1 %v9161_v3 }
 0x34a   :  { %1613 = vmatpush1.bf16.msra.mxu0 %v8639_v0  ;;  %v5627_v0 = vstv %s9927_s8  ;;  %s11264_s8 = sld [smem:[#allocation8 + $0x3]] }
 0x34b   :  { %1614 = vmatprep.subr.bf16.mxu0 %v8644_v4  ;;  %v5767_v4 = vstv %s9930_s26  ;;  %s10160_s26 = sld [smem:[#allocation8 + $0x404]] }
 0x34c   :  { %1768 = vmatpush1.bf16.msra.mxu1 %v8668_v34 }
 0x34d   :  { %1769 = vmatprep.subr.bf16.mxu1 %v9161_v3 }
 0x34e   :  { %1615 = vmatpush1.bf16.msra.mxu0 %v8642_v5  ;;  %v5771_v5 = vstv %s9932_s27  ;;  %s10162_s27 = sld [smem:[#allocation8 + $0x405]] }
 0x34f   :  { %1616 = vmatprep.subr.bf16.mxu0 %v8647_v8  ;;  %v5911_v8 = vstv %s9934_s28  ;;  %s10165_s28 = sld [smem:[#allocation8 + $0x484]] }
 0x350   :  { %1770 = vmatpush1.bf16.msra.mxu1 %v8670_v36 }
 0x351   :  { %1771 = vmatprep.subr.bf16.mxu1 %v9161_v3 }
 0x352   :  { %1617 = vmatpush1.bf16.msra.mxu0 %v8645_v13  ;;  %v5915_v13 = vstv %s9936_s29  ;;  %s10167_s29 = sld [smem:[#allocation8 + $0x485]] }
 0x353   :  { %1618 = vmatprep.subr.bf16.mxu0 %v8650_v41  ;;  %v6055_v41 = vstv %s9938_s30  ;;  %s10169_s30 = sld [smem:[#allocation8 + $0x504]] }
 0x354   :  { %1772 = vmatpush1.bf16.msra.mxu1 %v8672_v38 }
 0x355   :  { %1773 = vmatprep.subr.bf16.mxu1 %v9161_v3 }
 0x356   :  { %1619 = vmatpush1.bf16.msra.mxu0 %v8648_v9  ;;  %v6059_v9 = vstv %s9940_s10  ;;  %s10171_s10 = sld [smem:[#allocation8 + $0x505]] }
 0x357   :  { %1620 = vmatprep.subr.bf16.mxu0 %v8653_v11  ;;  %v6199_v11 = vstv %s9942_s11  ;;  %s10173_s11 = sld [smem:[#allocation8 + $0x584]] }
 0x358   :  { %1774 = vmatpush1.bf16.msra.mxu1 %v8674_v40 }
 0x359   :  { %1775 = vmatprep.subr.bf16.mxu1 %v9161_v3 }
 0x35a   :  { %1621 = vmatpush1.bf16.msra.mxu0 %v8651_v12  ;;  %v6203_v12 = vstv %s9944_s12  ;;  %s10175_s12 = sld [smem:[#allocation8 + $0x585]] }
 0x35b   :  { %1622 = vmatprep.subr.bf16.mxu0 %v8656_v17  ;;  %v6343_v17 = vstv %s9946_s13  ;;  %s10177_s13 = sld [smem:[#allocation8 + $0x604]] }
 0x35c   :  { %1776 = vmatpush1.bf16.msra.mxu1 %v8676_v43 }
 0x35d   :  { %1777 = vmatprep.subr.bf16.mxu1 %v9161_v3 }
 0x35e   :  { %1623 = vmatpush1.bf16.msra.mxu0 %v8654_v19 }
 0x35f   :  { %1624 = vmatprep.subr.bf16.mxu0 %v1602_v21  ;;  %v6487_v21 = vstv %s9950_s15  ;;  %s10181_s15 = sld [smem:[#allocation8 + $0x684]] }
 0x360   :  { %1778 = vmatpush1.bf16.msra.mxu1 %v8678_v45 }
 0x361   :  { %1779 = vmatprep.subr.bf16.mxu1 %v9161_v3 }
 0x362   :  { %1625 = vmatpush1.bf16.msra.mxu0 %v1599_v22  ;;  %v6631_v22 = vstv %s9952_s16  ;;  %s10183_s16 = sld [smem:[#allocation8 + $0x685]] }
 0x363   :  { %1913 = vmatprep.subr.bf16.mxu0 %v9161_v3 }
 0x364   :  { %1780 = vmatpush1.bf16.msra.mxu1 %v1757_v48 }
 0x365   :  { %1637 = vmatmul.mubr.bf16.vlgmr.msra.gmra.mrb[8].mxu0 %v1462_v25  ;;  %2101 = vmatprep.subr.bf16.mxu1 %v8684_v50 }
 0x366   :  { %1914 = vmatpush1.bf16.msra.mxu0 %v8661_v27 }
 0x367   :  { %1915 = vmatprep.subr.bf16.mxu0 %v9161_v3 }
 0x36a   :  { %1916 = vmatpush1.bf16.msra.mxu0 %v8663_v29 }
 0x36b   :  { %1917 = vmatprep.subr.bf16.mxu0 %v9161_v3 }
 0x36e   :  { %1918 = vmatpush1.bf16.msra.mxu0 %v8665_v31 }
 0x36f   :  { %1919 = vmatprep.subr.bf16.mxu0 %v9161_v3 }
 0x372   :  { %1920 = vmatpush1.bf16.msra.mxu0 %v8667_v33 }
 0x373   :  { %1921 = vmatprep.subr.bf16.mxu0 %v9161_v3 }
 0x376   :  { %1922 = vmatpush1.bf16.msra.mxu0 %v8669_v35 }
 0x377   :  { %1923 = vmatprep.subr.bf16.mxu0 %v9161_v3 }
 0x37a   :  { %1924 = vmatpush1.bf16.msra.mxu0 %v8671_v37 }
 0x37b   :  { %1925 = vmatprep.subr.bf16.mxu0 %v9161_v3 }
 0x37e   :  { %1926 = vmatpush1.bf16.msra.mxu0 %v8673_v39 }
 0x37f   :  { %1927 = vmatprep.subr.bf16.mxu0 %v9161_v3 }
 0x382   :  { %1928 = vmatpush1.bf16.msra.mxu0 %v8675_v42 }
 0x383   :  { %1929 = vmatprep.subr.bf16.mxu0 %v9161_v3 }
 0x386   :  { %1930 = vmatpush1.bf16.msra.mxu0 %v8677_v44 }
 0x387   :  { %1931 = vmatprep.subr.bf16.mxu0 %v9161_v3 }
 0x38a   :  { %1932 = vmatpush1.bf16.msra.mxu0 %v8679_v46 }
 0x38b   :  { %1933 = vmatprep.subr.bf16.mxu0 %v9161_v3 }
 0x38e   :  { %1934 = vmatpush1.bf16.msra.mxu0 %v1911_v51  ;;  %v1648_v51 = vstv %s7060_s6  ;;  %s10189_s6 = sld [smem:[#allocation8 + $0x705]] }
 0x38f   :  { %2256 = vmatprep.subr.bf16.mxu0 %v9161_v3 }
 0x40c   :  { %v1296_v52 = vpop.f32.mrb[4].mxu0 }
 0x40d   :  { %1303 = vst.msk [vmem:[#allocation3 + $0x10] sm:$0xff] %vm759_vm7, %v1296_v52  ;;  %v1298_v53 = vpop.f32.mrb[5].mxu0  ;;  %v1802_v52 = vstv %s7097_s18  ;;  %s10191_s18 = sld [smem:[#allocation8 + $0x785]] }
 0x40e   :  { %v1299_v54 = vpop.f32.mrb[6].mxu0  ;;  %v1450_v55 = vpop.f32.mrb[44].mxu1 }
 0x40f   :  { %1457 = vst.msk [vmem:[#allocation3 + $0x18] sm:$0xff] %vm759_vm7, %v1450_v55  ;;  %v1300_v56 = vpop.f32.mrb[7].mxu0  ;;  %v1452_v57 = vpop.f32.mrb[45].mxu1 }
 0x410   :  { %v1453_v59 = vpop.f32.mrb[46].mxu1 }
 0x411   :  { %v1454_v60 = vpop.f32.mrb[47].mxu1 }
 0x414   :  { %v4457_v61 = vld [vmem:[#allocation3 + $0x10] sm:$0xff] }
 0x415   :  { %v5624_v19 = vmul.f32 %v5623_v63, %v4457_v61  ;;  %v5768_v23 = vmul.f32 %v5767_v4, %v4457_v61  ;;  %v5912_v25 = vmul.f32 %v5911_v8, %v4457_v61  ;;  %v6056_v29 = vmul.f32 %v6055_v41, %v4457_v61 }
 0x416   :  { %v4462_v62 = vld [vmem:[#allocation3 + $0x18] sm:$0xff]  ;;  %v6200_v34 = vmul.f32 %v6199_v11, %v4457_v61  ;;  %v6344_v38 = vmul.f32 %v6343_v17, %v4457_v61  ;;  %v6632_v46 = vmul.f32 %v6631_v22, %v4457_v61 }
 0x417   :  { %v5628_v20 = vmul.f32 %v5627_v0, %v4462_v62  ;;  %v5772_v24 = vmul.f32 %v5771_v5, %v4462_v62  ;;  %v5625_v27 = vadd.f32 %v5624_v19, %v9747_v1  ;;  %v5916_v28 = vmul.f32 %v5915_v13, %v4462_v62 }
 0x418   :  { %v5769_v31 = vadd.f32 %v5768_v23, %v9749_v2  ;;  %v5913_v32 = vadd.f32 %v5912_v25, %v9751_v6  ;;  %v6060_v33 = vmul.f32 %v6059_v9, %v4462_v62  ;;  %v6057_v36 = vadd.f32 %v6056_v29, %v9753_v7  ;;  %v8682_v23 = vld [vmem:[%s12081_s2 + $0x210] ss:$8 sps:$4 sm:$0xff]   ;;  %v8687_v29 = vld [vmem:[%s12081_s2 + $0x224] ss:$8 sps:$4 sm:$0xff]  }
 0x419   :  { %v9977_v35 = vadd.f32 %v5628_v20, %v5625_v27  ;;  %v6204_v37 = vmul.f32 %v6203_v12, %v4462_v62  ;;  %v6201_v1 = vadd.f32 %v6200_v34, %v9755_v15  ;;  %v6348_v42 = vmul.f32 %v6347_v18, %v4462_v62  ;;  %v1958_v25 = vld [vmem:[#allocation2 + $0x78] sm:$0xff] }
 0x41a   :  { %v9980_v39 = vadd.f32 %v5772_v24, %v5769_v31  ;;  %v9982_v40 = vadd.f32 %v5916_v28, %v5913_v32  ;;  %v9985_v43 = vadd.f32 %v6060_v33, %v6057_v36  ;;  %v6345_v2 = vadd.f32 %v6344_v38, %v9757_v10  ;;  %v1956_v24 = vld [vmem:[#allocation2 + $0x68] sm:$0xff]  ;;  %v8690_v33 = vld [vmem:[%s12081_s2 + $0x234] ss:$8 sps:$4 sm:$0xff]   ;;  %v8688_v34 = vld [vmem:[%s12081_s2 + $0x230] ss:$8 sps:$4 sm:$0xff]  }
 0x41b   :  { %v6488_v6 = vmul.f32 %v6487_v21, %v4457_v61  ;;  %v6492_v44 = vmul.f32 %v6491_v26, %v4462_v62  ;;  %v9988_v45 = vadd.f32 %v6204_v37, %v6201_v1  ;;  %v6636_v47 = vmul.f32 %v6635_v30, %v4462_v62  ;;  %v8685_v32 = vld [vmem:[%s12081_s2 + $0x220] ss:$8 sps:$4 sm:$0xff]   ;;  %v8693_v36 = vld [vmem:[%s12081_s2 + $0x244] ss:$8 sps:$4 sm:$0xff]   ;;  %v8696_v38 = vld [vmem:[%s12081_s2 + $0x254] ss:$8 sps:$4 sm:$0xff]  }
 0x41c   :  { %v9990_v7 = vadd.f32 %v6348_v42, %v6345_v2  ;;  %v6633_v49 = vadd.f32 %v6632_v46, %v9761_v16  ;;  %v1960_v31 = vpack.c.bf16 %v1958_v25, %v1956_v24  ;;  %v8691_v37 = vld [vmem:[%s12081_s2 + $0x240] ss:$8 sps:$4 sm:$0xff]   ;;  %v8694_v1 = vld [vmem:[%s12081_s2 + $0x250] ss:$8 sps:$4 sm:$0xff]   ;;  %v8699_v42 = vld [vmem:[%s12081_s2 + $0x264] ss:$8 sps:$4 sm:$0xff]  }
 0x41d   :  { %v6489_v48 = vadd.f32 %v6488_v6, %v9759_v14  ;;  %v8697_v2 = vld [vmem:[%s12081_s2 + $0x260] ss:$8 sps:$4 sm:$0xff]   ;;  %v8702_v6 = vld [vmem:[%s12081_s2 + $0x274] ss:$8 sps:$4 sm:$0xff]   ;;  %v8705_v46 = vld [vmem:[%s12081_s2 + $0x284] ss:$8 sps:$4 sm:$0xff]  }
 0x41e   :  { %v9996_v15 = vadd.f32 %v6636_v47, %v6633_v49  ;;  %v8703_v47 = vld [vmem:[%s12081_s2 + $0x280] ss:$8 sps:$4 sm:$0xff]   ;;  %v8706_v49 = vld [vmem:[%s12081_s2 + $0x290] ss:$8 sps:$4 sm:$0xff]   ;;  %v8739_v25 = vld [vmem:[%s12081_s2 + $0x2c4] ss:$8 sps:$4 sm:$0xff]  }
 0x41f   :  { %v9994_v50 = vadd.f32 %v6492_v44, %v6489_v48  ;;  %v8700_v44 = vld [vmem:[%s12081_s2 + $0x270] ss:$8 sps:$4 sm:$0xff]   ;;  %v8708_v48 = vld [vmem:[%s12081_s2 + $0x294] ss:$8 sps:$4 sm:$0xff]  }
 0x420   :  { %v8736_v24 = vld [vmem:[%s12082_s3 + $0x2b8] sm:$0x1f]  }
 0x438   :  { %v1638_v10 = vpop.f32.mrb[8].mxu0 }
 0x439   :  { %v1649_v53 = vadd.f32 %v1648_v51, %v1638_v10  ;;  %v1640_v54 = vpop.f32.mrb[9].mxu0  ;;  %v8714_v10 = vld [vmem:[%s12081_s2 + $0x2b4] ss:$8 sps:$4 sm:$0x1f]  }
 0x43a   :  { %v1650_v55 = vadd.f32 %v1648_v51, %v1640_v54  ;;  %v1642_v56 = vpop.f32.mrb[10].mxu0  ;;  %v8711_v51 = vld [vmem:[%s12081_s2 + $0x2a4] ss:$8 sps:$4 sm:$0xff]   ;;  %v2099_v54 = vand.u32 %v8714_v10, %v9393_v58  ;;  %v6355_v10 = vstv %s10183_s16  ;;  %s10414_s16 = sld [smem:[#allocation8 + $0x607]] }
 0x43b   :  { %v1653_v57 = vmin.f32 %v1649_v53, 0.0  ;;  %v1803_v59 = vadd.f32 %v1802_v52, %v1642_v56  ;;  %v1644_v60 = vpop.f32.mrb[11].mxu0  ;;  %vm1651_vm13 = vcmp.gt.f32.partialorder %v1649_v53, 0.0  ;;  %v1955_v56 = vld [vmem:[#allocation2 + $0x60] sm:$0xff] }
 0x43c   :  { %v1654_v61 = vmin.f32 %v1650_v55, 0.0  ;;  %v1804_v14 = vadd.f32 %v1802_v52, %v1644_v60  ;;  %vm1652_vm14 = vcmp.gt.f32.partialorder %v1650_v55, 0.0  ;;  %v8709_v52 = vld [vmem:[%s12081_s2 + $0x2a0] ss:$8 sps:$4 sm:$0xff]   ;;  %v8715_v60 = vld [vmem:[%s12082_s3 + $0x210] sm:$0xff]  }
 0x43d   :  { %v1655_v62 = vmul.f32 1.442695, %v1653_v57  ;;  %v1807_v16 = vmin.f32 %v1803_v59, 0.0  ;;  %vm1805_vm15 = vcmp.gt.f32.partialorder %v1803_v59, 0.0  ;;  %v1957_v57 = vld [vmem:[#allocation2 + $0x70] sm:$0xff] }
 0x43e   :  { %v1657_v63 = vmul.f32 1.442695, %v1654_v61  ;;  %v1808_v0 = vmin.f32 %v1804_v14, 0.0  ;;  %vm1806_vm0 = vcmp.gt.f32.partialorder %v1804_v14, 0.0  ;;  %v8716_v61 = vld [vmem:[%s12082_s3 + $0x268] sm:$0xff]  }
 0x43f   :  { %9021 = vpow2.f32 %v1655_v62  ;;  %v1809_v4 = vmul.f32 1.442695, %v1807_v16  ;;  %v8718_v62 = vld [vmem:[%s12082_s3 + $0x270] sm:$0xff]   ;;  %v8719_v16 = vld [vmem:[%s12082_s3 + $0x220] sm:$0xff]  }
 0x440   :  { %9023 = vpow2.f32 %v1657_v63  ;;  %v1811_v5 = vmul.f32 1.442695, %v1808_v0  ;;  %v8720_v63 = vld [vmem:[%s12082_s3 + $0x278] sm:$0xff]   ;;  %v8721_v0 = vld [vmem:[%s12082_s3 + $0x228] sm:$0xff]  }
 0x441   :  { %9025 = vpow2.f32 %v1809_v4  ;;  %v8722_v4 = vld [vmem:[%s12082_s3 + $0x280] sm:$0xff]  }
 0x442   :  { %9027 = vpow2.f32 %v1811_v5  ;;  %v8723_v5 = vld [vmem:[%s12082_s3 + $0x230] sm:$0xff]  }
 0x449   :  { %v9022_v8 = vpop.eup %9021 }
 0x44a   :  { %v9024_v13 = vpop.eup %9023  ;;  %v7061_v41 = vadd.f32 -1.0, %v9022_v8  ;;  %v8724_v8 = vld [vmem:[%s12082_s3 + $0x288] sm:$0xff]  }
 0x44b   :  { %v9026_v9 = vpop.eup %9025  ;;  %v7062_v11 = vadd.f32 -1.0, %v9024_v13  ;;  %v8725_v13 = vld [vmem:[%s12082_s3 + $0x238] sm:$0xff]  }
 0x44c   :  { %v9028_v12 = vpop.eup %9027  ;;  %v1661_v17 = vsel %vm1651_vm13, %v1649_v53, %v7061_v41  ;;  %v7098_v18 = vadd.f32 -1.0, %v9026_v9  ;;  %v8712_v53 = vld [vmem:[%s12081_s2 + $0x2b0] ss:$8 sps:$4 sm:$0x1f]   ;;  %v8727_v9 = vld [vmem:[%s12082_s3 + $0x240] sm:$0xff]  }
 0x44d   :  { %v1662_v19 = vsel %vm1652_vm14, %v1650_v55, %v7062_v11  ;;  %v7099_v20 = vadd.f32 -1.0, %v9028_v12  ;;  %v1663_v26 = vpack.c.bf16 %v1661_v17, %v1661_v17  ;;  %v2096_v55 = vand.u32 %v8712_v53, %v9393_v58  ;;  %v8726_v41 = vld [vmem:[%s12082_s3 + $0x290] sm:$0xff]   ;;  %v8728_v11 = vld [vmem:[%s12082_s3 + $0x298] sm:$0xff]   ;;  %v8729_v12 = vld [vmem:[%s12082_s3 + $0x248] sm:$0xff]  }
 0x44e   :  { %v1664_v21 = vpack.c.bf16 %v1662_v19, %v1662_v19  ;;  %v1815_v22 = vsel %vm1805_vm15, %v1803_v59, %v7098_v18  ;;  %v1959_v59 = vpack.c.bf16 %v1957_v57, %v1955_v56  ;;  %v8730_v17 = vld [vmem:[%s12082_s3 + $0x2a0] sm:$0xff]   ;;  %v8731_v18 = vld [vmem:[%s12082_s3 + $0x250] sm:$0xff]   ;;  %v8732_v19 = vld [vmem:[%s12082_s3 + $0x2a8] sm:$0xff]  }
 0x44f   :  { %v1816_v27 = vsel %vm1806_vm0, %v1804_v14, %v7099_v20  ;;  %v1817_v30 = vpack.c.bf16 %v1815_v22, %v1815_v22  ;;  %v8717_v14 = vld [vmem:[%s12082_s3 + $0x218] sm:$0xff]   ;;  %v8735_v22 = vld [vmem:[%s12082_s3 + $0x260] sm:$0x1f]  }
 0x450   :  { %v1818_v28 = vpack.c.bf16 %v1816_v27, %v1816_v27  ;;  %7096 = vmatprep.mubr.msk.bf16.mxu1 %vm759_vm7, %v1664_v21  ;;  %v8733_v20 = vld [vmem:[%s12082_s3 + $0x258] sm:$0xff]   ;;  %v8734_v21 = vld [vmem:[%s12082_s3 + $0x2b0] sm:$0xff]  }
 0x451   :  { %1792 = vmatmul.mubr.bf16.vlgmr.msra.gmra.mrb[48].mxu1 %v1663_v26  ;;  %v2408_v26 = vsel %vm602_vm2, %v8736_v24, 0 }
 0x452   :  { %2102 = vmatpush1.bf16.msra.mxu1 %v8682_v23  ;;  %7133 = vmatprep.mubr.msk.bf16.mxu0 %vm759_vm7, %v1818_v28  ;;  %v2254_v23 = vsel %vm602_vm2, %v8735_v22, 0 }
 0x453   :  { %7178 = vmatprep.mubr.msk.bf16.mxu1 %vm431_vm3, %v1960_v31  ;;  %1946 = vmatmul.mubr.bf16.vlgmr.msra.gmra.mrb[12].mxu0 %v1817_v30 }
 0x454   :  { %2103 = vmatprep.subr.bf16.mxu1 %v8687_v29  ;;  %2257 = vmatpush1.bf16.msra.mxu0 %v8715_v60  ;;  %v6499_v60 = vstv %s10189_s6  ;;  %s10420_s6 = sld [smem:[#allocation8 + $0x706]] }
 0x455   :  { %2258 = vmatprep.subr.bf16.mxu0 %v9161_v3 }
 0x456   :  { %2104 = vmatpush1.bf16.msra.mxu1 %v8685_v32 }
 0x457   :  { %2105 = vmatprep.subr.bf16.mxu1 %v8690_v33 }
 0x458   :  { %2259 = vmatpush1.bf16.msra.mxu0 %v8717_v14 }
 0x459   :  { %2260 = vmatprep.subr.bf16.mxu0 %v9161_v3 }
 0x45a   :  { %2106 = vmatpush1.bf16.msra.mxu1 %v8688_v34 }
 0x45b   :  { %2107 = vmatprep.subr.bf16.mxu1 %v8693_v36 }
 0x45c   :  { %2261 = vmatpush1.bf16.msra.mxu0 %v8719_v16  ;;  %v6643_v16 = vstv %s10191_s18  ;;  %s10422_s18 = sld [smem:[#allocation8 + $0x786]] }
 0x45d   :  { %2262 = vmatprep.subr.bf16.mxu0 %v9161_v3 }
 0x45e   :  { %2108 = vmatpush1.bf16.msra.mxu1 %v8691_v37 }
 0x45f   :  { %2109 = vmatprep.subr.bf16.mxu1 %v8696_v38  ;;  %v5631_v38 = vstv %s10160_s26  ;;  %s11266_s26 = sld [smem:[#allocation8 + $0x103]] }
 0x460   :  { %2263 = vmatpush1.bf16.msra.mxu0 %v8721_v0 }
 0x461   :  { %2264 = vmatprep.subr.bf16.mxu0 %v9161_v3 }
 0x462   :  { %2110 = vmatpush1.bf16.msra.mxu1 %v8694_v1  ;;  %v5635_v1 = vstv %s10162_s27  ;;  %s11272_s27 = sld [smem:[#allocation8 + $0x83]] }
 0x463   :  { %2111 = vmatprep.subr.bf16.mxu1 %v8699_v42  ;;  %v5775_v42 = vstv %s10165_s28  ;;  %s10395_s28 = sld [smem:[#allocation8 + $0x406]] }
 0x464   :  { %2265 = vmatpush1.bf16.msra.mxu0 %v8723_v5 }
 0x465   :  { %2266 = vmatprep.subr.bf16.mxu0 %v9161_v3 }
 0x466   :  { %2112 = vmatpush1.bf16.msra.mxu1 %v8697_v2  ;;  %v5779_v2 = vstv %s10167_s29  ;;  %s10397_s29 = sld [smem:[#allocation8 + $0x407]] }
 0x467   :  { %2113 = vmatprep.subr.bf16.mxu1 %v8702_v6  ;;  %v5919_v6 = vstv %s10169_s30  ;;  %s10400_s30 = sld [smem:[#allocation8 + $0x486]] }
 0x468   :  { %2267 = vmatpush1.bf16.msra.mxu0 %v8725_v13 }
 0x469   :  { %2268 = vmatprep.subr.bf16.mxu0 %v9161_v3 }
 0x46a   :  { %2114 = vmatpush1.bf16.msra.mxu1 %v8700_v44  ;;  %v5923_v44 = vstv %s10171_s10  ;;  %s10402_s10 = sld [smem:[#allocation8 + $0x487]] }
 0x46b   :  { %2115 = vmatprep.subr.bf16.mxu1 %v8705_v46  ;;  %v6063_v46 = vstv %s10173_s11  ;;  %s10404_s11 = sld [smem:[#allocation8 + $0x506]] }
 0x46c   :  { %2269 = vmatpush1.bf16.msra.mxu0 %v8727_v9 }
 0x46d   :  { %2270 = vmatprep.subr.bf16.mxu0 %v9161_v3 }
 0x46e   :  { %2116 = vmatpush1.bf16.msra.mxu1 %v8703_v47  ;;  %v6067_v47 = vstv %s10175_s12  ;;  %s10406_s12 = sld [smem:[#allocation8 + $0x507]] }
 0x46f   :  { %2117 = vmatprep.subr.bf16.mxu1 %v8708_v48  ;;  %v6207_v48 = vstv %s10177_s13  ;;  %s10408_s13 = sld [smem:[#allocation8 + $0x586]] }
 0x470   :  { %2271 = vmatpush1.bf16.msra.mxu0 %v8729_v12 }
 0x471   :  { %2272 = vmatprep.subr.bf16.mxu0 %v9161_v3 }
 0x472   :  { %2118 = vmatpush1.bf16.msra.mxu1 %v8706_v49  ;;  %v6211_v49 = vstv %s10179_s14  ;;  %s10410_s14 = sld [smem:[#allocation8 + $0x587]] }
 0x473   :  { %2119 = vmatprep.subr.bf16.mxu1 %v8711_v51  ;;  %v6351_v51 = vstv %s10181_s15  ;;  %s10412_s15 = sld [smem:[#allocation8 + $0x606]] }
 0x474   :  { %2273 = vmatpush1.bf16.msra.mxu0 %v8731_v18 }
 0x475   :  { %2274 = vmatprep.subr.bf16.mxu0 %v9161_v3 }
 0x476   :  { %2120 = vmatpush1.bf16.msra.mxu1 %v8709_v52 }
 0x477   :  { %2121 = vmatprep.subr.bf16.mxu1 %v2099_v54  ;;  %v6495_v54 = vstv %s10185_s17  ;;  %s10416_s17 = sld [smem:[#allocation8 + $0x686]] }
 0x478   :  { %2275 = vmatpush1.bf16.msra.mxu0 %v8733_v20 }
 0x479   :  { %2276 = vmatprep.subr.bf16.mxu0 %v9161_v3 }
 0x47a   :  { %2122 = vmatpush1.bf16.msra.mxu1 %v2096_v55  ;;  %v6639_v55 = vstv %s10187_s7  ;;  %s10418_s7 = sld [smem:[#allocation8 + $0x687]] }
 0x47b   :  { %2410 = vmatprep.subr.bf16.mxu1 %v9161_v3 }
 0x47c   :  { %2277 = vmatpush1.bf16.msra.mxu0 %v2254_v23 }
 0x47d   :  { %2134 = vmatmul.mubr.bf16.vlgmr.msra.gmra.mrb[52].mxu1 %v1959_v59  ;;  %2598 = vmatprep.subr.bf16.mxu0 %v8739_v25 }
 0x47e   :  { %2411 = vmatpush1.bf16.msra.mxu1 %v8716_v61 }
 0x47f   :  { %2412 = vmatprep.subr.bf16.mxu1 %v9161_v3 }
 0x482   :  { %2413 = vmatpush1.bf16.msra.mxu1 %v8718_v62 }
 0x483   :  { %2414 = vmatprep.subr.bf16.mxu1 %v9161_v3 }
 0x486   :  { %2415 = vmatpush1.bf16.msra.mxu1 %v8720_v63 }
 0x487   :  { %2416 = vmatprep.subr.bf16.mxu1 %v9161_v3 }
 0x48a   :  { %2417 = vmatpush1.bf16.msra.mxu1 %v8722_v4 }
 0x48b   :  { %2418 = vmatprep.subr.bf16.mxu1 %v9161_v3 }
 0x48e   :  { %2419 = vmatpush1.bf16.msra.mxu1 %v8724_v8 }
 0x48f   :  { %2420 = vmatprep.subr.bf16.mxu1 %v9161_v3 }
 0x492   :  { %2421 = vmatpush1.bf16.msra.mxu1 %v8726_v41 }
 0x493   :  { %2422 = vmatprep.subr.bf16.mxu1 %v9161_v3 }
 0x496   :  { %2423 = vmatpush1.bf16.msra.mxu1 %v8728_v11 }
 0x497   :  { %2424 = vmatprep.subr.bf16.mxu1 %v9161_v3 }
 0x49a   :  { %2425 = vmatpush1.bf16.msra.mxu1 %v8730_v17 }
 0x49b   :  { %2426 = vmatprep.subr.bf16.mxu1 %v9161_v3 }
 0x49e   :  { %2427 = vmatpush1.bf16.msra.mxu1 %v8732_v19 }
 0x49f   :  { %2428 = vmatprep.subr.bf16.mxu1 %v9161_v3 }
 0x4a2   :  { %2429 = vmatpush1.bf16.msra.mxu1 %v8734_v21 }
 0x4a3   :  { %2430 = vmatprep.subr.bf16.mxu1 %v9161_v3 }
 0x4a6   :  { %2431 = vmatpush1.bf16.msra.mxu1 %v2408_v26  ;;  %v2145_v26 = vstv %s7179_s1  ;;  %s10424_s1 = sld [smem:[#allocation8 + $0x707]] }
 0x4a7   :  { %2753 = vmatprep.subr.bf16.mxu1 %v9161_v3 }
 0x524   :  { %v1793_v27 = vpop.f32.mrb[48].mxu1 }
 0x525   :  { %1800 = vst.msk [vmem:[#allocation3 + $0x20] sm:$0xff] %vm759_vm7, %v1793_v27  ;;  %v1795_v28 = vpop.f32.mrb[49].mxu1  ;;  %v2299_v27 = vstv %s7216_s19  ;;  %s10426_s19 = sld [smem:[#allocation8 + $0x787]] }
 0x526   :  { %v1796_v29 = vpop.f32.mrb[50].mxu1  ;;  %v1947_v30 = vpop.f32.mrb[12].mxu0 }
 0x527   :  { %1954 = vst.msk [vmem:[#allocation3 + $0x28] sm:$0xff] %vm759_vm7, %v1947_v30  ;;  %v1797_v31 = vpop.f32.mrb[51].mxu1  ;;  %v1949_v32 = vpop.f32.mrb[13].mxu0 }
 0x528   :  { %v1950_v33 = vpop.f32.mrb[14].mxu0 }
 0x529   :  { %v1951_v34 = vpop.f32.mrb[15].mxu0 }
 0x52c   :  { %v4467_v36 = vld [vmem:[#allocation3 + $0x20] sm:$0xff] }
 0x52d   :  { %v5632_v52 = vmul.f32 %v5631_v38, %v4467_v36  ;;  %v5776_v56 = vmul.f32 %v5775_v42, %v4467_v36  ;;  %v5920_v59 = vmul.f32 %v5919_v6, %v4467_v36  ;;  %v6064_v62 = vmul.f32 %v6063_v46, %v4467_v36 }
 0x52e   :  { %v4472_v37 = vld [vmem:[#allocation3 + $0x28] sm:$0xff]  ;;  %v6208_v5 = vmul.f32 %v6207_v48, %v4467_v36  ;;  %v6352_v9 = vmul.f32 %v6351_v51, %v4467_v36  ;;  %v6640_v21 = vmul.f32 %v6639_v55, %v4467_v36 }
 0x52f   :  { %v5636_v53 = vmul.f32 %v5635_v1, %v4472_v37  ;;  %v5780_v57 = vmul.f32 %v5779_v2, %v4472_v37  ;;  %v5633_v61 = vadd.f32 %v5632_v52, %v9977_v35  ;;  %v5924_v14 = vmul.f32 %v5923_v44, %v4472_v37 }
 0x530   :  { %v5777_v63 = vadd.f32 %v5776_v56, %v9980_v39  ;;  %v5921_v0 = vadd.f32 %v5920_v59, %v9982_v40  ;;  %v6068_v4 = vmul.f32 %v6067_v47, %v4472_v37  ;;  %v6065_v13 = vadd.f32 %v6064_v62, %v9985_v43  ;;  %v8737_v56 = vld [vmem:[%s12081_s2 + $0x2c0] ss:$8 sps:$4 sm:$0xff]   ;;  %v2455_v59 = vld [vmem:[#allocation2 + $0x98] sm:$0xff] }
 0x531   :  { %v10212_v8 = vadd.f32 %v5636_v53, %v5633_v61  ;;  %v6212_v41 = vmul.f32 %v6211_v49, %v4472_v37  ;;  %v6209_v35 = vadd.f32 %v6208_v5, %v9988_v45  ;;  %v6356_v17 = vmul.f32 %v6355_v10, %v4472_v37  ;;  %v8742_v62 = vld [vmem:[%s12081_s2 + $0x2d4] ss:$8 sps:$4 sm:$0xff]   ;;  %v8743_v5 = vld [vmem:[%s12081_s2 + $0x2e0] ss:$8 sps:$4 sm:$0xff]  }
 0x532   :  { %v10215_v11 = vadd.f32 %v5780_v57, %v5777_v63  ;;  %v10217_v12 = vadd.f32 %v5924_v14, %v5921_v0  ;;  %v10220_v18 = vadd.f32 %v6068_v4, %v6065_v13  ;;  %v6353_v39 = vadd.f32 %v6352_v9, %v9990_v7  ;;  %v2453_v57 = vld [vmem:[#allocation2 + $0x88] sm:$0xff]  ;;  %v8740_v0 = vld [vmem:[%s12081_s2 + $0x2d0] ss:$8 sps:$4 sm:$0xff]   ;;  %v8748_v13 = vld [vmem:[%s12081_s2 + $0x2f4] ss:$8 sps:$4 sm:$0xff]  }
 0x533   :  { %v6496_v40 = vmul.f32 %v6495_v54, %v4467_v36  ;;  %v6500_v19 = vmul.f32 %v6499_v60, %v4472_v37  ;;  %v10223_v20 = vadd.f32 %v6212_v41, %v6209_v35  ;;  %v6644_v22 = vmul.f32 %v6643_v16, %v4472_v37  ;;  %v8745_v4 = vld [vmem:[%s12081_s2 + $0x2e4] ss:$8 sps:$4 sm:$0xff]   ;;  %v8746_v41 = vld [vmem:[%s12081_s2 + $0x2f0] ss:$8 sps:$4 sm:$0xff]   ;;  %v8749_v35 = vld [vmem:[%s12081_s2 + $0x300] ss:$8 sps:$4 sm:$0xff]  }
 0x534   :  { %v10225_v43 = vadd.f32 %v6356_v17, %v6353_v39  ;;  %v6641_v24 = vadd.f32 %v6640_v21, %v9996_v15  ;;  %v2457_v63 = vpack.c.bf16 %v2455_v59, %v2453_v57  ;;  %v8751_v9 = vld [vmem:[%s12081_s2 + $0x304] ss:$8 sps:$4 sm:$0xff]   ;;  %v8754_v17 = vld [vmem:[%s12081_s2 + $0x314] ss:$8 sps:$4 sm:$0xff]   ;;  %v8752_v39 = vld [vmem:[%s12081_s2 + $0x310] ss:$8 sps:$4 sm:$0xff]  }
 0x535   :  { %v6497_v23 = vadd.f32 %v6496_v40, %v9994_v50  ;;  %v8757_v40 = vld [vmem:[%s12081_s2 + $0x324] ss:$8 sps:$4 sm:$0xff]   ;;  %v8760_v21 = vld [vmem:[%s12081_s2 + $0x334] ss:$8 sps:$4 sm:$0xff]  }
 0x536   :  { %v10231_v45 = vadd.f32 %v6644_v22, %v6641_v24  ;;  %v8758_v22 = vld [vmem:[%s12081_s2 + $0x330] ss:$8 sps:$4 sm:$0xff]   ;;  %v8761_v24 = vld [vmem:[%s12081_s2 + $0x340] ss:$8 sps:$4 sm:$0xff]   ;;  %v8794_v59 = vld [vmem:[%s12081_s2 + $0x374] ss:$8 sps:$4 sm:$0xff]  }
 0x537   :  { %v10229_v25 = vadd.f32 %v6500_v19, %v6497_v23  ;;  %v8755_v19 = vld [vmem:[%s12081_s2 + $0x320] ss:$8 sps:$4 sm:$0xff]   ;;  %v8763_v23 = vld [vmem:[%s12081_s2 + $0x344] ss:$8 sps:$4 sm:$0xff]  }
 0x538   :  { %v8791_v57 = vld [vmem:[%s12082_s3 + $0x368] sm:$0x1f]  }
 0x550   :  { %v2135_v7 = vpop.f32.mrb[52].mxu1 }
 0x551   :  { %v2146_v28 = vadd.f32 %v2145_v26, %v2135_v7  ;;  %v2137_v29 = vpop.f32.mrb[53].mxu1  ;;  %v8769_v7 = vld [vmem:[%s12081_s2 + $0x364] ss:$8 sps:$4 sm:$0x1f]  }
 0x552   :  { %v2147_v30 = vadd.f32 %v2145_v26, %v2137_v29  ;;  %v2139_v31 = vpop.f32.mrb[54].mxu1  ;;  %v8766_v26 = vld [vmem:[%s12081_s2 + $0x354] ss:$8 sps:$4 sm:$0xff]   ;;  %v2596_v29 = vand.u32 %v8769_v7, %v9393_v58  ;;  %v6363_v7 = vstv %s10418_s7  ;;  %s10649_s7 = sld [smem:[#allocation8 + $0x609]] }
 0x553   :  { %v2150_v32 = vmin.f32 %v2146_v28, 0.0  ;;  %v2300_v33 = vadd.f32 %v2299_v27, %v2139_v31  ;;  %v2141_v34 = vpop.f32.mrb[55].mxu1  ;;  %vm2148_vm1 = vcmp.gt.f32.partialorder %v2146_v28, 0.0  ;;  %v2452_v31 = vld [vmem:[#allocation2 + $0x80] sm:$0xff] }
 0x554   :  { %v2151_v36 = vmin.f32 %v2147_v30, 0.0  ;;  %v2301_v50 = vadd.f32 %v2299_v27, %v2141_v34  ;;  %vm2149_vm4 = vcmp.gt.f32.partialorder %v2147_v30, 0.0  ;;  %v8764_v27 = vld [vmem:[%s12081_s2 + $0x350] ss:$8 sps:$4 sm:$0xff]   ;;  %v8770_v34 = vld [vmem:[%s12082_s3 + $0x2c0] sm:$0xff]  }
 0x555   :  { %v2152_v37 = vmul.f32 1.442695, %v2150_v32  ;;  %v2304_v15 = vmin.f32 %v2300_v33, 0.0  ;;  %vm2302_vm5 = vcmp.gt.f32.partialorder %v2300_v33, 0.0  ;;  %v2454_v32 = vld [vmem:[#allocation2 + $0x90] sm:$0xff] }
 0x556   :  { %v2154_v38 = vmul.f32 1.442695, %v2151_v36  ;;  %v2305_v1 = vmin.f32 %v2301_v50, 0.0  ;;  %vm2303_vm6 = vcmp.gt.f32.partialorder %v2301_v50, 0.0  ;;  %v8771_v36 = vld [vmem:[%s12082_s3 + $0x318] sm:$0xff]  }
 0x557   :  { %9029 = vpow2.f32 %v2152_v37  ;;  %v2306_v42 = vmul.f32 1.442695, %v2304_v15  ;;  %v8773_v37 = vld [vmem:[%s12082_s3 + $0x320] sm:$0xff]   ;;  %v8774_v15 = vld [vmem:[%s12082_s3 + $0x2d0] sm:$0xff]  }
 0x558   :  { %9031 = vpow2.f32 %v2154_v38  ;;  %v2308_v2 = vmul.f32 1.442695, %v2305_v1  ;;  %v8775_v38 = vld [vmem:[%s12082_s3 + $0x328] sm:$0xff]   ;;  %v8776_v1 = vld [vmem:[%s12082_s3 + $0x2d8] sm:$0xff]  }
 0x559   :  { %9033 = vpow2.f32 %v2306_v42  ;;  %v8777_v42 = vld [vmem:[%s12082_s3 + $0x330] sm:$0xff]  }
 0x55a   :  { %9035 = vpow2.f32 %v2308_v2  ;;  %v8778_v2 = vld [vmem:[%s12082_s3 + $0x2e0] sm:$0xff]  }
 0x561   :  { %v9030_v6 = vpop.eup %9029 }
 0x562   :  { %v9032_v44 = vpop.eup %9031  ;;  %v7180_v46 = vadd.f32 -1.0, %v9030_v6  ;;  %v8779_v6 = vld [vmem:[%s12082_s3 + $0x338] sm:$0xff]  }
 0x563   :  { %v9034_v47 = vpop.eup %9033  ;;  %v7181_v48 = vadd.f32 -1.0, %v9032_v44  ;;  %v8780_v44 = vld [vmem:[%s12082_s3 + $0x2e8] sm:$0xff]  }
 0x564   :  { %v9036_v49 = vpop.eup %9035  ;;  %v2158_v51 = vsel %vm2148_vm1, %v2146_v28, %v7180_v46  ;;  %v7217_v10 = vadd.f32 -1.0, %v9034_v47  ;;  %v8767_v28 = vld [vmem:[%s12081_s2 + $0x360] ss:$8 sps:$4 sm:$0x1f]   ;;  %v8782_v47 = vld [vmem:[%s12082_s3 + $0x2f0] sm:$0xff]  }
 0x565   :  { %v2159_v52 = vsel %vm2149_vm4, %v2147_v30, %v7181_v48  ;;  %v7218_v53 = vadd.f32 -1.0, %v9036_v49  ;;  %v2160_v60 = vpack.c.bf16 %v2158_v51, %v2158_v51  ;;  %v2593_v30 = vand.u32 %v8767_v28, %v9393_v58  ;;  %v8781_v46 = vld [vmem:[%s12082_s3 + $0x340] sm:$0xff]   ;;  %v8783_v48 = vld [vmem:[%s12082_s3 + $0x348] sm:$0xff]   ;;  %v8784_v49 = vld [vmem:[%s12082_s3 + $0x2f8] sm:$0xff]  }
 0x566   :  { %v2161_v54 = vpack.c.bf16 %v2159_v52, %v2159_v52  ;;  %v2312_v55 = vsel %vm2302_vm5, %v2300_v33, %v7217_v10  ;;  %v2456_v33 = vpack.c.bf16 %v2454_v32, %v2452_v31  ;;  %v8785_v51 = vld [vmem:[%s12082_s3 + $0x350] sm:$0xff]   ;;  %v8786_v10 = vld [vmem:[%s12082_s3 + $0x300] sm:$0xff]   ;;  %v8787_v52 = vld [vmem:[%s12082_s3 + $0x358] sm:$0xff]  }
 0x567   :  { %v2313_v61 = vsel %vm2303_vm6, %v2301_v50, %v7218_v53  ;;  %v2314_v16 = vpack.c.bf16 %v2312_v55, %v2312_v55  ;;  %v8772_v50 = vld [vmem:[%s12082_s3 + $0x2c8] sm:$0xff]   ;;  %v8790_v55 = vld [vmem:[%s12082_s3 + $0x310] sm:$0x1f]  }
 0x568   :  { %v2315_v14 = vpack.c.bf16 %v2313_v61, %v2313_v61  ;;  %7215 = vmatprep.mubr.msk.bf16.mxu0 %vm759_vm7, %v2161_v54  ;;  %v8788_v53 = vld [vmem:[%s12082_s3 + $0x308] sm:$0xff]   ;;  %v8789_v54 = vld [vmem:[%s12082_s3 + $0x360] sm:$0xff]  }
 0x569   :  { %2289 = vmatmul.mubr.bf16.vlgmr.msra.gmra.mrb[16].mxu0 %v2160_v60  ;;  %v2905_v60 = vsel %vm602_vm2, %v8791_v57, 0 }
 0x56a   :  { %2599 = vmatpush1.bf16.msra.mxu0 %v8737_v56  ;;  %7252 = vmatprep.mubr.msk.bf16.mxu1 %vm759_vm7, %v2315_v14  ;;  %v2751_v56 = vsel %vm602_vm2, %v8790_v55, 0 }
 0x56b   :  { %7297 = vmatprep.mubr.msk.bf16.mxu0 %vm431_vm3, %v2457_v63  ;;  %2443 = vmatmul.mubr.bf16.vlgmr.msra.gmra.mrb[56].mxu1 %v2314_v16 }
 0x56c   :  { %2600 = vmatprep.subr.bf16.mxu0 %v8742_v62  ;;  %2754 = vmatpush1.bf16.msra.mxu1 %v8770_v34  ;;  %v6507_v34 = vstv %s10424_s1  ;;  %s10655_s1 = sld [smem:[#allocation8 + $0x708]] }
 0x56d   :  { %2755 = vmatprep.subr.bf16.mxu1 %v9161_v3 }
 0x56e   :  { %2601 = vmatpush1.bf16.msra.mxu0 %v8740_v0 }
 0x56f   :  { %2602 = vmatprep.subr.bf16.mxu0 %v8745_v4 }
 0x570   :  { %2756 = vmatpush1.bf16.msra.mxu1 %v8772_v50 }
 0x571   :  { %2757 = vmatprep.subr.bf16.mxu1 %v9161_v3 }
 0x572   :  { %2603 = vmatpush1.bf16.msra.mxu0 %v8743_v5 }
 0x573   :  { %2604 = vmatprep.subr.bf16.mxu0 %v8748_v13 }
 0x574   :  { %2758 = vmatpush1.bf16.msra.mxu1 %v8774_v15  ;;  %v6651_v15 = vstv %s10426_s19  ;;  %s10657_s19 = sld [smem:[#allocation8 + $0x788]] }
 0x575   :  { %2759 = vmatprep.subr.bf16.mxu1 %v9161_v3 }
 0x576   :  { %2605 = vmatpush1.bf16.msra.mxu0 %v8746_v41 }
 0x577   :  { %2606 = vmatprep.subr.bf16.mxu0 %v8751_v9  ;;  %v5639_v9 = vstv %s10395_s28  ;;  %s11274_s28 = sld [smem:[#allocation8 + $0x183]] }
 0x578   :  { %2760 = vmatpush1.bf16.msra.mxu1 %v8776_v1 }
 0x579   :  { %2761 = vmatprep.subr.bf16.mxu1 %v9161_v3 }
 0x57a   :  { %2607 = vmatpush1.bf16.msra.mxu0 %v8749_v35  ;;  %v5643_v35 = vstv %s10397_s29  ;;  %s11279_s29 = sld [smem:[#allocation8 + $0x203]] }
 0x57b   :  { %2608 = vmatprep.subr.bf16.mxu0 %v8754_v17  ;;  %v5783_v17 = vstv %s10400_s30  ;;  %s10630_s30 = sld [smem:[#allocation8 + $0x408]] }
 0x57c   :  { %2762 = vmatpush1.bf16.msra.mxu1 %v8778_v2 }
 0x57d   :  { %2763 = vmatprep.subr.bf16.mxu1 %v9161_v3 }
 0x57e   :  { %2609 = vmatpush1.bf16.msra.mxu0 %v8752_v39  ;;  %v5787_v39 = vstv %s10402_s10  ;;  %s10632_s10 = sld [smem:[#allocation8 + $0x409]] }
 0x57f   :  { %2610 = vmatprep.subr.bf16.mxu0 %v8757_v40  ;;  %v5927_v40 = vstv %s10404_s11  ;;  %s10635_s11 = sld [smem:[#allocation8 + $0x488]] }
 0x580   :  { %2764 = vmatpush1.bf16.msra.mxu1 %v8780_v44 }
 0x581   :  { %2765 = vmatprep.subr.bf16.mxu1 %v9161_v3 }
 0x582   :  { %2611 = vmatpush1.bf16.msra.mxu0 %v8755_v19  ;;  %v5931_v19 = vstv %s10406_s12  ;;  %s10637_s12 = sld [smem:[#allocation8 + $0x489]] }
 0x583   :  { %2612 = vmatprep.subr.bf16.mxu0 %v8760_v21  ;;  %v6071_v21 = vstv %s10408_s13  ;;  %s10639_s13 = sld [smem:[#allocation8 + $0x508]] }
 0x584   :  { %2766 = vmatpush1.bf16.msra.mxu1 %v8782_v47 }
 0x585   :  { %2767 = vmatprep.subr.bf16.mxu1 %v9161_v3 }
 0x586   :  { %2613 = vmatpush1.bf16.msra.mxu0 %v8758_v22  ;;  %v6075_v22 = vstv %s10410_s14  ;;  %s10641_s14 = sld [smem:[#allocation8 + $0x509]] }
 0x587   :  { %2614 = vmatprep.subr.bf16.mxu0 %v8763_v23  ;;  %v6215_v23 = vstv %s10412_s15  ;;  %s10643_s15 = sld [smem:[#allocation8 + $0x588]] }
 0x588   :  { %2768 = vmatpush1.bf16.msra.mxu1 %v8784_v49 }
 0x589   :  { %2769 = vmatprep.subr.bf16.mxu1 %v9161_v3 }
 0x58a   :  { %2615 = vmatpush1.bf16.msra.mxu0 %v8761_v24  ;;  %v6219_v24 = vstv %s10414_s16  ;;  %s10645_s16 = sld [smem:[#allocation8 + $0x589]] }
 0x58b   :  { %2616 = vmatprep.subr.bf16.mxu0 %v8766_v26  ;;  %v6359_v26 = vstv %s10416_s17  ;;  %s10647_s17 = sld [smem:[#allocation8 + $0x608]] }
 0x58c   :  { %2770 = vmatpush1.bf16.msra.mxu1 %v8786_v10 }
 0x58d   :  { %2771 = vmatprep.subr.bf16.mxu1 %v9161_v3 }
 0x58e   :  { %2617 = vmatpush1.bf16.msra.mxu0 %v8764_v27 }
 0x58f   :  { %2618 = vmatprep.subr.bf16.mxu0 %v2596_v29  ;;  %v6503_v29 = vstv %s10420_s6  ;;  %s10651_s6 = sld [smem:[#allocation8 + $0x688]] }
 0x590   :  { %2772 = vmatpush1.bf16.msra.mxu1 %v8788_v53 }
 0x591   :  { %2773 = vmatprep.subr.bf16.mxu1 %v9161_v3 }
 0x592   :  { %2619 = vmatpush1.bf16.msra.mxu0 %v2593_v30  ;;  %v6647_v30 = vstv %s10422_s18  ;;  %s10653_s18 = sld [smem:[#allocation8 + $0x689]] }
 0x593   :  { %2907 = vmatprep.subr.bf16.mxu0 %v9161_v3 }
 0x594   :  { %2774 = vmatpush1.bf16.msra.mxu1 %v2751_v56 }
 0x595   :  { %2631 = vmatmul.mubr.bf16.vlgmr.msra.gmra.mrb[20].mxu0 %v2456_v33  ;;  %3095 = vmatprep.subr.bf16.mxu1 %v8794_v59 }
 0x596   :  { %2908 = vmatpush1.bf16.msra.mxu0 %v8771_v36 }
 0x597   :  { %2909 = vmatprep.subr.bf16.mxu0 %v9161_v3 }
 0x59a   :  { %2910 = vmatpush1.bf16.msra.mxu0 %v8773_v37 }
 0x59b   :  { %2911 = vmatprep.subr.bf16.mxu0 %v9161_v3 }
 0x59e   :  { %2912 = vmatpush1.bf16.msra.mxu0 %v8775_v38 }
 0x59f   :  { %2913 = vmatprep.subr.bf16.mxu0 %v9161_v3 }
 0x5a2   :  { %2914 = vmatpush1.bf16.msra.mxu0 %v8777_v42 }
 0x5a3   :  { %2915 = vmatprep.subr.bf16.mxu0 %v9161_v3 }
 0x5a6   :  { %2916 = vmatpush1.bf16.msra.mxu0 %v8779_v6 }
 0x5a7   :  { %2917 = vmatprep.subr.bf16.mxu0 %v9161_v3 }
 0x5aa   :  { %2918 = vmatpush1.bf16.msra.mxu0 %v8781_v46 }
 0x5ab   :  { %2919 = vmatprep.subr.bf16.mxu0 %v9161_v3 }
 0x5ae   :  { %2920 = vmatpush1.bf16.msra.mxu0 %v8783_v48 }
 0x5af   :  { %2921 = vmatprep.subr.bf16.mxu0 %v9161_v3 }
 0x5b2   :  { %2922 = vmatpush1.bf16.msra.mxu0 %v8785_v51 }
 0x5b3   :  { %2923 = vmatprep.subr.bf16.mxu0 %v9161_v3 }
 0x5b6   :  { %2924 = vmatpush1.bf16.msra.mxu0 %v8787_v52 }
 0x5b7   :  { %2925 = vmatprep.subr.bf16.mxu0 %v9161_v3 }
 0x5ba   :  { %2926 = vmatpush1.bf16.msra.mxu0 %v8789_v54 }
 0x5bb   :  { %2927 = vmatprep.subr.bf16.mxu0 %v9161_v3 }
 0x5be   :  { %2928 = vmatpush1.bf16.msra.mxu0 %v2905_v60  ;;  %v2642_v60 = vstv %s7298_s20  ;;  %s10659_s20 = sld [smem:[#allocation8 + $0x709]] }
 0x5bf   :  { %3250 = vmatprep.subr.bf16.mxu0 %v9161_v3 }
 0x63c   :  { %v2290_v61 = vpop.f32.mrb[16].mxu0 }
 0x63d   :  { %2297 = vst.msk [vmem:[#allocation3 + $0x30] sm:$0xff] %vm759_vm7, %v2290_v61  ;;  %v2292_v14 = vpop.f32.mrb[17].mxu0  ;;  %v2796_v61 = vstv %s7335_s21  ;;  %s10661_s21 = sld [smem:[#allocation8 + $0x789]] }
 0x63e   :  { %v2293_v62 = vpop.f32.mrb[18].mxu0  ;;  %v2444_v16 = vpop.f32.mrb[56].mxu1 }
 0x63f   :  { %2451 = vst.msk [vmem:[#allocation3 + $0x38] sm:$0xff] %vm759_vm7, %v2444_v16  ;;  %v2294_v63 = vpop.f32.mrb[19].mxu0  ;;  %v2446_v0 = vpop.f32.mrb[57].mxu1 }
 0x640   :  { %v2447_v4 = vpop.f32.mrb[58].mxu1 }
 0x641   :  { %v2448_v5 = vpop.f32.mrb[59].mxu1 }
 0x644   :  { %v4477_v13 = vld [vmem:[#allocation3 + $0x30] sm:$0xff] }
 0x645   :  { %v5640_v27 = vmul.f32 %v5639_v9, %v4477_v13  ;;  %v5784_v31 = vmul.f32 %v5783_v17, %v4477_v13  ;;  %v5928_v33 = vmul.f32 %v5927_v40, %v4477_v13  ;;  %v6072_v37 = vmul.f32 %v6071_v21, %v4477_v13 }
 0x646   :  { %v4482_v41 = vld [vmem:[#allocation3 + $0x38] sm:$0xff]  ;;  %v6216_v2 = vmul.f32 %v6215_v23, %v4477_v13  ;;  %v6360_v47 = vmul.f32 %v6359_v26, %v4477_v13  ;;  %v6648_v54 = vmul.f32 %v6647_v30, %v4477_v13 }
 0x647   :  { %v5644_v28 = vmul.f32 %v5643_v35, %v4482_v41  ;;  %v5788_v32 = vmul.f32 %v5787_v39, %v4482_v41  ;;  %v5641_v36 = vadd.f32 %v5640_v27, %v10212_v8  ;;  %v5932_v50 = vmul.f32 %v5931_v19, %v4482_v41 }
 0x648   :  { %v5785_v38 = vadd.f32 %v5784_v31, %v10215_v11  ;;  %v5929_v1 = vadd.f32 %v5928_v33, %v10217_v12  ;;  %v6076_v42 = vmul.f32 %v6075_v22, %v4482_v41  ;;  %v6073_v44 = vadd.f32 %v6072_v37, %v10220_v18  ;;  %v8792_v31 = vld [vmem:[%s12081_s2 + $0x370] ss:$8 sps:$4 sm:$0xff]   ;;  %v8797_v37 = vld [vmem:[%s12081_s2 + $0x384] ss:$8 sps:$4 sm:$0xff]  }
 0x649   :  { %v10447_v6 = vadd.f32 %v5644_v28, %v5641_v36  ;;  %v6220_v46 = vmul.f32 %v6219_v24, %v4482_v41  ;;  %v6217_v8 = vadd.f32 %v6216_v2, %v10223_v20  ;;  %v6364_v51 = vmul.f32 %v6363_v7, %v4482_v41  ;;  %v2952_v33 = vld [vmem:[#allocation2 + $0xb8] sm:$0xff] }
 0x64a   :  { %v10450_v48 = vadd.f32 %v5788_v32, %v5785_v38  ;;  %v10452_v49 = vadd.f32 %v5932_v50, %v5929_v1  ;;  %v10455_v10 = vadd.f32 %v6076_v42, %v6073_v44  ;;  %v6361_v11 = vadd.f32 %v6360_v47, %v10225_v43  ;;  %v2950_v32 = vld [vmem:[#allocation2 + $0xa8] sm:$0xff]  ;;  %v8800_v42 = vld [vmem:[%s12081_s2 + $0x394] ss:$8 sps:$4 sm:$0xff]   ;;  %v8798_v2 = vld [vmem:[%s12081_s2 + $0x390] ss:$8 sps:$4 sm:$0xff]  }
 0x64b   :  { %v6504_v12 = vmul.f32 %v6503_v29, %v4477_v13  ;;  %v6508_v52 = vmul.f32 %v6507_v34, %v4482_v41  ;;  %v10458_v53 = vadd.f32 %v6220_v46, %v6217_v8  ;;  %v6652_v55 = vmul.f32 %v6651_v15, %v4482_v41  ;;  %v8795_v1 = vld [vmem:[%s12081_s2 + $0x380] ss:$8 sps:$4 sm:$0xff]   ;;  %v8803_v44 = vld [vmem:[%s12081_s2 + $0x3a4] ss:$8 sps:$4 sm:$0xff]   ;;  %v8806_v47 = vld [vmem:[%s12081_s2 + $0x3b4] ss:$8 sps:$4 sm:$0xff]  }
 0x64c   :  { %v10460_v18 = vadd.f32 %v6364_v51, %v6361_v11  ;;  %v6649_v57 = vadd.f32 %v6648_v54, %v10231_v45  ;;  %v2954_v38 = vpack.c.bf16 %v2952_v33, %v2950_v32  ;;  %v8801_v46 = vld [vmem:[%s12081_s2 + $0x3a0] ss:$8 sps:$4 sm:$0xff]   ;;  %v8804_v8 = vld [vmem:[%s12081_s2 + $0x3b0] ss:$8 sps:$4 sm:$0xff]   ;;  %v8809_v51 = vld [vmem:[%s12081_s2 + $0x3c4] ss:$8 sps:$4 sm:$0xff]  }
 0x64d   :  { %v6505_v56 = vadd.f32 %v6504_v12, %v10229_v25  ;;  %v8807_v11 = vld [vmem:[%s12081_s2 + $0x3c0] ss:$8 sps:$4 sm:$0xff]   ;;  %v8812_v12 = vld [vmem:[%s12081_s2 + $0x3d4] ss:$8 sps:$4 sm:$0xff]   ;;  %v8815_v54 = vld [vmem:[%s12081_s2 + $0x3e4] ss:$8 sps:$4 sm:$0xff]  }
 0x64e   :  { %v10466_v20 = vadd.f32 %v6652_v55, %v6649_v57  ;;  %v8813_v55 = vld [vmem:[%s12081_s2 + $0x3e0] ss:$8 sps:$4 sm:$0xff]   ;;  %v8816_v57 = vld [vmem:[%s12081_s2 + $0x3f0] ss:$8 sps:$4 sm:$0xff]   ;;  %v8849_v33 = vld [vmem:[%s12081_s2 + $0x424] ss:$8 sps:$4 sm:$0xff]  }
 0x64f   :  { %v10464_v59 = vadd.f32 %v6508_v52, %v6505_v56  ;;  %v8810_v52 = vld [vmem:[%s12081_s2 + $0x3d0] ss:$8 sps:$4 sm:$0xff]   ;;  %v8818_v56 = vld [vmem:[%s12081_s2 + $0x3f4] ss:$8 sps:$4 sm:$0xff]  }
 0x650   :  { %v8846_v32 = vld [vmem:[%s12082_s3 + $0x418] sm:$0x1f]  }
 0x668   :  { %v2632_v43 = vpop.f32.mrb[20].mxu0 }
 0x669   :  { %v2643_v14 = vadd.f32 %v2642_v60, %v2632_v43  ;;  %v2634_v62 = vpop.f32.mrb[21].mxu0  ;;  %v8824_v43 = vld [vmem:[%s12081_s2 + $0x414] ss:$8 sps:$4 sm:$0x1f]  }
 0x66a   :  { %v2644_v16 = vadd.f32 %v2642_v60, %v2634_v62  ;;  %v2636_v63 = vpop.f32.mrb[22].mxu0  ;;  %v8821_v60 = vld [vmem:[%s12081_s2 + $0x404] ss:$8 sps:$4 sm:$0xff]   ;;  %v3093_v62 = vand.u32 %v8824_v43, %v9393_v58  ;;  %v6371_v43 = vstv %s10653_s18  ;;  %s10884_s18 = sld [smem:[#allocation8 + $0x60b]] }
 0x66b   :  { %v2647_v0 = vmin.f32 %v2643_v14, 0.0  ;;  %v2797_v4 = vadd.f32 %v2796_v61, %v2636_v63  ;;  %v2638_v5 = vpop.f32.mrb[23].mxu0  ;;  %vm2645_vm8 = vcmp.gt.f32.partialorder %v2643_v14, 0.0  ;;  %v2949_v63 = vld [vmem:[#allocation2 + $0xa0] sm:$0xff] }
 0x66c   :  { %v2648_v13 = vmin.f32 %v2644_v16, 0.0  ;;  %v2798_v25 = vadd.f32 %v2796_v61, %v2638_v5  ;;  %vm2646_vm9 = vcmp.gt.f32.partialorder %v2644_v16, 0.0  ;;  %v8819_v61 = vld [vmem:[%s12081_s2 + $0x400] ss:$8 sps:$4 sm:$0xff]   ;;  %v8825_v5 = vld [vmem:[%s12082_s3 + $0x370] sm:$0xff]  }
 0x66d   :  { %v2649_v41 = vmul.f32 1.442695, %v2647_v0  ;;  %v2801_v45 = vmin.f32 %v2797_v4, 0.0  ;;  %vm2799_vm10 = vcmp.gt.f32.partialorder %v2797_v4, 0.0  ;;  %v2951_v0 = vld [vmem:[#allocation2 + $0xb0] sm:$0xff] }
 0x66e   :  { %v2651_v9 = vmul.f32 1.442695, %v2648_v13  ;;  %v2802_v35 = vmin.f32 %v2798_v25, 0.0  ;;  %vm2800_vm11 = vcmp.gt.f32.partialorder %v2798_v25, 0.0  ;;  %v8826_v13 = vld [vmem:[%s12082_s3 + $0x3c8] sm:$0xff]  }
 0x66f   :  { %9037 = vpow2.f32 %v2649_v41  ;;  %v2803_v17 = vmul.f32 1.442695, %v2801_v45  ;;  %v8828_v41 = vld [vmem:[%s12082_s3 + $0x3d0] sm:$0xff]   ;;  %v8829_v45 = vld [vmem:[%s12082_s3 + $0x380] sm:$0xff]  }
 0x670   :  { %9039 = vpow2.f32 %v2651_v9  ;;  %v2805_v39 = vmul.f32 1.442695, %v2802_v35  ;;  %v8830_v9 = vld [vmem:[%s12082_s3 + $0x3d8] sm:$0xff]   ;;  %v8831_v35 = vld [vmem:[%s12082_s3 + $0x388] sm:$0xff]  }
 0x671   :  { %9041 = vpow2.f32 %v2803_v17  ;;  %v8832_v17 = vld [vmem:[%s12082_s3 + $0x3e0] sm:$0xff]  }
 0x672   :  { %9043 = vpow2.f32 %v2805_v39  ;;  %v8833_v39 = vld [vmem:[%s12082_s3 + $0x390] sm:$0xff]  }
 0x679   :  { %v9038_v40 = vpop.eup %9037 }
 0x67a   :  { %v9040_v19 = vpop.eup %9039  ;;  %v7299_v21 = vadd.f32 -1.0, %v9038_v40  ;;  %v8834_v40 = vld [vmem:[%s12082_s3 + $0x3e8] sm:$0xff]  }
 0x67b   :  { %v9042_v22 = vpop.eup %9041  ;;  %v7300_v23 = vadd.f32 -1.0, %v9040_v19  ;;  %v8835_v19 = vld [vmem:[%s12082_s3 + $0x398] sm:$0xff]  }
 0x67c   :  { %v9044_v24 = vpop.eup %9043  ;;  %v2655_v26 = vsel %vm2645_vm8, %v2643_v14, %v7299_v21  ;;  %v7336_v7 = vadd.f32 -1.0, %v9042_v22  ;;  %v8822_v14 = vld [vmem:[%s12081_s2 + $0x410] ss:$8 sps:$4 sm:$0x1f]   ;;  %v8837_v22 = vld [vmem:[%s12082_s3 + $0x3a0] sm:$0xff]  }
 0x67d   :  { %v2656_v27 = vsel %vm2646_vm9, %v2644_v16, %v7300_v23  ;;  %v7337_v28 = vadd.f32 -1.0, %v9044_v24  ;;  %v2657_v34 = vpack.c.bf16 %v2655_v26, %v2655_v26  ;;  %v3090_v16 = vand.u32 %v8822_v14, %v9393_v58  ;;  %v8836_v21 = vld [vmem:[%s12082_s3 + $0x3f0] sm:$0xff]   ;;  %v8838_v23 = vld [vmem:[%s12082_s3 + $0x3f8] sm:$0xff]   ;;  %v8839_v24 = vld [vmem:[%s12082_s3 + $0x3a8] sm:$0xff]  }
 0x67e   :  { %v2658_v29 = vpack.c.bf16 %v2656_v27, %v2656_v27  ;;  %v2809_v30 = vsel %vm2799_vm10, %v2797_v4, %v7336_v7  ;;  %v2953_v4 = vpack.c.bf16 %v2951_v0, %v2949_v63  ;;  %v8840_v26 = vld [vmem:[%s12082_s3 + $0x400] sm:$0xff]   ;;  %v8841_v7 = vld [vmem:[%s12082_s3 + $0x3b0] sm:$0xff]   ;;  %v8842_v27 = vld [vmem:[%s12082_s3 + $0x408] sm:$0xff]   ;;  %vm9163_vm10 = vmmov 0  }
 0x67f   :  { %v2810_v36 = vsel %vm2800_vm11, %v2798_v25, %v7337_v28  ;;  %v2811_v15 = vpack.c.bf16 %v2809_v30, %v2809_v30  ;;  %v8827_v25 = vld [vmem:[%s12082_s3 + $0x378] sm:$0xff]   ;;  %v8845_v30 = vld [vmem:[%s12082_s3 + $0x3c0] sm:$0x1f]  }
 0x680   :  { %v2812_v50 = vpack.c.bf16 %v2810_v36, %v2810_v36  ;;  %7334 = vmatprep.mubr.msk.bf16.mxu1 %vm759_vm7, %v2658_v29  ;;  %v8843_v28 = vld [vmem:[%s12082_s3 + $0x3b8] sm:$0xff]   ;;  %v8844_v29 = vld [vmem:[%s12082_s3 + $0x410] sm:$0xff]  }
 0x681   :  { %2786 = vmatmul.mubr.bf16.vlgmr.msra.gmra.mrb[60].mxu1 %v2657_v34  ;;  %v3402_v34 = vsel %vm602_vm2, %v8846_v32, 0 }
 0x682   :  { %3096 = vmatpush1.bf16.msra.mxu1 %v8792_v31  ;;  %7371 = vmatprep.mubr.msk.bf16.mxu0 %vm759_vm7, %v2812_v50  ;;  %v3248_v31 = vsel %vm602_vm2, %v8845_v30, 0 }
 0x683   :  { %7416 = vmatprep.mubr.msk.bf16.mxu1 %vm431_vm3, %v2954_v38  ;;  %2940 = vmatmul.mubr.bf16.vlgmr.msra.gmra.mrb[24].mxu0 %v2811_v15 }
 0x684   :  { %3097 = vmatprep.subr.bf16.mxu1 %v8797_v37  ;;  %3251 = vmatpush1.bf16.msra.mxu0 %v8825_v5  ;;  %v6515_v5 = vstv %s10659_s20  ;;  %s10890_s20 = sld [smem:[#allocation8 + $0x70a]] }
 0x685   :  { %3252 = vmatprep.subr.bf16.mxu0 %v9161_v3 }
 0x686   :  { %3098 = vmatpush1.bf16.msra.mxu1 %v8795_v1 }
 0x687   :  { %3099 = vmatprep.subr.bf16.mxu1 %v8800_v42 }
 0x688   :  { %3253 = vmatpush1.bf16.msra.mxu0 %v8827_v25 }
 0x689   :  { %3254 = vmatprep.subr.bf16.mxu0 %v9161_v3 }
 0x68a   :  { %3100 = vmatpush1.bf16.msra.mxu1 %v8798_v2 }
 0x68b   :  { %3101 = vmatprep.subr.bf16.mxu1 %v8803_v44 }
 0x68c   :  { %3255 = vmatpush1.bf16.msra.mxu0 %v8829_v45  ;;  %v6659_v45 = vstv %s10661_s21  ;;  %s10892_s21 = sld [smem:[#allocation8 + $0x78a]] }
 0x68d   :  { %3256 = vmatprep.subr.bf16.mxu0 %v9161_v3 }
 0x68e   :  { %3102 = vmatpush1.bf16.msra.mxu1 %v8801_v46 }
 0x68f   :  { %3103 = vmatprep.subr.bf16.mxu1 %v8806_v47  ;;  %v5647_v47 = vstv %s10630_s30  ;;  %s11096_s30 = sld [smem:[#allocation8 + $0x40c]] }
 0x690   :  { %3257 = vmatpush1.bf16.msra.mxu0 %v8831_v35 }
 0x691   :  { %3258 = vmatprep.subr.bf16.mxu0 %v9161_v3 }
 0x692   :  { %3104 = vmatpush1.bf16.msra.mxu1 %v8804_v8  ;;  %v5651_v8 = vstv %s10632_s10  ;;  %s11098_s10 = sld [smem:[#allocation8 + $0x40d]] }
 0x693   :  { %3105 = vmatprep.subr.bf16.mxu1 %v8809_v51  ;;  %v5791_v51 = vstv %s10635_s11  ;;  %s10865_s11 = sld [smem:[#allocation8 + $0x40a]] }
 0x694   :  { %3259 = vmatpush1.bf16.msra.mxu0 %v8833_v39 }
 0x695   :  { %3260 = vmatprep.subr.bf16.mxu0 %v9161_v3 }
 0x696   :  { %3106 = vmatpush1.bf16.msra.mxu1 %v8807_v11  ;;  %v5795_v11 = vstv %s10637_s12  ;;  %s10867_s12 = sld [smem:[#allocation8 + $0x40b]] }
 0x697   :  { %3107 = vmatprep.subr.bf16.mxu1 %v8812_v12  ;;  %v5935_v12 = vstv %s10639_s13  ;;  %s10870_s13 = sld [smem:[#allocation8 + $0x48a]] }
 0x698   :  { %3261 = vmatpush1.bf16.msra.mxu0 %v8835_v19 }
 0x699   :  { %3262 = vmatprep.subr.bf16.mxu0 %v9161_v3 }
 0x69a   :  { %3108 = vmatpush1.bf16.msra.mxu1 %v8810_v52  ;;  %v5939_v52 = vstv %s10641_s14  ;;  %s10872_s14 = sld [smem:[#allocation8 + $0x48b]] }
 0x69b   :  { %3109 = vmatprep.subr.bf16.mxu1 %v8815_v54  ;;  %v6079_v54 = vstv %s10643_s15  ;;  %s10874_s15 = sld [smem:[#allocation8 + $0x50a]] }
 0x69c   :  { %3263 = vmatpush1.bf16.msra.mxu0 %v8837_v22 }
 0x69d   :  { %3264 = vmatprep.subr.bf16.mxu0 %v9161_v3 }
 0x69e   :  { %3110 = vmatpush1.bf16.msra.mxu1 %v8813_v55  ;;  %v6083_v55 = vstv %s10645_s16  ;;  %s10876_s16 = sld [smem:[#allocation8 + $0x50b]] }
 0x69f   :  { %3111 = vmatprep.subr.bf16.mxu1 %v8818_v56  ;;  %v6223_v56 = vstv %s10647_s17  ;;  %s10878_s17 = sld [smem:[#allocation8 + $0x58a]] }
 0x6a0   :  { %3265 = vmatpush1.bf16.msra.mxu0 %v8839_v24 }
 0x6a1   :  { %3266 = vmatprep.subr.bf16.mxu0 %v9161_v3 }
 0x6a2   :  { %3112 = vmatpush1.bf16.msra.mxu1 %v8816_v57  ;;  %v6227_v57 = vstv %s10649_s7  ;;  %s10880_s7 = sld [smem:[#allocation8 + $0x58b]] }
 0x6a3   :  { %3113 = vmatprep.subr.bf16.mxu1 %v8821_v60  ;;  %v6367_v60 = vstv %s10651_s6  ;;  %s10882_s6 = sld [smem:[#allocation8 + $0x60a]] }
 0x6a4   :  { %3267 = vmatpush1.bf16.msra.mxu0 %v8841_v7 }
 0x6a5   :  { %3268 = vmatprep.subr.bf16.mxu0 %v9161_v3 }
 0x6a6   :  { %3114 = vmatpush1.bf16.msra.mxu1 %v8819_v61 }
 0x6a7   :  { %3115 = vmatprep.subr.bf16.mxu1 %v3093_v62  ;;  %v6511_v62 = vstv %s10655_s1  ;;  %s10886_s1 = sld [smem:[#allocation8 + $0x68a]] }
 0x6a8   :  { %3269 = vmatpush1.bf16.msra.mxu0 %v8843_v28 }
 0x6a9   :  { %3270 = vmatprep.subr.bf16.mxu0 %v9161_v3 }
 0x6aa   :  { %3116 = vmatpush1.bf16.msra.mxu1 %v3090_v16  ;;  %v6655_v16 = vstv %s10657_s19  ;;  %s10888_s19 = sld [smem:[#allocation8 + $0x68b]] }
 0x6ab   :  { %3404 = vmatprep.subr.bf16.mxu1 %v9161_v3 }
 0x6ac   :  { %3271 = vmatpush1.bf16.msra.mxu0 %v3248_v31 }
 0x6ad   :  { %3128 = vmatmul.mubr.bf16.vlgmr.msra.gmra.mrb[64].mxu1 %v2953_v4  ;;  %3592 = vmatprep.subr.bf16.mxu0 %v8849_v33 }
 0x6ae   :  { %3405 = vmatpush1.bf16.msra.mxu1 %v8826_v13 }
 0x6af   :  { %3406 = vmatprep.subr.bf16.mxu1 %v9161_v3 }
 0x6b2   :  { %3407 = vmatpush1.bf16.msra.mxu1 %v8828_v41 }
 0x6b3   :  { %3408 = vmatprep.subr.bf16.mxu1 %v9161_v3 }
 0x6b6   :  { %3409 = vmatpush1.bf16.msra.mxu1 %v8830_v9 }
 0x6b7   :  { %3410 = vmatprep.subr.bf16.mxu1 %v9161_v3 }
 0x6ba   :  { %3411 = vmatpush1.bf16.msra.mxu1 %v8832_v17 }
 0x6bb   :  { %3412 = vmatprep.subr.bf16.mxu1 %v9161_v3 }
 0x6be   :  { %3413 = vmatpush1.bf16.msra.mxu1 %v8834_v40 }
 0x6bf   :  { %3414 = vmatprep.subr.bf16.mxu1 %v9161_v3 }
 0x6c2   :  { %3415 = vmatpush1.bf16.msra.mxu1 %v8836_v21 }
 0x6c3   :  { %3416 = vmatprep.subr.bf16.mxu1 %v9161_v3 }
 0x6c6   :  { %3417 = vmatpush1.bf16.msra.mxu1 %v8838_v23 }
 0x6c7   :  { %3418 = vmatprep.subr.bf16.mxu1 %v9161_v3 }
 0x6ca   :  { %3419 = vmatpush1.bf16.msra.mxu1 %v8840_v26 }
 0x6cb   :  { %3420 = vmatprep.subr.bf16.mxu1 %v9161_v3 }
 0x6ce   :  { %3421 = vmatpush1.bf16.msra.mxu1 %v8842_v27 }
 0x6cf   :  { %3422 = vmatprep.subr.bf16.mxu1 %v9161_v3 }
 0x6d2   :  { %3423 = vmatpush1.bf16.msra.mxu1 %v8844_v29 }
 0x6d3   :  { %3424 = vmatprep.subr.bf16.mxu1 %v9161_v3 }
 0x6d6   :  { %3425 = vmatpush1.bf16.msra.mxu1 %v3402_v34  ;;  %v3139_v34 = vstv %s7417_s22  ;;  %s10894_s22 = sld [smem:[#allocation8 + $0x70b]] }
 0x6d7   :  { %3747 = vmatprep.subr.bf16.mxu1 %v9161_v3 }
 0x754   :  { %v2787_v36 = vpop.f32.mrb[60].mxu1 }
 0x755   :  { %2794 = vst.msk [vmem:[#allocation3 + $0x40] sm:$0xff] %vm759_vm7, %v2787_v36  ;;  %v2789_v50 = vpop.f32.mrb[61].mxu1  ;;  %v3293_v36 = vstv %s7454_s23  ;;  %s10896_s23 = sld [smem:[#allocation8 + $0x78b]] }
 0x756   :  { %v2790_v37 = vpop.f32.mrb[62].mxu1  ;;  %v2941_v15 = vpop.f32.mrb[24].mxu0 }
 0x757   :  { %2948 = vst.msk [vmem:[#allocation3 + $0x48] sm:$0xff] %vm759_vm7, %v2941_v15  ;;  %v2791_v38 = vpop.f32.mrb[63].mxu1  ;;  %v2943_v1 = vpop.f32.mrb[25].mxu0 }
 0x758   :  { %v2944_v42 = vpop.f32.mrb[26].mxu0 }
 0x759   :  { %v2945_v2 = vpop.f32.mrb[27].mxu0 }
 0x75c   :  { %v4487_v44 = vld [vmem:[#allocation3 + $0x40] sm:$0xff] }
 0x75d   :  { %v5648_v61 = vmul.f32 %v5647_v47, %v4487_v44  ;;  %v5792_v63 = vmul.f32 %v5791_v51, %v4487_v44  ;;  %v5936_v4 = vmul.f32 %v5935_v12, %v4487_v44  ;;  %v6080_v41 = vmul.f32 %v6079_v54, %v4487_v44 }
 0x75e   :  { %v4492_v46 = vld [vmem:[#allocation3 + $0x48] sm:$0xff]  ;;  %v6224_v39 = vmul.f32 %v6223_v56, %v4487_v44  ;;  %v6368_v22 = vmul.f32 %v6367_v60, %v4487_v44  ;;  %v6656_v29 = vmul.f32 %v6655_v16, %v4487_v44 }
 0x75f   :  { %v5652_v14 = vmul.f32 %v5651_v8, %v4492_v46  ;;  %v5796_v0 = vmul.f32 %v5795_v11, %v4492_v46  ;;  %v5649_v13 = vadd.f32 %v5648_v61, %v10447_v6  ;;  %v5940_v25 = vmul.f32 %v5939_v52, %v4492_v46 }
 0x760   :  { %v5793_v9 = vadd.f32 %v5792_v63, %v10450_v48  ;;  %v5937_v35 = vadd.f32 %v5936_v4, %v10452_v49  ;;  %v6084_v17 = vmul.f32 %v6083_v55, %v4492_v46  ;;  %v6081_v19 = vadd.f32 %v6080_v41, %v10455_v10  ;;  %v8847_v63 = vld [vmem:[%s12081_s2 + $0x420] ss:$8 sps:$4 sm:$0xff]   ;;  %v3449_v4 = vld [vmem:[#allocation2 + $0xd8] sm:$0xff] }
 0x761   :  { %v10682_v40 = vadd.f32 %v5652_v14, %v5649_v13  ;;  %v6228_v21 = vmul.f32 %v6227_v57, %v4492_v46  ;;  %v6225_v6 = vadd.f32 %v6224_v39, %v10458_v53  ;;  %v6372_v26 = vmul.f32 %v6371_v43, %v4492_v46  ;;  %v8852_v41 = vld [vmem:[%s12081_s2 + $0x434] ss:$8 sps:$4 sm:$0xff]   ;;  %v8853_v39 = vld [vmem:[%s12081_s2 + $0x440] ss:$8 sps:$4 sm:$0xff]  }
 0x762   :  { %v10685_v23 = vadd.f32 %v5796_v0, %v5793_v9  ;;  %v10687_v24 = vadd.f32 %v5940_v25, %v5937_v35  ;;  %v10690_v7 = vadd.f32 %v6084_v17, %v6081_v19  ;;  %v6369_v48 = vadd.f32 %v6368_v22, %v10460_v18  ;;  %v3447_v0 = vld [vmem:[#allocation2 + $0xc8] sm:$0xff]  ;;  %v8850_v35 = vld [vmem:[%s12081_s2 + $0x430] ss:$8 sps:$4 sm:$0xff]   ;;  %v8858_v19 = vld [vmem:[%s12081_s2 + $0x454] ss:$8 sps:$4 sm:$0xff]  }
 0x763   :  { %v6512_v49 = vmul.f32 %v6511_v62, %v4487_v44  ;;  %v6516_v27 = vmul.f32 %v6515_v5, %v4492_v46  ;;  %v10693_v28 = vadd.f32 %v6228_v21, %v6225_v6  ;;  %v6660_v30 = vmul.f32 %v6659_v45, %v4492_v46  ;;  %v8855_v17 = vld [vmem:[%s12081_s2 + $0x444] ss:$8 sps:$4 sm:$0xff]   ;;  %v8856_v21 = vld [vmem:[%s12081_s2 + $0x450] ss:$8 sps:$4 sm:$0xff]   ;;  %v8859_v6 = vld [vmem:[%s12081_s2 + $0x460] ss:$8 sps:$4 sm:$0xff]  }
 0x764   :  { %v10695_v10 = vadd.f32 %v6372_v26, %v6369_v48  ;;  %v6657_v32 = vadd.f32 %v6656_v29, %v10466_v20  ;;  %v3451_v9 = vpack.c.bf16 %v3449_v4, %v3447_v0  ;;  %v8861_v22 = vld [vmem:[%s12081_s2 + $0x464] ss:$8 sps:$4 sm:$0xff]   ;;  %v8864_v26 = vld [vmem:[%s12081_s2 + $0x474] ss:$8 sps:$4 sm:$0xff]   ;;  %v8862_v48 = vld [vmem:[%s12081_s2 + $0x470] ss:$8 sps:$4 sm:$0xff]  }
 0x765   :  { %v6513_v31 = vadd.f32 %v6512_v49, %v10464_v59  ;;  %v8867_v49 = vld [vmem:[%s12081_s2 + $0x484] ss:$8 sps:$4 sm:$0xff]   ;;  %v8870_v29 = vld [vmem:[%s12081_s2 + $0x494] ss:$8 sps:$4 sm:$0xff]  }
 0x766   :  { %v10701_v53 = vadd.f32 %v6660_v30, %v6657_v32  ;;  %v8868_v30 = vld [vmem:[%s12081_s2 + $0x490] ss:$8 sps:$4 sm:$0xff]   ;;  %v8871_v32 = vld [vmem:[%s12081_s2 + $0x4a0] ss:$8 sps:$4 sm:$0xff]   ;;  %v8904_v4 = vld [vmem:[%s12081_s2 + $0x4d4] ss:$8 sps:$4 sm:$0xff]  }
 0x767   :  { %v10699_v33 = vadd.f32 %v6516_v27, %v6513_v31  ;;  %v8865_v27 = vld [vmem:[%s12081_s2 + $0x480] ss:$8 sps:$4 sm:$0xff]   ;;  %v8873_v31 = vld [vmem:[%s12081_s2 + $0x4a4] ss:$8 sps:$4 sm:$0xff]  }
 0x768   :  { %v8901_v0 = vld [vmem:[%s12082_s3 + $0x4c8] sm:$0x1f]  }
 0x780   :  { %v3129_v18 = vpop.f32.mrb[64].mxu1 }
 0x781   :  { %v3140_v50 = vadd.f32 %v3139_v34, %v3129_v18  ;;  %v3131_v37 = vpop.f32.mrb[65].mxu1  ;;  %v8879_v18 = vld [vmem:[%s12081_s2 + $0x4c4] ss:$8 sps:$4 sm:$0x1f]  }
 0x782   :  { %v3141_v15 = vadd.f32 %v3139_v34, %v3131_v37  ;;  %v3133_v38 = vpop.f32.mrb[66].mxu1  ;;  %v8876_v34 = vld [vmem:[%s12081_s2 + $0x4b4] ss:$8 sps:$4 sm:$0xff]   ;;  %v3590_v37 = vand.u32 %v8879_v18, %v9393_v58  ;;  %v6379_v18 = vstv %s10888_s19  ;;  %s11127_s19 = sld [smem:[#allocation8 + $0x78d]] }
 0x783   :  { %v3144_v1 = vmin.f32 %v3140_v50, 0.0  ;;  %v3294_v42 = vadd.f32 %v3293_v36, %v3133_v38  ;;  %v3135_v2 = vpop.f32.mrb[67].mxu1  ;;  %vm3142_vm12 = vcmp.gt.f32.partialorder %v3140_v50, 0.0  ;;  %v3446_v38 = vld [vmem:[#allocation2 + $0xc0] sm:$0xff] }
 0x784   :  { %v3145_v44 = vmin.f32 %v3141_v15, 0.0  ;;  %v3295_v59 = vadd.f32 %v3293_v36, %v3135_v2  ;;  %vm3143_vm13 = vcmp.gt.f32.partialorder %v3141_v15, 0.0  ;;  %v8874_v36 = vld [vmem:[%s12081_s2 + $0x4b0] ss:$8 sps:$4 sm:$0xff]   ;;  %v8880_v2 = vld [vmem:[%s12082_s3 + $0x420] sm:$0xff]  }
 0x785   :  { %v3146_v46 = vmul.f32 1.442695, %v3144_v1  ;;  %v3298_v20 = vmin.f32 %v3294_v42, 0.0  ;;  %vm3296_vm14 = vcmp.gt.f32.partialorder %v3294_v42, 0.0  ;;  %v3448_v1 = vld [vmem:[#allocation2 + $0xd0] sm:$0xff] }
 0x786   :  { %v3148_v47 = vmul.f32 1.442695, %v3145_v44  ;;  %v3299_v8 = vmin.f32 %v3295_v59, 0.0  ;;  %vm3297_vm15 = vcmp.gt.f32.partialorder %v3295_v59, 0.0  ;;  %v8881_v44 = vld [vmem:[%s12082_s3 + $0x478] sm:$0xff]  }
 0x787   :  { %9045 = vpow2.f32 %v3146_v46  ;;  %v3300_v51 = vmul.f32 1.442695, %v3298_v20  ;;  %v8883_v46 = vld [vmem:[%s12082_s3 + $0x480] sm:$0xff]   ;;  %v8884_v20 = vld [vmem:[%s12082_s3 + $0x430] sm:$0xff]  }
 0x788   :  { %9047 = vpow2.f32 %v3148_v47  ;;  %v3302_v11 = vmul.f32 1.442695, %v3299_v8  ;;  %v8885_v47 = vld [vmem:[%s12082_s3 + $0x488] sm:$0xff]   ;;  %v8886_v8 = vld [vmem:[%s12082_s3 + $0x438] sm:$0xff]  }
 0x789   :  { %9049 = vpow2.f32 %v3300_v51  ;;  %v8887_v51 = vld [vmem:[%s12082_s3 + $0x490] sm:$0xff]  }
 0x78a   :  { %9051 = vpow2.f32 %v3302_v11  ;;  %v8888_v11 = vld [vmem:[%s12082_s3 + $0x440] sm:$0xff]  }
 0x791   :  { %v9046_v12 = vpop.eup %9045 }
 0x792   :  { %v9048_v52 = vpop.eup %9047  ;;  %v7418_v54 = vadd.f32 -1.0, %v9046_v12  ;;  %v8889_v12 = vld [vmem:[%s12082_s3 + $0x498] sm:$0xff]  }
 0x793   :  { %v9050_v55 = vpop.eup %9049  ;;  %v7419_v56 = vadd.f32 -1.0, %v9048_v52  ;;  %v8890_v52 = vld [vmem:[%s12082_s3 + $0x448] sm:$0xff]  }
 0x794   :  { %v9052_v57 = vpop.eup %9051  ;;  %v3152_v60 = vsel %vm3142_vm12, %v3140_v50, %v7418_v54  ;;  %v7455_v43 = vadd.f32 -1.0, %v9050_v55  ;;  %v8877_v50 = vld [vmem:[%s12081_s2 + $0x4c0] ss:$8 sps:$4 sm:$0x1f]   ;;  %v8892_v55 = vld [vmem:[%s12082_s3 + $0x450] sm:$0xff]  }
 0x795   :  { %v3153_v61 = vsel %vm3143_vm13, %v3141_v15, %v7419_v56  ;;  %v7456_v14 = vadd.f32 -1.0, %v9052_v57  ;;  %v3154_v5 = vpack.c.bf16 %v3152_v60, %v3152_v60  ;;  %v3587_v15 = vand.u32 %v8877_v50, %v9393_v58  ;;  %v8891_v54 = vld [vmem:[%s12082_s3 + $0x4a0] sm:$0xff]   ;;  %v8893_v56 = vld [vmem:[%s12082_s3 + $0x4a8] sm:$0xff]   ;;  %v8894_v57 = vld [vmem:[%s12082_s3 + $0x458] sm:$0xff]  }
 0x796   :  { %v3155_v62 = vpack.c.bf16 %v3153_v61, %v3153_v61  ;;  %v3306_v16 = vsel %vm3296_vm14, %v3294_v42, %v7455_v43  ;;  %v3450_v42 = vpack.c.bf16 %v3448_v1, %v3446_v38  ;;  %v8895_v60 = vld [vmem:[%s12082_s3 + $0x4b0] sm:$0xff]   ;;  %v8896_v43 = vld [vmem:[%s12082_s3 + $0x460] sm:$0xff]   ;;  %v8897_v61 = vld [vmem:[%s12082_s3 + $0x4b8] sm:$0xff]  }
 0x797   :  { %v3307_v13 = vsel %vm3297_vm15, %v3295_v59, %v7456_v14  ;;  %v3308_v45 = vpack.c.bf16 %v3306_v16, %v3306_v16  ;;  %v8882_v59 = vld [vmem:[%s12082_s3 + $0x428] sm:$0xff]   ;;  %v8900_v16 = vld [vmem:[%s12082_s3 + $0x470] sm:$0x1f]  }
 0x798   :  { %v3309_v25 = vpack.c.bf16 %v3307_v13, %v3307_v13  ;;  %7453 = vmatprep.mubr.msk.bf16.mxu0 %vm759_vm7, %v3155_v62  ;;  %v8898_v14 = vld [vmem:[%s12082_s3 + $0x468] sm:$0xff]   ;;  %v8899_v62 = vld [vmem:[%s12082_s3 + $0x4c0] sm:$0xff]  }
 0x799   :  { %3283 = vmatmul.mubr.bf16.vlgmr.msra.gmra.mrb[28].mxu0 %v3154_v5  ;;  %v3899_v5 = vsel %vm602_vm2, %v8901_v0, 0 }
 0x79a   :  { %3593 = vmatpush1.bf16.msra.mxu0 %v8847_v63  ;;  %7490 = vmatprep.mubr.msk.bf16.mxu1 %vm759_vm7, %v3309_v25  ;;  %v3745_v63 = vsel %vm602_vm2, %v8900_v16, 0 }
 0x79b   :  { %7535 = vmatprep.mubr.msk.bf16.mxu0 %vm431_vm3, %v3451_v9  ;;  %3437 = vmatmul.mubr.bf16.vlgmr.msra.gmra.mrb[68].mxu1 %v3308_v45 }
 0x79c   :  { %3594 = vmatprep.subr.bf16.mxu0 %v8852_v41  ;;  %3748 = vmatpush1.bf16.msra.mxu1 %v8880_v2  ;;  %v6523_v2 = vstv %s10894_s22  ;;  %s11245_s22 = sld [smem:[#allocation8 + $0x2]] }
 0x79d   :  { %3749 = vmatprep.subr.bf16.mxu1 %v9161_v3 }
 0x79e   :  { %3595 = vmatpush1.bf16.msra.mxu0 %v8850_v35 }
 0x79f   :  { %3596 = vmatprep.subr.bf16.mxu0 %v8855_v17 }
 0x7a0   :  { %3750 = vmatpush1.bf16.msra.mxu1 %v8882_v59 }
 0x7a1   :  { %3751 = vmatprep.subr.bf16.mxu1 %v9161_v3 }
 0x7a2   :  { %3597 = vmatpush1.bf16.msra.mxu0 %v8853_v39 }
 0x7a3   :  { %3598 = vmatprep.subr.bf16.mxu0 %v8858_v19 }
 0x7a4   :  { %3752 = vmatpush1.bf16.msra.mxu1 %v8884_v20  ;;  %v6667_v20 = vstv %s10896_s23  ;;  %s11248_s23 = sld [smem:[#allocation8 + $0x102]] }
 0x7a5   :  { %3753 = vmatprep.subr.bf16.mxu1 %v9161_v3 }
 0x7a6   :  { %3599 = vmatpush1.bf16.msra.mxu0 %v8856_v21 }
 0x7a7   :  { %3600 = vmatprep.subr.bf16.mxu0 %v8861_v22  ;;  %v5655_v22 = vstv %s10865_s11  ;;  %s11101_s11 = sld [smem:[#allocation8 + $0x48c]] }
 0x7a8   :  { %3754 = vmatpush1.bf16.msra.mxu1 %v8886_v8 }
 0x7a9   :  { %3755 = vmatprep.subr.bf16.mxu1 %v9161_v3 }
 0x7aa   :  { %3601 = vmatpush1.bf16.msra.mxu0 %v8859_v6  ;;  %v5659_v6 = vstv %s10867_s12  ;;  %s11105_s12 = sld [smem:[#allocation8 + $0x50c]] }
 0x7ab   :  { %3602 = vmatprep.subr.bf16.mxu0 %v8864_v26  ;;  %v5799_v26 = vstv %s10870_s13  ;;  %s11107_s13 = sld [smem:[#allocation8 + $0x50d]] }
 0x7ac   :  { %3756 = vmatpush1.bf16.msra.mxu1 %v8888_v11 }
 0x7ad   :  { %3757 = vmatprep.subr.bf16.mxu1 %v9161_v3 }
 0x7ae   :  { %3603 = vmatpush1.bf16.msra.mxu0 %v8862_v48  ;;  %v5803_v48 = vstv %s10872_s14  ;;  %s11109_s14 = sld [smem:[#allocation8 + $0x58c]] }
 0x7af   :  { %3604 = vmatprep.subr.bf16.mxu0 %v8867_v49  ;;  %v5943_v49 = vstv %s10874_s15  ;;  %s11111_s15 = sld [smem:[#allocation8 + $0x58d]] }
 0x7b0   :  { %3758 = vmatpush1.bf16.msra.mxu1 %v8890_v52 }
 0x7b1   :  { %3759 = vmatprep.subr.bf16.mxu1 %v9161_v3 }
 0x7b2   :  { %3605 = vmatpush1.bf16.msra.mxu0 %v8865_v27  ;;  %v5947_v27 = vstv %s10876_s16  ;;  %s11113_s16 = sld [smem:[#allocation8 + $0x60c]] }
 0x7b3   :  { %3606 = vmatprep.subr.bf16.mxu0 %v8870_v29  ;;  %v6087_v29 = vstv %s10878_s17  ;;  %s11115_s17 = sld [smem:[#allocation8 + $0x60d]] }
 0x7b4   :  { %3760 = vmatpush1.bf16.msra.mxu1 %v8892_v55 }
 0x7b5   :  { %3761 = vmatprep.subr.bf16.mxu1 %v9161_v3 }
 0x7b6   :  { %3607 = vmatpush1.bf16.msra.mxu0 %v8868_v30  ;;  %v6091_v30 = vstv %s10880_s7  ;;  %s11117_s7 = sld [smem:[#allocation8 + $0x68c]] }
 0x7b7   :  { %3608 = vmatprep.subr.bf16.mxu0 %v8873_v31  ;;  %v6231_v31 = vstv %s10882_s6  ;;  %s11119_s6 = sld [smem:[#allocation8 + $0x68d]] }
 0x7b8   :  { %3762 = vmatpush1.bf16.msra.mxu1 %v8894_v57 }
 0x7b9   :  { %3763 = vmatprep.subr.bf16.mxu1 %v9161_v3 }
 0x7ba   :  { %3609 = vmatpush1.bf16.msra.mxu0 %v8871_v32  ;;  %v6235_v32 = vstv %s10884_s18  ;;  %s11121_s18 = sld [smem:[#allocation8 + $0x70c]] }
 0x7bb   :  { %3610 = vmatprep.subr.bf16.mxu0 %v8876_v34  ;;  %v6375_v34 = vstv %s10886_s1  ;;  %s11123_s1 = sld [smem:[#allocation8 + $0x78c]] }
 0x7bc   :  { %3764 = vmatpush1.bf16.msra.mxu1 %v8896_v43 }
 0x7bd   :  { %3765 = vmatprep.subr.bf16.mxu1 %v9161_v3 }
 0x7be   :  { %3611 = vmatpush1.bf16.msra.mxu0 %v8874_v36 }
 0x7bf   :  { %3612 = vmatprep.subr.bf16.mxu0 %v3590_v37  ;;  %v6519_v37 = vstv %s10890_s20  ;;  %s7655_s20 = sld [smem:[#allocation4 + $0xe]] }
 0x7c0   :  { %3766 = vmatpush1.bf16.msra.mxu1 %v8898_v14 }
 0x7c1   :  { %3767 = vmatprep.subr.bf16.mxu1 %v9161_v3 }
 0x7c2   :  { %3613 = vmatpush1.bf16.msra.mxu0 %v3587_v15  ;;  %v6663_v15 = vstv %s10892_s21  ;;  %s7692_s21 = sld [smem:[#allocation4 + $0xf]] }
 0x7c3   :  { %3901 = vmatprep.subr.bf16.mxu0 %v9161_v3 }
 0x7c4   :  { %3768 = vmatpush1.bf16.msra.mxu1 %v3745_v63 }
 0x7c5   :  { %3625 = vmatmul.mubr.bf16.vlgmr.msra.gmra.mrb[32].mxu0 %v3450_v42  ;;  %4089 = vmatprep.subr.bf16.mxu1 %v8904_v4 }
 0x7c6   :  { %3902 = vmatpush1.bf16.msra.mxu0 %v8881_v44 }
 0x7c7   :  { %3903 = vmatprep.subr.bf16.mxu0 %v9161_v3 }
 0x7ca   :  { %3904 = vmatpush1.bf16.msra.mxu0 %v8883_v46 }
 0x7cb   :  { %3905 = vmatprep.subr.bf16.mxu0 %v9161_v3 }
 0x7ce   :  { %3906 = vmatpush1.bf16.msra.mxu0 %v8885_v47 }
 0x7cf   :  { %3907 = vmatprep.subr.bf16.mxu0 %v9161_v3 }
 0x7d2   :  { %3908 = vmatpush1.bf16.msra.mxu0 %v8887_v51 }
 0x7d3   :  { %3909 = vmatprep.subr.bf16.mxu0 %v9161_v3 }
 0x7d6   :  { %3910 = vmatpush1.bf16.msra.mxu0 %v8889_v12 }
 0x7d7   :  { %3911 = vmatprep.subr.bf16.mxu0 %v9161_v3 }
 0x7da   :  { %3912 = vmatpush1.bf16.msra.mxu0 %v8891_v54 }
 0x7db   :  { %3913 = vmatprep.subr.bf16.mxu0 %v9161_v3 }
 0x7de   :  { %3914 = vmatpush1.bf16.msra.mxu0 %v8893_v56 }
 0x7df   :  { %3915 = vmatprep.subr.bf16.mxu0 %v9161_v3 }
 0x7e2   :  { %3916 = vmatpush1.bf16.msra.mxu0 %v8895_v60 }
 0x7e3   :  { %3917 = vmatprep.subr.bf16.mxu0 %v9161_v3 }
 0x7e6   :  { %3918 = vmatpush1.bf16.msra.mxu0 %v8897_v61 }
 0x7e7   :  { %3919 = vmatprep.subr.bf16.mxu0 %v9161_v3 }
 0x7ea   :  { %3920 = vmatpush1.bf16.msra.mxu0 %v8899_v62 }
 0x7eb   :  { %3921 = vmatprep.subr.bf16.mxu0 %v9161_v3 }
 0x7ee   :  { %3922 = vmatpush1.bf16.msra.mxu0 %v3899_v5  ;;  %v3636_v5 = vstv %s7536_s24  ;;  %s11250_s24 = sld [smem:[#allocation8 + $0x82]] }
 0x7ef   :  { %4244 = vmatprep.subr.bf16.mxu0 %v9161_v3 }
 0x86c   :  { %v3284_v13 = vpop.f32.mrb[28].mxu0 }
 0x86d   :  { %3291 = vst.msk [vmem:[#allocation3 + $0x50] sm:$0xff] %vm759_vm7, %v3284_v13  ;;  %v3286_v25 = vpop.f32.mrb[29].mxu0  ;;  %v3790_v13 = vstv %s7573_s25  ;;  %s11256_s25 = sld [smem:[#allocation8 + $0x182]] }
 0x86e   :  { %v3287_v41 = vpop.f32.mrb[30].mxu0  ;;  %v3438_v45 = vpop.f32.mrb[68].mxu1 }
 0x86f   :  { %3445 = vst.msk [vmem:[#allocation3 + $0x58] sm:$0xff] %vm759_vm7, %v3438_v45  ;;  %v3288_v9 = vpop.f32.mrb[31].mxu0  ;;  %v3440_v35 = vpop.f32.mrb[69].mxu1 }
 0x870   :  { %v3441_v17 = vpop.f32.mrb[70].mxu1 }
 0x871   :  { %v3442_v39 = vpop.f32.mrb[71].mxu1 }
 0x874   :  { %v4497_v19 = vld [vmem:[#allocation3 + $0x50] sm:$0xff] }
 0x875   :  { %v5656_v36 = vmul.f32 %v5655_v22, %v4497_v19  ;;  %v5800_v38 = vmul.f32 %v5799_v26, %v4497_v19  ;;  %v5944_v42 = vmul.f32 %v5943_v49, %v4497_v19  ;;  %v6088_v46 = vmul.f32 %v6087_v29, %v4497_v19 }
 0x876   :  { %v4502_v21 = vld [vmem:[#allocation3 + $0x58] sm:$0xff]  ;;  %v6232_v11 = vmul.f32 %v6231_v31, %v4497_v19  ;;  %v6376_v55 = vmul.f32 %v6375_v34, %v4497_v19  ;;  %v6664_v62 = vmul.f32 %v6663_v15, %v4497_v19 }
 0x877   :  { %v5660_v50 = vmul.f32 %v5659_v6, %v4502_v21  ;;  %v5804_v1 = vmul.f32 %v5803_v48, %v4502_v21  ;;  %v5657_v44 = vadd.f32 %v5656_v36, %v10682_v40  ;;  %v5948_v59 = vmul.f32 %v5947_v27, %v4502_v21 }
 0x878   :  { %v5801_v47 = vadd.f32 %v5800_v38, %v10685_v23  ;;  %v5945_v8 = vadd.f32 %v5944_v42, %v10687_v24  ;;  %v6092_v51 = vmul.f32 %v6091_v30, %v4502_v21  ;;  %v6089_v52 = vadd.f32 %v6088_v46, %v10690_v7  ;;  %v8902_v38 = vld [vmem:[%s12081_s2 + $0x4d0] ss:$8 sps:$4 sm:$0xff]   ;;  %v8907_v46 = vld [vmem:[%s12081_s2 + $0x4e4] ss:$8 sps:$4 sm:$0xff]  }
 0x879   :  { %v10917_v12 = vadd.f32 %v5660_v50, %v5657_v44  ;;  %v6236_v54 = vmul.f32 %v6235_v32, %v4502_v21  ;;  %v6233_v40 = vadd.f32 %v6232_v11, %v10693_v28  ;;  %v6380_v60 = vmul.f32 %v6379_v18, %v4502_v21  ;;  %v3946_v42 = vld [vmem:[#allocation2 + $0xf8] sm:$0xff] }
 0x87a   :  { %v10920_v56 = vadd.f32 %v5804_v1, %v5801_v47  ;;  %v10922_v57 = vadd.f32 %v5948_v59, %v5945_v8  ;;  %v10925_v43 = vadd.f32 %v6092_v51, %v6089_v52  ;;  %v6377_v23 = vadd.f32 %v6376_v55, %v10695_v10  ;;  %v3944_v1 = vld [vmem:[#allocation2 + $0xe8] sm:$0xff]  ;;  %v8910_v51 = vld [vmem:[%s12081_s2 + $0x4f4] ss:$8 sps:$4 sm:$0xff]   ;;  %v8908_v11 = vld [vmem:[%s12081_s2 + $0x4f0] ss:$8 sps:$4 sm:$0xff]  }
 0x87b   :  { %v6520_v24 = vmul.f32 %v6519_v37, %v4497_v19  ;;  %v6524_v61 = vmul.f32 %v6523_v2, %v4502_v21  ;;  %v10928_v14 = vadd.f32 %v6236_v54, %v6233_v40  ;;  %v6668_v16 = vmul.f32 %v6667_v20, %v4502_v21  ;;  %v8905_v8 = vld [vmem:[%s12081_s2 + $0x4e0] ss:$8 sps:$4 sm:$0xff]   ;;  %v8913_v52 = vld [vmem:[%s12081_s2 + $0x504] ss:$8 sps:$4 sm:$0xff]   ;;  %v8916_v55 = vld [vmem:[%s12081_s2 + $0x514] ss:$8 sps:$4 sm:$0xff]  }
 0x87c   :  { %v10930_v7 = vadd.f32 %v6380_v60, %v6377_v23  ;;  %v6665_v0 = vadd.f32 %v6664_v62, %v10701_v53  ;;  %v3948_v47 = vpack.c.bf16 %v3946_v42, %v3944_v1  ;;  %v8911_v54 = vld [vmem:[%s12081_s2 + $0x500] ss:$8 sps:$4 sm:$0xff]   ;;  %v8914_v40 = vld [vmem:[%s12081_s2 + $0x510] ss:$8 sps:$4 sm:$0xff]   ;;  %v8919_v60 = vld [vmem:[%s12081_s2 + $0x524] ss:$8 sps:$4 sm:$0xff]  }
 0x87d   :  { %v6521_v63 = vadd.f32 %v6520_v24, %v10699_v33  ;;  %v8917_v23 = vld [vmem:[%s12081_s2 + $0x520] ss:$8 sps:$4 sm:$0xff]   ;;  %v8922_v24 = vld [vmem:[%s12081_s2 + $0x534] ss:$8 sps:$4 sm:$0xff]   ;;  %v8925_v62 = vld [vmem:[%s12081_s2 + $0x544] ss:$8 sps:$4 sm:$0xff]  }
 0x87e   :  { %v10936_v28 = vadd.f32 %v6668_v16, %v6665_v0  ;;  %v8923_v16 = vld [vmem:[%s12081_s2 + $0x540] ss:$8 sps:$4 sm:$0xff]   ;;  %v8926_v0 = vld [vmem:[%s12081_s2 + $0x550] ss:$8 sps:$4 sm:$0xff]  }
 0x87f   :  { %v10934_v4 = vadd.f32 %v6524_v61, %v6521_v63  ;;  %v8920_v61 = vld [vmem:[%s12081_s2 + $0x530] ss:$8 sps:$4 sm:$0xff]   ;;  %v8928_v63 = vld [vmem:[%s12081_s2 + $0x554] ss:$8 sps:$4 sm:$0xff]  }
 0x898   :  { %v3626_v10 = vpop.f32.mrb[32].mxu0 }
 0x899   :  { %v3637_v25 = vadd.f32 %v3636_v5, %v3626_v10  ;;  %v3628_v41 = vpop.f32.mrb[33].mxu0  ;;  %v8934_v10 = vld [vmem:[%s12081_s2 + $0x574] ss:$8 sps:$4 sm:$0x1f]  }
 0x89a   :  { %v3638_v45 = vadd.f32 %v3636_v5, %v3628_v41  ;;  %v3630_v9 = vpop.f32.mrb[34].mxu0  ;;  %v8931_v5 = vld [vmem:[%s12081_s2 + $0x564] ss:$8 sps:$4 sm:$0xff]   ;;  %v4087_v41 = vand.u32 %v8934_v10, %v9393_v58  ;;  %v6527_v10 = vstv %s11121_s18  ;;  %s11233_s18 = sld [smem:[#allocation8 + $0x280]] }
 0x89b   :  { %v3641_v35 = vmin.f32 %v3637_v25, 0.0  ;;  %v3791_v17 = vadd.f32 %v3790_v13, %v3630_v9  ;;  %v3632_v39 = vpop.f32.mrb[35].mxu0  ;;  %vm3639_vm0 = vcmp.gt.f32.partialorder %v3637_v25, 0.0  ;;  %v3943_v9 = vld [vmem:[#allocation2 + $0xe0] sm:$0xff] }
 0x89c   :  { %v3642_v19 = vmin.f32 %v3638_v45, 0.0  ;;  %v3792_v33 = vadd.f32 %v3790_v13, %v3632_v39  ;;  %vm3640_vm1 = vcmp.gt.f32.partialorder %v3638_v45, 0.0  ;;  %v8929_v13 = vld [vmem:[%s12081_s2 + $0x560] ss:$8 sps:$4 sm:$0xff]   ;;  %v8935_v39 = vld [vmem:[%s12082_s3 + $0x4d0] sm:$0xff]  }
 0x89d   :  { %v3643_v21 = vmul.f32 1.442695, %v3641_v35  ;;  %v3795_v53 = vmin.f32 %v3791_v17, 0.0  ;;  %vm3793_vm4 = vcmp.gt.f32.partialorder %v3791_v17, 0.0  ;;  %v3945_v35 = vld [vmem:[#allocation2 + $0xf0] sm:$0xff] }
 0x89e   :  { %v3645_v22 = vmul.f32 1.442695, %v3642_v19  ;;  %v3796_v6 = vmin.f32 %v3792_v33, 0.0  ;;  %vm3794_vm5 = vcmp.gt.f32.partialorder %v3792_v33, 0.0  ;;  %v8936_v19 = vld [vmem:[%s12082_s3 + $0x528] sm:$0xff]  }
 0x89f   :  { %9053 = vpow2.f32 %v3643_v21  ;;  %v3797_v26 = vmul.f32 1.442695, %v3795_v53  ;;  %v8939_v21 = vld [vmem:[%s12082_s3 + $0x4e0] sm:$0xff]   ;;  %v8940_v53 = vld [vmem:[%s12082_s3 + $0x538] sm:$0xff]  }
 0x8a0   :  { %9055 = vpow2.f32 %v3645_v22  ;;  %v3799_v48 = vmul.f32 1.442695, %v3796_v6  ;;  %v8941_v22 = vld [vmem:[%s12082_s3 + $0x4e8] sm:$0xff]   ;;  %v8942_v6 = vld [vmem:[%s12082_s3 + $0x540] sm:$0xff]  }
 0x8a1   :  { %9057 = vpow2.f32 %v3797_v26  ;;  %v8943_v26 = vld [vmem:[%s12082_s3 + $0x4f0] sm:$0xff]  }
 0x8a2   :  { %9059 = vpow2.f32 %v3799_v48  ;;  %v8944_v48 = vld [vmem:[%s12082_s3 + $0x548] sm:$0xff]  }
 0x8a9   :  { %v9054_v49 = vpop.eup %9053 }
 0x8aa   :  { %v9056_v27 = vpop.eup %9055  ;;  %v7537_v29 = vadd.f32 -1.0, %v9054_v49  ;;  %v8945_v49 = vld [vmem:[%s12082_s3 + $0x4f8] sm:$0xff]  }
 0x8ab   :  { %v9058_v30 = vpop.eup %9057  ;;  %v7538_v31 = vadd.f32 -1.0, %v9056_v27  ;;  %v8946_v27 = vld [vmem:[%s12082_s3 + $0x550] sm:$0xff]  }
 0x8ac   :  { %v9060_v32 = vpop.eup %9059  ;;  %v3649_v34 = vsel %vm3639_vm0, %v3637_v25, %v7537_v29  ;;  %v7574_v18 = vadd.f32 -1.0, %v9058_v30  ;;  %v8932_v25 = vld [vmem:[%s12081_s2 + $0x570] ss:$8 sps:$4 sm:$0x1f]   ;;  %v8947_v29 = vld [vmem:[%s12082_s3 + $0x500] sm:$0xff]   ;;  %s11125_s2 = sld [smem:[#allocation8 + $0x70d]] }
 0x8ad   :  { %v3650_v36 = vsel %vm3640_vm1, %v3638_v45, %v7538_v31  ;;  %v7575_v50 = vadd.f32 -1.0, %v9060_v32  ;;  %v3651_v2 = vpack.c.bf16 %v3649_v34, %v3649_v34  ;;  %v4084_v45 = vand.u32 %v8932_v25, %v9393_v58  ;;  %v8937_v58 = vld [vmem:[%s12082_s3 + $0x4d8] sm:$0xff]   ;;  %v8949_v31 = vld [vmem:[%s12082_s3 + $0x508] sm:$0xff]   ;;  %v8950_v32 = vld [vmem:[%s12082_s3 + $0x560] sm:$0xff]  }
 0x8ae   :  { %v3652_v37 = vpack.c.bf16 %v3650_v36, %v3650_v36  ;;  %v3803_v15 = vsel %vm3793_vm4, %v3791_v17, %v7574_v18  ;;  %v3947_v17 = vpack.c.bf16 %v3945_v35, %v3943_v9  ;;  %v8948_v30 = vld [vmem:[%s12082_s3 + $0x558] sm:$0xff]   ;;  %v8951_v34 = vld [vmem:[%s12082_s3 + $0x510] sm:$0xff]   ;;  %v8952_v18 = vld [vmem:[%s12082_s3 + $0x568] sm:$0xff]  }
 0x8af   :  { %v3804_v44 = vsel %vm3794_vm5, %v3792_v33, %v7575_v50  ;;  %v3805_v20 = vpack.c.bf16 %v3803_v15, %v3803_v15  ;;  %v8938_v33 = vld [vmem:[%s12082_s3 + $0x530] sm:$0xff]   ;;  %v8953_v36 = vld [vmem:[%s12082_s3 + $0x518] sm:$0xff]  }
 0x8b0   :  { %v3806_v59 = vpack.c.bf16 %v3804_v44, %v3804_v44  ;;  %7572 = vmatprep.mubr.msk.bf16.mxu1 %vm759_vm7, %v3652_v37  ;;  %v8954_v50 = vld [vmem:[%s12082_s3 + $0x570] sm:$0xff]   ;;  %v8955_v37 = vld [vmem:[%s12082_s3 + $0x520] sm:$0x1f]  }
 0x8b1   :  { %3780 = vmatmul.mubr.bf16.vlgmr.msra.gmra.mrb[72].mxu1 %v3651_v2  ;;  %v4242_v15 = vsel %vm602_vm2, %v8955_v37, 0 }
 0x8b2   :  { %4090 = vmatpush1.bf16.msra.mxu1 %v8902_v38  ;;  %7609 = vmatprep.mubr.msk.bf16.mxu0 %vm759_vm7, %v3806_v59  ;;  %v8956_v38 = vld [vmem:[%s12082_s3 + $0x578] sm:$0x1f]   ;;  %s11103_s3 = sld [smem:[#allocation8 + $0x48d]]  ;;  %v6531_v9 = vstv %s11125_s2  ;;  %s11237_s2 = sld [smem:[#allocation8 + $0x300]] }
 0x8b3   :  { %7654 = vmatprep.mubr.msk.bf16.mxu1 %vm431_vm3, %v3948_v47  ;;  %3934 = vmatmul.mubr.bf16.vlgmr.msra.gmra.mrb[36].mxu0 %v3805_v20  ;;  %v4396_v1 = vsel %vm602_vm2, %v8956_v38, 0  ;;  %v4287_v38 = vstv %s7692_s21  ;;  %s11243_s21 = sld [smem:[#allocation8 + $0x381]] }
 0x8b4   :  { %4091 = vmatprep.subr.bf16.mxu1 %v8907_v46  ;;  %4245 = vmatpush1.bf16.msra.mxu0 %v8935_v39 }
 0x8b5   :  { %4246 = vmatprep.subr.bf16.mxu0 %v9161_v3 }
 0x8b6   :  { %4092 = vmatpush1.bf16.msra.mxu1 %v8905_v8 }
 0x8b7   :  { %4093 = vmatprep.subr.bf16.mxu1 %v8910_v51 }
 0x8b8   :  { %4247 = vmatpush1.bf16.msra.mxu0 %v8937_v58 }
 0x8b9   :  { %4248 = vmatprep.subr.bf16.mxu0 %v9161_v3 }
 0x8ba   :  { %4094 = vmatpush1.bf16.msra.mxu1 %v8908_v11  ;;  %v5663_v11 = vstv %s11096_s30  ;;  %s11281_s30 = sld [smem:[#allocation8 + $0x282]] }
 0x8bb   :  { %4095 = vmatprep.subr.bf16.mxu1 %v8913_v52  ;;  %v5667_v52 = vstv %s11098_s10  ;;  %s11283_s10 = sld [smem:[#allocation8 + $0x302]] }
 0x8bc   :  { %4249 = vmatpush1.bf16.msra.mxu0 %v8939_v21 }
 0x8bd   :  { %4250 = vmatprep.subr.bf16.mxu0 %v9161_v3 }
 0x8be   :  { %4096 = vmatpush1.bf16.msra.mxu1 %v8911_v54  ;;  %v5807_v54 = vstv %s11101_s11  ;;  %s11213_s11 = sld [smem:[#allocation8]] }
 0x8bf   :  { %4097 = vmatprep.subr.bf16.mxu1 %v8916_v55  ;;  %v5811_v55 = vstv %s11103_s3  ;;  %s11215_s3 = sld [smem:[#allocation8 + $0x100]] }
 0x8c0   :  { %4251 = vmatpush1.bf16.msra.mxu0 %v8941_v22 }
 0x8c1   :  { %4252 = vmatprep.subr.bf16.mxu0 %v9161_v3 }
 0x8c2   :  { %4098 = vmatpush1.bf16.msra.mxu1 %v8914_v40  ;;  %v5951_v40 = vstv %s11105_s12  ;;  %s11217_s12 = sld [smem:[#allocation8 + $0x1]] }
 0x8c3   :  { %4099 = vmatprep.subr.bf16.mxu1 %v8919_v60  ;;  %v5955_v60 = vstv %s11107_s13  ;;  %s11219_s13 = sld [smem:[#allocation8 + $0x80]] }
 0x8c4   :  { %4253 = vmatpush1.bf16.msra.mxu0 %v8943_v26 }
 0x8c5   :  { %4254 = vmatprep.subr.bf16.mxu0 %v9161_v3 }
 0x8c6   :  { %4100 = vmatpush1.bf16.msra.mxu1 %v8917_v23  ;;  %v6095_v23 = vstv %s11109_s14  ;;  %s11221_s14 = sld [smem:[#allocation8 + $0x101]] }
 0x8c7   :  { %4101 = vmatprep.subr.bf16.mxu1 %v8922_v24  ;;  %v6099_v24 = vstv %s11111_s15  ;;  %s11223_s15 = sld [smem:[#allocation8 + $0x81]] }
 0x8c8   :  { %4255 = vmatpush1.bf16.msra.mxu0 %v8945_v49 }
 0x8c9   :  { %4256 = vmatprep.subr.bf16.mxu0 %v9161_v3 }
 0x8ca   :  { %4102 = vmatpush1.bf16.msra.mxu1 %v8920_v61  ;;  %v6239_v61 = vstv %s11113_s16  ;;  %s11225_s16 = sld [smem:[#allocation8 + $0x180]] }
 0x8cb   :  { %4103 = vmatprep.subr.bf16.mxu1 %v8925_v62  ;;  %v6243_v62 = vstv %s11115_s17  ;;  %s11227_s17 = sld [smem:[#allocation8 + $0x181]] }
 0x8cc   :  { %4257 = vmatpush1.bf16.msra.mxu0 %v8947_v29 }
 0x8cd   :  { %4258 = vmatprep.subr.bf16.mxu0 %v9161_v3 }
 0x8ce   :  { %4104 = vmatpush1.bf16.msra.mxu1 %v8923_v16  ;;  %v6383_v16 = vstv %s11117_s7  ;;  %s11229_s7 = sld [smem:[#allocation8 + $0x200]] }
 0x8cf   :  { %4105 = vmatprep.subr.bf16.mxu1 %v8928_v63  ;;  %v6387_v63 = vstv %s11119_s6  ;;  %s11231_s6 = sld [smem:[#allocation8 + $0x201]] }
 0x8d0   :  { %4259 = vmatpush1.bf16.msra.mxu0 %v8949_v31 }
 0x8d1   :  { %4260 = vmatprep.subr.bf16.mxu0 %v9161_v3 }
 0x8d2   :  { %4106 = vmatpush1.bf16.msra.mxu1 %v8926_v0 }
 0x8d3   :  { %4107 = vmatprep.subr.bf16.mxu1 %v8931_v5 }
 0x8d4   :  { %4261 = vmatpush1.bf16.msra.mxu0 %v8951_v34 }
 0x8d5   :  { %4262 = vmatprep.subr.bf16.mxu0 %v9161_v3 }
 0x8d6   :  { %4108 = vmatpush1.bf16.msra.mxu1 %v8929_v13  ;;  %v6671_v13 = vstv %s11123_s1  ;;  %s11235_s1 = sld [smem:[#allocation8 + $0x281]] }
 0x8d7   :  { %4109 = vmatprep.subr.bf16.mxu1 %v4087_v41 }
 0x8d8   :  { %4263 = vmatpush1.bf16.msra.mxu0 %v8953_v36 }
 0x8d9   :  { %4264 = vmatprep.subr.bf16.mxu0 %v9161_v3 }
 0x8da   :  { %4110 = vmatpush1.bf16.msra.mxu1 %v4084_v45 }
 0x8db   :  { %4398 = vmatprep.subr.bf16.mxu1 %v9161_v3 }
 0x8dc   :  { %4265 = vmatpush1.bf16.msra.mxu0 %v4242_v15 }
 0x8dd   :  { %4122 = vmatmul.mubr.bf16.vlgmr.msra.gmra.mrb[76].mxu1 %v3947_v17 }
 0x8de   :  { %4399 = vmatpush1.bf16.msra.mxu1 %v8936_v19  ;;  %v6675_v19 = vstv %s11127_s19  ;;  %s11239_s19 = sld [smem:[#allocation8 + $0x301]] }
 0x8df   :  { %4400 = vmatprep.subr.bf16.mxu1 %v9161_v3 }
 0x8e2   :  { %4401 = vmatpush1.bf16.msra.mxu1 %v8938_v33 }
 0x8e3   :  { %4402 = vmatprep.subr.bf16.mxu1 %v9161_v3 }
 0x8e6   :  { %4403 = vmatpush1.bf16.msra.mxu1 %v8940_v53 }
 0x8e7   :  { %4404 = vmatprep.subr.bf16.mxu1 %v9161_v3 }
 0x8ea   :  { %4405 = vmatpush1.bf16.msra.mxu1 %v8942_v6 }
 0x8eb   :  { %4406 = vmatprep.subr.bf16.mxu1 %v9161_v3 }
 0x8ee   :  { %4407 = vmatpush1.bf16.msra.mxu1 %v8944_v48 }
 0x8ef   :  { %4408 = vmatprep.subr.bf16.mxu1 %v9161_v3 }
 0x8f2   :  { %4409 = vmatpush1.bf16.msra.mxu1 %v8946_v27 }
 0x8f3   :  { %4410 = vmatprep.subr.bf16.mxu1 %v9161_v3 }
 0x8f6   :  { %4411 = vmatpush1.bf16.msra.mxu1 %v8948_v30 }
 0x8f7   :  { %4412 = vmatprep.subr.bf16.mxu1 %v9161_v3 }
 0x8fa   :  { %4413 = vmatpush1.bf16.msra.mxu1 %v8950_v32 }
 0x8fb   :  { %4414 = vmatprep.subr.bf16.mxu1 %v9161_v3 }
 0x8fe   :  { %4415 = vmatpush1.bf16.msra.mxu1 %v8952_v18 }
 0x8ff   :  { %4416 = vmatprep.subr.bf16.mxu1 %v9161_v3 }
 0x902   :  { %4417 = vmatpush1.bf16.msra.mxu1 %v8954_v50 }
 0x903   :  { %4418 = vmatprep.subr.bf16.mxu1 %v9161_v3 }
 0x906   :  { %4419 = vmatpush1.bf16.msra.mxu1 %v4396_v1 }
 0x984   :  { %v3781_v42 = vpop.f32.mrb[72].mxu1 }
 0x985   :  { %3788 = vst.msk [vmem:[#allocation3 + $0x60] sm:$0xff] %vm759_vm7, %v3781_v42  ;;  %v3783_v2 = vpop.f32.mrb[73].mxu1 }
 0x986   :  { %v3784_v44 = vpop.f32.mrb[74].mxu1  ;;  %v3935_v59 = vpop.f32.mrb[36].mxu0 }
 0x987   :  { %3942 = vst.msk [vmem:[#allocation3 + $0x68] sm:$0xff] %vm759_vm7, %v3935_v59  ;;  %v3785_v3 = vpop.f32.mrb[75].mxu1  ;;  %v3937_v46 = vpop.f32.mrb[37].mxu0 }
 0x988   :  { %v3938_v20 = vpop.f32.mrb[38].mxu0 }
 0x989   :  { %v3939_v47 = vpop.f32.mrb[39].mxu0 }
 0x98c   :  { %v11129_v8 = vld [vmem:[#allocation3 + $0x60] sm:$0xff] }
 0x98d   :  { %v5664_v0 = vmul.f32 %v5663_v11, %v11129_v8  ;;  %v5808_v25 = vmul.f32 %v5807_v54, %v11129_v8  ;;  %v5952_v45 = vmul.f32 %v5951_v40, %v11129_v8  ;;  %v6096_v39 = vmul.f32 %v6095_v23, %v11129_v8 }
 0x98e   :  { %v4512_v51 = vld [vmem:[#allocation3 + $0x68] sm:$0xff]  ;;  %v6240_v53 = vmul.f32 %v6239_v61, %v11129_v8  ;;  %v6384_v48 = vmul.f32 %v6383_v16, %v11129_v8  ;;  %v6528_v30 = vmul.f32 %v6527_v10, %v11129_v8 }
 0x98f   :  { %v5668_v5 = vmul.f32 %v5667_v52, %v4512_v51  ;;  %v5812_v41 = vmul.f32 %v5811_v55, %v4512_v51  ;;  %v5665_v35 = vadd.f32 %v5664_v0, %v10917_v12  ;;  %v5956_v17 = vmul.f32 %v5955_v60, %v4512_v51 }
 0x990   :  { %v5809_v58 = vadd.f32 %v5808_v25, %v10920_v56  ;;  %v5953_v33 = vadd.f32 %v5952_v45, %v10922_v57  ;;  %v6100_v21 = vmul.f32 %v6099_v24, %v4512_v51  ;;  %v6097_v6 = vadd.f32 %v6096_v39, %v10925_v43  ;;  %v8959_v39 = vld [vmem:[%s12083_s4 + $0x38] sm:$0xff]  }
 0x991   :  { %v11155_v22 = vadd.f32 %v5668_v5, %v5665_v35  ;;  %v6244_v26 = vmul.f32 %v6243_v62, %v4512_v51  ;;  %v6241_v27 = vadd.f32 %v6240_v53, %v10928_v14  ;;  %v6388_v29 = vmul.f32 %v6387_v63, %v4512_v51  ;;  %v8958_v35 = vld [vmem:[%s12083_s4] sm:$0xff]  }
 0x992   :  { %v11159_v49 = vadd.f32 %v5812_v41, %v5809_v58  ;;  %v11161_v12 = vadd.f32 %v5956_v17, %v5953_v33  ;;  %v11164_v56 = vadd.f32 %v6100_v21, %v6097_v6  ;;  %v6385_v57 = vadd.f32 %v6384_v48, %v10930_v7  ;;  %v8961_v58 = vld [vmem:[%s12083_s4 + $0x40] sm:$0x1f]   ;;  %v8962_v33 = vld [vmem:[%s12083_s4 + $0x10] sm:$0x1f]  }
 0x993   :  { %v6532_v31 = vmul.f32 %v6531_v9, %v4512_v51  ;;  %v11168_v32 = vadd.f32 %v6244_v26, %v6241_v27  ;;  %v6672_v43 = vmul.f32 %v6671_v13, %v11129_v8  ;;  %v6676_v34 = vmul.f32 %v6675_v19, %v4512_v51  ;;  %v8957_v9 = vld [vmem:[%s12083_s4 + $0x30] sm:$0xff]   ;;  %v8960_v19 = vld [vmem:[%s12083_s4 + $0x8] sm:$0xff]  }
 0x994   :  { %v11171_v18 = vadd.f32 %v6388_v29, %v6385_v57  ;;  %v6529_v36 = vadd.f32 %v6528_v30, %v10934_v4  ;;  %v4133_v7 = vstv %s7655_s20  ;;  %v9162_v17 = vmov 0.0   ;;  %s11241_s20 = sld [smem:[#allocation8 + $0x380]] }
 0x995   :  { %v6673_v50 = vadd.f32 %v6672_v43, %v10936_v28  ;;  %8254 = vmatprep.subr.bf16.mxu0 %v9162_v17  ;;  %8234 = vmatprep.subr.bf16.mxu1 %v9162_v17  ;;  %v4852_v21 = vsel %vm602_vm2, %v8961_v58, 0  ;;  %v4564_v53 = vsel %vm602_vm2, %v8962_v33, 0  ;;  %v4450_v6 = vstv %s11213_s11  ;;  %s11285_s11 = sld [smem:[#allocation8 + $0x382]] }
 0x996   :  { %v11175_v14 = vadd.f32 %v6532_v31, %v6529_v36  ;;  %v4454_v26 = vstv %s11217_s12  ;;  %v4752_v48 = vstv %s11215_s3  ;;  %v4755_v27 = vstv %s11221_s14  ;;  %s11292_s3 = sld [smem:[#allocation8 + $0x283]]  ;;  %s11299_s14 = sld [smem:[#allocation8 + $0x4]] }
 0x997   :  { %v11177_v37 = vadd.f32 %v6676_v34, %v6673_v50  ;;  %v4608_v29 = vstv %s11219_s13  ;;  %v4611_v57 = vstv %s11223_s15  ;;  %v4896_v30 = vstv %s11225_s16  ;;  %s11294_s12 = sld [smem:[#allocation8 + $0x303]]  ;;  %s11302_s15 = sld [smem:[#allocation8 + $0x104]] }
 0x998   :  { %v4899_v31 = vstv %s11227_s17  ;;  %v5040_v43 = vstv %s11229_s7  ;;  %v5043_v34 = vstv %s11231_s6  ;;  %v5184_v36 = vstv %s11233_s18  ;;  %s11297_s13 = sld [smem:[#allocation8 + $0x383]]  ;;  %s11305_s16 = sld [smem:[#allocation8 + $0x84]] }
 0x999   :  { %v5187_v50 = vstv %s11235_s1  ;;  %s11308_s17 = sld [smem:[#allocation8 + $0x184]]  ;;  %s11312_s7 = sld [smem:[#allocation8 + $0x5]] }
 0x99a   :  { %s11314_s6 = sld [smem:[#allocation8 + $0x204]]  ;;  %s11318_s18 = sld [smem:[#allocation8 + $0x105]] }
 0x99b   :  { %s11320_s1 = sld [smem:[#allocation8 + $0x284]] }
 0x9b0   :  { %v4123_v15 = vpop.f32.mrb[76].mxu1 }
 0x9b1   :  { %v4134_v1 = vadd.f32 %v4133_v7, %v4123_v15  ;;  %v4125_v42 = vpop.f32.mrb[77].mxu1  ;;  %v9101_v15 = vld [vmem:[#allocation3] sm:$0xff] }
 0x9b2   :  { %v4135_v2 = vadd.f32 %v4133_v7, %v4125_v42  ;;  %v4127_v44 = vpop.f32.mrb[78].mxu1  ;;  %v5328_v7 = vstv %s11237_s2  ;;  %v5472_v42 = vstv %s11241_s20  ;;  %s11322_s2 = sld [smem:[#allocation8 + $0x85]] }
 0x9b3   :  { %v4138_v59 = vmin.f32 %v4134_v1, 0.0  ;;  %v4288_v3 = vadd.f32 %v4287_v38, %v4127_v44  ;;  %v4129_v46 = vpop.f32.mrb[79].mxu1  ;;  %vm4136_vm3 = vcmp.gt.f32.partialorder %v4134_v1, 0.0  ;;  %v9102_v44 = vld [vmem:[#allocation3 + $0x8] sm:$0xff]  ;;  %s11326_s20 = sld [smem:[#allocation8 + $0x205]] }
 0x9b4   :  { %v4139_v20 = vmin.f32 %v4135_v2, 0.0  ;;  %v4289_v4 = vadd.f32 %v4287_v38, %v4129_v46  ;;  %vm4137_vm6 = vcmp.gt.f32.partialorder %v4135_v2, 0.0  ;;  %v4451_v38 = vmul.f32 %v9101_v15, %v4450_v6 }
 0x9b5   :  { %v4140_v47 = vmul.f32 1.442695, %v4138_v59  ;;  %v4292_v28 = vmin.f32 %v4288_v3, 0.0  ;;  %vm4290_vm8 = vcmp.gt.f32.partialorder %v4288_v3, 0.0  ;;  %v4455_v59 = vmul.f32 %v9102_v44, %v4454_v26 }
 0x9b6   :  { %v4142_v51 = vmul.f32 1.442695, %v4139_v20  ;;  %v4293_v11 = vmin.f32 %v4289_v4, 0.0  ;;  %vm4291_vm9 = vcmp.gt.f32.partialorder %v4289_v4, 0.0  ;;  %v4609_v46 = vmul.f32 %v9101_v15, %v4608_v29 }
 0x9b7   :  { %9061 = vpow2.f32 %v4140_v47  ;;  %v4294_v52 = vmul.f32 1.442695, %v4292_v28  ;;  %v4897_v20 = vmul.f32 %v9101_v15, %v4896_v30  ;;  %v4612_v47 = vmul.f32 %v9102_v44, %v4611_v57 }
 0x9b8   :  { %9063 = vpow2.f32 %v4142_v51  ;;  %v4296_v54 = vmul.f32 1.442695, %v4293_v11  ;;  %v5041_v28 = vmul.f32 %v9101_v15, %v5040_v43  ;;  %v5185_v51 = vmul.f32 %v9101_v15, %v5184_v36 }
 0x9b9   :  { %9065 = vpow2.f32 %v4294_v52  ;;  %v4459_v11 = vstv %s11245_s22  ;;  %v4900_v52 = vmul.f32 %v9102_v44, %v4899_v31  ;;  %v5051_v6 = vstv %s11279_s29  ;;  %s11332_s22 = sld [smem:[#allocation8 + $0x304]]  ;;  %s11365_s29 = sld [smem:[#allocation8 + $0x107]] }
 0x9ba   :  { %9067 = vpow2.f32 %v4296_v54  ;;  %v5329_v54 = vmul.f32 %v9101_v15, %v5328_v7  ;;  %v5191_v26 = vstv %s11281_s30  ;;  %v5335_v57 = vstv %s11283_s10  ;;  %s11367_s30 = sld [smem:[#allocation8 + $0x206]] }
 0x9bb   :  { %v5479_v30 = vstv %s11285_s11  ;;  %s11369_s10 = sld [smem:[#allocation8 + $0x286]] }
 0x9bc   :  { %s11371_s11 = sld [smem:[#allocation8 + $0x306]] }
 0x9c1   :  { %v9062_v55 = vpop.eup %9061 }
 0x9c2   :  { %v9064_v40 = vpop.eup %9063  ;;  %v7656_v60 = vadd.f32 -1.0, %v9062_v55  ;;  %v5473_v55 = vmul.f32 %v9101_v15, %v5472_v42 }
 0x9c3   :  { %v9066_v23 = vpop.eup %9065  ;;  %v7657_v24 = vadd.f32 -1.0, %v9064_v40  ;;  %v4759_v40 = vstv %s11248_s23  ;;  %s11334_s23 = sld [smem:[#allocation8 + $0x384]] }
 0x9c4   :  { %v9068_v61 = vpop.eup %9067  ;;  %v4146_v62 = vsel %vm4136_vm3, %v4134_v1, %v7656_v60  ;;  %v7693_v16 = vadd.f32 -1.0, %v9066_v23  ;;  %v5331_v1 = vstv %s11239_s19  ;;  %v4615_v60 = vstv %s11250_s24  ;;  %s11324_s19 = sld [smem:[#allocation8 + $0x185]] }
 0x9c5   :  { %v4147_v63 = vsel %vm4137_vm6, %v4135_v2, %v7657_v24  ;;  %v7694_v0 = vadd.f32 -1.0, %v9068_v61  ;;  %v4148_v13 = vpack.c.bf16 %v4146_v62, %v4146_v62  ;;  %v5475_v2 = vstv %s11243_s21  ;;  %s11328_s21 = sld [smem:[#allocation8 + $0x285]] }
 0x9c6   :  { %v4149_v5 = vpack.c.bf16 %v4147_v63, %v4147_v63  ;;  %v4300_v10 = vsel %vm4290_vm8, %v4288_v3, %v7693_v16  ;;  %v4753_v3 = vmul.f32 %v9101_v15, %v4752_v48  ;;  %v5044_v23 = vmul.f32 %v9102_v44, %v5043_v34  ;;  %s11343_s24 = sld [smem:[#allocation8 + $0x305]] }
 0x9c7   :  { %v4301_v25 = vsel %vm4291_vm9, %v4289_v4, %v7694_v0  ;;  %v4302_v45 = vpack.c.bf16 %v4300_v10, %v4300_v10  ;;  %v4756_v4 = vmul.f32 %v9102_v44, %v4755_v27  ;;  %v5188_v24 = vmul.f32 %v9102_v44, %v5187_v50  ;;  %v9103_v0 = vld [vmem:[#allocation3 + $0x10] sm:$0xff]  ;;  %v9104_v27 = vld [vmem:[#allocation3 + $0x18] sm:$0xff] }
 0x9c8   :  { %v4303_v41 = vpack.c.bf16 %v4301_v25, %v4301_v25  ;;  %7691 = vmatprep.mubr.msk.bf16.mxu0 %vm759_vm7, %v4149_v5  ;;  %v4456_v61 = vadd.f32 %v4455_v59, %v4451_v38  ;;  %v4903_v62 = vstv %s11256_s25  ;;  %v5332_v16 = vmul.f32 %v9102_v44, %v5331_v1  ;;  %s11345_s25 = sld [smem:[#allocation8 + $0x385]] }
 0x9c9   :  { %4277 = vmatmul.mubr.bf16.vlgmr.msra.gmra.mrb[40].mxu0 %v4148_v13  ;;  %v5476_v63 = vmul.f32 %v9102_v44, %v5475_v2  ;;  %v4460_v5 = vmul.f32 %v9103_v0, %v4459_v11  ;;  %v4757_v10 = vadd.f32 %v4756_v4, %v4753_v3  ;;  %v4613_v13 = vadd.f32 %v4612_v47, %v4609_v46 }
 0x9ca   :  { %7728 = vmatprep.mubr.msk.bf16.mxu1 %vm759_vm7, %v4303_v41  ;;  %8255 = vmatpush3.bf16.msra.mxu0 %v8957_v9  ;;  %v5047_v25 = vstv %s11262_s0  ;;  %v4464_v41 = vstv %s11264_s8  ;;  %v4616_v9 = vmul.f32 %v9103_v0, %v4615_v60  ;;  %v4904_v58 = vmul.f32 %v9103_v0, %v4903_v62  ;;  %s11348_s0 = sld [smem:[#allocation8 + $0x6]] }
 0x9cb   :  { %4431 = vmatmul.mubr.bf16.vlgmr.msra.gmra.mrb[80].mxu1 %v4302_v45  ;;  %8256 = vmatprep.subr.bf16.mxu0 %v9162_v17  ;;  %v4760_v45 = vmul.f32 %v9103_v0, %v4759_v40  ;;  %v5045_v33 = vadd.f32 %v5044_v23, %v5041_v28  ;;  %v4461_v48 = vadd.f32 %v4460_v5, %v4456_v61  ;;  %v5195_v59 = vstv %s11292_s3  ;;  %s11351_s8 = sld [smem:[#allocation8 + $0x106]]  ;;  %s11373_s3 = sld [smem:[#allocation8 + $0x87]] }
 0x9cc   :  { %8235 = vmatpush3.bf16.msra.mxu1 %v8958_v35  ;;  %8240 = vmatprep.mubr.msk.bf16.mxu1 %vm9163_vm10, %v9162_v17  ;;  %v4901_v35 = vadd.f32 %v4900_v52, %v4897_v20  ;;  %v4465_v29 = vmul.f32 %v9104_v27, %v4464_v41  ;;  %v4617_v34 = vadd.f32 %v4616_v9, %v4613_v13  ;;  %v5339_v46 = vstv %s11294_s12  ;;  %s11375_s12 = sld [smem:[#allocation8 + $0x187]] }
 0x9cd   :  { %8236 = vmatprep.subr.bf16.mxu1 %v9162_v17  ;;  %8260 = vmatprep.mubr.msk.bf16.mxu0 %vm9163_vm10, %v9162_v17  ;;  %v4761_v31 = vadd.f32 %v4760_v45, %v4757_v10  ;;  %v5189_v15 = vadd.f32 %v5188_v24, %v5185_v51  ;;  %v5192_v38 = vmul.f32 %v9103_v0, %v5191_v26  ;;  %v5483_v51 = vstv %s11297_s13  ;;  %s11377_s13 = sld [smem:[#allocation8 + $0x207]] }
 0x9ce   :  { %8257 = vmatpush3.bf16.msra.mxu0 %v8959_v39  ;;  %v4763_v39 = vstv %s11266_s26  ;;  %v4905_v50 = vadd.f32 %v4904_v58, %v4901_v35  ;;  %v5052_v42 = vmul.f32 %v9104_v27, %v5051_v6  ;;  %v5333_v2 = vadd.f32 %v5332_v16, %v5329_v54  ;;  %s11354_s26 = sld [smem:[#allocation8 + $0x86]] }
 0x9cf   :  { %8258 = vmatprep.subr.bf16.mxu0 %v9162_v17  ;;  %v4764_v43 = vmul.f32 %v9104_v27, %v4763_v39  ;;  %v5477_v44 = vadd.f32 %v5476_v63, %v5473_v55  ;;  %v5336_v3 = vmul.f32 %v9103_v0, %v5335_v57  ;;  %v5480_v20 = vmul.f32 %v9103_v0, %v5479_v30 }
 0x9d0   :  { %8237 = vmatpush3.bf16.msra.mxu1 %v8960_v19  ;;  %v4619_v19 = vstv %s11272_s27  ;;  %v4466_v4 = vadd.f32 %v4465_v29, %v4461_v48  ;;  %v4469_v11 = vstv %s11299_s14  ;;  %v4767_v52 = vstv %s11302_s15  ;;  %s11358_s27 = sld [smem:[#allocation8 + $0x7]] }
 0x9d1   :  { %8238 = vmatprep.subr.bf16.mxu1 %v9162_v17  ;;  %v4620_v36 = vmul.f32 %v9104_v27, %v4619_v19  ;;  %v4765_v47 = vadd.f32 %v4764_v43, %v4761_v31  ;;  %v5193_v40 = vadd.f32 %v5192_v38, %v5189_v15  ;;  %v4623_v55 = vstv %s11305_s16  ;;  %s11379_s14 = sld [smem:[#allocation8 + $0x287]]  ;;  %s11385_s16 = sld [smem:[#allocation8 + $0x386]] }
 0x9d2   :  { %8259 = vmatpush3.bf16.msra.mxu0 %v4852_v21  ;;  %v4907_v21 = vstv %s11274_s28  ;;  %v4911_v60 = vstv %s11308_s17  ;;  %v5196_v24 = vmul.f32 %v9104_v27, %v5195_v59  ;;  %v5055_v61 = vstv %s11314_s6  ;;  %s11360_s28 = sld [smem:[#allocation8 + $0x186]]  ;;  %s11382_s15 = sld [smem:[#allocation8 + $0x307]] }
 0x9d3   :  { %8264 = vmatprep.subr.bf16.mxu0 %v9162_v17  ;;  %v4908_v7 = vmul.f32 %v9104_v27, %v4907_v21  ;;  %v4621_v28 = vadd.f32 %v4620_v36, %v4617_v34  ;;  %v5337_v62 = vadd.f32 %v5336_v3, %v5333_v2  ;;  %v5340_v16 = vmul.f32 %v9104_v27, %v5339_v46  ;;  %s11395_s17 = sld [smem:[#allocation8 + $0x387]]  ;;  %s11400_s6 = sld [smem:[#allocation8 + $0x108]] }
 0x9d4   :  { %8239 = vmatpush3.bf16.msra.mxu1 %v4564_v53  ;;  %v5048_v53 = vmul.f32 %v9103_v0, %v5047_v25  ;;  %v5481_v63 = vadd.f32 %v5480_v20, %v5477_v44  ;;  %v9105_v0 = vld [vmem:[#allocation3 + $0x20] sm:$0xff]  ;;  %v5199_v13 = vstv %s11320_s1  ;;  %v5484_v25 = vmul.f32 %v9104_v27, %v5483_v51  ;;  %v9106_v27 = vld [vmem:[#allocation3 + $0x28] sm:$0xff]  ;;  %s11405_s1 = sld [smem:[#allocation8 + $0x88]] }
 0x9d5   :  { %8244 = vmatprep.subr.bf16.mxu1 %v9162_v17  ;;  %v4909_v54 = vadd.f32 %v4908_v7, %v4905_v50  ;;  %v4470_v5 = vmul.f32 %v9105_v0, %v4469_v11  ;;  %v4768_v10 = vmul.f32 %v9105_v0, %v4767_v52  ;;  %v4474_v41 = vstv %s11312_s7  ;;  %s11397_s7 = sld [smem:[#allocation8 + $0x8]] }
 0x9d6   :  { %v5049_v1 = vadd.f32 %v5048_v53, %v5045_v33  ;;  %v4771_v45 = vstv %s11318_s18  ;;  %v4624_v9 = vmul.f32 %v9105_v0, %v4623_v55  ;;  %v4912_v35 = vmul.f32 %v9105_v0, %v4911_v60  ;;  %s11403_s18 = sld [smem:[#allocation8 + $0x9]] }
 0x9d7   :  { %v4627_v39 = vstv %s11322_s2  ;;  %v4915_v19 = vstv %s11324_s19  ;;  %v5056_v58 = vmul.f32 %v9105_v0, %v5055_v61  ;;  %v5059_v33 = vstv %s11326_s20  ;;  %s11410_s2 = sld [smem:[#allocation8 + $0x188]]  ;;  %s11416_s20 = sld [smem:[#allocation8 + $0x109]] }
 0x9d8   :  { %v5053_v23 = vadd.f32 %v5052_v42, %v5049_v1  ;;  %v5200_v21 = vmul.f32 %v9105_v0, %v5199_v13  ;;  %v5203_v53 = vstv %s11328_s21  ;;  %v5343_v6 = vstv %s11332_s22  ;;  %s11412_s19 = sld [smem:[#allocation8 + $0x208]]  ;;  %s11420_s22 = sld [smem:[#allocation8 + $0x89]] }
 0x9d9   :  { %v5487_v26 = vstv %s11334_s23  ;;  %v4471_v48 = vadd.f32 %v4470_v5, %v4466_v4  ;;  %v4475_v29 = vmul.f32 %v9106_v27, %v4474_v41  ;;  %v4769_v57 = vadd.f32 %v4768_v10, %v4765_v47  ;;  %s11418_s21 = sld [smem:[#allocation8 + $0x288]] }
 0x9da   :  { %v4772_v30 = vmul.f32 %v9106_v27, %v4771_v45  ;;  %v4625_v31 = vadd.f32 %v4624_v9, %v4621_v28  ;;  %v4628_v43 = vmul.f32 %v9106_v27, %v4627_v39  ;;  %v4913_v34 = vadd.f32 %v4912_v35, %v4909_v54  ;;  %s11422_s23 = sld [smem:[#allocation8 + $0x308]] }
 0x9db   :  { %v4916_v36 = vmul.f32 %v9106_v27, %v4915_v19  ;;  %v5057_v50 = vadd.f32 %v5056_v58, %v5053_v23  ;;  %v5060_v7 = vmul.f32 %v9106_v27, %v5059_v33  ;;  %v5197_v15 = vadd.f32 %v5196_v24, %v5193_v40 }
 0x9dc   :  { %v5344_v38 = vmul.f32 %v9105_v0, %v5343_v6  ;;  %v5341_v1 = vadd.f32 %v5340_v16, %v5337_v62  ;;  %v5485_v42 = vadd.f32 %v5484_v25, %v5481_v63  ;;  %v5488_v2 = vmul.f32 %v9105_v0, %v5487_v26  ;;  %v9107_v63 = vld [vmem:[#allocation3 + $0x30] sm:$0xff] }
 0x9dd   :  { %v5201_v44 = vadd.f32 %v5200_v21, %v5197_v15  ;;  %v5204_v59 = vmul.f32 %v9106_v27, %v5203_v53  ;;  %v5347_v3 = vstv %s11343_s24  ;;  %v5491_v46 = vstv %s11345_s25  ;;  %s11424_s24 = sld [smem:[#allocation8 + $0x189]] }
 0x9de   :  { %v4476_v20 = vadd.f32 %v4475_v29, %v4471_v48  ;;  %v4773_v4 = vadd.f32 %v4772_v30, %v4769_v57  ;;  %v4629_v47 = vadd.f32 %v4628_v43, %v4625_v31  ;;  %v4917_v28 = vadd.f32 %v4916_v36, %v4913_v34  ;;  %v9108_v48 = vld [vmem:[#allocation3 + $0x38] sm:$0xff]  ;;  %s11426_s25 = sld [smem:[#allocation8 + $0x209]] }
 0x9df   :  { %v4479_v51 = vstv %s11348_s0  ;;  %v4775_v11 = vstv %s11351_s8  ;;  %v5061_v52 = vadd.f32 %v5060_v7, %v5057_v50  ;;  %v5345_v54 = vadd.f32 %v5344_v38, %v5341_v1  ;;  %s11428_s0 = sld [smem:[#allocation8 + $0x289]] }
 0x9e0   :  { %v4631_v40 = vstv %s11354_s26  ;;  %v4919_v55 = vstv %s11360_s28  ;;  %v5348_v60 = vmul.f32 %v9106_v27, %v5347_v3  ;;  %v5489_v23 = vadd.f32 %v5488_v2, %v5485_v42  ;;  %s11430_s8 = sld [smem:[#allocation8 + $0x309]]  ;;  %s11433_s26 = sld [smem:[#allocation8 + $0x388]] }
 0x9e1   :  { %v4484_v24 = vstv %s11358_s27  ;;  %v5063_v61 = vstv %s11367_s30  ;;  %v5205_v62 = vadd.f32 %v5204_v59, %v5201_v44  ;;  %v5492_v16 = vmul.f32 %v9106_v27, %v5491_v46  ;;  %s11442_s27 = sld [smem:[#allocation8 + $0xa]]  ;;  %s11446_s28 = sld [smem:[#allocation8 + $0x389]] }
 0x9e2   :  { %v4480_v0 = vmul.f32 %v9107_v63, %v4479_v51  ;;  %v4776_v5 = vmul.f32 %v9107_v63, %v4775_v11  ;;  %v5207_v10 = vstv %s11369_s10  ;;  %v5351_v13 = vstv %s11371_s11  ;;  %s11451_s30 = sld [smem:[#allocation8 + $0x8a]]  ;;  %s11454_s10 = sld [smem:[#allocation8 + $0xb]] }
 0x9e3   :  { %v4779_v25 = vstv %s11365_s29  ;;  %v4632_v41 = vmul.f32 %v9107_v63, %v4631_v40  ;;  %v4635_v45 = vstv %s11373_s3  ;;  %v4920_v9 = vmul.f32 %v9107_v63, %v4919_v55  ;;  %s11448_s29 = sld [smem:[#allocation8 + $0x10a]]  ;;  %s11456_s11 = sld [smem:[#allocation8 + $0x10b]] }
 0x9e4   :  { %v4923_v35 = vstv %s11375_s12  ;;  %v5064_v39 = vmul.f32 %v9107_v63, %v5063_v61  ;;  %v5067_v19 = vstv %s11377_s13  ;;  %v5211_v58 = vstv %s11379_s14  ;;  %s11461_s3 = sld [smem:[#allocation8 + $0x8b]]  ;;  %s11463_s12 = sld [smem:[#allocation8 + $0x18a]] }
 0x9e5   :  { %v5208_v33 = vmul.f32 %v9107_v63, %v5207_v10  ;;  %v5352_v21 = vmul.f32 %v9107_v63, %v5351_v13  ;;  %v5355_v53 = vstv %s11382_s15  ;;  %v5495_v6 = vstv %s11385_s16  ;;  %s11466_s13 = sld [smem:[#allocation8 + $0x18b]]  ;;  %s11468_s14 = sld [smem:[#allocation8 + $0x20a]] }
 0x9e6   :  { %v4481_v26 = vadd.f32 %v4480_v0, %v4476_v20  ;;  %v4485_v27 = vmul.f32 %v9108_v48, %v4484_v24  ;;  %v4777_v29 = vadd.f32 %v4776_v5, %v4773_v4  ;;  %v4780_v57 = vmul.f32 %v9108_v48, %v4779_v25  ;;  %s11470_s15 = sld [smem:[#allocation8 + $0x20b]]  ;;  %s11472_s16 = sld [smem:[#allocation8 + $0x28a]] }
 0x9e7   :  { %v4633_v30 = vadd.f32 %v4632_v41, %v4629_v47  ;;  %v4636_v31 = vmul.f32 %v9108_v48, %v4635_v45  ;;  %v4921_v43 = vadd.f32 %v4920_v9, %v4917_v28  ;;  %v4924_v34 = vmul.f32 %v9108_v48, %v4923_v35 }
 0x9e8   :  { %v5065_v36 = vadd.f32 %v5064_v39, %v5061_v52  ;;  %v5068_v50 = vmul.f32 %v9108_v48, %v5067_v19  ;;  %v5349_v7 = vadd.f32 %v5348_v60, %v5345_v54  ;;  %v5496_v15 = vmul.f32 %v9107_v63, %v5495_v6 }
 0x9e9   :  { %v5209_v38 = vadd.f32 %v5208_v33, %v5205_v62  ;;  %v5212_v1 = vmul.f32 %v9108_v48, %v5211_v58  ;;  %v5493_v42 = vadd.f32 %v5492_v16, %v5489_v23  ;;  %v4486_v2 = vadd.f32 %v4485_v27, %v4481_v26  ;;  %v9109_v23 = vld [vmem:[#allocation3 + $0x40] sm:$0xff]  ;;  %v9110_v33 = vld [vmem:[#allocation3 + $0x48] sm:$0xff] }
 0x9ea   :  { %v5353_v44 = vadd.f32 %v5352_v21, %v5349_v7  ;;  %v5356_v59 = vmul.f32 %v9108_v48, %v5355_v53  ;;  %v5499_v3 = vstv %s11395_s17  ;;  %v4489_v46 = vstv %s11397_s7  ;;  %s11474_s17 = sld [smem:[#allocation8 + $0x28b]]  ;;  %s11476_s7 = sld [smem:[#allocation8 + $0x30a]] }
 0x9eb   :  { %v4781_v20 = vadd.f32 %v4780_v57, %v4777_v29  ;;  %v4637_v4 = vadd.f32 %v4636_v31, %v4633_v30  ;;  %v4925_v47 = vadd.f32 %v4924_v34, %v4921_v43  ;;  %v4783_v28 = vstv %s11400_s6  ;;  %s11478_s6 = sld [smem:[#allocation8 + $0xc]] }
 0x9ec   :  { %v4639_v51 = vstv %s11405_s1  ;;  %v5069_v11 = vadd.f32 %v5068_v50, %v5065_v36  ;;  %v5497_v52 = vadd.f32 %v5496_v15, %v5493_v42  ;;  %v4927_v54 = vstv %s11410_s2  ;;  %s11483_s1 = sld [smem:[#allocation8 + $0x10c]] }
 0x9ed   :  { %v5071_v40 = vstv %s11412_s19  ;;  %v5213_v55 = vadd.f32 %v5212_v1, %v5209_v38  ;;  %v5500_v60 = vmul.f32 %v9108_v48, %v5499_v3  ;;  %v4490_v24 = vmul.f32 %v9109_v23, %v4489_v46  ;;  %s11485_s2 = sld [smem:[#allocation8 + $0x8c]] }
 0x9ee   :  { %v4494_v61 = vstv %s11403_s18  ;;  %v5215_v62 = vstv %s11418_s21  ;;  %v5357_v16 = vadd.f32 %v5356_v59, %v5353_v44  ;;  %v4784_v63 = vmul.f32 %v9109_v23, %v4783_v28  ;;  %s11480_s18 = sld [smem:[#allocation8 + $0x38a]]  ;;  %s11490_s19 = sld [smem:[#allocation8 + $0x18c]] }
 0x9ef   :  { %v4787_v0 = vstv %s11416_s20  ;;  %v4640_v5 = vmul.f32 %v9109_v23, %v4639_v51  ;;  %v5359_v10 = vstv %s11422_s23  ;;  %v4643_v13 = vstv %s11420_s22  ;;  %v11496_v51 = vld [vmem:[#allocation3 + $0x50] sm:$0xff]  ;;  %s11499_s20 = sld [smem:[#allocation8 + $0xd]] }
 0x9f0   :  { %v4928_v25 = vmul.f32 %v9109_v23, %v4927_v54  ;;  %v4931_v41 = vstv %s11424_s24  ;;  %v5072_v45 = vmul.f32 %v9109_v23, %v5071_v40  ;;  %v5075_v9 = vstv %s11426_s25  ;;  %s11508_s21 = sld [smem:[#allocation8 + $0x10d]]  ;;  %s11528_s24 = sld [smem:[#allocation8 + $0x20c]] }
 0x9f1   :  { %v5216_v35 = vmul.f32 %v9109_v23, %v5215_v62  ;;  %v5219_v39 = vstv %s11428_s0  ;;  %v5363_v19 = vstv %s11430_s8  ;;  %v4491_v58 = vadd.f32 %v4490_v24, %v4486_v2  ;;  %s11511_s22 = sld [smem:[#allocation8 + $0x8d]]  ;;  %s11537_s0 = sld [smem:[#allocation8 + $0x28c]] }
 0x9f2   :  { %v4495_v21 = vmul.f32 %v9110_v33, %v4494_v61  ;;  %v5360_v53 = vmul.f32 %v9109_v23, %v5359_v10  ;;  %v5503_v6 = vstv %s11433_s26  ;;  %v4785_v26 = vadd.f32 %v4784_v63, %v4781_v20  ;;  %s11519_s23 = sld [smem:[#allocation8 + $0x18d]]  ;;  %s11539_s8 = sld [smem:[#allocation8 + $0xe]] }
 0x9f3   :  { %v4788_v48 = vmul.f32 %v9110_v33, %v4787_v0  ;;  %v4641_v27 = vadd.f32 %v4640_v5, %v4637_v4  ;;  %v4644_v29 = vmul.f32 %v9110_v33, %v4643_v13  ;;  %v4929_v57 = vadd.f32 %v4928_v25, %v4925_v47  ;;  %s11534_s25 = sld [smem:[#allocation8 + $0x20d]]  ;;  %s11542_s26 = sld [smem:[#allocation8 + $0x10e]] }
 0x9f4   :  { %v4932_v30 = vmul.f32 %v9110_v33, %v4931_v41  ;;  %v5073_v31 = vadd.f32 %v5072_v45, %v5069_v11  ;;  %v5076_v43 = vmul.f32 %v9110_v33, %v5075_v9  ;;  %v5217_v34 = vadd.f32 %v5216_v35, %v5213_v55  ;;  %v11524_v41 = vld [vmem:[#allocation3 + $0x58] sm:$0xff] }
 0x9f5   :  { %v5220_v36 = vmul.f32 %v9110_v33, %v5219_v39  ;;  %v5504_v50 = vmul.f32 %v9109_v23, %v5503_v6  ;;  %v5361_v7 = vadd.f32 %v5360_v53, %v5357_v16  ;;  %v5364_v15 = vmul.f32 %v9110_v33, %v5363_v19 }
 0x9f6   :  { %v4496_v38 = vadd.f32 %v4495_v21, %v4491_v58  ;;  %v4499_v1 = vstv %s11442_s27  ;;  %v5501_v42 = vadd.f32 %v5500_v60, %v5497_v52  ;;  %v5507_v2 = vstv %s11446_s28  ;;  %s11546_s27 = sld [smem:[#allocation8 + $0x8e]] }
 0x9f7   :  { %v4789_v44 = vadd.f32 %v4788_v48, %v4785_v26  ;;  %v4645_v59 = vadd.f32 %v4644_v29, %v4641_v27  ;;  %v4933_v3 = vadd.f32 %v4932_v30, %v4929_v57  ;;  %v5077_v46 = vadd.f32 %v5076_v43, %v5073_v31  ;;  %s11550_s28 = sld [smem:[#allocation8 + $0x18e]] }
 0x9f8   :  { %v4791_v20 = vstv %s11448_s29  ;;  %v4647_v4 = vstv %s11451_s30  ;;  %v11492_v47 = vadd.f32 %v5220_v36, %v5217_v34  ;;  %v11494_v28 = vadd.f32 %v5504_v50, %v5501_v42  ;;  %s11553_s29 = sld [smem:[#allocation8 + $0xf]] }
 0x9f9   :  { %v4500_v11 = vmul.f32 %v11496_v51, %v4499_v1  ;;  %v4935_v52 = vstv %s11463_s12  ;;  %v11502_v54 = vadd.f32 %v5364_v15, %v5361_v7  ;;  %v11504_v40 = vmul.f32 %v9110_v33, %v5507_v2  ;;  %s11556_s30 = sld [smem:[#allocation8 + $0x10f]]  ;;  %s11578_s12 = sld [smem:[#allocation6]] }
 0x9fa   :  { %v4504_v55 = vstv %s11454_s10  ;;  %v4795_v60 = vstv %s11456_s11  ;;  %v4651_v23 = vstv %s11461_s3  ;;  %v4939_v24 = vstv %s11466_s13  ;;  %s11561_s10 = sld [smem:[#allocation8 + $0x8f]]  ;;  %s11570_s3 = sld [smem:[#allocation8 + $0x20e]] }
 0x9fb   :  { %v4792_v61 = vmul.f32 %v11496_v51, %v4791_v20  ;;  %v4648_v62 = vmul.f32 %v11496_v51, %v4647_v4  ;;  %v5079_v16 = vstv %s11468_s14  ;;  %v5223_v63 = vstv %s11472_s16  ;;  %s11563_s11 = sld [smem:[#allocation8 + $0x18f]]  ;;  %v11575_v4 = vld [vmem:[#allocation3 + $0x68] sm:$0xff]  ;;  %s11580_s13 = sld [smem:[#allocation6 + $0x2]] }
 0x9fc   :  { %v4936_v0 = vmul.f32 %v11496_v51, %v4935_v52  ;;  %v5083_v5 = vstv %s11470_s15  ;;  %v5227_v10 = vstv %s11474_s17  ;;  %v5367_v13 = vstv %s11476_s7  ;;  %s11595_s14 = sld [smem:[#allocation6 + $0x1]]  ;;  %s11598_s15 = sld [smem:[#allocation6 + $0x3]] }
 0x9fd   :  { %v4501_v25 = vadd.f32 %v4500_v11, %v4496_v38  ;;  %v4505_v45 = vmul.f32 %v11524_v41, %v4504_v55  ;;  %v4509_v9 = vstv %s11478_s6  ;;  %v5511_v35 = vstv %s11480_s18  ;;  %s11607_s16 = sld [smem:[#allocation8 + $0x30b]]  ;;  %s11619_s17 = sld [smem:[#allocation8 + $0x20f]] }
 0x9fe   :  { %v4799_v39 = vstv %s11483_s1  ;;  %v4655_v19 = vstv %s11485_s2  ;;  %v5080_v58 = vmul.f32 %v11496_v51, %v5079_v16  ;;  %v5224_v33 = vmul.f32 %v11496_v51, %v5223_v63  ;;  %s11628_s7 = sld [smem:[#allocation8 + $0x40e]]  ;;  %s11632_s6 = sld [smem:[#allocation8 + $0x28d]] }
 0x9ff   :  { %v4793_v21 = vadd.f32 %v4792_v61, %v4789_v44  ;;  %v4796_v53 = vmul.f32 %v11524_v41, %v4795_v60  ;;  %v4649_v6 = vadd.f32 %v4648_v62, %v4645_v59  ;;  %v4652_v26 = vmul.f32 %v11524_v41, %v4651_v23  ;;  %v11567_v44 = vld [vmem:[#allocation3 + $0x60] sm:$0xff]  ;;  %s11634_s1 = sld [smem:[#allocation8 + $0x40f]]  ;;  %s11638_s2 = sld [smem:[#allocation8 + $0x28e]] }
 0xa00   :  { %v4510_v48 = vmul.f32 %v4509_v9, %v11129_v8  ;;  %v4937_v27 = vadd.f32 %v4936_v0, %v4933_v3  ;;  %v4940_v29 = vmul.f32 %v11524_v41, %v4939_v24  ;;  %v4943_v57 = vstv %s11490_s19  ;;  %s11640_s19 = sld [smem:[#allocation8 + $0x30c]]  ;;  %s11687_s18 = sld [smem:[#allocation8 + $0x58f]] }
 0xa01   :  { %v4506_v30 = vadd.f32 %v4505_v45, %v4501_v25  ;;  %v4514_v31 = vstv %s11499_s20  ;;  %v4800_v43 = vmul.f32 %v4799_v39, %v11129_v8  ;;  %v4656_v34 = vmul.f32 %v4655_v19, %v11129_v8  ;;  %s11643_s20 = sld [smem:[#allocation8 + $0x48e]] }
 0xa02   :  { %v4803_v50 = vstv %s11508_s21  ;;  %v4659_v7 = vstv %s11511_s22  ;;  %v5081_v15 = vadd.f32 %v5080_v58, %v5077_v46  ;;  %v5084_v38 = vmul.f32 %v11524_v41, %v5083_v5  ;;  %s11645_s21 = sld [smem:[#allocation8 + $0x50e]]  ;;  %s11656_s22 = sld [smem:[#allocation8 + $0x48f]] }
 0xa03   :  { %v4797_v42 = vadd.f32 %v4796_v53, %v4793_v21  ;;  %v4653_v2 = vadd.f32 %v4652_v26, %v4649_v6  ;;  %v4944_v8 = vmul.f32 %v11567_v44, %v4943_v57  ;;  %v11573_v59 = vmul.f32 %v11496_v51, %v5367_v13 }
 0xa04   :  { %v4511_v46 = vadd.f32 %v4510_v48, %v4506_v30  ;;  %v4515_v11 = vmul.f32 %v11575_v4, %v4514_v31  ;;  %v4941_v52 = vadd.f32 %v4940_v29, %v4937_v27  ;;  %v4947_v55 = vstv %s11519_s23  ;;  %s11668_s23 = sld [smem:[#allocation8 + $0x50f]] }
 0xa05   :  { %v4801_v24 = vadd.f32 %v4800_v43, %v4797_v42  ;;  %v4804_v61 = vmul.f32 %v11575_v4, %v4803_v50  ;;  %v4657_v62 = vadd.f32 %v4656_v34, %v4653_v2  ;;  %v4660_v16 = vmul.f32 %v11575_v4, %v4659_v7 }
 0xa06   :  { %v5085_v0 = vadd.f32 %v5084_v38, %v5081_v15  ;;  %v5087_v5 = vstv %s11528_s24  ;;  %v11588_v13 = vadd.f32 %v5224_v33, %v11492_v47  ;;  %v11593_v25 = vmul.f32 %v11524_v41, %v5227_v10  ;;  %s11673_s24 = sld [smem:[#allocation6 + $0x4]] }
 0xa07   :  { %v4945_v9 = vadd.f32 %v4944_v8, %v4941_v52  ;;  %v4948_v39 = vmul.f32 %v11575_v4, %v4947_v55  ;;  %v5091_v19 = vstv %s11534_s25  ;;  %v5231_v58 = vstv %s11537_s0  ;;  %s11676_s25 = sld [smem:[#allocation8 + $0x58e]]  ;;  %s11695_s0 = sld [smem:[#allocation8 + $0x28f]] }
 0xa08   :  { %v4519_v47 = vstv %s11539_s8  ;;  %v4807_v33 = vstv %s11542_s26  ;;  %v4663_v21 = vstv %s11546_s27  ;;  %v4951_v53 = vstv %s11550_s28  ;;  %s11699_s8 = sld [smem:[#allocation8 + $0x38b]]  ;;  %s11703_s26 = sld [smem:[#allocation8 + $0x30d]] }
 0xa09   :  { %v4516_v10 = vadd.f32 %v4515_v11, %v4511_v46  ;;  %v4805_v6 = vadd.f32 %v4804_v61, %v4801_v24  ;;  %v4661_v26 = vadd.f32 %v4660_v16, %v4657_v62  ;;  %v5088_v48 = vmul.f32 %v11567_v44, %v5087_v5  ;;  %s11714_s27 = sld [smem:[#allocation8 + $0x60e]] }
 0xa0a   :  { %v4524_v29 = vstv %s11553_s29  ;;  %v4811_v57 = vstv %s11556_s30  ;;  %v4667_v30 = vstv %s11561_s10  ;;  %v4955_v31 = vstv %s11563_s11  ;;  %s11717_s28 = sld [smem:[#allocation8 + $0x30e]]  ;;  %s11722_s29 = sld [smem:[#allocation6 + $0x5]] }
 0xa0b   :  { %v4528_v15 = vstv %s11578_s12  ;;  %v4815_v38 = vstv %s11580_s13  ;;  %v5095_v42 = vstv %s11570_s3  ;;  %v4671_v24 = vstv %s11595_s14  ;;  %s11724_s30 = sld [smem:[#allocation8 + $0x38c]]  ;;  %s11732_s10 = sld [smem:[#allocation8 + $0x30f]] }
 0xa0c   :  { %v4959_v61 = vstv %s11598_s15  ;;  %v5092_v5 = vmul.f32 %v11575_v4, %v5091_v19  ;;  %s11736_s11 = sld [smem:[#allocation8 + $0x68e]]  ;;  %s11742_s3 = sld [smem:[#allocation8 + $0x60f]] }
 0xa0d   :  { %s11744_s12 = sld [smem:[#allocation8 + $0x70e]]  ;;  %s11751_s13 = sld [smem:[#allocation8 + $0x68f]] }
 0xa0e   :  { %s11753_s14 = sld [smem:[#allocation8 + $0x78e]]  ;;  %s11762_s15 = sld [smem:[#allocation8 + $0x70f]] }
 0xa9c   :  { %v4278_v36 = vpop.f32.mrb[40].mxu0 }
 0xa9d   :  { %4285 = vst.msk [vmem:[#allocation3 + $0x70] sm:$0xff] %vm759_vm7, %v4278_v36  ;;  %v4280_v1 = vpop.f32.mrb[41].mxu0 }
 0xa9e   :  { %v4281_v3 = vpop.f32.mrb[42].mxu0  ;;  %v4432_v20 = vpop.f32.mrb[80].mxu1  ;;  %v4949_v1 = vadd.f32 %v4948_v39, %v4945_v9  ;;  %v5371_v39 = vstv %s11607_s16  ;;  %s11764_s16 = sld [smem:[#allocation8 + $0x78f]] }
 0xa9f   :  { %4439 = vst.msk [vmem:[#allocation3 + $0x78] sm:$0xff] %vm759_vm7, %v4432_v20  ;;  %v4282_v60 = vpop.f32.mrb[43].mxu0  ;;  %v4434_v23 = vpop.f32.mrb[81].mxu1 }
 0xaa0   :  { %v4435_v63 = vpop.f32.mrb[82].mxu1 }
 0xaa1   :  { %v4436_v45 = vpop.f32.mrb[83].mxu1  ;;  %v5089_v63 = vadd.f32 %v5088_v48, %v5085_v0 }
 0xaa4   :  { %v11609_v27 = vld [vmem:[#allocation3 + $0x70] sm:$0xff] }
 0xaa5   :  { %v4520_v43 = vmul.f32 %v4519_v47, %v11609_v27  ;;  %v4808_v34 = vmul.f32 %v4807_v33, %v11609_v27  ;;  %v4664_v36 = vmul.f32 %v4663_v21, %v11609_v27  ;;  %v4952_v50 = vmul.f32 %v4951_v53, %v11609_v27 }
 0xaa6   :  { %v11621_v7 = vld [vmem:[#allocation3 + $0x78] sm:$0xff]  ;;  %v11654_v47 = vadd.f32 %v11504_v40, %v11494_v28  ;;  %v5096_v19 = vmul.f32 %v5095_v42, %v11609_v27  ;;  %v11666_v21 = vmul.f32 %v11496_v51, %v5511_v35  ;;  %v5099_v40 = vstv %s11619_s17 }
 0xaa7   :  { %v4521_v2 = vadd.f32 %v4520_v43, %v4516_v10  ;;  %v4525_v8 = vmul.f32 %v4524_v29, %v11621_v7  ;;  %v4809_v3 = vadd.f32 %v4808_v34, %v4805_v6  ;;  %v4812_v20 = vmul.f32 %v4811_v57, %v11621_v7 }
 0xaa8   :  { %v4665_v46 = vadd.f32 %v4664_v36, %v4661_v26  ;;  %v4668_v11 = vmul.f32 %v4667_v30, %v11621_v7  ;;  %v4953_v52 = vadd.f32 %v4952_v50, %v4949_v1  ;;  %v4956_v55 = vmul.f32 %v4955_v31, %v11621_v7 }
 0xaa9   :  { %v4526_v60 = vadd.f32 %v4525_v8, %v4521_v2  ;;  %v4813_v23 = vadd.f32 %v4812_v20, %v4809_v3  ;;  %v5232_v10 = vmul.f32 %v11567_v44, %v5231_v58  ;;  %v5093_v6 = vadd.f32 %v5092_v5, %v5089_v63 }
 0xaaa   :  { %v4669_v62 = vadd.f32 %v4668_v11, %v4665_v46  ;;  %v4957_v16 = vadd.f32 %v4956_v55, %v4953_v52  ;;  %v5229_v51 = vadd.f32 %v11593_v25, %v11588_v13  ;;  %v11682_v35 = vadd.f32 %v11573_v59, %v11502_v54 }
 0xaab   :  { %v11647_v45 = vadd.f32 %v4528_v15, %v4526_v60  ;;  %v11649_v9 = vadd.f32 %v4815_v38, %v4813_v23  ;;  %v11685_v26 = vmul.f32 %v11524_v41, %v5371_v39  ;;  %v5671_v57 = vstv %s11628_s7  ;;  %s7962_s7 = sld [smem:[#allocation6 + $0x8]] }
 0xaac   :  { %v11658_v33 = vadd.f32 %v4671_v24, %v4669_v62  ;;  %v11660_v0 = vadd.f32 %v4959_v61, %v4957_v16  ;;  %v5097_v25 = vadd.f32 %v5096_v19, %v5093_v6  ;;  %v5100_v30 = vmul.f32 %v5099_v40, %v11621_v7 }
 0xaad   :  { %v4531_v53 = vmin.f32 %v11647_v45, 0.0  ;;  %v4818_v28 = vmin.f32 %v11649_v9, 0.0  ;;  %v5675_v54 = vstv %s11634_s1  ;;  %v5233_v59 = vadd.f32 %v5232_v10, %v5229_v51 }
 0xaae   :  { %v4674_v29 = vmin.f32 %v11658_v33, 0.0  ;;  %v4962_v13 = vmin.f32 %v11660_v0, 0.0  ;;  %v5235_v31 = vstv %s11632_s6  ;;  %v5375_v43 = vstv %s11640_s19 }
 0xaaf   :  { %v4532_v48 = vmul.f32 1.442695, %v4531_v53  ;;  %v4819_v58 = vmul.f32 1.442695, %v4818_v28  ;;  %v5239_v34 = vstv %s11638_s2  ;;  %v5815_v36 = vstv %s11643_s20 }
 0xab0   :  { %v5959_v50 = vstv %s11645_s21  ;;  %v4675_v15 = vmul.f32 1.442695, %v4674_v29  ;;  %v5672_v38 = vmul.f32 %v5671_v57, %v11609_v27  ;;  %v5676_v1 = vmul.f32 %v5675_v54, %v11621_v7 }
 0xab1   :  { %9069 = vpow2.f32 %v4532_v48  ;;  %v5819_v42 = vstv %s11656_s22  ;;  %v4963_v2 = vmul.f32 1.442695, %v4962_v13  ;;  %v5101_v8 = vadd.f32 %v5100_v30, %v5097_v25  ;;  %s7990_s22 = sld [smem:[#allocation6 + $0x9]] }
 0xab2   :  { %9071 = vpow2.f32 %v4819_v58  ;;  %v5236_v3 = vmul.f32 %v11575_v4, %v5235_v31  ;;  %v5963_v20 = vstv %s11668_s23  ;;  %v5103_v46 = vstv %s11673_s24 }
 0xab3   :  { %v5673_v11 = vadd.f32 %v5672_v38, %v11155_v22  ;;  %v5816_v52 = vmul.f32 %v5815_v36, %v11609_v27  ;;  %v6103_v55 = vstv %s11676_s25  ;;  %v5240_v60 = vmul.f32 %v5239_v34, %v11609_v27 }
 0xab4   :  { %v5820_v23 = vmul.f32 %v5819_v42, %v11621_v7  ;;  %v5960_v24 = vmul.f32 %v5959_v50, %v11609_v27  ;;  %v6107_v61 = vstv %s11687_s18  ;;  %9073 = vpow2.f32 %v4675_v15  ;;  %v8963_v50 = vld [vmem:[%s12083_s4 + $0x48] sm:$0xff]   ;;  %s11811_s18 = sld [smem:[#allocation8 + $0x38d]] }
 0xab5   :  { %v11726_v22 = vadd.f32 %v5676_v1, %v5673_v11  ;;  %v5817_v62 = vadd.f32 %v5816_v52, %v11159_v49  ;;  %v5964_v16 = vmul.f32 %v5963_v20, %v11621_v7  ;;  %9075 = vpow2.f32 %v4963_v2 }
 0xab6   :  { %v11730_v63 = vadd.f32 %v5103_v46, %v5101_v8  ;;  %v5961_v5 = vadd.f32 %v5960_v24, %v11161_v12  ;;  %v6104_v39 = vmul.f32 %v6103_v55, %v11609_v27  ;;  %v5237_v19 = vadd.f32 %v5236_v3, %v5233_v59  ;;  %v8964_v59 = vld [vmem:[%s12083_s4 + $0x18] sm:$0xff]   ;;  %v8968_v3 = vld [vmem:[%s12083_s4 + $0x28] sm:$0x1f]   ;;  %v8966_v55 = vld [vmem:[%s12083_s4 + $0x20] sm:$0xff]  }
 0xab7   :  { %v5243_v53 = vstv %s11695_s0  ;;  %v5376_v28 = vmul.f32 %v11567_v44, %v5375_v43  ;;  %v11740_v40 = vadd.f32 %v5820_v23, %v5817_v62  ;;  %v5515_v49 = vstv %s11699_s8  ;;  %v8965_v62 = vld [vmem:[%s12083_s4 + $0x50] sm:$0xff]   ;;  %s11825_s0 = sld [smem:[#allocation6 + $0x6]] }
 0xab8   :  { %v11747_v10 = vadd.f32 %v5964_v16, %v5961_v5  ;;  %v6105_v12 = vadd.f32 %v6104_v39, %v11164_v56  ;;  %v6108_v6 = vmul.f32 %v6107_v61, %v11621_v7  ;;  %v5241_v48 = vadd.f32 %v5240_v60, %v5237_v19  ;;  %s11827_s8 = sld [smem:[#allocation8 + $0x38e]] }
 0xab9   :  { %v5373_v58 = vadd.f32 %v11685_v26, %v11682_v35  ;;  %v5379_v29 = vstv %s11703_s26  ;;  %v11760_v57 = vadd.f32 %v11666_v21, %v11654_v47  ;;  %v5106_v25 = vmin.f32 %v11730_v63, 0.0  ;;  %s11846_s26 = sld [smem:[#allocation8 + $0x38f]] }
 0xaba   :  { %v5244_v30 = vmul.f32 %v5243_v53, %v11621_v7  ;;  %v11768_v54 = vadd.f32 %v6108_v6, %v6105_v12  ;;  %vm4530_vm11 = vcmp.gt.f32.partialorder %v11647_v45, 0.0  ;;  %v6247_v47 = vstv %s11714_s27 }
 0xabb   :  { %v9070_v51 = vpop.eup %9069  ;;  %v5377_v26 = vadd.f32 %v5376_v28, %v5373_v58  ;;  %vm4817_vm12 = vcmp.gt.f32.partialorder %v11649_v9, 0.0  ;;  %v5380_v31 = vmul.f32 %v11575_v4, %v5379_v29  ;;  %v5383_v43 = vstv %s11717_s28 }
 0xabc   :  { %v9072_v56 = vpop.eup %9071  ;;  %v7745_v13 = vadd.f32 -1.0, %v9070_v51  ;;  %v11787_v15 = vmul.f32 %v11524_v41, %v5515_v49  ;;  %v5519_v38 = vstv %s11724_s30  ;;  %v5107_v42 = vmul.f32 1.442695, %v5106_v25 }
 0xabd   :  { %v7795_v35 = vadd.f32 -1.0, %v9072_v56  ;;  %v5245_v2 = vadd.f32 %v5244_v30, %v5241_v48  ;;  %v5247_v20 = vstv %s11722_s29  ;;  %v5384_v41 = vmul.f32 %v5383_v43, %v11609_v27 }
 0xabe   :  { %v4535_v21 = vsel %vm4530_vm11, %v11647_v45, %v7745_v13  ;;  %v8967_v45 = vld [vmem:[%s12083_s4 + $0x58] sm:$0x1f]   ;;  %v9074_v8 = vpop.eup %9073  ;;  %v5387_v46 = vstv %s11732_s10  ;;  %v6391_v11 = vstv %s11736_s11  ;;  %v5381_v60 = vadd.f32 %v5380_v31, %v5377_v26 }
 0xabf   :  { %v4536_v34 = vpack.c.bf16 %v4535_v21, %v4535_v21  ;;  %v4822_v36 = vsel %vm4817_vm12, %v11649_v9, %v7795_v35  ;;  %v6248_v9 = vmul.f32 %v6247_v47, %v11609_v27  ;;  %v9076_v52 = vpop.eup %9075  ;;  %v6251_v23 = vstv %s11742_s3  ;;  %s7934_s3 = sld [smem:[#allocation6 + $0x7]] }
 0xac0   :  { %v4823_v1 = vpack.c.bf16 %v4822_v36, %v4822_v36  ;;  %v6535_v24 = vstv %s11744_s12  ;;  %v6679_v61 = vstv %s11753_s14  ;;  %v4996_v16 = vsel %vm602_vm2, %v8967_v45, 0 }
 0xac1   :  { %8241 = vmatmul.mubr.msk.bf16.vlgmr.msra.gmra.mrb[84].mxu1 %vm759_vm7, %v4536_v34  ;;  %v6395_v5 = vstv %s11751_s13  ;;  %v6539_v39 = vstv %s11762_s15  ;;  %v6683_v19 = vstv %s11764_s16  ;;  %v7767_v53 = vadd.f32 -1.0, %v9074_v8  ;;  %v8971_v8 = vld [vmem:[%s12083_s4 + $0x70] sm:$0x1f]  }
 0xac2   :  { %8261 = vmatmul.mubr.msk.bf16.vlgmr.msra.gmra.mrb[44].mxu0 %vm759_vm7, %v4823_v1  ;;  %8245 = vmatpush3.bf16.msra.mxu1 %v8964_v59  ;;  %9077 = vpow2.f32 %v5107_v42  ;;  %v11819_v28 = vadd.f32 %v5247_v20, %v5245_v2  ;;  %v6249_v49 = vadd.f32 %v6248_v9, %v11168_v32  ;;  %v4708_v12 = vsel %vm602_vm2, %v8968_v3, 0 }
 0xac3   :  { %8265 = vmatpush3.bf16.msra.mxu0 %v8963_v50  ;;  %8246 = vmatprep.subr.bf16.mxu1 %v9162_v17  ;;  %v7823_v6 = vadd.f32 -1.0, %v9076_v52  ;;  %v5385_v51 = vadd.f32 %v5384_v41, %v5381_v60  ;;  %v6252_v48 = vmul.f32 %v6251_v23, %v11621_v7  ;;  %vm4673_vm13 = vcmp.gt.f32.partialorder %v11658_v33, 0.0 }
 0xac4   :  { %8266 = vmatprep.subr.bf16.mxu0 %v9162_v17  ;;  %8250 = vmatprep.mubr.msk.bf16.mxu1 %vm9163_vm10, %v9162_v17  ;;  %v5388_v58 = vmul.f32 %v5387_v46, %v11621_v7  ;;  %v6392_v32 = vmul.f32 %v6391_v11, %v11609_v27  ;;  %v6396_v29 = vmul.f32 %v6395_v5, %v11621_v7  ;;  %vm4961_vm14 = vcmp.gt.f32.partialorder %v11660_v0, 0.0 }
 0xac5   :  { %8270 = vmatprep.mubr.msk.bf16.mxu0 %vm9163_vm10, %v9162_v17  ;;  %v11836_v56 = vadd.f32 %v6252_v48, %v6249_v49  ;;  %v6536_v13 = vmul.f32 %v6535_v24, %v11609_v27  ;;  %v6540_v25 = vmul.f32 %v6539_v39, %v11621_v7  ;;  %v4678_v30 = vsel %vm4673_vm13, %v11658_v33, %v7767_v53 }
 0xac6   :  { %8247 = vmatpush3.bf16.msra.mxu1 %v8966_v55  ;;  %v5250_v35 = vmin.f32 %v11819_v28, 0.0  ;;  %v6393_v26 = vadd.f32 %v6392_v32, %v11171_v18  ;;  %v6680_v47 = vmul.f32 %v6679_v61, %v11609_v27  ;;  %v4966_v21 = vsel %vm4961_vm14, %v11660_v0, %v7823_v6  ;;  %v8969_v0 = vld [vmem:[%s12083_s4 + $0x60] sm:$0xff]   ;;  %v8975_v6 = vld [vmem:[%s12083_s4 + $0x90] sm:$0xff]  }
 0xac7   :  { %8267 = vmatpush3.bf16.msra.mxu0 %v8965_v62  ;;  %8248 = vmatprep.subr.bf16.mxu1 %v9162_v17  ;;  %v6537_v59 = vadd.f32 %v6536_v13, %v11175_v14  ;;  %v6684_v31 = vmul.f32 %v6683_v19, %v11621_v7  ;;  %v5520_v43 = vmul.f32 %v11567_v44, %v5519_v38  ;;  %v5523_v36 = vstv %s11811_s18 }
 0xac8   :  { %8268 = vmatprep.subr.bf16.mxu0 %v9162_v17  ;;  %v11851_v33 = vadd.f32 %v6396_v29, %v6393_v26  ;;  %v6681_v34 = vadd.f32 %v6680_v47, %v11177_v37  ;;  %v4679_v18 = vpack.c.bf16 %v4678_v30, %v4678_v30  ;;  %v5517_v14 = vadd.f32 %v11787_v15, %v11760_v57  ;;  %v8970_v15 = vld [vmem:[%s12083_s4 + $0x68] sm:$0xff]   ;;  %v8976_v29 = vld [vmem:[%s12083_s4 + $0x98] sm:$0xff]  }
 0xac9   :  { %v11860_v50 = vadd.f32 %v6540_v25, %v6537_v59  ;;  %v4967_v44 = vpack.c.bf16 %v4966_v21, %v4966_v21  ;;  %v5251_v45 = vmul.f32 1.442695, %v5250_v35  ;;  %v5389_v38 = vadd.f32 %v5388_v58, %v5385_v51  ;;  %v8978_v47 = vld [vmem:[%s12083_s4 + $0xa8] sm:$0xff]  }
 0xaca   :  { %8249 = vmatpush3.bf16.msra.mxu1 %v4708_v12  ;;  %v11863_v1 = vadd.f32 %v6684_v31, %v6681_v34  ;;  %v5391_v37 = vstv %s11825_s0  ;;  %v5527_v42 = vstv %s11827_s8  ;;  %v5521_v9 = vadd.f32 %v5520_v43, %v5517_v14  ;;  %v8979_v43 = vld [vmem:[%s12083_s4 + $0xb0] sm:$0xff]   ;;  %v8980_v34 = vld [vmem:[%s12083_s4 + $0xb8] sm:$0x1f]  }
 0xacb   :  { %8269 = vmatpush3.bf16.msra.mxu0 %v4996_v16  ;;  %v5524_v57 = vmul.f32 %v11575_v4, %v5523_v36  ;;  %9079 = vpow2.f32 %v5251_v45  ;;  %v5392_v3 = vadd.f32 %v5391_v37, %v5389_v38  ;;  %v5528_v20 = vmul.f32 %v5527_v42, %v11609_v27  ;;  %v8972_v27 = vld [vmem:[%s12083_s4 + $0x78] sm:$0xff]   ;;  %v8981_v45 = vld [vmem:[%s12083_s4 + $0xc0] sm:$0xff]  }
 0xacc   :  { %8274 = vmatprep.subr.bf16.mxu0 %v9162_v17  ;;  %v9078_v2 = vpop.eup %9077  ;;  %v5531_v4 = vstv %s11846_s26  ;;  %v5140_v11 = vsel %vm602_vm2, %v8971_v8, 0  ;;  %vm5105_vm15 = vcmp.gt.f32.partialorder %v11730_v63, 0.0  ;;  %v5535_v16 = vstv %s7934_s3  ;;  %s8018_s26 = sld [smem:[#allocation6 + $0xa]]  ;;  %s8046_s3 = sld [smem:[#allocation6 + $0xb]] }
 0xacd   :  { %8251 = vmatmul.mubr.msk.bf16.vlgmr.msra.gmra.mrb[84].mxu1 %vm759_vm7, %v4679_v18  ;;  %v7851_v41 = vadd.f32 -1.0, %v9078_v2  ;;  %v5525_v46 = vadd.f32 %v5524_v57, %v5521_v9  ;;  %v5394_v52 = vmin.f32 %v5392_v3, 0.0  ;;  %v5532_v60 = vmul.f32 %v5531_v4, %v11621_v7  ;;  %v8973_v7 = vld [vmem:[%s12083_s4 + $0x80] sm:$0xff]   ;;  %v8982_v2 = vld [vmem:[%s12083_s4 + $0xc8] sm:$0xff]   ;;  %v8983_v9 = vld [vmem:[%s12083_s4 + $0xd0] sm:$0x1f]  }
 0xace   :  { %8271 = vmatmul.mubr.msk.bf16.vlgmr.msra.gmra.mrb[44].mxu0 %vm759_vm7, %v4967_v44  ;;  %vm5249_vm0 = vcmp.gt.f32.partialorder %v11819_v28, 0.0  ;;  %v5679_v58 = vstv %s7962_s7  ;;  %vm5393_vm1 = vcmp.gt.f32.partialorder %v5392_v3, 0.0  ;;  %v5572_v14 = vsel %vm602_vm2, %v8980_v34, 0  ;;  %s8074_s7 = sld [smem:[#allocation6 + $0xc]] }
 0xacf   :  { %8275 = vmatpush3.bf16.msra.mxu0 %v8969_v0  ;;  %8280 = vmatprep.mubr.msk.bf16.mxu0 %vm9163_vm10, %v9162_v17  ;;  %v5529_v55 = vadd.f32 %v5528_v20, %v5525_v46  ;;  %v5110_v23 = vsel %vm5105_vm15, %v11730_v63, %v7851_v41  ;;  %v5395_v61 = vmul.f32 1.442695, %v5394_v52  ;;  %v8974_v63 = vld [vmem:[%s12083_s4 + $0x88] sm:$0x1f]   ;;  %v5680_v13 = vadd.f32 %v5679_v58, %v11726_v22  ;;  %v8984_v41 = vld [vmem:[%s12083_s4 + $0xd8] sm:$0xff]   ;;  %v8985_v52 = vld [vmem:[%s12083_s4 + $0xe0] sm:$0xff]  }
 0xad0   :  { %8276 = vmatprep.subr.bf16.mxu0 %v9162_v17  ;;  %v5111_v24 = vpack.c.bf16 %v5110_v23, %v5110_v23  ;;  %v5284_v53 = vsel %vm602_vm2, %v8974_v63, 0  ;;  %v5823_v22 = vstv %s7990_s22  ;;  %v5716_v8 = vsel %vm602_vm2, %v8983_v9, 0  ;;  %v8988_v63 = vld [vmem:[%s12083_s4 + $0xf8] sm:$0xff]   ;;  %s8102_s22 = sld [smem:[#allocation6 + $0xd]] }
 0xad1   :  { %v5533_v62 = vadd.f32 %v5532_v60, %v5529_v55  ;;  %9081 = vpow2.f32 %v5395_v61  ;;  %v5682_v35 = vmin.f32 %v5680_v13, 0.0  ;;  %v5824_v18 = vadd.f32 %v5823_v22, %v11740_v40  ;;  %v8986_v55 = vld [vmem:[%s12083_s4 + $0xe8] sm:$0x1f]  }
 0xad2   :  { %v5967_v40 = vstv %s8018_s26  ;;  %vm5681_vm5 = vcmp.gt.f32.partialorder %v5680_v13, 0.0  ;;  %s8130_s26 = sld [smem:[#allocation6 + $0xe]] }
 0xad3   :  { %8277 = vmatpush3.bf16.msra.mxu0 %v8970_v15  ;;  %v5536_v39 = vadd.f32 %v5535_v16, %v5533_v62  ;;  %v5683_v59 = vmul.f32 1.442695, %v5682_v35  ;;  %v5826_v36 = vmin.f32 %v5824_v18, 0.0  ;;  %v5968_v57 = vadd.f32 %v5967_v40, %v11747_v10  ;;  %v8987_v62 = vld [vmem:[%s12083_s4 + $0xf0] sm:$0xff]   ;;  %v8997_v40 = vld [vmem:[%s12083_s4 + $0x140] sm:$0xff]  }
 0xad4   :  { %8278 = vmatprep.subr.bf16.mxu0 %v9162_v17  ;;  %v6111_v10 = vstv %s8046_s3  ;;  %vm5825_vm3 = vcmp.gt.f32.partialorder %v5824_v18, 0.0  ;;  %s8158_s3 = sld [smem:[#allocation6 + $0xf]] }
 0xad5   :  { %v9080_v5 = vpop.eup %9079  ;;  %v5538_v49 = vmin.f32 %v5536_v39, 0.0  ;;  %vm5537_vm4 = vcmp.gt.f32.partialorder %v5536_v39, 0.0  ;;  %v5827_v37 = vmul.f32 1.442695, %v5826_v36  ;;  %v6112_v60 = vadd.f32 %v6111_v10, %v11768_v54 }
 0xad6   :  { %v7879_v19 = vadd.f32 -1.0, %v9080_v5  ;;  %v6255_v54 = vstv %s8074_s7  ;;  %vm5969_vm6 = vcmp.gt.f32.partialorder %v5968_v57, 0.0 }
 0xad7   :  { %8279 = vmatpush3.bf16.msra.mxu0 %v5140_v11  ;;  %v5539_v48 = vmul.f32 1.442695, %v5538_v49  ;;  %vm6113_vm8 = vcmp.gt.f32.partialorder %v6112_v60, 0.0 }
 0xad8   :  { %8284 = vmatprep.subr.bf16.mxu0 %v9162_v17  ;;  %v5254_v12 = vsel %vm5249_vm0, %v11819_v28, %v7879_v19  ;;  %v8977_v28 = vld [vmem:[%s12083_s4 + $0xa0] sm:$0x1f]   ;;  %v6256_v19 = vadd.f32 %v6255_v54, %v11836_v56  ;;  %v6399_v56 = vstv %s8102_s22 }
 0xad9   :  { %v5255_v51 = vpack.c.bf16 %v5254_v12, %v5254_v12  ;;  %9083 = vpow2.f32 %v5539_v48  ;;  %v5428_v30 = vsel %vm602_vm2, %v8977_v28, 0  ;;  %v8992_v28 = vld [vmem:[%s12083_s4 + $0x118] sm:$0x1f]  }
 0xada   :  { %8281 = vmatmul.mubr.msk.bf16.vlgmr.msra.gmra.mrb[44].mxu0 %vm759_vm7, %v5111_v24  ;;  %9085 = vpow2.f32 %v5683_v59  ;;  %v6114_v24 = vmin.f32 %v6112_v60, 0.0  ;;  %v6258_v12 = vmin.f32 %v6256_v19, 0.0  ;;  %vm6257_vm9 = vcmp.gt.f32.partialorder %v6256_v19, 0.0 }
 0xadb   :  { %8285 = vmatpush3.bf16.msra.mxu0 %v8972_v27  ;;  %8290 = vmatprep.mubr.msk.bf16.mxu0 %vm9163_vm10, %v9162_v17  ;;  %v9082_v32 = vpop.eup %9081  ;;  %9087 = vpow2.f32 %v5827_v37  ;;  %v5860_v27 = vsel %vm602_vm2, %v8986_v55, 0  ;;  %v9002_v55 = vld [vmem:[%s12083_s4 + $0x168] sm:$0xff]  }
 0xadc   :  { %8286 = vmatprep.subr.bf16.mxu0 %v9162_v17  ;;  %v7907_v25 = vadd.f32 -1.0, %v9082_v32  ;;  %v6115_v5 = vmul.f32 1.442695, %v6114_v24  ;;  %v6259_v58 = vmul.f32 1.442695, %v6258_v12 }
 0xadd   :  { %v9004_v24 = vld [vmem:[%s12083_s4 + $0x178] sm:$0x1f]  }
 0xade   :  { %v5398_v26 = vsel %vm5393_vm1, %v5392_v3, %v7907_v25  ;;  %v5970_v3 = vmin.f32 %v5968_v57, 0.0 }
 0xadf   :  { %8287 = vmatpush3.bf16.msra.mxu0 %v8973_v7  ;;  %v5399_v21 = vpack.c.bf16 %v5398_v26, %v5398_v26 }
 0xae0   :  { %8288 = vmatprep.subr.bf16.mxu0 %v9162_v17  ;;  %v5971_v46 = vmul.f32 1.442695, %v5970_v3  ;;  %v8999_v3 = vld [vmem:[%s12083_s4 + $0x150] sm:$0xff]  }
 0xae2   :  { %9089 = vpow2.f32 %v5971_v46  ;;  %v9001_v46 = vld [vmem:[%s12083_s4 + $0x160] sm:$0x1f]  }
 0xae3   :  { %8289 = vmatpush3.bf16.msra.mxu0 %v5284_v53  ;;  %v9084_v31 = vpop.eup %9083  ;;  %9091 = vpow2.f32 %v6115_v5 }
 0xae4   :  { %8294 = vmatprep.subr.bf16.mxu0 %v9162_v17  ;;  %v7935_v0 = vadd.f32 -1.0, %v9084_v31  ;;  %v9086_v42 = vpop.eup %9085  ;;  %9093 = vpow2.f32 %v6259_v58  ;;  %v8994_v31 = vld [vmem:[%s12083_s4 + $0x128] sm:$0xff]  }
 0xae5   :  { %v7963_v15 = vadd.f32 -1.0, %v9086_v42  ;;  %v9088_v11 = vpop.eup %9087  ;;  %v8998_v42 = vld [vmem:[%s12083_s4 + $0x148] sm:$0x1f]  }
 0xae6   :  { %8291 = vmatmul.mubr.msk.bf16.vlgmr.msra.gmra.mrb[44].mxu0 %vm759_vm7, %v5255_v51  ;;  %v5542_v44 = vsel %vm5537_vm4, %v5536_v39, %v7935_v0  ;;  %v7991_v23 = vadd.f32 -1.0, %v9088_v11  ;;  %v8989_v39 = vld [vmem:[%s12083_s4 + $0x100] sm:$0x1f]   ;;  %v8990_v51 = vld [vmem:[%s12083_s4 + $0x108] sm:$0xff]   ;;  %v6580_v11 = vsel %vm602_vm2, %v9001_v46, 0 }
 0xae7   :  { %8295 = vmatpush3.bf16.msra.mxu0 %v8975_v6  ;;  %8300 = vmatprep.mubr.msk.bf16.mxu0 %vm9163_vm10, %v9162_v17  ;;  %v5543_v38 = vpack.c.bf16 %v5542_v44, %v5542_v44  ;;  %v5686_v20 = vsel %vm5681_vm5, %v5680_v13, %v7963_v15  ;;  %v6004_v49 = vsel %vm602_vm2, %v8989_v39, 0  ;;  %v6400_v13 = vadd.f32 %v6399_v56, %v11851_v33  ;;  %v8996_v44 = vld [vmem:[%s12083_s4 + $0x138] sm:$0xff]  }
 0xae8   :  { %8296 = vmatprep.subr.bf16.mxu0 %v9162_v17  ;;  %v5687_v4 = vpack.c.bf16 %v5686_v20, %v5686_v20  ;;  %v5830_v61 = vsel %vm5825_vm3, %v5824_v18, %v7991_v23  ;;  %v6543_v33 = vstv %s8130_s26 }
 0xae9   :  { %v5831_v16 = vpack.c.bf16 %v5830_v61, %v5830_v61  ;;  %v6402_v35 = vmin.f32 %v6400_v13, 0.0  ;;  %v6544_v34 = vadd.f32 %v6543_v33, %v11860_v50  ;;  %v6687_v50 = vstv %s8158_s3 }
 0xaea   :  { %vm6401_vm11 = vcmp.gt.f32.partialorder %v6400_v13, 0.0 }
 0xaeb   :  { %8297 = vmatpush3.bf16.msra.mxu0 %v8976_v29  ;;  %v8991_v29 = vld [vmem:[%s12083_s4 + $0x110] sm:$0xff]   ;;  %v6403_v59 = vmul.f32 1.442695, %v6402_v35  ;;  %vm6545_vm12 = vcmp.gt.f32.partialorder %v6544_v34, 0.0 }
 0xaec   :  { %8298 = vmatprep.subr.bf16.mxu0 %v9162_v17  ;;  %v9090_v7 = vpop.eup %9089 }
 0xaed   :  { %v8019_v53 = vadd.f32 -1.0, %v9090_v7  ;;  %v9092_v32 = vpop.eup %9091  ;;  %9095 = vpow2.f32 %v6403_v59 }
 0xaee   :  { %v8047_v25 = vadd.f32 -1.0, %v9092_v32  ;;  %v9094_v22 = vpop.eup %9093 }
 0xaef   :  { %8299 = vmatpush3.bf16.msra.mxu0 %v5428_v30  ;;  %v5974_v6 = vsel %vm5969_vm6, %v5968_v57, %v8019_v53  ;;  %v6148_v30 = vsel %vm602_vm2, %v8992_v28, 0  ;;  %v8075_v18 = vadd.f32 -1.0, %v9094_v22  ;;  %v6436_v57 = vsel %vm602_vm2, %v8998_v42, 0 }
 0xaf0   :  { %8304 = vmatprep.subr.bf16.mxu0 %v9162_v17  ;;  %v5975_v48 = vpack.c.bf16 %v5974_v6, %v5974_v6  ;;  %v6118_v26 = vsel %vm6113_vm8, %v6112_v60, %v8047_v25 }
 0xaf1   :  { %v6262_v36 = vsel %vm6257_vm9, %v6256_v19, %v8075_v18  ;;  %v7729_v19 = vld [vmem:[%s12084_s5] ss:$0 sm:$0xff] }
 0xaf2   :  { %8301 = vmatmul.mubr.msk.bf16.vlgmr.msra.gmra.mrb[44].mxu0 %vm759_vm7, %v5399_v21  ;;  %v6119_v21 = vpack.c.bf16 %v6118_v26, %v6118_v26 }
 0xaf3   :  { %8305 = vmatpush3.bf16.msra.mxu0 %v8978_v47  ;;  %8310 = vmatprep.mubr.msk.bf16.mxu0 %vm9163_vm10, %v9162_v17  ;;  %v8993_v47 = vld [vmem:[%s12083_s4 + $0x120] sm:$0xff]  }
 0xaf4   :  { %8306 = vmatprep.subr.bf16.mxu0 %v9162_v17 }
 0xaf7   :  { %8307 = vmatpush3.bf16.msra.mxu0 %v8979_v43  ;;  %v8995_v43 = vld [vmem:[%s12083_s4 + $0x130] sm:$0x1f]   ;;  %v9096_v37 = vpop.eup %9095 }
 0xaf8   :  { %8308 = vmatprep.subr.bf16.mxu0 %v9162_v17  ;;  %v6292_v0 = vsel %vm602_vm2, %v8995_v43, 0  ;;  %v8103_v9 = vadd.f32 -1.0, %v9096_v37 }
 0xafb   :  { %8309 = vmatpush3.bf16.msra.mxu0 %v5572_v14  ;;  %v6546_v14 = vmin.f32 %v6544_v34, 0.0 }
 0xafc   :  { %8314 = vmatprep.subr.bf16.mxu0 %v9162_v17 }
 0xafe   :  { %8311 = vmatmul.mubr.msk.bf16.vlgmr.msra.gmra.mrb[44].mxu0 %vm759_vm7, %v5543_v38  ;;  %v6547_v38 = vmul.f32 1.442695, %v6546_v14 }
 0xaff   :  { %8315 = vmatpush3.bf16.msra.mxu0 %v8981_v45  ;;  %8320 = vmatprep.mubr.msk.bf16.mxu0 %vm9163_vm10, %v9162_v17  ;;  %v6263_v45 = vpack.c.bf16 %v6262_v36, %v6262_v36 }
 0xb00   :  { %8316 = vmatprep.subr.bf16.mxu0 %v9162_v17  ;;  %9097 = vpow2.f32 %v6547_v38 }
 0xb03   :  { %8317 = vmatpush3.bf16.msra.mxu0 %v8982_v2  ;;  %v6688_v2 = vadd.f32 %v6687_v50, %v11863_v1  ;;  %v9000_v1 = vld [vmem:[%s12083_s4 + $0x158] sm:$0xff]  }
 0xb04   :  { %8318 = vmatprep.subr.bf16.mxu0 %v9162_v17 }
 0xb05   :  { %v6690_v15 = vmin.f32 %v6688_v2, 0.0  ;;  %vm6689_vm13 = vcmp.gt.f32.partialorder %v6688_v2, 0.0 }
 0xb07   :  { %8319 = vmatpush3.bf16.msra.mxu0 %v5716_v8  ;;  %v6406_v8 = vsel %vm6401_vm11, %v6400_v13, %v8103_v9 }
 0xb08   :  { %8324 = vmatprep.subr.bf16.mxu0 %v9162_v17  ;;  %v6407_v20 = vpack.c.bf16 %v6406_v8, %v6406_v8 }
 0xb0a   :  { %8321 = vmatmul.mubr.msk.bf16.vlgmr.msra.gmra.mrb[44].mxu0 %vm759_vm7, %v5687_v4  ;;  %v9098_v4 = vpop.eup %9097 }
 0xb0b   :  { %8325 = vmatpush3.bf16.msra.mxu0 %v8984_v41  ;;  %8330 = vmatprep.mubr.msk.bf16.mxu0 %vm9163_vm10, %v9162_v17  ;;  %v6691_v41 = vmul.f32 1.442695, %v6690_v15  ;;  %v8131_v10 = vadd.f32 -1.0, %v9098_v4 }
 0xb0c   :  { %8326 = vmatprep.subr.bf16.mxu0 %v9162_v17 }
 0xb0d   :  { %9099 = vpow2.f32 %v6691_v41 }
 0xb0f   :  { %8327 = vmatpush3.bf16.msra.mxu0 %v8985_v52  ;;  %v6550_v52 = vsel %vm6545_vm12, %v6544_v34, %v8131_v10 }
 0xb10   :  { %8328 = vmatprep.subr.bf16.mxu0 %v9162_v17  ;;  %v6551_v60 = vpack.c.bf16 %v6550_v52, %v6550_v52 }
 0xb13   :  { %8329 = vmatpush3.bf16.msra.mxu0 %v5860_v27  ;;  %v9003_v27 = vld [vmem:[%s12083_s4 + $0x170] sm:$0xff]  }
 0xb14   :  { %8334 = vmatprep.subr.bf16.mxu0 %v9162_v17 }
 0xb16   :  { %8331 = vmatmul.mubr.msk.bf16.vlgmr.msra.gmra.mrb[44].mxu0 %vm759_vm7, %v5831_v16 }
 0xb17   :  { %8335 = vmatpush3.bf16.msra.mxu0 %v8987_v62  ;;  %8340 = vmatprep.mubr.msk.bf16.mxu0 %vm9163_vm10, %v9162_v17  ;;  %v9100_v23 = vpop.eup %9099  ;;  %v6724_v62 = vsel %vm602_vm2, %v9004_v24, 0 }
 0xb18   :  { %8336 = vmatprep.subr.bf16.mxu0 %v9162_v17  ;;  %v8159_v61 = vadd.f32 -1.0, %v9100_v23 }
 0xb1a   :  { %v6694_v16 = vsel %vm6689_vm13, %v6688_v2, %v8159_v61 }
 0xb1b   :  { %8337 = vmatpush3.bf16.msra.mxu0 %v8988_v63  ;;  %v6695_v5 = vpack.c.bf16 %v6694_v16, %v6694_v16 }
 0xb1c   :  { %8338 = vmatprep.subr.bf16.mxu0 %v9162_v17 }
 0xb1f   :  { %8339 = vmatpush3.bf16.msra.mxu0 %v6004_v49 }
 0xb20   :  { %8344 = vmatprep.subr.bf16.mxu0 %v9162_v17 }
 0xb22   :  { %8341 = vmatmul.mubr.msk.bf16.vlgmr.msra.gmra.mrb[44].mxu0 %vm759_vm7, %v5975_v48 }
 0xb23   :  { %8345 = vmatpush3.bf16.msra.mxu0 %v8990_v51  ;;  %8350 = vmatprep.mubr.msk.bf16.mxu0 %vm9163_vm10, %v9162_v17 }
 0xb24   :  { %8346 = vmatprep.subr.bf16.mxu0 %v9162_v17 }
 0xb27   :  { %8347 = vmatpush3.bf16.msra.mxu0 %v8991_v29 }
 0xb28   :  { %8348 = vmatprep.subr.bf16.mxu0 %v9162_v17 }
 0xb2b   :  { %8349 = vmatpush3.bf16.msra.mxu0 %v6148_v30 }
 0xb2c   :  { %8354 = vmatprep.subr.bf16.mxu0 %v9162_v17 }
 0xb2e   :  { %8351 = vmatmul.mubr.msk.bf16.vlgmr.msra.gmra.mrb[44].mxu0 %vm759_vm7, %v6119_v21 }
 0xb2f   :  { %8355 = vmatpush3.bf16.msra.mxu0 %v8993_v47  ;;  %8360 = vmatprep.mubr.msk.bf16.mxu0 %vm9163_vm10, %v9162_v17 }
 0xb30   :  { %8356 = vmatprep.subr.bf16.mxu0 %v9162_v17 }
 0xb33   :  { %8357 = vmatpush3.bf16.msra.mxu0 %v8994_v31 }
 0xb34   :  { %8358 = vmatprep.subr.bf16.mxu0 %v9162_v17 }
 0xb37   :  { %8359 = vmatpush3.bf16.msra.mxu0 %v6292_v0 }
 0xb38   :  { %8364 = vmatprep.subr.bf16.mxu0 %v9162_v17 }
 0xb3a   :  { %8361 = vmatmul.mubr.msk.bf16.vlgmr.msra.gmra.mrb[44].mxu0 %vm759_vm7, %v6263_v45 }
 0xb3b   :  { %8365 = vmatpush3.bf16.msra.mxu0 %v8996_v44  ;;  %8370 = vmatprep.mubr.msk.bf16.mxu0 %vm9163_vm10, %v9162_v17 }
 0xb3c   :  { %8366 = vmatprep.subr.bf16.mxu0 %v9162_v17 }
 0xb3f   :  { %8367 = vmatpush3.bf16.msra.mxu0 %v8997_v40 }
 0xb40   :  { %8368 = vmatprep.subr.bf16.mxu0 %v9162_v17 }
 0xb43   :  { %8369 = vmatpush3.bf16.msra.mxu0 %v6436_v57 }
 0xb44   :  { %8374 = vmatprep.subr.bf16.mxu0 %v9162_v17 }
 0xb46   :  { %8371 = vmatmul.mubr.msk.bf16.vlgmr.msra.gmra.mrb[44].mxu0 %vm759_vm7, %v6407_v20 }
 0xb47   :  { %8375 = vmatpush3.bf16.msra.mxu0 %v8999_v3  ;;  %8380 = vmatprep.mubr.msk.bf16.mxu0 %vm9163_vm10, %v9162_v17 }
 0xb48   :  { %8376 = vmatprep.subr.bf16.mxu0 %v9162_v17 }
 0xb4b   :  { %8377 = vmatpush3.bf16.msra.mxu0 %v9000_v1 }
 0xb4c   :  { %8378 = vmatprep.subr.bf16.mxu0 %v9162_v17 }
 0xb4f   :  { %8379 = vmatpush3.bf16.msra.mxu0 %v6580_v11 }
 0xb50   :  { %8384 = vmatprep.subr.bf16.mxu0 %v9162_v17 }
 0xb52   :  { %8381 = vmatmul.mubr.msk.bf16.vlgmr.msra.gmra.mrb[44].mxu0 %vm759_vm7, %v6551_v60 }
 0xb53   :  { %8385 = vmatpush3.bf16.msra.mxu0 %v9002_v55  ;;  %8390 = vmatprep.mubr.msk.bf16.mxu0 %vm9163_vm10, %v9162_v17  ;;  %vm6767_vm10 = vcmask 39936  }
 0xb54   :  { %8386 = vmatprep.subr.bf16.mxu0 %v9162_v17 }
 0xb57   :  { %8387 = vmatpush3.bf16.msra.mxu0 %v9003_v27 }
 0xb58   :  { %8388 = vmatprep.subr.bf16.mxu0 %v9162_v17 }
 0xb5b   :  { %8389 = vmatpush3.bf16.msra.mxu0 %v6724_v62 }
 0xb5e   :  { %8391 = vmatmul.mubr.msk.bf16.vlgmr.msra.gmra.mrb[44].mxu0 %vm759_vm7, %v6695_v5 }
 0xba0   :  { %v4744_v54 = vpop.f32.mrb[84].mxu1 }
 0xba1   :  { %v8252_v7 = vpop.f32.mrb[85].mxu1  ;;  %v8394_v53 = vadd.f32 %v7729_v19, %v4744_v54 }
 0xba2   :  { %v4747_v63 = vpop.f32.mrb[86].mxu1 }
 0xba3   :  { %v8253_v39 = vpop.f32.mrb[87].mxu1 }
 0xc31   :  { %v6760_v49 = vpop.f32.mrb[44].mxu0 }
 0xc32   :  { %v8395_v17 = vadd.f32 %v8394_v53, %v6760_v49  ;;  %v8392_v12 = vpop.f32.mrb[45].mxu0 }
 0xc33   :  { %v6763_v6 = vpop.f32.mrb[46].mxu0 }
 0xc34   :  { %6768 = vst.msk [vmem:[%s12088_s9] sm:$0xff] %vm6767_vm10, %v8395_v17  ;;  %v8393_v51 = vpop.f32.mrb[47].mxu0 }
 0xc35   :  { %6773 = vsyncpa [#allocation5], 1 }
 0xc36   :  { %6774 = vsyncpa [#allocation7], 1 }

</bundles_post_ra>
